<compile_context>
chip_gen: v7x
topology: tpu7x:2x2x1
jax: 0.10.0
libtpu: 0.0.40
codegen_flags: <defaults>
</compile_context>

<pallas_src>
import functools

import jax
import jax.numpy as jnp
from jax import lax
from jax.experimental import pallas as pl
from jax.experimental.pallas import tpu as pltpu

LRELU_SLOPE = 0.2
IN_EPS = 1e-5
_LANE = 128


def _round_up(x, m):
    return (x + m - 1) // m * m


def _device_kind():
    try:
        return jax.devices()[0].device_kind.lower()
    except Exception:
        return ""


def _preferred_tn():
    # MXU-native N tile: 256 on v6e/v7x, 128 on v5e.
    return 128 if "v5" in _device_kind() else 256


def _vmem_limit_bytes():
    kind = _device_kind()
    if "v5" in kind or "v6" in kind:
        return 100 << 20          # 128 MiB physical VMEM on v5e/v6e
    return 48 << 20               # safe for v7x's 64 MiB VMEM (and unknown gens)


# ----------------------------- Pallas kernel ------------------------------

def _conv_fused_kernel(x_ref, w_ref, o_ref, *, taps, tap_w, win, out_m, cs,
                       oh, ow, fold_k, mode, eps, slope):
    """Direct conv (k-folded or per-tap MXU matmuls) with fused epilogue.

    x_ref: (1, Lf, Cs)        bf16 flattened (padded-H x Ws) rows x channels
    w_ref: (taps*Cs, tn)      bf16 weight slab (tap-major rows)
    o_ref: (1, out_m, tn)     bf16/f32; out_m = OH * Ws (cols >= OW are garbage,
                              sliced by the caller; masked out of the IN stats)
    mode: "none" | "lrelu" | "in_lrelu"
    """
    if fold_k:
        # One MXU dot over K = taps*Cs (MXU accumulates internally; no f32
        # per-tap accumulate adds on the VALU, no MRF pop chain per tap).
        parts = []
        for t in range(taps):
            shift = (t // tap_w) * win + (t % tap_w)
            parts.append(x_ref[0, shift:shift + out_m, :])
        xk = jnp.concatenate(parts, axis=-1)                    # (out_m, taps*Cs) bf16
        acc = jnp.dot(xk, w_ref[...], preferred_element_type=jnp.float32)
    else:
        acc = None
        for t in range(taps):                                   # short fixed trip -> unrolled
            shift = (t // tap_w) * win + (t % tap_w)
            xt = x_ref[0, shift:shift + out_m, :]               # bf16 already
            wt = w_ref[t * cs:(t + 1) * cs, :]
            d = jnp.dot(xt, wt, preferred_element_type=jnp.float32)
            acc = d if acc is None else acc + d                 # init from first tap

    if mode == "in_lrelu":
        # Fused InstanceNorm2d (no affine, biased var) + LeakyReLU(0.2).
        # Stats are complete per block (whole image x tn channel slice resident);
        # garbage columns (>= OW) are masked out of the statistics.
        tn = acc.shape[-1]
        a3 = acc.reshape(oh, win, tn)                           # win is a multiple of 8
        col = lax.broadcasted_iota(jnp.int32, a3.shape, 1)
        valid = (col < ow).astype(jnp.float32)
        inv_cnt = 1.0 / float(oh * ow)
        s1 = jnp.sum(a3 * valid, axis=(0, 1), keepdims=True)    # sum
        s2 = jnp.sum(a3 * a3 * valid, axis=(0, 1), keepdims=True)  # sum of squares
        mean = s1 * inv_cnt
        var = jnp.maximum(s2 * inv_cnt - mean * mean, 0.0)
        y = (a3 - mean) * lax.rsqrt(var + eps)
        y = jnp.where(y >= 0, y, slope * y)
        acc = y.reshape(out_m, tn)
    elif mode == "lrelu":
        acc = jnp.where(acc >= 0, acc, slope * acc)

    o_ref[0] = acc.astype(o_ref.dtype)


# ------------------------------ glue / wrappers -----------------------------

def _space_to_depth2(xp):
    # [N, Hp, Wp, C] -> [N, Hp/2, Wp/2, 4C], channel order (ph, pw, c)
    N, Hp, Wp, C = xp.shape
    assert Hp % 2 == 0 and Wp % 2 == 0
    x = xp.reshape(N, Hp // 2, 2, Wp // 2, 2, C)
    x = jnp.transpose(x, (0, 1, 3, 2, 4, 5))
    return x.reshape(N, Hp // 2, Wp // 2, 4 * C)


def conv2d_pallas(x_nhwc, w_hwio, *, stride, pad, mode, out_dtype):
    """Conv2d (PyTorch cross-correlation semantics), k=4, stride in {1,2},
    fused LeakyReLU / InstanceNorm+LeakyReLU epilogue."""
    N, H, W, Cin = x_nhwc.shape
    KH, KW, _, OC = w_hwio.shape
    assert (KH, KW) == (4, 4) and stride in (1, 2)
    OH = (H + 2 * pad - KH) // stride + 1
    OW = (W + 2 * pad - KW) // stride + 1

    x = x_nhwc.astype(jnp.bfloat16)        # bf16 activation path (half the HBM bytes)

    if stride == 2:
        Hp, Wp = H + 2 * pad, W + 2 * pad
        Ws = (Wp + (Wp % 2)) // 2          # space-to-depth width
        Ws_pad = _round_up(Ws, 8)          # sublane-aligned flat row width
        # single pad pass: left/top conv pad, even extents for s2d, +2 bottom rows
        # (= +1 s2d halo row for the flat-shifted reads), width alignment.
        pad_b = pad + (Hp % 2) + 2
        pad_r = pad + (Wp % 2) + 2 * (Ws_pad - Ws)
        xp = jnp.pad(x, ((0, 0), (pad, pad_b), (pad, pad_r), (0, 0)))
        xs = _space_to_depth2(xp)          # [N, Hs, Ws_pad, 4*Cin] -> stride-1 2x2 conv
        taps, tap_w = 4, 2
        # w[kh,kw,ci,co], kh = 2*rh+ph, kw = 2*rw+pw  ->  w_t[(rh,rw), (ph,pw,ci), co]
        w_t = jnp.transpose(w_hwio.reshape(2, 2, 2, 2, Cin, OC),
                            (0, 2, 1, 3, 4, 5)).reshape(taps, 4 * Cin, OC)
    else:
        Wp = W + 2 * pad
        Ws_pad = _round_up(Wp, 8)
        # single pad pass: conv pad + 1 halo row + width alignment
        xs = jnp.pad(x, ((0, 0), (pad, pad + 1), (pad, pad + (Ws_pad - Wp)), (0, 0)))
        taps, tap_w = KH * KW, KW
        w_t = w_hwio.reshape(taps, Cin, OC)

    _, Hs1, Wsf, Cs = xs.shape
    assert Wsf == Ws_pad
    Lf = Hs1 * Ws_pad
    xf = xs.reshape(N, Lf, Cs)             # bf16 activations in HBM

    Mfull = OH * Ws_pad                    # full-width output rows; cols >= OW are garbage
    taps_h = taps // tap_w
    assert (taps_h - 1) * Ws_pad + (tap_w - 1) + Mfull <= Lf  # all flat reads in bounds

    # lane-dense output channels: pad OC up to a multiple of 128, slice back after
    OCp = _round_up(OC, _LANE)
    if OCp != OC:
        w_t = jnp.pad(w_t, ((0, 0), (0, 0), (0, OCp - OC)))
    Kfold = taps * Cs
    w_t = w_t.reshape(Kfold, OCp).astype(jnp.bfloat16)   # bf16 weights in HBM

    tn = min(_preferred_tn(), OCp)
    if OCp % tn:
        tn = _LANE
    n_oc = OCp // tn
    fold_k = (Cs % _LANE == 0)             # lane-aligned concat only (layers 2-5)

    kernel = functools.partial(
        _conv_fused_kernel, taps=taps, tap_w=tap_w, win=Ws_pad, out_m=Mfull, cs=Cs,
        oh=OH, ow=OW, fold_k=fold_k, mode=mode, eps=IN_EPS, slope=LRELU_SLOPE)

    out_bytes = jnp.dtype(out_dtype).itemsize
    flops = 2 * N * Mfull * Kfold * OCp
    bytes_accessed = (N * Lf * Cs * 2 * n_oc            # bf16 activation read per OC block
                      + Kfold * OCp * 2                  # bf16 weights (resident across batch)
                      + N * Mfull * OCp * out_bytes)     # output write

    # TODO(synk): for large per-image spatial extents (e.g. >256x256 early layers) the
    # whole-image block (activation + K-folded operand + f32 accumulator) exceeds the
    # per-generation VMEM budget; that needs a spatial grid axis with overlapping halo
    # windows fed via pl.ANY + pltpu.make_async_copy.
    out = pl.pallas_call(
        kernel,
        out_shape=jax.ShapeDtypeStruct((N, Mfull, OCp), out_dtype),
        grid_spec=pltpu.PrefetchScalarGridSpec(
            num_scalar_prefetch=0,
            # OC slowest, batch fastest: weight block index is independent of n, so the
            # (multi-MB for layer_4/5) weight tile stays resident across the batch sweep.
            grid=(n_oc, N),
            in_specs=[
                pl.BlockSpec((1, Lf, Cs), lambda j, n: (n, 0, 0)),
                pl.BlockSpec((Kfold, tn), lambda j, n: (0, j)),
            ],
            out_specs=pl.BlockSpec((1, Mfull, tn), lambda j, n: (n, 0, j)),
        ),
        compiler_params=pltpu.CompilerParams(
            dimension_semantics=("parallel", "parallel"),   # megacore sharding on v7x
            vmem_limit_bytes=_vmem_limit_bytes(),
        ),
        cost_estimate=pl.CostEstimate(
            flops=flops,
            transcendentals=(N * OCp if mode == "in_lrelu" else 0),
            bytes_accessed=bytes_accessed),
    )(xf, w_t)

    return out.reshape(N, OH, Ws_pad, OCp)[:, :, :OW, :OC]


# ------------------------------- Discriminator ------------------------------

def init_discriminator_params(key, in_ch):
    def conv_w(k, kh, kw, cin, cout):
        fan_in = kh * kw * cin
        return jax.random.normal(k, (kh, kw, cin, cout), jnp.float32) / jnp.sqrt(fan_in)

    keys = jax.random.split(key, 8)
    return {
        "w1": conv_w(keys[0], 4, 4, in_ch, 64),     # layer_1 conv (bias=False)
        "w2": conv_w(keys[1], 4, 4, 64, 128),       # layer_2 conv
        "b2": 0.01 * jax.random.normal(keys[2], (128,), jnp.float32),
        "w3": conv_w(keys[3], 4, 4, 128, 256),      # layer_3 conv
        "b3": 0.01 * jax.random.normal(keys[4], (256,), jnp.float32),
        "w4": conv_w(keys[5], 4, 4, 256, 512),      # layer_4 conv
        "b4": 0.01 * jax.random.normal(keys[6], (512,), jnp.float32),
        "w5": conv_w(keys[7], 4, 4, 512, 64),       # last_conv (bias=False)
    }


def discriminator_forward(params, x_nchw):
    """x_nchw: [N, in_ch, H, W] (PyTorch NCHW). Returns [N, 64, H', W'] in NCHW."""
    x = jnp.transpose(x_nchw, (0, 2, 3, 1)).astype(jnp.float32)   # -> NHWC

    # layer_1: Conv(in,64,k4,s2,p1,bias=False) + LeakyReLU(0.2)           (fused)
    h = conv2d_pallas(x, params["w1"], stride=2, pad=1, mode="lrelu",
                      out_dtype=jnp.bfloat16)
    # layer_2..4: Conv + InstanceNorm2d + LeakyReLU(0.2)                  (all fused)
    # (conv bias b2/b3/b4 is skipped: it cancels exactly under the non-affine InstanceNorm)
    h = conv2d_pallas(h, params["w2"], stride=2, pad=1, mode="in_lrelu",
                      out_dtype=jnp.bfloat16)
    h = conv2d_pallas(h, params["w3"], stride=2, pad=1, mode="in_lrelu",
                      out_dtype=jnp.bfloat16)
    h = conv2d_pallas(h, params["w4"], stride=1, pad=2, mode="in_lrelu",
                      out_dtype=jnp.bfloat16)
    # last_conv: Conv(512,64,k4,s1,p2,bias=False)
    h = conv2d_pallas(h, params["w5"], stride=1, pad=2, mode="none",
                      out_dtype=jnp.float32)
    return jnp.transpose(h, (0, 3, 1, 2))   # back to NCHW


# ------------------------------ pure-JAX reference ---------------------------

def _ref_conv(x, w, b, stride, pad, bf16_matmul):
    if bf16_matmul:
        x = x.astype(jnp.bfloat16)
        w = w.astype(jnp.bfloat16)
    out = lax.conv_general_dilated(
        x, w, window_strides=(stride, stride),
        padding=((pad, pad), (pad, pad)),
        dimension_numbers=("NHWC", "HWIO", "NHWC"),
        preferred_element_type=jnp.float32)
    if b is not None:
        out = out + b
    return out


def _ref_lrelu(x):
    return jnp.where(x >= 0, x, LRELU_SLOPE * x)


def _ref_inorm(x):
    m = jnp.mean(x, axis=(1, 2), keepdims=True)
    v = jnp.mean((x - m) ** 2, axis=(1, 2), keepdims=True)
    return (x - m) * lax.rsqrt(v + IN_EPS)


def discriminator_ref(params, x_nchw, bf16_matmul=False):
    x = jnp.transpose(x_nchw, (0, 2, 3, 1)).astype(jnp.float32)
    h = _ref_lrelu(_ref_conv(x, params["w1"], None, 2, 1, bf16_matmul))
    h = _ref_lrelu(_ref_inorm(_ref_conv(h, params["w2"], params["b2"], 2, 1, bf16_matmul)))
    h = _ref_lrelu(_ref_inorm(_ref_conv(h, params["w3"], params["b3"], 2, 1, bf16_matmul)))
    h = _ref_lrelu(_ref_inorm(_ref_conv(h, params["w4"], params["b4"], 1, 2, bf16_matmul)))
    h = _ref_conv(h, params["w5"], None, 1, 2, bf16_matmul)
    return jnp.transpose(h, (0, 3, 1, 2))


# ----------------------------------- main ------------------------------------

if __name__ == "__main__":
    key = jax.random.PRNGKey(0)
    k_param, k_x = jax.random.split(key)

    in_ch = 4
    x = jax.random.normal(k_x, (2, in_ch, 16, 16), jnp.float32)   # NCHW, like PyTorch
    params = init_discriminator_params(k_param, in_ch)

    fwd = jax.jit(discriminator_forward)
    out = jax.block_until_ready(fwd(params, x))

    assert out.shape == (2, 64, 4, 4), out.shape
    assert bool(jnp.all(jnp.isfinite(out)))

    # Tight check vs a same-math reference (bf16 conv operands, f32 accumulation),
    # and a looser check vs the exact f32 reference (bounds the bf16 drift over 5 layers;
    # the f32 reference also keeps the b2/b3/b4 biases that InstanceNorm cancels).
    ref_bf16 = discriminator_ref(params, x, bf16_matmul=True)
    ref_f32 = discriminator_ref(params, x, bf16_matmul=False)

    err_bf16 = float(jnp.max(jnp.abs(out - ref_bf16)))
    err_f32 = float(jnp.max(jnp.abs(out - ref_f32)))
    assert jnp.allclose(out, ref_bf16, rtol=2e-2, atol=2e-2), err_bf16
    assert jnp.allclose(out, ref_f32, rtol=1e-1, atol=1e-1), err_f32

    print("KERNEL_OK")
</pallas_src>

<mosaic_0001>
module attributes {stable_mosaic.version = 11 : i64} {
  func.func @_conv_fused_kernel(%arg0: i32, %arg1: i32, %arg2: memref<1x160x16xbf16, #tpu.memory_space<vmem>>, %arg3: memref<64x128xbf16, #tpu.memory_space<vmem>>, %arg4: memref<1x128x128xbf16, #tpu.memory_space<vmem>>) attributes {dimension_semantics = [#tpu.dimension_semantics<parallel>, #tpu.dimension_semantics<parallel>], iteration_bounds = array<i64: 1, 2>, scalar_prefetch = 0 : i64, scratch_operands = 0 : i64, tpu.core_type = #tpu.core_type<tc>, window_params = [{transform_indices = @transform_0, window_bounds = array<i64: 1, 160, 16>}, {transform_indices = @transform_1, window_bounds = array<i64: 64, 128>}, {transform_indices = @transform_2, window_bounds = array<i64: 1, 128, 128>}]} {
    %c0 = arith.constant 0 : index
    %c0_0 = arith.constant 0 : index
    %c0_1 = arith.constant 0 : index
    %0 = vector.load %arg2[%c0, %c0_0, %c0_1] : memref<1x160x16xbf16, #tpu.memory_space<vmem>>, vector<1x128x16xbf16>
    %1 = vector.shape_cast %0 : vector<1x128x16xbf16> to vector<128x16xbf16>
    %c0_2 = arith.constant 0 : index
    %c0_3 = arith.constant 0 : index
    %2 = vector.load %arg3[%c0_2, %c0_3] : memref<64x128xbf16, #tpu.memory_space<vmem>>, vector<16x128xbf16>
    %cst = arith.constant dense<0.000000e+00> : vector<128x128xf32>
    %3 = tpu.matmul %1, %2, %cst {dimension_numbers = #tpu.dot_dimension_numbers<[1], [0], [0], [1], [0, 0, 1, 1], [], []>} : vector<128x16xbf16>, vector<16x128xbf16>, vector<128x128xf32> -> vector<128x128xf32>
    %c0_4 = arith.constant 0 : index
    %c1 = arith.constant 1 : index
    %c0_5 = arith.constant 0 : index
    %4 = vector.load %arg2[%c0_4, %c1, %c0_5] : memref<1x160x16xbf16, #tpu.memory_space<vmem>>, vector<1x128x16xbf16>
    %5 = vector.shape_cast %4 : vector<1x128x16xbf16> to vector<128x16xbf16>
    %c16 = arith.constant 16 : index
    %c0_6 = arith.constant 0 : index
    %6 = vector.load %arg3[%c16, %c0_6] : memref<64x128xbf16, #tpu.memory_space<vmem>>, vector<16x128xbf16>
    %cst_7 = arith.constant dense<0.000000e+00> : vector<128x128xf32>
    %7 = tpu.matmul %5, %6, %cst_7 {dimension_numbers = #tpu.dot_dimension_numbers<[1], [0], [0], [1], [0, 0, 1, 1], [], []>} : vector<128x16xbf16>, vector<16x128xbf16>, vector<128x128xf32> -> vector<128x128xf32>
    %8 = arith.addf %3, %7 : vector<128x128xf32>
    %c0_8 = arith.constant 0 : index
    %c16_9 = arith.constant 16 : index
    %c0_10 = arith.constant 0 : index
    %9 = vector.load %arg2[%c0_8, %c16_9, %c0_10] : memref<1x160x16xbf16, #tpu.memory_space<vmem>>, vector<1x128x16xbf16>
    %10 = vector.shape_cast %9 : vector<1x128x16xbf16> to vector<128x16xbf16>
    %c32 = arith.constant 32 : index
    %c0_11 = arith.constant 0 : index
    %11 = vector.load %arg3[%c32, %c0_11] : memref<64x128xbf16, #tpu.memory_space<vmem>>, vector<16x128xbf16>
    %cst_12 = arith.constant dense<0.000000e+00> : vector<128x128xf32>
    %12 = tpu.matmul %10, %11, %cst_12 {dimension_numbers = #tpu.dot_dimension_numbers<[1], [0], [0], [1], [0, 0, 1, 1], [], []>} : vector<128x16xbf16>, vector<16x128xbf16>, vector<128x128xf32> -> vector<128x128xf32>
    %13 = arith.addf %8, %12 : vector<128x128xf32>
    %c0_13 = arith.constant 0 : index
    %c17 = arith.constant 17 : index
    %c0_14 = arith.constant 0 : index
    %14 = vector.load %arg2[%c0_13, %c17, %c0_14] : memref<1x160x16xbf16, #tpu.memory_space<vmem>>, vector<1x128x16xbf16>
    %15 = vector.shape_cast %14 : vector<1x128x16xbf16> to vector<128x16xbf16>
    %c48 = arith.constant 48 : index
    %c0_15 = arith.constant 0 : index
    %16 = vector.load %arg3[%c48, %c0_15] : memref<64x128xbf16, #tpu.memory_space<vmem>>, vector<16x128xbf16>
    %cst_16 = arith.constant dense<0.000000e+00> : vector<128x128xf32>
    %17 = tpu.matmul %15, %16, %cst_16 {dimension_numbers = #tpu.dot_dimension_numbers<[1], [0], [0], [1], [0, 0, 1, 1], [], []>} : vector<128x16xbf16>, vector<16x128xbf16>, vector<128x128xf32> -> vector<128x128xf32>
    %18 = arith.addf %13, %17 : vector<128x128xf32>
    %cst_17 = arith.constant 0.000000e+00 : f32
    %19 = vector.broadcast %cst_17 : f32 to vector<128x128xf32>
    %20 = arith.cmpf oge, %18, %19 : vector<128x128xf32>
    %cst_18 = arith.constant 2.000000e-01 : f32
    %21 = vector.broadcast %cst_18 : f32 to vector<128x128xf32>
    %22 = arith.mulf %21, %18 : vector<128x128xf32>
    %23 = arith.select %20, %18, %22 : vector<128x128xi1>, vector<128x128xf32>
    %24 = arith.truncf %23 : vector<128x128xf32> to vector<128x128xbf16>
    %c0_19 = arith.constant 0 : index
    %c0_20 = arith.constant 0 : index
    %c0_21 = arith.constant 0 : index
    %25 = vector.load %arg4[%c0_19, %c0_20, %c0_21] : memref<1x128x128xbf16, #tpu.memory_space<vmem>>, vector<1x128x128xbf16>
    %26 = vector.shape_cast %25 : vector<1x128x128xbf16> to vector<128x128xbf16>
    %27 = vector.shape_cast %24 : vector<128x128xbf16> to vector<1x128x128xbf16>
    tpu.vector_store %arg4[%c0_19, %c0_20, %c0_21], %27 {strides = array<i32>} : memref<1x128x128xbf16, #tpu.memory_space<vmem>>, vector<1x128x128xbf16>,
    return
  }
  func.func @transform_0(%arg0: i32, %arg1: i32) -> (i32, i32, i32) {
    %c0_i32 = arith.constant 0 : i32
    %c0_i32_0 = arith.constant 0 : i32
    %c0_i32_1 = arith.constant 0 : i32
    return %arg1, %c0_i32, %c0_i32_0 : i32, i32, i32
  }
  func.func @transform_1(%arg0: i32, %arg1: i32) -> (i32, i32) {
    %c0_i32 = arith.constant 0 : i32
    %c0_i32_0 = arith.constant 0 : i32
    return %c0_i32, %arg0 : i32, i32
  }
  func.func @transform_2(%arg0: i32, %arg1: i32) -> (i32, i32, i32) {
    %c0_i32 = arith.constant 0 : i32
    %c0_i32_0 = arith.constant 0 : i32
    return %arg1, %c0_i32, %arg0 : i32, i32, i32
  }
}

module attributes {stable_mosaic.version = 11 : i64} {
  func.func @_conv_fused_kernel(%arg0: i32, %arg1: i32, %arg2: memref<1x48x256xbf16, #tpu.memory_space<vmem>>, %arg3: memref<1024x128xbf16, #tpu.memory_space<vmem>>, %arg4: memref<1x32x128xbf16, #tpu.memory_space<vmem>>) attributes {dimension_semantics = [#tpu.dimension_semantics<parallel>, #tpu.dimension_semantics<parallel>], iteration_bounds = array<i64: 1, 2>, scalar_prefetch = 0 : i64, scratch_operands = 0 : i64, tpu.core_type = #tpu.core_type<tc>, window_params = [{transform_indices = @transform_0, window_bounds = array<i64: 1, 48, 256>}, {transform_indices = @transform_1, window_bounds = array<i64: 1024, 128>}, {transform_indices = @transform_2, window_bounds = array<i64: 1, 32, 128>}]} {
    %c0 = arith.constant 0 : index
    %c0_0 = arith.constant 0 : index
    %c0_1 = arith.constant 0 : index
    %0 = vector.load %arg2[%c0, %c0_0, %c0_1] : memref<1x48x256xbf16, #tpu.memory_space<vmem>>, vector<1x32x256xbf16>
    %1 = vector.shape_cast %0 : vector<1x32x256xbf16> to vector<32x256xbf16>
    %c0_2 = arith.constant 0 : index
    %c1 = arith.constant 1 : index
    %c0_3 = arith.constant 0 : index
    %2 = vector.load %arg2[%c0_2, %c1, %c0_3] : memref<1x48x256xbf16, #tpu.memory_space<vmem>>, vector<1x32x256xbf16>
    %3 = vector.shape_cast %2 : vector<1x32x256xbf16> to vector<32x256xbf16>
    %c0_4 = arith.constant 0 : index
    %c8 = arith.constant 8 : index
    %c0_5 = arith.constant 0 : index
    %4 = vector.load %arg2[%c0_4, %c8, %c0_5] : memref<1x48x256xbf16, #tpu.memory_space<vmem>>, vector<1x32x256xbf16>
    %5 = vector.shape_cast %4 : vector<1x32x256xbf16> to vector<32x256xbf16>
    %c0_6 = arith.constant 0 : index
    %c9 = arith.constant 9 : index
    %c0_7 = arith.constant 0 : index
    %6 = vector.load %arg2[%c0_6, %c9, %c0_7] : memref<1x48x256xbf16, #tpu.memory_space<vmem>>, vector<1x32x256xbf16>
    %7 = vector.shape_cast %6 : vector<1x32x256xbf16> to vector<32x256xbf16>
    %8 = tpu.concatenate %1, %3, %5, %7 in 1 : vector<32x256xbf16>, vector<32x256xbf16>, vector<32x256xbf16>, vector<32x256xbf16> -> vector<32x1024xbf16>
    %c0_8 = arith.constant 0 : index
    %c0_9 = arith.constant 0 : index
    %9 = vector.load %arg3[%c0_8, %c0_9] : memref<1024x128xbf16, #tpu.memory_space<vmem>>, vector<1024x128xbf16>
    %cst = arith.constant dense<0.000000e+00> : vector<32x128xf32>
    %10 = tpu.matmul %8, %9, %cst {dimension_numbers = #tpu.dot_dimension_numbers<[1], [0], [0], [1], [0, 0, 1, 1], [], []>} : vector<32x1024xbf16>, vector<1024x128xbf16>, vector<32x128xf32> -> vector<32x128xf32>
    %11 = vector.shape_cast %10 : vector<32x128xf32> to vector<4x8x128xf32>
    %12 = tpu.iota {dimensions = array<i32: 1>} : vector<4x8x128xi32>
    %c4_i32 = arith.constant 4 : i32
    %13 = vector.broadcast %c4_i32 : i32 to vector<4x8x128xi32>
    %14 = arith.cmpi slt, %12, %13 : vector<4x8x128xi32>
    %15 = arith.extui %14 : vector<4x8x128xi1> to vector<4x8x128xi32>
    %16 = arith.sitofp %15 : vector<4x8x128xi32> to vector<4x8x128xf32>
    %17 = arith.mulf %11, %16 : vector<4x8x128xf32>
    %cst_10 = arith.constant dense<0.000000e+00> : vector<128xf32>
    %18 = vector.multi_reduction <add>, %17, %cst_10 [0, 1] : vector<4x8x128xf32> to vector<128xf32>
    %19 = vector.shape_cast %18 : vector<128xf32> to vector<1x1x128xf32>
    %20 = arith.mulf %11, %11 : vector<4x8x128xf32>
    %21 = arith.mulf %20, %16 : vector<4x8x128xf32>
    %cst_11 = arith.constant dense<0.000000e+00> : vector<128xf32>
    %22 = vector.multi_reduction <add>, %21, %cst_11 [0, 1] : vector<4x8x128xf32> to vector<128xf32>
    %23 = vector.shape_cast %22 : vector<128xf32> to vector<1x1x128xf32>
    %cst_12 = arith.constant 6.250000e-02 : f32
    %24 = vector.broadcast %cst_12 : f32 to vector<1x1x128xf32>
    %25 = arith.mulf %19, %24 : vector<1x1x128xf32>
    %cst_13 = arith.constant 6.250000e-02 : f32
    %26 = vector.broadcast %cst_13 : f32 to vector<1x1x128xf32>
    %27 = arith.mulf %23, %26 : vector<1x1x128xf32>
    %28 = arith.mulf %25, %25 : vector<1x1x128xf32>
    %29 = arith.subf %27, %28 : vector<1x1x128xf32>
    %cst_14 = arith.constant 0.000000e+00 : f32
    %30 = vector.broadcast %cst_14 : f32 to vector<1x1x128xf32>
    %31 = arith.maximumf %29, %30 : vector<1x1x128xf32>
    %32 = vector.broadcast %25 : vector<1x1x128xf32> to vector<4x8x128xf32>
    %33 = arith.subf %11, %32 : vector<4x8x128xf32>
    %cst_15 = arith.constant 9.99999974E-6 : f32
    %34 = vector.broadcast %cst_15 : f32 to vector<1x1x128xf32>
    %35 = arith.addf %31, %34 : vector<1x1x128xf32>
    %36 = math.rsqrt %35 : vector<1x1x128xf32>
    %37 = vector.broadcast %36 : vector<1x1x128xf32> to vector<4x8x128xf32>
    %38 = arith.mulf %33, %37 : vector<4x8x128xf32>
    %cst_16 = arith.constant 0.000000e+00 : f32
    %39 = vector.broadcast %cst_16 : f32 to vector<4x8x128xf32>
    %40 = arith.cmpf oge, %38, %39 : vector<4x8x128xf32>
    %cst_17 = arith.constant 2.000000e-01 : f32
    %41 = vector.broadcast %cst_17 : f32 to vector<4x8x128xf32>
    %42 = arith.mulf %41, %38 : vector<4x8x128xf32>
    %43 = arith.select %40, %38, %42 : vector<4x8x128xi1>, vector<4x8x128xf32>
    %44 = vector.shape_cast %43 : vector<4x8x128xf32> to vector<32x128xf32>
    %45 = arith.truncf %44 : vector<32x128xf32> to vector<32x128xbf16>
    %c0_18 = arith.constant 0 : index
    %c0_19 = arith.constant 0 : index
    %c0_20 = arith.constant 0 : index
    %46 = vector.load %arg4[%c0_18, %c0_19, %c0_20] : memref<1x32x128xbf16, #tpu.memory_space<vmem>>, vector<1x32x128xbf16>
    %47 = vector.shape_cast %46 : vector<1x32x128xbf16> to vector<32x128xbf16>
    %48 = vector.shape_cast %45 : vector<32x128xbf16> to vector<1x32x128xbf16>
    tpu.vector_store %arg4[%c0_18, %c0_19, %c0_20], %48 {strides = array<i32>} : memref<1x32x128xbf16, #tpu.memory_space<vmem>>, vector<1x32x128xbf16>,
    return
  }
  func.func @transform_0(%arg0: i32, %arg1: i32) -> (i32, i32, i32) {
    %c0_i32 = arith.constant 0 : i32
    %c0_i32_0 = arith.constant 0 : i32
    %c0_i32_1 = arith.constant 0 : i32
    return %arg1, %c0_i32, %c0_i32_0 : i32, i32, i32
  }
  func.func @transform_1(%arg0: i32, %arg1: i32) -> (i32, i32) {
    %c0_i32 = arith.constant 0 : i32
    %c0_i32_0 = arith.constant 0 : i32
    return %c0_i32, %arg0 : i32, i32
  }
  func.func @transform_2(%arg0: i32, %arg1: i32) -> (i32, i32, i32) {
    %c0_i32 = arith.constant 0 : i32
    %c0_i32_0 = arith.constant 0 : i32
    return %arg1, %c0_i32, %arg0 : i32, i32, i32
  }
}

module attributes {stable_mosaic.version = 11 : i64} {
  func.func @_conv_fused_kernel(%arg0: i32, %arg1: i32, %arg2: memref<1x32x512xbf16, #tpu.memory_space<vmem>>, %arg3: memref<2048x256xbf16, #tpu.memory_space<vmem>>, %arg4: memref<1x16x256xbf16, #tpu.memory_space<vmem>>) attributes {dimension_semantics = [#tpu.dimension_semantics<parallel>, #tpu.dimension_semantics<parallel>], iteration_bounds = array<i64: 1, 2>, scalar_prefetch = 0 : i64, scratch_operands = 0 : i64, tpu.core_type = #tpu.core_type<tc>, window_params = [{transform_indices = @transform_0, window_bounds = array<i64: 1, 32, 512>}, {transform_indices = @transform_1, window_bounds = array<i64: 2048, 256>}, {transform_indices = @transform_2, window_bounds = array<i64: 1, 16, 256>}]} {
    %c0 = arith.constant 0 : index
    %c0_0 = arith.constant 0 : index
    %c0_1 = arith.constant 0 : index
    %0 = vector.load %arg2[%c0, %c0_0, %c0_1] : memref<1x32x512xbf16, #tpu.memory_space<vmem>>, vector<1x16x512xbf16>
    %1 = vector.shape_cast %0 : vector<1x16x512xbf16> to vector<16x512xbf16>
    %c0_2 = arith.constant 0 : index
    %c1 = arith.constant 1 : index
    %c0_3 = arith.constant 0 : index
    %2 = vector.load %arg2[%c0_2, %c1, %c0_3] : memref<1x32x512xbf16, #tpu.memory_space<vmem>>, vector<1x16x512xbf16>
    %3 = vector.shape_cast %2 : vector<1x16x512xbf16> to vector<16x512xbf16>
    %c0_4 = arith.constant 0 : index
    %c8 = arith.constant 8 : index
    %c0_5 = arith.constant 0 : index
    %4 = vector.load %arg2[%c0_4, %c8, %c0_5] : memref<1x32x512xbf16, #tpu.memory_space<vmem>>, vector<1x16x512xbf16>
    %5 = vector.shape_cast %4 : vector<1x16x512xbf16> to vector<16x512xbf16>
    %c0_6 = arith.constant 0 : index
    %c9 = arith.constant 9 : index
    %c0_7 = arith.constant 0 : index
    %6 = vector.load %arg2[%c0_6, %c9, %c0_7] : memref<1x32x512xbf16, #tpu.memory_space<vmem>>, vector<1x16x512xbf16>
    %7 = vector.shape_cast %6 : vector<1x16x512xbf16> to vector<16x512xbf16>
    %8 = tpu.concatenate %1, %3, %5, %7 in 1 : vector<16x512xbf16>, vector<16x512xbf16>, vector<16x512xbf16>, vector<16x512xbf16> -> vector<16x2048xbf16>
    %c0_8 = arith.constant 0 : index
    %c0_9 = arith.constant 0 : index
    %9 = vector.load %arg3[%c0_8, %c0_9] : memref<2048x256xbf16, #tpu.memory_space<vmem>>, vector<2048x256xbf16>
    %cst = arith.constant dense<0.000000e+00> : vector<16x256xf32>
    %10 = tpu.matmul %8, %9, %cst {dimension_numbers = #tpu.dot_dimension_numbers<[1], [0], [0], [1], [0, 0, 1, 1], [], []>} : vector<16x2048xbf16>, vector<2048x256xbf16>, vector<16x256xf32> -> vector<16x256xf32>
    %11 = vector.shape_cast %10 : vector<16x256xf32> to vector<2x8x256xf32>
    %12 = tpu.iota {dimensions = array<i32: 1>} : vector<2x8x256xi32>
    %c2_i32 = arith.constant 2 : i32
    %13 = vector.broadcast %c2_i32 : i32 to vector<2x8x256xi32>
    %14 = arith.cmpi slt, %12, %13 : vector<2x8x256xi32>
    %15 = arith.extui %14 : vector<2x8x256xi1> to vector<2x8x256xi32>
    %16 = arith.sitofp %15 : vector<2x8x256xi32> to vector<2x8x256xf32>
    %17 = arith.mulf %11, %16 : vector<2x8x256xf32>
    %cst_10 = arith.constant dense<0.000000e+00> : vector<256xf32>
    %18 = vector.multi_reduction <add>, %17, %cst_10 [0, 1] : vector<2x8x256xf32> to vector<256xf32>
    %19 = vector.shape_cast %18 : vector<256xf32> to vector<1x1x256xf32>
    %20 = arith.mulf %11, %11 : vector<2x8x256xf32>
    %21 = arith.mulf %20, %16 : vector<2x8x256xf32>
    %cst_11 = arith.constant dense<0.000000e+00> : vector<256xf32>
    %22 = vector.multi_reduction <add>, %21, %cst_11 [0, 1] : vector<2x8x256xf32> to vector<256xf32>
    %23 = vector.shape_cast %22 : vector<256xf32> to vector<1x1x256xf32>
    %cst_12 = arith.constant 2.500000e-01 : f32
    %24 = vector.broadcast %cst_12 : f32 to vector<1x1x256xf32>
    %25 = arith.mulf %19, %24 : vector<1x1x256xf32>
    %cst_13 = arith.constant 2.500000e-01 : f32
    %26 = vector.broadcast %cst_13 : f32 to vector<1x1x256xf32>
    %27 = arith.mulf %23, %26 : vector<1x1x256xf32>
    %28 = arith.mulf %25, %25 : vector<1x1x256xf32>
    %29 = arith.subf %27, %28 : vector<1x1x256xf32>
    %cst_14 = arith.constant 0.000000e+00 : f32
    %30 = vector.broadcast %cst_14 : f32 to vector<1x1x256xf32>
    %31 = arith.maximumf %29, %30 : vector<1x1x256xf32>
    %32 = vector.broadcast %25 : vector<1x1x256xf32> to vector<2x8x256xf32>
    %33 = arith.subf %11, %32 : vector<2x8x256xf32>
    %cst_15 = arith.constant 9.99999974E-6 : f32
    %34 = vector.broadcast %cst_15 : f32 to vector<1x1x256xf32>
    %35 = arith.addf %31, %34 : vector<1x1x256xf32>
    %36 = math.rsqrt %35 : vector<1x1x256xf32>
    %37 = vector.broadcast %36 : vector<1x1x256xf32> to vector<2x8x256xf32>
    %38 = arith.mulf %33, %37 : vector<2x8x256xf32>
    %cst_16 = arith.constant 0.000000e+00 : f32
    %39 = vector.broadcast %cst_16 : f32 to vector<2x8x256xf32>
    %40 = arith.cmpf oge, %38, %39 : vector<2x8x256xf32>
    %cst_17 = arith.constant 2.000000e-01 : f32
    %41 = vector.broadcast %cst_17 : f32 to vector<2x8x256xf32>
    %42 = arith.mulf %41, %38 : vector<2x8x256xf32>
    %43 = arith.select %40, %38, %42 : vector<2x8x256xi1>, vector<2x8x256xf32>
    %44 = vector.shape_cast %43 : vector<2x8x256xf32> to vector<16x256xf32>
    %45 = arith.truncf %44 : vector<16x256xf32> to vector<16x256xbf16>
    %c0_18 = arith.constant 0 : index
    %c0_19 = arith.constant 0 : index
    %c0_20 = arith.constant 0 : index
    %46 = vector.load %arg4[%c0_18, %c0_19, %c0_20] : memref<1x16x256xbf16, #tpu.memory_space<vmem>>, vector<1x16x256xbf16>
    %47 = vector.shape_cast %46 : vector<1x16x256xbf16> to vector<16x256xbf16>
    %48 = vector.shape_cast %45 : vector<16x256xbf16> to vector<1x16x256xbf16>
    tpu.vector_store %arg4[%c0_18, %c0_19, %c0_20], %48 {strides = array<i32>} : memref<1x16x256xbf16, #tpu.memory_space<vmem>>, vector<1x16x256xbf16>,
    return
  }
  func.func @transform_0(%arg0: i32, %arg1: i32) -> (i32, i32, i32) {
    %c0_i32 = arith.constant 0 : i32
    %c0_i32_0 = arith.constant 0 : i32
    %c0_i32_1 = arith.constant 0 : i32
    return %arg1, %c0_i32, %c0_i32_0 : i32, i32, i32
  }
  func.func @transform_1(%arg0: i32, %arg1: i32) -> (i32, i32) {
    %c0_i32 = arith.constant 0 : i32
    %c0_i32_0 = arith.constant 0 : i32
    return %c0_i32, %arg0 : i32, i32
  }
  func.func @transform_2(%arg0: i32, %arg1: i32) -> (i32, i32, i32) {
    %c0_i32 = arith.constant 0 : i32
    %c0_i32_0 = arith.constant 0 : i32
    return %arg1, %c0_i32, %arg0 : i32, i32, i32
  }
}

module attributes {stable_mosaic.version = 11 : i64} {
  func.func @_conv_fused_kernel(%arg0: i32, %arg1: i32, %arg2: memref<1x56x256xbf16, #tpu.memory_space<vmem>>, %arg3: memref<4096x256xbf16, #tpu.memory_space<vmem>>, %arg4: memref<1x24x256xbf16, #tpu.memory_space<vmem>>) attributes {dimension_semantics = [#tpu.dimension_semantics<parallel>, #tpu.dimension_semantics<parallel>], iteration_bounds = array<i64: 2, 2>, scalar_prefetch = 0 : i64, scratch_operands = 0 : i64, tpu.core_type = #tpu.core_type<tc>, window_params = [{transform_indices = @transform_0, window_bounds = array<i64: 1, 56, 256>}, {transform_indices = @transform_1, window_bounds = array<i64: 4096, 256>}, {transform_indices = @transform_2, window_bounds = array<i64: 1, 24, 256>}]} {
    %c0 = arith.constant 0 : index
    %c0_0 = arith.constant 0 : index
    %c0_1 = arith.constant 0 : index
    %0 = vector.load %arg2[%c0, %c0_0, %c0_1] : memref<1x56x256xbf16, #tpu.memory_space<vmem>>, vector<1x24x256xbf16>
    %1 = vector.shape_cast %0 : vector<1x24x256xbf16> to vector<24x256xbf16>
    %c0_2 = arith.constant 0 : index
    %c1 = arith.constant 1 : index
    %c0_3 = arith.constant 0 : index
    %2 = vector.load %arg2[%c0_2, %c1, %c0_3] : memref<1x56x256xbf16, #tpu.memory_space<vmem>>, vector<1x24x256xbf16>
    %3 = vector.shape_cast %2 : vector<1x24x256xbf16> to vector<24x256xbf16>
    %c0_4 = arith.constant 0 : index
    %c2 = arith.constant 2 : index
    %c0_5 = arith.constant 0 : index
    %4 = vector.load %arg2[%c0_4, %c2, %c0_5] : memref<1x56x256xbf16, #tpu.memory_space<vmem>>, vector<1x24x256xbf16>
    %5 = vector.shape_cast %4 : vector<1x24x256xbf16> to vector<24x256xbf16>
    %c0_6 = arith.constant 0 : index
    %c3 = arith.constant 3 : index
    %c0_7 = arith.constant 0 : index
    %6 = vector.load %arg2[%c0_6, %c3, %c0_7] : memref<1x56x256xbf16, #tpu.memory_space<vmem>>, vector<1x24x256xbf16>
    %7 = vector.shape_cast %6 : vector<1x24x256xbf16> to vector<24x256xbf16>
    %c0_8 = arith.constant 0 : index
    %c8 = arith.constant 8 : index
    %c0_9 = arith.constant 0 : index
    %8 = vector.load %arg2[%c0_8, %c8, %c0_9] : memref<1x56x256xbf16, #tpu.memory_space<vmem>>, vector<1x24x256xbf16>
    %9 = vector.shape_cast %8 : vector<1x24x256xbf16> to vector<24x256xbf16>
    %c0_10 = arith.constant 0 : index
    %c9 = arith.constant 9 : index
    %c0_11 = arith.constant 0 : index
    %10 = vector.load %arg2[%c0_10, %c9, %c0_11] : memref<1x56x256xbf16, #tpu.memory_space<vmem>>, vector<1x24x256xbf16>
    %11 = vector.shape_cast %10 : vector<1x24x256xbf16> to vector<24x256xbf16>
    %c0_12 = arith.constant 0 : index
    %c10 = arith.constant 10 : index
    %c0_13 = arith.constant 0 : index
    %12 = vector.load %arg2[%c0_12, %c10, %c0_13] : memref<1x56x256xbf16, #tpu.memory_space<vmem>>, vector<1x24x256xbf16>
    %13 = vector.shape_cast %12 : vector<1x24x256xbf16> to vector<24x256xbf16>
    %c0_14 = arith.constant 0 : index
    %c11 = arith.constant 11 : index
    %c0_15 = arith.constant 0 : index
    %14 = vector.load %arg2[%c0_14, %c11, %c0_15] : memref<1x56x256xbf16, #tpu.memory_space<vmem>>, vector<1x24x256xbf16>
    %15 = vector.shape_cast %14 : vector<1x24x256xbf16> to vector<24x256xbf16>
    %c0_16 = arith.constant 0 : index
    %c16 = arith.constant 16 : index
    %c0_17 = arith.constant 0 : index
    %16 = vector.load %arg2[%c0_16, %c16, %c0_17] : memref<1x56x256xbf16, #tpu.memory_space<vmem>>, vector<1x24x256xbf16>
    %17 = vector.shape_cast %16 : vector<1x24x256xbf16> to vector<24x256xbf16>
    %c0_18 = arith.constant 0 : index
    %c17 = arith.constant 17 : index
    %c0_19 = arith.constant 0 : index
    %18 = vector.load %arg2[%c0_18, %c17, %c0_19] : memref<1x56x256xbf16, #tpu.memory_space<vmem>>, vector<1x24x256xbf16>
    %19 = vector.shape_cast %18 : vector<1x24x256xbf16> to vector<24x256xbf16>
    %c0_20 = arith.constant 0 : index
    %c18 = arith.constant 18 : index
    %c0_21 = arith.constant 0 : index
    %20 = vector.load %arg2[%c0_20, %c18, %c0_21] : memref<1x56x256xbf16, #tpu.memory_space<vmem>>, vector<1x24x256xbf16>
    %21 = vector.shape_cast %20 : vector<1x24x256xbf16> to vector<24x256xbf16>
    %c0_22 = arith.constant 0 : index
    %c19 = arith.constant 19 : index
    %c0_23 = arith.constant 0 : index
    %22 = vector.load %arg2[%c0_22, %c19, %c0_23] : memref<1x56x256xbf16, #tpu.memory_space<vmem>>, vector<1x24x256xbf16>
    %23 = vector.shape_cast %22 : vector<1x24x256xbf16> to vector<24x256xbf16>
    %c0_24 = arith.constant 0 : index
    %c24 = arith.constant 24 : index
    %c0_25 = arith.constant 0 : index
    %24 = vector.load %arg2[%c0_24, %c24, %c0_25] : memref<1x56x256xbf16, #tpu.memory_space<vmem>>, vector<1x24x256xbf16>
    %25 = vector.shape_cast %24 : vector<1x24x256xbf16> to vector<24x256xbf16>
    %c0_26 = arith.constant 0 : index
    %c25 = arith.constant 25 : index
    %c0_27 = arith.constant 0 : index
    %26 = vector.load %arg2[%c0_26, %c25, %c0_27] : memref<1x56x256xbf16, #tpu.memory_space<vmem>>, vector<1x24x256xbf16>
    %27 = vector.shape_cast %26 : vector<1x24x256xbf16> to vector<24x256xbf16>
    %c0_28 = arith.constant 0 : index
    %c26 = arith.constant 26 : index
    %c0_29 = arith.constant 0 : index
    %28 = vector.load %arg2[%c0_28, %c26, %c0_29] : memref<1x56x256xbf16, #tpu.memory_space<vmem>>, vector<1x24x256xbf16>
    %29 = vector.shape_cast %28 : vector<1x24x256xbf16> to vector<24x256xbf16>
    %c0_30 = arith.constant 0 : index
    %c27 = arith.constant 27 : index
    %c0_31 = arith.constant 0 : index
    %30 = vector.load %arg2[%c0_30, %c27, %c0_31] : memref<1x56x256xbf16, #tpu.memory_space<vmem>>, vector<1x24x256xbf16>
    %31 = vector.shape_cast %30 : vector<1x24x256xbf16> to vector<24x256xbf16>
    %32 = tpu.concatenate %1, %3, %5, %7, %9, %11, %13, %15, %17, %19, %21, %23, %25, %27, %29, %31 in 1 : vector<24x256xbf16>, vector<24x256xbf16>, vector<24x256xbf16>, vector<24x256xbf16>, vector<24x256xbf16>, vector<24x256xbf16>, vector<24x256xbf16>, vector<24x256xbf16>, vector<24x256xbf16>, vector<24x256xbf16>, vector<24x256xbf16>, vector<24x256xbf16>, vector<24x256xbf16>, vector<24x256xbf16>, vector<24x256xbf16>, vector<24x256xbf16> -> vector<24x4096xbf16>
    %c0_32 = arith.constant 0 : index
    %c0_33 = arith.constant 0 : index
    %33 = vector.load %arg3[%c0_32, %c0_33] : memref<4096x256xbf16, #tpu.memory_space<vmem>>, vector<4096x256xbf16>
    %cst = arith.constant dense<0.000000e+00> : vector<24x256xf32>
    %34 = tpu.matmul %32, %33, %cst {dimension_numbers = #tpu.dot_dimension_numbers<[1], [0], [0], [1], [0, 0, 1, 1], [], []>} : vector<24x4096xbf16>, vector<4096x256xbf16>, vector<24x256xf32> -> vector<24x256xf32>
    %35 = vector.shape_cast %34 : vector<24x256xf32> to vector<3x8x256xf32>
    %36 = tpu.iota {dimensions = array<i32: 1>} : vector<3x8x256xi32>
    %c3_i32 = arith.constant 3 : i32
    %37 = vector.broadcast %c3_i32 : i32 to vector<3x8x256xi32>
    %38 = arith.cmpi slt, %36, %37 : vector<3x8x256xi32>
    %39 = arith.extui %38 : vector<3x8x256xi1> to vector<3x8x256xi32>
    %40 = arith.sitofp %39 : vector<3x8x256xi32> to vector<3x8x256xf32>
    %41 = arith.mulf %35, %40 : vector<3x8x256xf32>
    %cst_34 = arith.constant dense<0.000000e+00> : vector<256xf32>
    %42 = vector.multi_reduction <add>, %41, %cst_34 [0, 1] : vector<3x8x256xf32> to vector<256xf32>
    %43 = vector.shape_cast %42 : vector<256xf32> to vector<1x1x256xf32>
    %44 = arith.mulf %35, %35 : vector<3x8x256xf32>
    %45 = arith.mulf %44, %40 : vector<3x8x256xf32>
    %cst_35 = arith.constant dense<0.000000e+00> : vector<256xf32>
    %46 = vector.multi_reduction <add>, %45, %cst_35 [0, 1] : vector<3x8x256xf32> to vector<256xf32>
    %47 = vector.shape_cast %46 : vector<256xf32> to vector<1x1x256xf32>
    %cst_36 = arith.constant 0.111111112 : f32
    %48 = vector.broadcast %cst_36 : f32 to vector<1x1x256xf32>
    %49 = arith.mulf %43, %48 : vector<1x1x256xf32>
    %cst_37 = arith.constant 0.111111112 : f32
    %50 = vector.broadcast %cst_37 : f32 to vector<1x1x256xf32>
    %51 = arith.mulf %47, %50 : vector<1x1x256xf32>
    %52 = arith.mulf %49, %49 : vector<1x1x256xf32>
    %53 = arith.subf %51, %52 : vector<1x1x256xf32>
    %cst_38 = arith.constant 0.000000e+00 : f32
    %54 = vector.broadcast %cst_38 : f32 to vector<1x1x256xf32>
    %55 = arith.maximumf %53, %54 : vector<1x1x256xf32>
    %56 = vector.broadcast %49 : vector<1x1x256xf32> to vector<3x8x256xf32>
    %57 = arith.subf %35, %56 : vector<3x8x256xf32>
    %cst_39 = arith.constant 9.99999974E-6 : f32
    %58 = vector.broadcast %cst_39 : f32 to vector<1x1x256xf32>
    %59 = arith.addf %55, %58 : vector<1x1x256xf32>
    %60 = math.rsqrt %59 : vector<1x1x256xf32>
    %61 = vector.broadcast %60 : vector<1x1x256xf32> to vector<3x8x256xf32>
    %62 = arith.mulf %57, %61 : vector<3x8x256xf32>
    %cst_40 = arith.constant 0.000000e+00 : f32
    %63 = vector.broadcast %cst_40 : f32 to vector<3x8x256xf32>
    %64 = arith.cmpf oge, %62, %63 : vector<3x8x256xf32>
    %cst_41 = arith.constant 2.000000e-01 : f32
    %65 = vector.broadcast %cst_41 : f32 to vector<3x8x256xf32>
    %66 = arith.mulf %65, %62 : vector<3x8x256xf32>
    %67 = arith.select %64, %62, %66 : vector<3x8x256xi1>, vector<3x8x256xf32>
    %68 = vector.shape_cast %67 : vector<3x8x256xf32> to vector<24x256xf32>
    %69 = arith.truncf %68 : vector<24x256xf32> to vector<24x256xbf16>
    %c0_42 = arith.constant 0 : index
    %c0_43 = arith.constant 0 : index
    %c0_44 = arith.constant 0 : index
    %70 = vector.load %arg4[%c0_42, %c0_43, %c0_44] : memref<1x24x256xbf16, #tpu.memory_space<vmem>>, vector<1x24x256xbf16>
    %71 = vector.shape_cast %70 : vector<1x24x256xbf16> to vector<24x256xbf16>
    %72 = vector.shape_cast %69 : vector<24x256xbf16> to vector<1x24x256xbf16>
    tpu.vector_store %arg4[%c0_42, %c0_43, %c0_44], %72 {strides = array<i32>} : memref<1x24x256xbf16, #tpu.memory_space<vmem>>, vector<1x24x256xbf16>,
    return
  }
  func.func @transform_0(%arg0: i32, %arg1: i32) -> (i32, i32, i32) {
    %c0_i32 = arith.constant 0 : i32
    %c0_i32_0 = arith.constant 0 : i32
    %c0_i32_1 = arith.constant 0 : i32
    return %arg1, %c0_i32, %c0_i32_0 : i32, i32, i32
  }
  func.func @transform_1(%arg0: i32, %arg1: i32) -> (i32, i32) {
    %c0_i32 = arith.constant 0 : i32
    %c0_i32_0 = arith.constant 0 : i32
    return %c0_i32, %arg0 : i32, i32
  }
  func.func @transform_2(%arg0: i32, %arg1: i32) -> (i32, i32, i32) {
    %c0_i32 = arith.constant 0 : i32
    %c0_i32_0 = arith.constant 0 : i32
    return %arg1, %c0_i32, %arg0 : i32, i32, i32
  }
}

module attributes {stable_mosaic.version = 11 : i64} {
  func.func @_conv_fused_kernel(%arg0: i32, %arg1: i32, %arg2: memref<1x64x512xbf16, #tpu.memory_space<vmem>>, %arg3: memref<8192x128xbf16, #tpu.memory_space<vmem>>, %arg4: memref<1x32x128xf32, #tpu.memory_space<vmem>>) attributes {dimension_semantics = [#tpu.dimension_semantics<parallel>, #tpu.dimension_semantics<parallel>], iteration_bounds = array<i64: 1, 2>, scalar_prefetch = 0 : i64, scratch_operands = 0 : i64, tpu.core_type = #tpu.core_type<tc>, window_params = [{transform_indices = @transform_0, window_bounds = array<i64: 1, 64, 512>}, {transform_indices = @transform_1, window_bounds = array<i64: 8192, 128>}, {transform_indices = @transform_2, window_bounds = array<i64: 1, 32, 128>}]} {
    %c0 = arith.constant 0 : index
    %c0_0 = arith.constant 0 : index
    %c0_1 = arith.constant 0 : index
    %0 = vector.load %arg2[%c0, %c0_0, %c0_1] : memref<1x64x512xbf16, #tpu.memory_space<vmem>>, vector<1x32x512xbf16>
    %1 = vector.shape_cast %0 : vector<1x32x512xbf16> to vector<32x512xbf16>
    %c0_2 = arith.constant 0 : index
    %c1 = arith.constant 1 : index
    %c0_3 = arith.constant 0 : index
    %2 = vector.load %arg2[%c0_2, %c1, %c0_3] : memref<1x64x512xbf16, #tpu.memory_space<vmem>>, vector<1x32x512xbf16>
    %3 = vector.shape_cast %2 : vector<1x32x512xbf16> to vector<32x512xbf16>
    %c0_4 = arith.constant 0 : index
    %c2 = arith.constant 2 : index
    %c0_5 = arith.constant 0 : index
    %4 = vector.load %arg2[%c0_4, %c2, %c0_5] : memref<1x64x512xbf16, #tpu.memory_space<vmem>>, vector<1x32x512xbf16>
    %5 = vector.shape_cast %4 : vector<1x32x512xbf16> to vector<32x512xbf16>
    %c0_6 = arith.constant 0 : index
    %c3 = arith.constant 3 : index
    %c0_7 = arith.constant 0 : index
    %6 = vector.load %arg2[%c0_6, %c3, %c0_7] : memref<1x64x512xbf16, #tpu.memory_space<vmem>>, vector<1x32x512xbf16>
    %7 = vector.shape_cast %6 : vector<1x32x512xbf16> to vector<32x512xbf16>
    %c0_8 = arith.constant 0 : index
    %c8 = arith.constant 8 : index
    %c0_9 = arith.constant 0 : index
    %8 = vector.load %arg2[%c0_8, %c8, %c0_9] : memref<1x64x512xbf16, #tpu.memory_space<vmem>>, vector<1x32x512xbf16>
    %9 = vector.shape_cast %8 : vector<1x32x512xbf16> to vector<32x512xbf16>
    %c0_10 = arith.constant 0 : index
    %c9 = arith.constant 9 : index
    %c0_11 = arith.constant 0 : index
    %10 = vector.load %arg2[%c0_10, %c9, %c0_11] : memref<1x64x512xbf16, #tpu.memory_space<vmem>>, vector<1x32x512xbf16>
    %11 = vector.shape_cast %10 : vector<1x32x512xbf16> to vector<32x512xbf16>
    %c0_12 = arith.constant 0 : index
    %c10 = arith.constant 10 : index
    %c0_13 = arith.constant 0 : index
    %12 = vector.load %arg2[%c0_12, %c10, %c0_13] : memref<1x64x512xbf16, #tpu.memory_space<vmem>>, vector<1x32x512xbf16>
    %13 = vector.shape_cast %12 : vector<1x32x512xbf16> to vector<32x512xbf16>
    %c0_14 = arith.constant 0 : index
    %c11 = arith.constant 11 : index
    %c0_15 = arith.constant 0 : index
    %14 = vector.load %arg2[%c0_14, %c11, %c0_15] : memref<1x64x512xbf16, #tpu.memory_space<vmem>>, vector<1x32x512xbf16>
    %15 = vector.shape_cast %14 : vector<1x32x512xbf16> to vector<32x512xbf16>
    %c0_16 = arith.constant 0 : index
    %c16 = arith.constant 16 : index
    %c0_17 = arith.constant 0 : index
    %16 = vector.load %arg2[%c0_16, %c16, %c0_17] : memref<1x64x512xbf16, #tpu.memory_space<vmem>>, vector<1x32x512xbf16>
    %17 = vector.shape_cast %16 : vector<1x32x512xbf16> to vector<32x512xbf16>
    %c0_18 = arith.constant 0 : index
    %c17 = arith.constant 17 : index
    %c0_19 = arith.constant 0 : index
    %18 = vector.load %arg2[%c0_18, %c17, %c0_19] : memref<1x64x512xbf16, #tpu.memory_space<vmem>>, vector<1x32x512xbf16>
    %19 = vector.shape_cast %18 : vector<1x32x512xbf16> to vector<32x512xbf16>
    %c0_20 = arith.constant 0 : index
    %c18 = arith.constant 18 : index
    %c0_21 = arith.constant 0 : index
    %20 = vector.load %arg2[%c0_20, %c18, %c0_21] : memref<1x64x512xbf16, #tpu.memory_space<vmem>>, vector<1x32x512xbf16>
    %21 = vector.shape_cast %20 : vector<1x32x512xbf16> to vector<32x512xbf16>
    %c0_22 = arith.constant 0 : index
    %c19 = arith.constant 19 : index
    %c0_23 = arith.constant 0 : index
    %22 = vector.load %arg2[%c0_22, %c19, %c0_23] : memref<1x64x512xbf16, #tpu.memory_space<vmem>>, vector<1x32x512xbf16>
    %23 = vector.shape_cast %22 : vector<1x32x512xbf16> to vector<32x512xbf16>
    %c0_24 = arith.constant 0 : index
    %c24 = arith.constant 24 : index
    %c0_25 = arith.constant 0 : index
    %24 = vector.load %arg2[%c0_24, %c24, %c0_25] : memref<1x64x512xbf16, #tpu.memory_space<vmem>>, vector<1x32x512xbf16>
    %25 = vector.shape_cast %24 : vector<1x32x512xbf16> to vector<32x512xbf16>
    %c0_26 = arith.constant 0 : index
    %c25 = arith.constant 25 : index
    %c0_27 = arith.constant 0 : index
    %26 = vector.load %arg2[%c0_26, %c25, %c0_27] : memref<1x64x512xbf16, #tpu.memory_space<vmem>>, vector<1x32x512xbf16>
    %27 = vector.shape_cast %26 : vector<1x32x512xbf16> to vector<32x512xbf16>
    %c0_28 = arith.constant 0 : index
    %c26 = arith.constant 26 : index
    %c0_29 = arith.constant 0 : index
    %28 = vector.load %arg2[%c0_28, %c26, %c0_29] : memref<1x64x512xbf16, #tpu.memory_space<vmem>>, vector<1x32x512xbf16>
    %29 = vector.shape_cast %28 : vector<1x32x512xbf16> to vector<32x512xbf16>
    %c0_30 = arith.constant 0 : index
    %c27 = arith.constant 27 : index
    %c0_31 = arith.constant 0 : index
    %30 = vector.load %arg2[%c0_30, %c27, %c0_31] : memref<1x64x512xbf16, #tpu.memory_space<vmem>>, vector<1x32x512xbf16>
    %31 = vector.shape_cast %30 : vector<1x32x512xbf16> to vector<32x512xbf16>
    %32 = tpu.concatenate %1, %3, %5, %7, %9, %11, %13, %15, %17, %19, %21, %23, %25, %27, %29, %31 in 1 : vector<32x512xbf16>, vector<32x512xbf16>, vector<32x512xbf16>, vector<32x512xbf16>, vector<32x512xbf16>, vector<32x512xbf16>, vector<32x512xbf16>, vector<32x512xbf16>, vector<32x512xbf16>, vector<32x512xbf16>, vector<32x512xbf16>, vector<32x512xbf16>, vector<32x512xbf16>, vector<32x512xbf16>, vector<32x512xbf16>, vector<32x512xbf16> -> vector<32x8192xbf16>
    %c0_32 = arith.constant 0 : index
    %c0_33 = arith.constant 0 : index
    %33 = vector.load %arg3[%c0_32, %c0_33] : memref<8192x128xbf16, #tpu.memory_space<vmem>>, vector<8192x128xbf16>
    %cst = arith.constant dense<0.000000e+00> : vector<32x128xf32>
    %34 = tpu.matmul %32, %33, %cst {dimension_numbers = #tpu.dot_dimension_numbers<[1], [0], [0], [1], [0, 0, 1, 1], [], []>} : vector<32x8192xbf16>, vector<8192x128xbf16>, vector<32x128xf32> -> vector<32x128xf32>
    %c0_34 = arith.constant 0 : index
    %c0_35 = arith.constant 0 : index
    %c0_36 = arith.constant 0 : index
    %35 = vector.load %arg4[%c0_34, %c0_35, %c0_36] : memref<1x32x128xf32, #tpu.memory_space<vmem>>, vector<1x32x128xf32>
    %36 = vector.shape_cast %35 : vector<1x32x128xf32> to vector<32x128xf32>
    %37 = vector.shape_cast %34 : vector<32x128xf32> to vector<1x32x128xf32>
    tpu.vector_store %arg4[%c0_34, %c0_35, %c0_36], %37 {strides = array<i32>} : memref<1x32x128xf32, #tpu.memory_space<vmem>>, vector<1x32x128xf32>,
    return
  }
  func.func @transform_0(%arg0: i32, %arg1: i32) -> (i32, i32, i32) {
    %c0_i32 = arith.constant 0 : i32
    %c0_i32_0 = arith.constant 0 : i32
    %c0_i32_1 = arith.constant 0 : i32
    return %arg1, %c0_i32, %c0_i32_0 : i32, i32, i32
  }
  func.func @transform_1(%arg0: i32, %arg1: i32) -> (i32, i32) {
    %c0_i32 = arith.constant 0 : i32
    %c0_i32_0 = arith.constant 0 : i32
    return %c0_i32, %arg0 : i32, i32
  }
  func.func @transform_2(%arg0: i32, %arg1: i32) -> (i32, i32, i32) {
    %c0_i32 = arith.constant 0 : i32
    %c0_i32_0 = arith.constant 0 : i32
    return %arg1, %c0_i32, %arg0 : i32, i32, i32
  }
}

</mosaic_0001>

<bundles_post_ra>
// kernel: discriminator_forward.5
= control target key start
LH: loop header
LB: loop body
LE: loop exit
PB: predicated region body
PF: predicated region fallthrough
CT: control target
= control target key end

     0   :  { %s1660_s9 = smov 0   ;;  %s1662_s10 = smov 0   ;;  %s1835_s0 = inlined_call_operand.vmem [shape: bf16[2,160,16], index: 0, kind: input, shape index: {}]   ;;  %s1836_s1 = inlined_call_operand.vmem [shape: bf16[64,128], index: 1, kind: input, shape index: {}]   ;;  %s1837_s2 = inlined_call_operand.vmem [shape: bf16[2,128,128], index: 2, kind: output, shape index: {}]  }
   0x1   :  { %s1664_s11 = smov 0  }
   0x2 LB: > { %s21_s12 = sadd.s32 1, %s1639_s10  ;;  %p1262_p0 = scmp.ge.s32.totalorder %s1643_s11, 1  ;;  %s1643_s11 = sphi %s1664_s11, %s12_s11   ;;  %s1639_s10 = sphi %s1662_s10, %s1839_s10   ;;  %s1635_s9 = sphi %s1660_s9, %s1838_s9  }
   0x3   : > { %p22_p1 = scmp.ge.s32.totalorder %s21_s12, 2  ;;  %p135_p2 = scmp.lt.s32.totalorder %s1643_s11, 3 }
   0x5   : > { %s1841_s12 = smov (%p22_p1, %s21_s12), 0  ;;  %p136_p3 = pnand %p1262_p0, %p135_p2 }
   0x6   : > { %v1591_v0 = vld [vmem:[%s1836_s1 + $0x10] sm:$0xff] (!%p136_p3)   ;;  %p164_p4 = scmp.lt.s32.totalorder (!%p136_p3), %s1635_s9, 1  ;;  %v1594_v1 = vld [vmem:[%s1836_s1 + $0x8] sm:$0xff] (!%p136_p3)   ;;  %v1597_v2 = vld [vmem:[%s1836_s1] sm:$0xff] (!%p136_p3)   ;;  %vm321_vm0 = vcmask (!%p136_p3), 130048  }
   0x7   : > { %139 = sbr.rel (%p136_p3) target bundleno = 306 (0x132), region = 28  ;;  %1482 = vmatprep.subr.bf16.mxu0 (!%p136_p3), %v1591_v0  ;;  %1446 = vmatprep.subr.bf16.mxu1 (!%p136_p3), %v1594_v1  ;;  %v1598_v3 = vld [vmem:[%s1836_s1 + $0x18] sm:$0xff] (!%p136_p3)   ;;  %vm246_vm1 = vsmask.f32 (!%p136_p3), 7424 }
   0x8   : > { %1483 = vmatpush3.bf16.msra.mxu0 (!%p136_p3), %v1591_v0  ;;  %1447 = vmatpush3.bf16.msra.mxu1 (!%p136_p3), %v1594_v1 }
   0x9   : > { %1464 = vmatprep.subr.bf16.mxu1 (!%p136_p3), %v1597_v2  ;;  %1500 = vmatprep.subr.bf16.mxu0 (!%p136_p3), %v1598_v3 }
   0xe   : > { %s1843_s9 = smov (!%p164_p4, %s1635_s9), 1 }
   0xf   : > { %s1566_s19 = smul.u32 80, %s1843_s9  ;;  %s1346_s25 = sshll.u32 %s1843_s9, 6 }
  0x10   : > { %s1816_s28 = scalar_lea.vmem %s1837_s2, %s1346_s25 }
  0x11   : > { %s1696_s24 = scalar_lea.vmem %s1835_s0, %s1566_s19 }
  0x12   : > { %v1592_v4 = vld [vmem:[%s1696_s24 + $0x8] sm:$0xff]   ;;  %v1593_v5 = vld [vmem:[%s1696_s24 + $0x10] sm:$0xff]   ;;  %v1703_v6 = vld [vmem:[%s1696_s24] sm:$0xff]  }
  0x13   : > { %1484 = vmatprep.mubr.msk.bf16.mxu0 %vm321_vm0, %v1592_v4  ;;  %v1706_v7 = vld [vmem:[%s1696_s24 + $0x8] sm:$0xff]   ;;  %v1709_v8 = vld [vmem:[%s1696_s24 + $0x10] sm:$0xff]   ;;  %v248_v9 = vshrl.u32 %v1703_v6, 16  ;;  %v250_v10 = vshll.u32 %v1703_v6, 16  ;;  %v1600_v14 = vld [vmem:[%s1696_s24 + $0x18] sm:$0xff]  }
  0x14   : > { %1485 = vmatmul.mubr.msk.bf16.vlgmr.msra.gmra.mrb[0].mxu0 %vm321_vm0, %v1593_v5  ;;  %v255_v11 = vshll.u32 %v1706_v7, 16  ;;  %v259_v12 = vshrl.u32 %v1706_v7, 16  ;;  %v263_v13 = vshll.u32 %v1709_v8, 16  ;;  %v1601_v17 = vld [vmem:[%s1696_s24 + $0x20] sm:$0xff]   ;;  %v1719_v18 = vld [vmem:[%s1696_s24 + $0x18] sm:$0xff]   ;;  %v267_v20 = vshrl.u32 %v1709_v8, 16 }
  0x15   : > { %1501 = vmatpush3.bf16.msra.mxu0 %v1598_v3  ;;  %v252_v15 = vrot.slane %v250_v10, 1  ;;  %1488 = vmatprep.mubr.msk.bf16.mxu0 %vm321_vm0, %v1600_v14  ;;  %v271_v23 = vshll.u32 %v1719_v18, 16  ;;  %v1725_v24 = vld [vmem:[%s1696_s24 + $0x20] sm:$0xff]   ;;  %v275_v26 = vshrl.u32 %v1719_v18, 16  ;;  %v1604_v27 = vld [vmem:[%s1696_s24 + $0x28] sm:$0xff]   ;;  %v1743_v37 = vld [vmem:[%s1696_s24 + $0x30] sm:$0xff]  }
  0x16   : > { %v257_v16 = vrot.slane %v255_v11, 1  ;;  %v265_v19 = vrot.slane %v263_v13, 1  ;;  %v279_v31 = vshll.u32 %v1725_v24, 16  ;;  %v283_v32 = vshrl.u32 %v1725_v24, 16  ;;  %v1739_v35 = vld [vmem:[%s1696_s24 + $0x28] sm:$0xff]   ;;  %v1605_v38 = vld [vmem:[%s1696_s24 + $0x30] sm:$0xff]  }
  0x17   : > { %v253_v21 = vor.u32 %v252_v15, %v248_v9  ;;  %v273_v30 = vrot.slane %v271_v23, 1  ;;  %v287_v40 = vshll.u32 %v1739_v35, 16  ;;  %v1608_v41 = vld [vmem:[%s1696_s24 + $0x38] sm:$0xff]   ;;  %v295_v42 = vshll.u32 %v1743_v37, 16  ;;  %v1612_v52 = vld [vmem:[%s1696_s24 + $0x8] sm:$0xff]   ;;  %v1613_v53 = vld [vmem:[%s1696_s24 + $0x10] sm:$0xff]  }
  0x18   : > { %v261_v22 = vor.u32 %v259_v12, %v257_v16  ;;  %v269_v25 = vor.u32 %v267_v20, %v265_v19  ;;  %v281_v34 = vrot.slane %v279_v31, 1  ;;  %v1750_v43 = vld [vmem:[%s1696_s24 + $0x38] sm:$0xff]   ;;  %v291_v46 = vshrl.u32 %v1739_v35, 16  ;;  %v1611_v51 = vld [vmem:[%s1696_s24 + $0x40] ss:$0 sps:$4 sm:$0x11]  }
  0x19   : > { %v258_v28 = vsel %vm246_vm1, %v253_v21, %v257_v16  ;;  %v277_v36 = vor.u32 %v275_v26, %v273_v30  ;;  %v289_v44 = vrot.slane %v287_v40, 1  ;;  %v299_v47 = vshrl.u32 %v1743_v37, 16  ;;  %v1614_v54 = vld [vmem:[%s1696_s24 + $0x18] sm:$0xff]   ;;  %v1609_v58 = vld [vmem:[%s1696_s24 + $0x40] sm:$0xff]   ;;  %v1616_v14 = vld [vmem:[%s1696_s24 + $0x28] sm:$0xff]  }
  0x1a   : > { %v266_v29 = vsel %vm246_vm1, %v261_v22, %v265_v19  ;;  %1448 = vmatprep.mubr.msk.bf16.mxu1 %vm321_vm0, %v258_v28  ;;  %v274_v33 = vsel %vm246_vm1, %v269_v25, %v273_v30  ;;  %v285_v39 = vor.u32 %v283_v32, %v281_v34  ;;  %v303_v48 = vshll.u32 %v1750_v43, 16  ;;  %v1615_v63 = vld [vmem:[%s1696_s24 + $0x20] sm:$0xff]   ;;  %v1617_v20 = vld [vmem:[%s1696_s24 + $0x30] sm:$0xff]   ;;  %v1618_v32 = vld [vmem:[%s1696_s24 + $0x38] sm:$0xff]  }
  0x1b   : > { %1449 = vmatmul.mubr.msk.bf16.vlgmr.msra.gmra.mrb[0].mxu1 %vm321_vm0, %v266_v29  ;;  %v282_v45 = vsel %vm246_vm1, %v277_v36, %v281_v34  ;;  %v297_v50 = vrot.slane %v295_v42, 1  ;;  %v293_v55 = vor.u32 %v291_v46, %v289_v44  ;;  %v826_v59 = vshrl.u32 %v1612_v52, 16 }
  0x1c   : > { %1489 = vmatmul.mubr.msk.bf16.gmra.mrb[4].mxu0 %vm321_vm0, %v1601_v17  ;;  %1465 = vmatpush3.bf16.msra.mxu1 %v1597_v2  ;;  %v290_v49 = vsel %vm246_vm1, %v285_v39, %v289_v44  ;;  %v305_v57 = vrot.slane %v303_v48, 1  ;;  %v828_v60 = vshll.u32 %v1612_v52, 16  ;;  %v833_v61 = vshll.u32 %v1613_v53, 16  ;;  %v1620_v48 = vld [vmem:[%s1696_s24 + $0x48] ss:$0 sps:$4 sm:$0x11]  }
  0x1d   : > { %1492 = vmatprep.mubr.msk.bf16.mxu0 %vm321_vm0, %v1604_v27  ;;  %1452 = vmatprep.mubr.msk.bf16.mxu1 %vm321_vm0, %v274_v33  ;;  %v301_v56 = vor.u32 %v299_v47, %v297_v50  ;;  %v841_v62 = vshll.u32 %v1614_v54, 16  ;;  %v837_v0 = vshrl.u32 %v1613_v53, 16  ;;  %v845_v3 = vshrl.u32 %v1614_v54, 16 }
  0x1e   : > { %v830_v1 = vrot.slane %v828_v60, 1  ;;  %v835_v2 = vrot.slane %v833_v61, 1  ;;  %v849_v4 = vshll.u32 %v1615_v63, 16  ;;  %v298_v5 = vsel %vm246_vm1, %v293_v55, %v297_v50 }
  0x1f   : > { %v307_v9 = vshrl.u32 %v1750_v43, 16  ;;  %v311_v10 = vshll.u32 %v1611_v51, 16  ;;  %v306_v11 = vsel %vm246_vm1, %v301_v56, %v305_v57  ;;  %v843_v13 = vrot.slane %v841_v62, 1 }
  0x20   : > { %v831_v12 = vor.u32 %v830_v1, %v826_v59  ;;  %v839_v15 = vor.u32 %v837_v0, %v835_v2  ;;  %v851_v19 = vrot.slane %v849_v4, 1  ;;  %v857_v23 = vshll.u32 %v1616_v14, 16 }
  0x21   : > { %v847_v17 = vor.u32 %v845_v3, %v843_v13  ;;  %v309_v21 = vor.u32 %v307_v9, %v305_v57  ;;  %v313_v22 = vrot.slane %v311_v10, 1  ;;  %v853_v26 = vshrl.u32 %v1615_v63, 16 }
  0x22   : > { %v836_v16 = vsel %vm246_vm1, %v831_v12, %v835_v2  ;;  %v844_v25 = vsel %vm246_vm1, %v839_v15, %v843_v13  ;;  %v861_v28 = vshrl.u32 %v1616_v14, 16  ;;  %v865_v29 = vshll.u32 %v1617_v20, 16 }
  0x23   : > { %1453 = vmatmul.mubr.msk.bf16.gmra.mrb[4].mxu1 %vm321_vm0, %v282_v45  ;;  %v852_v27 = vsel %vm246_vm1, %v847_v17, %v851_v19  ;;  %v314_v30 = vsel %vm246_vm1, %v309_v21, %v313_v22  ;;  %v859_v31 = vrot.slane %v857_v23, 1  ;;  %v855_v33 = vor.u32 %v853_v26, %v851_v19 }
  0x24   : > { %1493 = vmatmul.mubr.msk.bf16.gmra.mrb[8].mxu0 %vm321_vm0, %v1605_v38  ;;  %1456 = vmatprep.mubr.msk.bf16.mxu1 %vm321_vm0, %v290_v49  ;;  %v867_v36 = vrot.slane %v865_v29, 1  ;;  %v1619_v38 = vld [vmem:[%s1696_s24 + $0x40] sm:$0xff]   ;;  %v873_v39 = vshll.u32 %v1618_v32, 16  ;;  %v877_v44 = vshrl.u32 %v1618_v32, 16  ;;  %v889_v52 = vshll.u32 %v1620_v48, 16 }
  0x25   : > { %1496 = vmatprep.mubr.msk.bf16.mxu0 %vm321_vm0, %v1608_v41  ;;  %v863_v34 = vor.u32 %v861_v28, %v859_v31  ;;  %v860_v40 = vsel %vm246_vm1, %v855_v33, %v859_v31  ;;  %v869_v41 = vshrl.u32 %v1617_v20, 16  ;;  %v881_v45 = vshll.u32 %v1619_v38, 16 }
  0x26   : > { %v875_v46 = vrot.slane %v873_v39, 1  ;;  %v885_v51 = vshrl.u32 %v1619_v38, 16  ;;  %v891_v55 = vrot.slane %v889_v52, 1 }
  0x27   : > { %v868_v42 = vsel %vm246_vm1, %v863_v34, %v867_v36  ;;  %v871_v47 = vor.u32 %v869_v41, %v867_v36 }
  0x28   : > { %v879_v49 = vor.u32 %v877_v44, %v875_v46 }
  0x29   : > { %v876_v50 = vsel %vm246_vm1, %v871_v47, %v875_v46 }
  0x2b   : > { %1457 = vmatmul.mubr.msk.bf16.gmra.mrb[8].mxu1 %vm321_vm0, %v298_v5 }
  0x2c   : > { %1497 = vmatmul.mubr.msk.bf16.gmra.mrb[12].mxu0 %vm321_vm0, %v1609_v58  ;;  %1460 = vmatprep.mubr.msk.bf16.mxu1 %vm321_vm0, %v306_v11 }
  0x2d   : > { %1502 = vmatprep.mubr.msk.bf16.mxu0 %vm321_vm0, %v836_v16 }
  0x33   : > { %1461 = vmatmul.mubr.msk.bf16.gmra.mrb[12].mxu1 %vm321_vm0, %v314_v30 }
  0x34   : > { %1503 = vmatmul.mubr.msk.bf16.vlgmr.msra.gmra.mrb[0].mxu0 %vm321_vm0, %v844_v25  ;;  %1466 = vmatprep.mubr.msk.bf16.mxu1 %vm321_vm0, %v1703_v6  ;;  %v883_v6 = vrot.slane %v881_v45, 1 }
  0x35   : > { %1506 = vmatprep.mubr.msk.bf16.mxu0 %vm321_vm0, %v852_v27 }
  0x36   : > { %v884_v53 = vsel %vm246_vm1, %v879_v49, %v883_v6  ;;  %v887_v54 = vor.u32 %v885_v51, %v883_v6 }
  0x3b   : > { %1467 = vmatmul.mubr.msk.bf16.vlgmr.msra.gmra.mrb[0].mxu1 %vm321_vm0, %v1706_v7  ;;  %v892_v7 = vsel %vm246_vm1, %v887_v54, %v891_v55 }
  0x3c   : > { %1507 = vmatmul.mubr.msk.bf16.gmra.mrb[4].mxu0 %vm321_vm0, %v860_v40  ;;  %1470 = vmatprep.mubr.msk.bf16.mxu1 %vm321_vm0, %v1709_v8 }
  0x3d   : > { %1510 = vmatprep.mubr.msk.bf16.mxu0 %vm321_vm0, %v868_v42 }
  0x43   : > { %1471 = vmatmul.mubr.msk.bf16.gmra.mrb[4].mxu1 %vm321_vm0, %v1719_v18 }
  0x44   : > { %1511 = vmatmul.mubr.msk.bf16.gmra.mrb[8].mxu0 %vm321_vm0, %v876_v50  ;;  %1474 = vmatprep.mubr.msk.bf16.mxu1 %vm321_vm0, %v1725_v24 }
  0x45   : > { %1514 = vmatprep.mubr.msk.bf16.mxu0 %vm321_vm0, %v884_v53 }
  0x4b   : > { %1475 = vmatmul.mubr.msk.bf16.gmra.mrb[8].mxu1 %vm321_vm0, %v1739_v35 }
  0x4c   : > { %1515 = vmatmul.mubr.msk.bf16.gmra.mrb[12].mxu0 %vm321_vm0, %v892_v7  ;;  %1478 = vmatprep.mubr.msk.bf16.mxu1 %vm321_vm0, %v1743_v37 }
  0x53   : > { %1479 = vmatmul.mubr.msk.bf16.gmra.mrb[12].mxu1 %vm321_vm0, %v1750_v43 }
 0x107   : > { %v1504_v8 = vpop.f32.mrb[0].mxu0 }
 0x108   : > { %v957_v56 = vpop.f32.mrb[1].mxu0 }
 0x109   : > { %v1505_v57 = vpop.f32.mrb[2].mxu0 }
 0x10a   : > { %v960_v18 = vpop.f32.mrb[3].mxu0 }
 0x10e   : > { %v1468_v59 = vpop.f32.mrb[0].mxu1 }
 0x10f   : > { %v1508_v58 = vpop.f32.mrb[4].mxu0  ;;  %v1518_v61 = vadd.f32 %v1504_v8, %v1468_v59  ;;  %v499_v62 = vpop.f32.mrb[1].mxu1 }
 0x110   : > { %v973_v24 = vpop.f32.mrb[5].mxu0  ;;  %v1519_v0 = vadd.f32 %v957_v56, %v499_v62  ;;  %v1469_v35 = vpop.f32.mrb[2].mxu1 }
 0x111   : > { %v1509_v60 = vpop.f32.mrb[6].mxu0  ;;  %v1054_v1 = vmul.f32 0.2, %v1518_v61  ;;  %v1520_v2 = vadd.f32 %v1505_v57, %v1469_v35  ;;  %v502_v37 = vpop.f32.mrb[3].mxu1  ;;  %vm1038_vm2 = vcmp.ge.f32.partialorder %v1518_v61, 0.0 }
 0x112   : > { %v976_v63 = vpop.f32.mrb[7].mxu0  ;;  %v1052_v3 = vmul.f32 0.2, %v1519_v0  ;;  %v1521_v43 = vadd.f32 %v960_v18, %v502_v37  ;;  %vm1036_vm3 = vcmp.ge.f32.partialorder %v1519_v0, 0.0 }
 0x113   : > { %vm1039_vm4 = vcmp.ge.f32.partialorder %v1520_v2, 0.0  ;;  %v1055_v4 = vmul.f32 0.2, %v1520_v2  ;;  %v1070_v10 = vsel %vm1038_vm2, %v1518_v61, %v1054_v1 }
 0x114   : > { %vm1037_vm5 = vcmp.ge.f32.partialorder %v1521_v43, 0.0  ;;  %v1053_v5 = vmul.f32 0.2, %v1521_v43  ;;  %v1068_v13 = vsel %vm1036_vm3, %v1519_v0, %v1052_v3 }
 0x115   : > { %v1071_v11 = vsel %vm1039_vm4, %v1520_v2, %v1055_v4 }
 0x116   : > { %v1371_v14 = vpack.c.bf16 %v1071_v11, %v1070_v10  ;;  %v1069_v15 = vsel %vm1037_vm5, %v1521_v43, %v1053_v5  ;;  %v1472_v16 = vpop.f32.mrb[4].mxu1 }
 0x117   : > { %v1512_v9 = vpop.f32.mrb[8].mxu0  ;;  %v1366_v19 = vpack.c.bf16 %v1069_v15, %v1068_v13  ;;  %v1522_v20 = vadd.f32 %v1508_v58, %v1472_v16  ;;  %v515_v21 = vpop.f32.mrb[5].mxu1 }
 0x118   : > { %v989_v12 = vpop.f32.mrb[9].mxu0  ;;  %1403 = vst [vmem:[%s1816_s28 + $0x8] sm:$0xff] %v1371_v14   ;;  %v1523_v23 = vadd.f32 %v973_v24, %v515_v21  ;;  %v1473_v25 = vpop.f32.mrb[6].mxu1 }
 0x119   : > { %v1513_v17 = vpop.f32.mrb[10].mxu0  ;;  %1367 = vst [vmem:[%s1816_s28] sm:$0xff] %v1366_v19   ;;  %v1058_v26 = vmul.f32 0.2, %v1522_v20  ;;  %v1524_v27 = vadd.f32 %v1509_v60, %v1473_v25  ;;  %v518_v28 = vpop.f32.mrb[7].mxu1  ;;  %vm1042_vm6 = vcmp.ge.f32.partialorder %v1522_v20, 0.0 }
 0x11a   : > { %v992_v22 = vpop.f32.mrb[11].mxu0  ;;  %v1056_v29 = vmul.f32 0.2, %v1523_v23  ;;  %v1525_v30 = vadd.f32 %v976_v63, %v518_v28  ;;  %vm1040_vm7 = vcmp.ge.f32.partialorder %v1523_v23, 0.0 }
 0x11b   : > { %vm1043_vm8 = vcmp.ge.f32.partialorder %v1524_v27, 0.0  ;;  %v1059_v31 = vmul.f32 0.2, %v1524_v27  ;;  %v1074_v34 = vsel %vm1042_vm6, %v1522_v20, %v1058_v26 }
 0x11c   : > { %vm1041_vm9 = vcmp.ge.f32.partialorder %v1525_v30, 0.0  ;;  %v1057_v32 = vmul.f32 0.2, %v1525_v30  ;;  %v1072_v39 = vsel %vm1040_vm7, %v1523_v23, %v1056_v29 }
 0x11d   : > { %v1075_v36 = vsel %vm1043_vm8, %v1524_v27, %v1059_v31 }
 0x11e   : > { %v1381_v40 = vpack.c.bf16 %v1075_v36, %v1074_v34  ;;  %v1073_v41 = vsel %vm1041_vm9, %v1525_v30, %v1057_v32  ;;  %v1476_v42 = vpop.f32.mrb[8].mxu1 }
 0x11f   : > { %v1516_v33 = vpop.f32.mrb[12].mxu0  ;;  %v1376_v45 = vpack.c.bf16 %v1073_v41, %v1072_v39  ;;  %v1526_v46 = vadd.f32 %v1512_v9, %v1476_v42  ;;  %v531_v47 = vpop.f32.mrb[9].mxu1 }
 0x120   : > { %v1005_v38 = vpop.f32.mrb[13].mxu0  ;;  %1405 = vst [vmem:[%s1816_s28 + $0x18] sm:$0xff] %v1381_v40   ;;  %v1527_v49 = vadd.f32 %v989_v12, %v531_v47  ;;  %v1477_v6 = vpop.f32.mrb[10].mxu1 }
 0x121   : > { %v1517_v44 = vpop.f32.mrb[14].mxu0  ;;  %1404 = vst [vmem:[%s1816_s28 + $0x10] sm:$0xff] %v1376_v45   ;;  %v1062_v50 = vmul.f32 0.2, %v1526_v46  ;;  %v1528_v51 = vadd.f32 %v1513_v17, %v1477_v6  ;;  %v534_v52 = vpop.f32.mrb[11].mxu1  ;;  %vm1046_vm10 = vcmp.ge.f32.partialorder %v1526_v46, 0.0 }
 0x122   : > { %v1008_v48 = vpop.f32.mrb[15].mxu0  ;;  %v1060_v53 = vmul.f32 0.2, %v1527_v49  ;;  %v1529_v54 = vadd.f32 %v992_v22, %v534_v52  ;;  %vm1044_vm11 = vcmp.ge.f32.partialorder %v1527_v49, 0.0 }
 0x123   : > { %vm1047_vm12 = vcmp.ge.f32.partialorder %v1528_v51, 0.0  ;;  %v1063_v55 = vmul.f32 0.2, %v1528_v51  ;;  %v1078_v8 = vsel %vm1046_vm10, %v1526_v46, %v1062_v50 }
 0x124   : > { %vm1045_vm13 = vcmp.ge.f32.partialorder %v1529_v54, 0.0  ;;  %v1061_v7 = vmul.f32 0.2, %v1529_v54  ;;  %v1076_v57 = vsel %vm1044_vm11, %v1527_v49, %v1060_v53 }
 0x125   : > { %v1079_v56 = vsel %vm1047_vm12, %v1528_v51, %v1063_v55 }
 0x126   : > { %v1391_v18 = vpack.c.bf16 %v1079_v56, %v1078_v8  ;;  %v1077_v58 = vsel %vm1045_vm13, %v1529_v54, %v1061_v7  ;;  %v1480_v24 = vpop.f32.mrb[12].mxu1 }
 0x127   : > { %v1386_v59 = vpack.c.bf16 %v1077_v58, %v1076_v57  ;;  %v1530_v60 = vadd.f32 %v1516_v33, %v1480_v24  ;;  %v547_v61 = vpop.f32.mrb[13].mxu1 }
 0x128   : > { %1407 = vst [vmem:[%s1816_s28 + $0x28] sm:$0xff] %v1391_v18   ;;  %v1531_v62 = vadd.f32 %v1005_v38, %v547_v61  ;;  %v1481_v63 = vpop.f32.mrb[14].mxu1 }
 0x129   : > { %1406 = vst [vmem:[%s1816_s28 + $0x20] sm:$0xff] %v1386_v59   ;;  %v1066_v0 = vmul.f32 0.2, %v1530_v60  ;;  %v1532_v35 = vadd.f32 %v1517_v44, %v1481_v63  ;;  %v550_v1 = vpop.f32.mrb[15].mxu1  ;;  %vm1050_vm14 = vcmp.ge.f32.partialorder %v1530_v60, 0.0 }
 0x12a   : > { %v1064_v2 = vmul.f32 0.2, %v1531_v62  ;;  %v1533_v37 = vadd.f32 %v1008_v48, %v550_v1  ;;  %vm1048_vm15 = vcmp.ge.f32.partialorder %v1531_v62, 0.0 }
 0x12b   : > { %vm1051_vm0 = vcmp.ge.f32.partialorder %v1532_v35, 0.0  ;;  %v1067_v3 = vmul.f32 0.2, %v1532_v35  ;;  %v1082_v4 = vsel %vm1050_vm14, %v1530_v60, %v1066_v0 }
 0x12c   : > { %vm1049_vm1 = vcmp.ge.f32.partialorder %v1533_v37, 0.0  ;;  %v1065_v43 = vmul.f32 0.2, %v1533_v37  ;;  %v1080_v9 = vsel %vm1048_vm15, %v1531_v62, %v1064_v2 }
 0x12d   : > { %v1083_v5 = vsel %vm1051_vm0, %v1532_v35, %v1067_v3 }
 0x12e   : > { %v1401_v10 = vpack.c.bf16 %v1083_v5, %v1082_v4  ;;  %v1081_v11 = vsel %vm1049_vm1, %v1533_v37, %v1065_v43 }
 0x12f   : > { %v1396_v12 = vpack.c.bf16 %v1081_v11, %v1080_v9 }
 0x130   : > { %1409 = vst [vmem:[%s1816_s28 + $0x38] sm:$0xff] %v1401_v10  }
 0x131   : > { %1408 = vst [vmem:[%s1816_s28 + $0x30] sm:$0xff] %v1396_v12  }
 0x132 PF: > { %s12_s11 = sadd.s32 1, %s1643_s11   ;;  %s1838_s9 = smov %s1639_s10 }
 0x133   : > { %p9_p5 = scmp.ge.s32.totalorder %s12_s11, 4   ;;  %s1839_s10 = smov %s1841_s12 }
 0x135   :  { %11 = sbr.rel (!%p9_p5) target bundleno = 2 (0x2), region = 61 }

// kernel: discriminator_forward.6
= control target key start
LH: loop header
LB: loop body
LE: loop exit
PB: predicated region body
PF: predicated region fallthrough
CT: control target
= control target key end

     0   :  { %s1590_s9 = smov 0   ;;  %s1592_s10 = smov 0   ;;  %s1879_s0 = inlined_call_operand.vmem [shape: bf16[2,48,256], index: 0, kind: input, shape index: {}]   ;;  %s1880_s1 = inlined_call_operand.vmem [shape: bf16[1024,128], index: 1, kind: input, shape index: {}]   ;;  %s1881_s2 = inlined_call_operand.vmem [shape: bf16[2,32,128], index: 2, kind: output, shape index: {}]  }
   0x1   :  { %s1594_s11 = smov 0  }
   0x2 LB: > { %s21_s12 = sadd.s32 1, %s1568_s10  ;;  %p1227_p0 = scmp.ge.s32.totalorder %s1572_s11, 1  ;;  %s1572_s11 = sphi %s1594_s11, %s12_s11   ;;  %s1568_s10 = sphi %s1592_s10, %s1883_s10   ;;  %s1564_s9 = sphi %s1590_s9, %s1882_s9  }
   0x3   : > { %p22_p1 = scmp.ge.s32.totalorder %s21_s12, 2  ;;  %p135_p2 = scmp.lt.s32.totalorder %s1572_s11, 3 }
   0x5   : > { %s1885_s12 = smov (%p22_p1, %s21_s12), 0  ;;  %p136_p3 = pnand %p1227_p0, %p135_p2 }
   0x6   : > { %v1472_v0 = vld [vmem:[%s1880_s1 + $0x40] sm:$0xff] (!%p136_p3)   ;;  %v1476_v4 = vld [vmem:[%s1880_s1 + $0x48] sm:$0xff] (!%p136_p3)   ;;  %v1480_v8 = vld [vmem:[%s1880_s1 + $0x50] sm:$0xff] (!%p136_p3)   ;;  %p164_p4 = scmp.lt.s32.totalorder (!%p136_p3), %s1564_s9, 1  ;;  %vm218_vm0 = vsmask.f32 (!%p136_p3), 7424 }
   0x7   : > { %139 = sbr.rel (%p136_p3) target bundleno = 349 (0x15d), region = 28  ;;  %v1473_v1 = vld [vmem:[%s1880_s1 + $0xc0] sm:$0xff] (!%p136_p3)   ;;  %1334 = vmatprep.subr.bf16.mxu0 (!%p136_p3), %v1472_v0  ;;  %v1477_v5 = vld [vmem:[%s1880_s1 + $0xc8] sm:$0xff] (!%p136_p3)   ;;  %v1481_v9 = vld [vmem:[%s1880_s1 + $0xd0] sm:$0xff] (!%p136_p3)  }
   0x8   : > { %v1474_v2 = vld [vmem:[%s1880_s1] sm:$0xff] (!%p136_p3)   ;;  %1362 = vmatprep.subr.bf16.mxu1 (!%p136_p3), %v1473_v1  ;;  %v1478_v6 = vld [vmem:[%s1880_s1 + $0x8] sm:$0xff] (!%p136_p3)   ;;  %v1482_v10 = vld [vmem:[%s1880_s1 + $0x10] sm:$0xff] (!%p136_p3)  }
   0x9   : > { %v1475_v3 = vld [vmem:[%s1880_s1 + $0x80] sm:$0xff] (!%p136_p3)   ;;  %1335 = vmatpush3.bf16.msra.mxu0 (!%p136_p3), %v1474_v2  ;;  %v1479_v7 = vld [vmem:[%s1880_s1 + $0x88] sm:$0xff] (!%p136_p3)   ;;  %v1483_v11 = vld [vmem:[%s1880_s1 + $0x90] sm:$0xff] (!%p136_p3)  }
   0xa   : > { %1363 = vmatpush3.bf16.msra.mxu1 (!%p136_p3), %v1475_v3  ;;  %1336 = vmatprep.subr.bf16.mxu0 (!%p136_p3), %v1476_v4  ;;  %v1484_v12 = vld [vmem:[%s1880_s1 + $0x58] sm:$0xff] (!%p136_p3)   ;;  %v1488_v16 = vld [vmem:[%s1880_s1 + $0x60] sm:$0xff] (!%p136_p3)   ;;  %v1492_v20 = vld [vmem:[%s1880_s1 + $0x68] sm:$0xff] (!%p136_p3)  }
   0xb   : > { %1364 = vmatprep.subr.bf16.mxu1 (!%p136_p3), %v1477_v5  ;;  %v1485_v13 = vld [vmem:[%s1880_s1 + $0xd8] sm:$0xff] (!%p136_p3)   ;;  %v1489_v17 = vld [vmem:[%s1880_s1 + $0xe0] sm:$0xff] (!%p136_p3)   ;;  %v1493_v21 = vld [vmem:[%s1880_s1 + $0xe8] sm:$0xff] (!%p136_p3)  }
   0xc   : > { %v1486_v14 = vld [vmem:[%s1880_s1 + $0x18] sm:$0xff] (!%p136_p3)   ;;  %v1490_v18 = vld [vmem:[%s1880_s1 + $0x20] sm:$0xff] (!%p136_p3)   ;;  %v1494_v22 = vld [vmem:[%s1880_s1 + $0x28] sm:$0xff] (!%p136_p3)  }
   0xd   : > { %1337 = vmatpush3.bf16.msra.mxu0 (!%p136_p3), %v1478_v6  ;;  %v1487_v15 = vld [vmem:[%s1880_s1 + $0x98] sm:$0xff] (!%p136_p3)   ;;  %v1491_v19 = vld [vmem:[%s1880_s1 + $0xa0] sm:$0xff] (!%p136_p3)   ;;  %v1495_v23 = vld [vmem:[%s1880_s1 + $0xa8] sm:$0xff] (!%p136_p3)  }
   0xe   : > { %1365 = vmatpush3.bf16.msra.mxu1 %v1479_v7  ;;  %1338 = vmatprep.subr.bf16.mxu0 %v1480_v8  ;;  %s1887_s9 = smov (!%p164_p4, %s1564_s9), 1  ;;  %v1496_v24 = vld [vmem:[%s1880_s1 + $0x70] sm:$0xff]   ;;  %v1500_v28 = vld [vmem:[%s1880_s1 + $0x78] sm:$0xff]   ;;  %v1508_v40 = vld [vmem:[%s1880_s1 + $0x140] sm:$0xff]  }
   0xf   : > { %1366 = vmatprep.subr.bf16.mxu1 %v1481_v9  ;;  %v1497_v25 = vld [vmem:[%s1880_s1 + $0xf0] sm:$0xff]   ;;  %s1446_s17 = smul.u32 48, %s1887_s9  ;;  %v1501_v29 = vld [vmem:[%s1880_s1 + $0xf8] sm:$0xff]   ;;  %v1509_v45 = vld [vmem:[%s1880_s1 + $0x1c0] sm:$0xff]  }
  0x10   : > { %v1498_v26 = vld [vmem:[%s1880_s1 + $0x30] sm:$0xff]   ;;  %v1502_v30 = vld [vmem:[%s1880_s1 + $0x38] sm:$0xff]   ;;  %v1510_v46 = vld [vmem:[%s1880_s1 + $0x100] sm:$0xff]  }
  0x11   : > { %1339 = vmatpush3.bf16.msra.mxu0 %v1482_v10  ;;  %v1499_v27 = vld [vmem:[%s1880_s1 + $0xb0] sm:$0xff]   ;;  %s1708_s28 = scalar_lea.vmem %s1879_s0, %s1446_s17  ;;  %v1503_v31 = vld [vmem:[%s1880_s1 + $0xb8] sm:$0xff]   ;;  %v1511_v53 = vld [vmem:[%s1880_s1 + $0x180] sm:$0xff]  }
  0x12   : > { %1367 = vmatpush3.bf16.msra.mxu1 %v1483_v11  ;;  %1340 = vmatprep.subr.bf16.mxu0 %v1484_v12  ;;  %v182_v32 = vld [vmem:[%s1708_s28] sm:$0xff]  ;;  %v1718_v33 = vld [vmem:[%s1708_s28 + $0x8] sm:$0xff]  ;;  %v1721_v34 = vld [vmem:[%s1708_s28 + $0x10] sm:$0xff] }
  0x13   : > { %1368 = vmatprep.subr.bf16.mxu1 %v1485_v13  ;;  %v1232_v35 = vcombine.high %v182_v32, %v1718_v33  ;;  %v1725_v36 = vld [vmem:[%s1708_s28 + $0x18] sm:$0xff]  ;;  %v1231_v37 = vcombine.low %v182_v32, %v1718_v33  ;;  %v1512_v54 = vld [vmem:[%s1880_s1 + $0x148] sm:$0xff]   ;;  %v1516_v62 = vld [vmem:[%s1880_s1 + $0x150] sm:$0xff]   ;;  %v1774_v0 = vcombine.high %v1718_v33, %v1721_v34 }
  0x14   : > { %v1730_v38 = vcombine.high %v1721_v34, %v1725_v36  ;;  %v1734_v39 = vcombine.low %v1721_v34, %v1725_v36  ;;  %v1513_v57 = vld [vmem:[%s1880_s1 + $0x1c8] sm:$0xff]   ;;  %v1517_v63 = vld [vmem:[%s1880_s1 + $0x1d0] sm:$0xff]   ;;  %v1520_v3 = vld [vmem:[%s1880_s1 + $0x158] sm:$0xff]  }
  0x15   : > { %1341 = vmatpush3.bf16.msra.mxu0 %v1486_v14  ;;  %883 = vmatprep.mubr.bf16.mxu0 %v1232_v35  ;;  %v232_v41 = vshrl.u32 %v1232_v35, 16  ;;  %v234_v42 = vshll.u32 %v1232_v35, 16  ;;  %v222_v43 = vshll.u32 %v1231_v37, 16  ;;  %v220_v44 = vshrl.u32 %v1231_v37, 16  ;;  %v1514_v60 = vld [vmem:[%s1880_s1 + $0x108] sm:$0xff]   ;;  %v1518_v1 = vld [vmem:[%s1880_s1 + $0x110] sm:$0xff]  }
  0x16   : > { %1369 = vmatpush3.bf16.msra.mxu1 %v1487_v15  ;;  %1342 = vmatprep.subr.bf16.mxu0 %v1488_v16  ;;  %v239_v47 = vshll.u32 %v1730_v38, 16  ;;  %v227_v48 = vshll.u32 %v1734_v39, 16  ;;  %v1515_v61 = vld [vmem:[%s1880_s1 + $0x188] sm:$0xff]   ;;  %v1519_v2 = vld [vmem:[%s1880_s1 + $0x190] sm:$0xff]   ;;  %v1521_v4 = vld [vmem:[%s1880_s1 + $0x1d8] sm:$0xff]   ;;  %v251_v9 = vshrl.u32 %v1730_v38, 16 }
  0x17   : > { %1370 = vmatprep.subr.bf16.mxu1 %v1489_v17  ;;  %v236_v49 = vrot.slane %v234_v42, 1  ;;  %v224_v50 = vrot.slane %v222_v43, 1  ;;  %v1522_v5 = vld [vmem:[%s1880_s1 + $0x118] sm:$0xff]   ;;  %v1524_v7 = vld [vmem:[%s1880_s1 + $0x160] sm:$0xff]   ;;  %v243_v11 = vshrl.u32 %v1734_v39, 16  ;;  %v1529_v14 = vld [vmem:[%s1880_s1 + $0x168] sm:$0xff]   ;;  %v1241_v17 = vcombine.low %v1718_v33, %v1721_v34 }
  0x18   : > { %v241_v51 = vrot.slane %v239_v47, 1  ;;  %v229_v52 = vrot.slane %v227_v48, 1  ;;  %v1523_v6 = vld [vmem:[%s1880_s1 + $0x198] sm:$0xff]   ;;  %v1525_v8 = vld [vmem:[%s1880_s1 + $0x1e0] sm:$0xff]   ;;  %v1536_v32 = vld [vmem:[%s1880_s1 + $0x130] sm:$0xff]   ;;  %v308_v35 = vshrl.u32 %v1774_v0, 16 }
  0x19   : > { %1343 = vmatpush3.bf16.msra.mxu0 %v1490_v18  ;;  %v237_v55 = vor.u32 %v236_v49, %v232_v41  ;;  %v225_v56 = vor.u32 %v224_v50, %v220_v44  ;;  %v1526_v10 = vld [vmem:[%s1880_s1 + $0x120] sm:$0xff]   ;;  %v310_v18 = vshll.u32 %v1774_v0, 16  ;;  %v298_v33 = vshll.u32 %v1241_v17, 16  ;;  %v1537_v34 = vld [vmem:[%s1880_s1 + $0x1b0] sm:$0xff]   ;;  %v1540_v41 = vld [vmem:[%s1880_s1 + $0x138] sm:$0xff]  }
  0x1a   : > { %1371 = vmatpush3.bf16.msra.mxu1 %v1491_v19  ;;  %1344 = vmatprep.subr.bf16.mxu0 %v1492_v20  ;;  %v186_v12 = vld [vmem:[%s1708_s28 + $0x20] sm:$0x11]  ;;  %v253_v19 = vor.u32 %v251_v9, %v241_v51  ;;  %v1541_v47 = vld [vmem:[%s1880_s1 + $0x1b8] sm:$0xff]  }
  0x1b   : > { %1372 = vmatprep.subr.bf16.mxu1 %v1493_v21  ;;  %v242_v58 = vsel %vm218_vm0, %v237_v55, %v241_v51  ;;  %v230_v59 = vsel %vm218_vm0, %v225_v56, %v229_v52  ;;  %v1236_v13 = vcombine.high %v186_v12, %v186_v12  ;;  %v1235_v15 = vcombine.low %v186_v12, %v186_v12  ;;  %v1527_v16 = vld [vmem:[%s1880_s1 + $0x1a0] sm:$0xff]   ;;  %v1530_v21 = vld [vmem:[%s1880_s1 + $0x1e8] sm:$0xff]  }
  0x1c   : > { %932 = vmatprep.mubr.bf16.mxu1 %v242_v58  ;;  %v300_v42 = vrot.slane %v298_v33, 1  ;;  %v191_v43 = vld [vmem:[%s1708_s28 + $0x20] sm:$0xff] }
  0x1d   : > { %1345 = vmatpush3.bf16.msra.mxu0 %v1494_v22  ;;  %v255_v20 = vshll.u32 %v1236_v13, 16  ;;  %v245_v22 = vor.u32 %v243_v11, %v229_v52  ;;  %v1243_v44 = vcombine.low %v1725_v36, %v191_v43 }
  0x1e   : > { %1373 = vmatpush3.bf16.msra.mxu1 %v1495_v23  ;;  %1346 = vmatprep.subr.bf16.mxu0 %v1496_v24  ;;  %v247_v23 = vshll.u32 %v1235_v15, 16  ;;  %v1532_v24 = vld [vmem:[%s1880_s1 + $0x128] sm:$0xff]  }
  0x1f   : > { %1374 = vmatprep.subr.bf16.mxu1 %v1497_v25  ;;  %v1533_v25 = vld [vmem:[%s1880_s1 + $0x1a8] sm:$0xff]   ;;  %v319_v58 = vshrl.u32 %v1243_v44, 16 }
  0x21   : > { %1347 = vmatpush3.bf16.msra.mxu0 %v1498_v26  ;;  %v257_v26 = vrot.slane %v255_v20, 1 }
  0x22   : > { %1375 = vmatpush3.bf16.msra.mxu1 %v1499_v27  ;;  %1348 = vmatprep.subr.bf16.mxu0 %v1500_v28  ;;  %v249_v27 = vrot.slane %v247_v23, 1  ;;  %v1534_v28 = vld [vmem:[%s1880_s1 + $0x170] sm:$0xff]  }
  0x23   : > { %1376 = vmatprep.subr.bf16.mxu1 %v1501_v29  ;;  %v1535_v29 = vld [vmem:[%s1880_s1 + $0x1f0] sm:$0xff]  }
  0x25   : > { %1349 = vmatpush3.bf16.msra.mxu0 %v1502_v30  ;;  %v258_v30 = vsel %vm218_vm0, %v253_v19, %v257_v26 }
  0x26   : > { %1377 = vmatpush3.bf16.msra.mxu1 %v1503_v31  ;;  %1390 = vmatprep.subr.bf16.mxu0 %v1508_v40  ;;  %v250_v31 = vsel %vm218_vm0, %v245_v22, %v249_v27  ;;  %v312_v40 = vrot.slane %v310_v18, 1 }
  0x27   : > { %1418 = vmatprep.subr.bf16.mxu1 %v1509_v45  ;;  %v1244_v45 = vcombine.high %v1725_v36, %v191_v43 }
  0x28   : > { %884 = vmatmul.mubr.bf16.vlgmr.msra.gmra.mrb[0].mxu0 %v1231_v37  ;;  %v1538_v37 = vld [vmem:[%s1880_s1 + $0x178] sm:$0xff]   ;;  %v313_v48 = vor.u32 %v312_v40, %v308_v35 }
  0x29   : > { %1391 = vmatpush3.bf16.msra.mxu0 %v1510_v46  ;;  %891 = vmatprep.mubr.bf16.mxu0 %v1730_v38  ;;  %v296_v38 = vshrl.u32 %v1241_v17, 16  ;;  %v192_v46 = vld [vmem:[%s1708_s28 + $0x28] sm:$0x11]  ;;  %v315_v51 = vshll.u32 %v1244_v45, 16  ;;  %s1318_s28 = sshll.u32 %s1887_s9, 4 }
  0x2a   : > { %1392 = vmatprep.subr.bf16.mxu0 %v1512_v54  ;;  %933 = vmatmul.mubr.bf16.vlgmr.msra.gmra.mrb[0].mxu1 %v230_v59  ;;  %v1246_v49 = vcombine.high %v192_v46, %v192_v46  ;;  %v1245_v50 = vcombine.low %v192_v46, %v192_v46  ;;  %v327_v54 = vshrl.u32 %v1244_v45, 16  ;;  %s180_s30 = scalar_lea.vmem %s1881_s2, %s1318_s28 }
  0x2b   : > { %1419 = vmatpush3.bf16.msra.mxu1 %v1511_v53  ;;  %940 = vmatprep.mubr.bf16.mxu1 %v258_v30  ;;  %v301_v52 = vor.u32 %v300_v42, %v296_v38  ;;  %v303_v53 = vshll.u32 %v1243_v44, 16  ;;  %v317_v56 = vrot.slane %v315_v51, 1  ;;  %v1574_v51 = vmov 0.0  }
  0x2c   : > { %1420 = vmatprep.subr.bf16.mxu1 %v1513_v57  ;;  %v331_v55 = vshll.u32 %v1246_v49, 16  ;;  %v323_v59 = vshll.u32 %v1245_v50, 16 }
  0x2d   : > { %1393 = vmatpush3.bf16.msra.mxu0 %v1514_v60  ;;  %v305_v57 = vrot.slane %v303_v53, 1  ;;  %v318_v60 = vsel %vm218_vm0, %v313_v48, %v317_v56 }
  0x2e   : > { %1394 = vmatprep.subr.bf16.mxu0 %v1516_v62  ;;  %v333_v36 = vrot.slane %v331_v55, 1  ;;  %v329_v62 = vor.u32 %v327_v54, %v317_v56 }
  0x2f   : > { %1421 = vmatpush3.bf16.msra.mxu1 %v1515_v61  ;;  %v306_v61 = vsel %vm218_vm0, %v301_v52, %v305_v57 }
  0x30   : > { %892 = vmatmul.mubr.bf16.gmra.mrb[4].mxu0 %v1734_v39  ;;  %1422 = vmatprep.subr.bf16.mxu1 %v1517_v63  ;;  %v1539_v39 = vld [vmem:[%s1880_s1 + $0x1f8] sm:$0xff]   ;;  %v334_v63 = vsel %vm218_vm0, %v329_v62, %v333_v36 }
  0x31   : > { %981 = vmatprep.mubr.bf16.mxu0 %v1774_v0  ;;  %1395 = vmatpush3.bf16.msra.mxu0 %v1518_v1  ;;  %v321_v0 = vor.u32 %v319_v58, %v305_v57  ;;  %v325_v1 = vrot.slane %v323_v59, 1 }
  0x32   : > { %1396 = vmatprep.subr.bf16.mxu0 %v1520_v3  ;;  %941 = vmatmul.mubr.bf16.gmra.mrb[4].mxu1 %v250_v31  ;;  %v1047_v31 = vlaneseq }
  0x33   : > { %1423 = vmatpush3.bf16.msra.mxu1 %v1519_v2  ;;  %1030 = vmatprep.mubr.bf16.mxu1 %v318_v60  ;;  %v326_v2 = vsel %vm218_vm0, %v321_v0, %v325_v1 }
  0x34   : > { %1424 = vmatprep.subr.bf16.mxu1 %v1521_v4 }
  0x35   : > { %1397 = vmatpush3.bf16.msra.mxu0 %v1522_v5 }
  0x36   : > { %1398 = vmatprep.subr.bf16.mxu0 %v1524_v7 }
  0x37   : > { %1425 = vmatpush3.bf16.msra.mxu1 %v1523_v6 }
  0x38   : > { %1426 = vmatprep.subr.bf16.mxu1 %v1525_v8 }
  0x39   : > { %1399 = vmatpush3.bf16.msra.mxu0 %v1526_v10 }
  0x3a   : > { %1400 = vmatprep.subr.bf16.mxu0 %v1529_v14 }
  0x3b   : > { %1427 = vmatpush3.bf16.msra.mxu1 %v1527_v16 }
  0x3c   : > { %1428 = vmatprep.subr.bf16.mxu1 %v1530_v21 }
  0x3d   : > { %1401 = vmatpush3.bf16.msra.mxu0 %v1532_v24 }
  0x3e   : > { %1402 = vmatprep.subr.bf16.mxu0 %v1534_v28 }
  0x3f   : > { %1429 = vmatpush3.bf16.msra.mxu1 %v1533_v25 }
  0x40   : > { %1430 = vmatprep.subr.bf16.mxu1 %v1535_v29 }
  0x41   : > { %1403 = vmatpush3.bf16.msra.mxu0 %v1536_v32 }
  0x42   : > { %1404 = vmatprep.subr.bf16.mxu0 %v1538_v37  ;;  %v1048_v37 = vshrl.u32 %v1047_v31, 7 }
  0x43   : > { %1431 = vmatpush3.bf16.msra.mxu1 %v1537_v34 }
  0x44   : > { %1432 = vmatprep.subr.bf16.mxu1 %v1539_v39  ;;  %vm1049_vm1 = vcmp.lt.s32.totalorder %v1048_v37, 4 }
  0x45   : > { %1405 = vmatpush3.bf16.msra.mxu0 %v1540_v41  ;;  %v1311_v52 = vsel %vm1049_vm1, 1.0, %v1574_v51 }
  0x47   : > { %1433 = vmatpush3.bf16.msra.mxu1 %v1541_v47 }
  0x48   : > { %982 = vmatmul.mubr.bf16.vlgmr.msra.gmra.mrb[8].mxu0 %v1241_v17 }
  0x49   : > { %989 = vmatprep.mubr.bf16.mxu0 %v1244_v45 }
  0x4a   : > { %1031 = vmatmul.mubr.bf16.vlgmr.msra.gmra.mrb[8].mxu1 %v306_v61 }
  0x4b   : > { %1038 = vmatprep.mubr.bf16.mxu1 %v334_v63 }
  0x50   : > { %990 = vmatmul.mubr.bf16.gmra.mrb[12].mxu0 %v1243_v44 }
  0x52   : > { %1039 = vmatmul.mubr.bf16.gmra.mrb[12].mxu1 %v326_v2 }
  0xfb   : > { %v1350_v3 = vpop.f32.mrb[0].mxu0 }
  0xfc   : > { %v1351_v4 = vpop.f32.mrb[1].mxu0 }
  0xfd   : > { %v1352_v5 = vadd.f32 %v1351_v4, %v1350_v3  ;;  %v1353_v6 = vpop.f32.mrb[2].mxu0  ;;  %v1378_v9 = vpop.f32.mrb[0].mxu1 }
  0xfe   : > { %v1354_v7 = vpop.f32.mrb[3].mxu0  ;;  %v1379_v10 = vpop.f32.mrb[1].mxu1 }
  0xff   : > { %v1355_v8 = vadd.f32 %v1354_v7, %v1353_v6  ;;  %v1380_v12 = vadd.f32 %v1379_v10, %v1378_v9  ;;  %v1381_v13 = vpop.f32.mrb[2].mxu1 }
 0x100   : > { %v1382_v15 = vpop.f32.mrb[3].mxu1 }
 0x101   : > { %v935_v18 = vadd.f32 %v1380_v12, %v1352_v5  ;;  %v1383_v19 = vadd.f32 %v1382_v15, %v1381_v13 }
 0x103   : > { %v1356_v11 = vpop.f32.mrb[4].mxu0  ;;  %v938_v22 = vadd.f32 %v1383_v19, %v1355_v8 }
 0x104   : > { %v1357_v14 = vpop.f32.mrb[5].mxu0 }
 0x105   : > { %v1358_v16 = vadd.f32 %v1357_v14, %v1356_v11  ;;  %v1359_v17 = vpop.f32.mrb[6].mxu0  ;;  %v1384_v23 = vpop.f32.mrb[4].mxu1 }
 0x106   : > { %v1360_v20 = vpop.f32.mrb[7].mxu0  ;;  %v1385_v24 = vpop.f32.mrb[5].mxu1 }
 0x107   : > { %v1361_v21 = vadd.f32 %v1360_v20, %v1359_v17  ;;  %v1386_v25 = vadd.f32 %v1385_v24, %v1384_v23  ;;  %v1387_v26 = vpop.f32.mrb[6].mxu1 }
 0x108   : > { %v1388_v27 = vpop.f32.mrb[7].mxu1 }
 0x109   : > { %v943_v28 = vadd.f32 %v1386_v25, %v1358_v16  ;;  %v1389_v29 = vadd.f32 %v1388_v27, %v1387_v26 }
 0x10b   : > { %v946_v30 = vadd.f32 %v1389_v29, %v1361_v21 }
 0x11b   : > { %v1406_v32 = vpop.f32.mrb[8].mxu0 }
 0x11c   : > { %v1407_v33 = vpop.f32.mrb[9].mxu0 }
 0x11d   : > { %v1408_v34 = vadd.f32 %v1407_v33, %v1406_v32  ;;  %v1409_v35 = vpop.f32.mrb[10].mxu0  ;;  %v1434_v41 = vpop.f32.mrb[8].mxu1 }
 0x11e   : > { %v1410_v38 = vpop.f32.mrb[11].mxu0  ;;  %v1435_v42 = vpop.f32.mrb[9].mxu1 }
 0x11f   : > { %v984_v39 = vadd.f32 %v1408_v34, %v935_v18  ;;  %v1411_v40 = vadd.f32 %v1410_v38, %v1409_v35  ;;  %v1436_v44 = vadd.f32 %v1435_v42, %v1434_v41  ;;  %v1437_v45 = vpop.f32.mrb[10].mxu1 }
 0x120   : > { %v1438_v46 = vpop.f32.mrb[11].mxu1 }
 0x121   : > { %v987_v43 = vadd.f32 %v1411_v40, %v938_v22  ;;  %v1860_v48 = vadd.f32 %v1436_v44, %v984_v39  ;;  %v1439_v49 = vadd.f32 %v1438_v46, %v1437_v45 }
 0x123   : > { %v1412_v47 = vpop.f32.mrb[12].mxu0  ;;  %v1065_v55 = vmul.f32 %v1860_v48, %v1860_v48  ;;  %v1036_v56 = vadd.f32 %v1439_v49, %v987_v43  ;;  %v1052_v59 = vmul.f32 %v1311_v52, %v1860_v48 }
 0x124   : > { %v1413_v50 = vpop.f32.mrb[13].mxu0 }
 0x125   : > { %v1414_v53 = vadd.f32 %v1413_v50, %v1412_v47  ;;  %v1415_v54 = vpop.f32.mrb[14].mxu0  ;;  %v1053_v60 = vmul.f32 %v1311_v52, %v1036_v56  ;;  %v1066_v61 = vmul.f32 %v1036_v56, %v1036_v56  ;;  %v1440_v62 = vpop.f32.mrb[12].mxu1  ;;  %v1069_v1 = vmul.f32 %v1311_v52, %v1065_v55 }
 0x126   : > { %v1416_v57 = vpop.f32.mrb[15].mxu0  ;;  %v1441_v63 = vpop.f32.mrb[13].mxu1 }
 0x127   : > { %v992_v36 = vadd.f32 %v1414_v53, %v943_v28  ;;  %v1417_v58 = vadd.f32 %v1416_v57, %v1415_v54  ;;  %v1056_v2 = vadd.f32 %v1053_v60, %v1052_v59  ;;  %v1070_v3 = vmul.f32 %v1311_v52, %v1066_v61  ;;  %v1443_v5 = vpop.f32.mrb[14].mxu1 }
 0x128   : > { %v1442_v4 = vadd.f32 %v1441_v63, %v1440_v62  ;;  %v1444_v6 = vpop.f32.mrb[15].mxu1 }
 0x129   : > { %v995_v0 = vadd.f32 %v1417_v58, %v946_v30  ;;  %v1073_v7 = vadd.f32 %v1070_v3, %v1069_v1  ;;  %v1445_v9 = vadd.f32 %v1444_v6, %v1443_v5 }
 0x12a   : > { %v1041_v8 = vadd.f32 %v1442_v4, %v992_v36 }
 0x12b   : > { %v1044_v12 = vadd.f32 %v1445_v9, %v995_v0 }
 0x12c   : > { %v1054_v10 = vmul.f32 %v1311_v52, %v1041_v8  ;;  %v1067_v11 = vmul.f32 %v1041_v8, %v1041_v8 }
 0x12d   : > { %v1055_v15 = vmul.f32 %v1311_v52, %v1044_v12  ;;  %v1068_v16 = vmul.f32 %v1044_v12, %v1044_v12 }
 0x12e   : > { %v1057_v13 = vadd.f32 %v1056_v2, %v1054_v10  ;;  %v1071_v14 = vmul.f32 %v1311_v52, %v1067_v11 }
 0x12f   : > { %v1072_v19 = vmul.f32 %v1311_v52, %v1068_v16 }
 0x130   : > { %v1074_v17 = vadd.f32 %v1073_v7, %v1071_v14  ;;  %v1058_v18 = vadd.f32 %v1057_v13, %v1055_v15 }
 0x132   : > { %v1059_v20 = vrot.slane %v1058_v18, 4  ;;  %v1075_v21 = vadd.f32 %v1074_v17, %v1072_v19 }
 0x134   : > { %v1060_v22 = vadd.f32 %v1059_v20, %v1058_v18  ;;  %v1076_v23 = vrot.slane %v1075_v21, 4 }
 0x136   : > { %v1061_v24 = vrot.slane %v1060_v22, 2  ;;  %v1077_v25 = vadd.f32 %v1076_v23, %v1075_v21 }
 0x138   : > { %v1062_v26 = vadd.f32 %v1061_v24, %v1060_v22  ;;  %v1078_v27 = vrot.slane %v1077_v25, 2 }
 0x13a   : > { %v1063_v28 = vrot.slane %v1062_v26, 1  ;;  %v1079_v29 = vadd.f32 %v1078_v27, %v1077_v25 }
 0x13c   : > { %v1064_v30 = vadd.f32 %v1063_v28, %v1062_v26  ;;  %v1080_v31 = vrot.slane %v1079_v29, 1 }
 0x13e   : > { %v1081_v32 = vadd.f32 %v1080_v31, %v1079_v29  ;;  %v1082_v33 = vmul.f32 0.0625, %v1064_v30 }
 0x140   : > { %v1083_v34 = vmul.f32 0.0625, %v1081_v32  ;;  %v1084_v35 = vmul.f32 %v1082_v33, %v1082_v33  ;;  %v1087_v37 = vsub.f32 %v1860_v48, %v1082_v33  ;;  %v1088_v38 = vsub.f32 %v1036_v56, %v1082_v33 }
 0x141   : > { %v1089_v39 = vsub.f32 %v1041_v8, %v1082_v33  ;;  %v1090_v40 = vsub.f32 %v1044_v12, %v1082_v33 }
 0x142   : > { %v1085_v41 = vsub.f32 %v1083_v34, %v1084_v35 }
 0x144   : > { %v1086_v42 = vmax.f32 %v1085_v41, 0.0 }
 0x146   : > { %v1091_v43 = vadd.f32 1e-05, %v1086_v42 }
 0x148   : > { %1548 = vrsqrt.f32 %v1091_v43 }
 0x152   : > { %v1549_v44 = vpop.eup %1548 }
 0x153   : > { %v1093_v45 = vmul.f32 %v1549_v44, %v1087_v37  ;;  %v1094_v46 = vmul.f32 %v1549_v44, %v1088_v38  ;;  %v1095_v47 = vmul.f32 %v1549_v44, %v1089_v39  ;;  %v1096_v49 = vmul.f32 %v1549_v44, %v1090_v40 }
 0x155   : > { %vm1097_vm2 = vcmp.ge.f32.partialorder %v1093_v45, 0.0  ;;  %vm1098_vm3 = vcmp.ge.f32.partialorder %v1094_v46, 0.0  ;;  %vm1099_vm4 = vcmp.ge.f32.partialorder %v1095_v47, 0.0  ;;  %vm1100_vm5 = vcmp.ge.f32.partialorder %v1096_v49, 0.0 }
 0x156   : > { %v1101_v50 = vmul.f32 0.2, %v1093_v45  ;;  %v1102_v51 = vmul.f32 0.2, %v1094_v46  ;;  %v1103_v48 = vmul.f32 0.2, %v1095_v47 }
 0x157   : > { %v1104_v52 = vmul.f32 0.2, %v1096_v49 }
 0x158   : > { %v1105_v53 = vsel %vm1097_vm2, %v1093_v45, %v1101_v50  ;;  %v1106_v54 = vsel %vm1098_vm3, %v1094_v46, %v1102_v51  ;;  %v1107_v55 = vsel %vm1099_vm4, %v1095_v47, %v1103_v48 }
 0x159   : > { %v1108_v56 = vsel %vm1100_vm5, %v1096_v49, %v1104_v52  ;;  %v1326_v57 = vpack.c.bf16 %v1106_v54, %v1105_v53 }
 0x15a   : > { %v1331_v36 = vpack.c.bf16 %v1108_v56, %v1107_v55 }
 0x15b   : > { %1327 = vst [vmem:[%s180_s30] sm:$0xff] %v1326_v57  }
 0x15c   : > { %1333 = vst [vmem:[%s180_s30 + $0x8] sm:$0xff] %v1331_v36  }
 0x15d PF: > { %s12_s11 = sadd.s32 1, %s1572_s11   ;;  %s1882_s9 = smov %s1568_s10 }
 0x15e   : > { %p9_p5 = scmp.ge.s32.totalorder %s12_s11, 4   ;;  %s1883_s10 = smov %s1885_s12 }
 0x160   :  { %11 = sbr.rel (!%p9_p5) target bundleno = 2 (0x2), region = 61 }

// kernel: discriminator_forward.7
= control target key start
LH: loop header
LB: loop body
LE: loop exit
PB: predicated region body
PF: predicated region fallthrough
CT: control target
= control target key end

     0   :  { %s3239_s9 = smov 0   ;;  %s3241_s10 = smov 0   ;;  %s4164_s0 = inlined_call_operand.vmem [shape: bf16[2,32,512], index: 0, kind: input, shape index: {}]   ;;  %s4165_s1 = inlined_call_operand.vmem [shape: bf16[2048,256], index: 1, kind: input, shape index: {}]   ;;  %s4166_s2 = inlined_call_operand.vmem [shape: bf16[2,16,256], index: 2, kind: output, shape index: {}]  }
   0x1   :  { %s3243_s11 = smov 0  }
   0x2 LB: > { %s21_s12 = sadd.s32 1, %s3217_s10  ;;  %p2452_p0 = scmp.ge.s32.totalorder %s3221_s11, 1  ;;  %s3221_s11 = sphi %s3243_s11, %s12_s11   ;;  %s3217_s10 = sphi %s3241_s10, %s4168_s10   ;;  %s3213_s9 = sphi %s3239_s9, %s4167_s9  }
   0x3   : > { %p22_p1 = scmp.ge.s32.totalorder %s21_s12, 2  ;;  %p137_p2 = scmp.lt.s32.totalorder %s3221_s11, 3 }
   0x5   : > { %s4170_s12 = smov (%p22_p1, %s21_s12), 0  ;;  %p138_p3 = pnand %p2452_p0, %p137_p2 }
   0x6   : > { %v2795_v0 = vld [vmem:[%s4165_s1 + $0x4] ss:$8 sps:$4 sm:$0xff] (!%p138_p3)   ;;  %v2799_v2 = vld [vmem:[%s4165_s1] ss:$8 sps:$4 sm:$0xff] (!%p138_p3)   ;;  %v2801_v4 = vld [vmem:[%s4165_s1 + $0x14] ss:$8 sps:$4 sm:$0xff] (!%p138_p3)  }
   0x7   : > { %141 = sbr.rel (%p138_p3) target bundleno = 526 (0x20e), region = 28  ;;  %v2797_v1 = vld [vmem:[%s4165_s1 + $0x404] ss:$8 sps:$4 sm:$0xff] (!%p138_p3)   ;;  %1914 = vmatprep.subr.bf16.mxu1 (!%p138_p3), %v2795_v0  ;;  %v2800_v3 = vld [vmem:[%s4165_s1 + $0x400] ss:$8 sps:$4 sm:$0xff] (!%p138_p3)   ;;  %p168_p4 = scmp.lt.s32.totalorder (!%p138_p3), %s3213_s9, 1 }
   0x8   : > { %2086 = vmatprep.subr.bf16.mxu0 (!%p138_p3), %v2797_v1  ;;  %1915 = vmatpush1.bf16.msra.mxu1 (!%p138_p3), %v2799_v2  ;;  %v2803_v5 = vld [vmem:[%s4165_s1 + $0x414] ss:$8 sps:$4 sm:$0xff] (!%p138_p3)   ;;  %v2805_v6 = vld [vmem:[%s4165_s1 + $0x10] ss:$8 sps:$4 sm:$0xff] (!%p138_p3)   ;;  %v2807_v8 = vld [vmem:[%s4165_s1 + $0x24] ss:$8 sps:$4 sm:$0xff] (!%p138_p3)  }
   0x9   : > { %2087 = vmatpush1.bf16.msra.mxu0 (!%p138_p3), %v2800_v3  ;;  %1916 = vmatprep.subr.bf16.mxu1 (!%p138_p3), %v2801_v4  ;;  %v2806_v7 = vld [vmem:[%s4165_s1 + $0x410] ss:$8 sps:$4 sm:$0xff] (!%p138_p3)   ;;  %v2809_v9 = vld [vmem:[%s4165_s1 + $0x424] ss:$8 sps:$4 sm:$0xff] (!%p138_p3)   ;;  %v2811_v10 = vld [vmem:[%s4165_s1 + $0x20] ss:$8 sps:$4 sm:$0xff] (!%p138_p3)  }
   0xa   : > { %2088 = vmatprep.subr.bf16.mxu0 (!%p138_p3), %v2803_v5  ;;  %v2812_v11 = vld [vmem:[%s4165_s1 + $0x420] ss:$8 sps:$4 sm:$0xff] (!%p138_p3)   ;;  %v2813_v12 = vld [vmem:[%s4165_s1 + $0x34] ss:$8 sps:$4 sm:$0xff] (!%p138_p3)   ;;  %v2817_v14 = vld [vmem:[%s4165_s1 + $0x30] ss:$8 sps:$4 sm:$0xff] (!%p138_p3)  }
   0xb   : > { %v2815_v13 = vld [vmem:[%s4165_s1 + $0x434] ss:$8 sps:$4 sm:$0xff] (!%p138_p3)   ;;  %v2818_v15 = vld [vmem:[%s4165_s1 + $0x430] ss:$8 sps:$4 sm:$0xff] (!%p138_p3)   ;;  %v2819_v16 = vld [vmem:[%s4165_s1 + $0x44] ss:$8 sps:$4 sm:$0xff] (!%p138_p3)  }
   0xc   : > { %1917 = vmatpush1.bf16.msra.mxu1 (!%p138_p3), %v2805_v6  ;;  %v2821_v17 = vld [vmem:[%s4165_s1 + $0x444] ss:$8 sps:$4 sm:$0xff] (!%p138_p3)   ;;  %v2823_v18 = vld [vmem:[%s4165_s1 + $0x40] ss:$8 sps:$4 sm:$0xff] (!%p138_p3)   ;;  %v2825_v20 = vld [vmem:[%s4165_s1 + $0x54] ss:$8 sps:$4 sm:$0xff] (!%p138_p3)  }
   0xd   : > { %2089 = vmatpush1.bf16.msra.mxu0 (!%p138_p3), %v2806_v7  ;;  %1918 = vmatprep.subr.bf16.mxu1 (!%p138_p3), %v2807_v8  ;;  %v2824_v19 = vld [vmem:[%s4165_s1 + $0x440] ss:$8 sps:$4 sm:$0xff] (!%p138_p3)   ;;  %v2827_v21 = vld [vmem:[%s4165_s1 + $0x454] ss:$8 sps:$4 sm:$0xff] (!%p138_p3)   ;;  %v2829_v22 = vld [vmem:[%s4165_s1 + $0x50] ss:$8 sps:$4 sm:$0xff] (!%p138_p3)  }
   0xe   : > { %2090 = vmatprep.subr.bf16.mxu0 %v2809_v9  ;;  %v2830_v23 = vld [vmem:[%s4165_s1 + $0x450] ss:$8 sps:$4 sm:$0xff]   ;;  %v2831_v24 = vld [vmem:[%s4165_s1 + $0x64] ss:$8 sps:$4 sm:$0xff]   ;;  %v2835_v26 = vld [vmem:[%s4165_s1 + $0x60] ss:$8 sps:$4 sm:$0xff]  }
   0xf   : > { %v2833_v25 = vld [vmem:[%s4165_s1 + $0x464] ss:$8 sps:$4 sm:$0xff]   ;;  %v2836_v27 = vld [vmem:[%s4165_s1 + $0x460] ss:$8 sps:$4 sm:$0xff]   ;;  %v2837_v28 = vld [vmem:[%s4165_s1 + $0x74] ss:$8 sps:$4 sm:$0xff]  }
  0x10   : > { %1919 = vmatpush1.bf16.msra.mxu1 %v2811_v10  ;;  %v2839_v29 = vld [vmem:[%s4165_s1 + $0x474] ss:$8 sps:$4 sm:$0xff]   ;;  %v2841_v30 = vld [vmem:[%s4165_s1 + $0x70] ss:$8 sps:$4 sm:$0xff]   ;;  %v2843_v32 = vld [vmem:[%s4165_s1 + $0x84] ss:$8 sps:$4 sm:$0xff]  }
  0x11   : > { %2091 = vmatpush1.bf16.msra.mxu0 %v2812_v11  ;;  %1920 = vmatprep.subr.bf16.mxu1 %v2813_v12  ;;  %v2842_v31 = vld [vmem:[%s4165_s1 + $0x470] ss:$8 sps:$4 sm:$0xff]   ;;  %v2845_v33 = vld [vmem:[%s4165_s1 + $0x484] ss:$8 sps:$4 sm:$0xff]   ;;  %v2847_v34 = vld [vmem:[%s4165_s1 + $0x80] ss:$8 sps:$4 sm:$0xff]  }
  0x12   : > { %2092 = vmatprep.subr.bf16.mxu0 %v2815_v13  ;;  %v2848_v35 = vld [vmem:[%s4165_s1 + $0x480] ss:$8 sps:$4 sm:$0xff]   ;;  %v2849_v36 = vld [vmem:[%s4165_s1 + $0x94] ss:$8 sps:$4 sm:$0xff]   ;;  %s4172_s9 = smov (!%p168_p4, %s3213_s9), 1 }
  0x13   : > { %v2851_v37 = vld [vmem:[%s4165_s1 + $0x494] ss:$8 sps:$4 sm:$0xff]   ;;  %v2853_v38 = vld [vmem:[%s4165_s1 + $0x90] ss:$8 sps:$4 sm:$0xff]   ;;  %v2855_v40 = vld [vmem:[%s4165_s1 + $0xa4] ss:$8 sps:$4 sm:$0xff]  }
  0x14   : > { %1921 = vmatpush1.bf16.msra.mxu1 %v2817_v14  ;;  %v2854_v39 = vld [vmem:[%s4165_s1 + $0x490] ss:$8 sps:$4 sm:$0xff]   ;;  %s2738_s23 = sshll.u32 %s4172_s9, 6  ;;  %v2857_v41 = vld [vmem:[%s4165_s1 + $0x4a4] ss:$8 sps:$4 sm:$0xff]   ;;  %s2739_s8 = sshll.u32 %s4172_s9, 4 }
  0x15   : > { %2093 = vmatpush1.bf16.msra.mxu0 %v2818_v15  ;;  %1922 = vmatprep.subr.bf16.mxu1 %v2819_v16  ;;  %v2859_v42 = vld [vmem:[%s4165_s1 + $0xa0] ss:$8 sps:$4 sm:$0xff]   ;;  %s3399_s4 = scalar_lea.vmem %s4164_s0, %s2738_s23  ;;  %v2861_v44 = vld [vmem:[%s4165_s1 + $0xb4] ss:$8 sps:$4 sm:$0xff]   ;;  %v2865_v46 = vld [vmem:[%s4165_s1 + $0xb0] ss:$8 sps:$4 sm:$0xff]   ;;  %s187_s15 = scalar_lea.vmem %s4166_s2, %s2739_s8 }
  0x16   : > { %2094 = vmatprep.subr.bf16.mxu0 %v2821_v17  ;;  %v2860_v43 = vld [vmem:[%s4165_s1 + $0x4a0] ss:$8 sps:$4 sm:$0xff]   ;;  %v2863_v45 = vld [vmem:[%s4165_s1 + $0x4b4] ss:$8 sps:$4 sm:$0xff]   ;;  %v2866_v49 = vld [vmem:[%s4165_s1 + $0x4b0] ss:$8 sps:$4 sm:$0xff]  }
  0x17   : > { %v189_v47 = vld [vmem:[%s3399_s4] sm:$0xff]  ;;  %v191_v48 = vld [vmem:[%s3399_s4 + $0x10] sm:$0xff]  ;;  %vm233_vm0 = vsmask.f32 7424 }
  0x18   : > { %1923 = vmatpush1.bf16.msra.mxu1 %v2823_v18  ;;  %v2867_v50 = vld [vmem:[%s4165_s1 + $0xc4] ss:$8 sps:$4 sm:$0xff]   ;;  %v3418_v51 = vcombine.high %v189_v47, %v191_v48  ;;  %v2871_v55 = vld [vmem:[%s4165_s1 + $0xc0] ss:$8 sps:$4 sm:$0xff]   ;;  %v2873_v57 = vld [vmem:[%s4165_s1 + $0xd4] ss:$8 sps:$4 sm:$0xff]   ;;  %v3484_v10 = vcombine.low %v189_v47, %v191_v48 }
  0x19   : > { %2095 = vmatpush1.bf16.msra.mxu0 %v2824_v19  ;;  %1924 = vmatprep.subr.bf16.mxu1 %v2825_v20  ;;  %v195_v52 = vld [vmem:[%s3399_s4 + $0x20] sm:$0xff]  ;;  %v2875_v58 = vld [vmem:[%s4165_s1 + $0x4d4] ss:$8 sps:$4 sm:$0xff]   ;;  %v2877_v59 = vld [vmem:[%s4165_s1 + $0xd0] ss:$8 sps:$4 sm:$0xff]  }
  0x1a   : > { %2096 = vmatprep.subr.bf16.mxu0 %v2827_v21  ;;  %v2869_v53 = vld [vmem:[%s4165_s1 + $0x4c4] ss:$8 sps:$4 sm:$0xff]   ;;  %v3424_v54 = vcombine.high %v191_v48, %v195_v52  ;;  %1946 = vmatprep.mubr.bf16.mxu1 %v3418_v51  ;;  %v2872_v56 = vld [vmem:[%s4165_s1 + $0x4c0] ss:$8 sps:$4 sm:$0xff]   ;;  %v2878_v60 = vld [vmem:[%s4165_s1 + $0x4d0] ss:$8 sps:$4 sm:$0xff]   ;;  %v3479_v8 = vcombine.low %v191_v48, %v195_v52 }
  0x1b   : > { %v2879_v61 = vld [vmem:[%s4165_s1 + $0xe4] ss:$8 sps:$4 sm:$0xff]   ;;  %v2883_v63 = vld [vmem:[%s4165_s1 + $0xe0] ss:$8 sps:$4 sm:$0xff]   ;;  %v2885_v1 = vld [vmem:[%s4165_s1 + $0xf4] ss:$8 sps:$4 sm:$0xff]  }
  0x1c   : > { %1925 = vmatpush1.bf16.msra.mxu1 %v2829_v22  ;;  %2118 = vmatprep.mubr.bf16.mxu0 %v3424_v54  ;;  %v2881_v62 = vld [vmem:[%s4165_s1 + $0x4e4] ss:$8 sps:$4 sm:$0xff]   ;;  %v2884_v0 = vld [vmem:[%s4165_s1 + $0x4e0] ss:$8 sps:$4 sm:$0xff]   ;;  %v2887_v2 = vld [vmem:[%s4165_s1 + $0x4f4] ss:$8 sps:$4 sm:$0xff]  }
  0x1d   : > { %2097 = vmatpush1.bf16.msra.mxu0 %v2830_v23  ;;  %1926 = vmatprep.subr.bf16.mxu1 %v2831_v24  ;;  %v2889_v3 = vld [vmem:[%s4165_s1 + $0xf0] ss:$8 sps:$4 sm:$0xff]   ;;  %v2894_v5 = vld [vmem:[%s4165_s1 + $0x104] ss:$8 sps:$4 sm:$0xff]   ;;  %v2892_v7 = vld [vmem:[%s4165_s1 + $0x100] ss:$8 sps:$4 sm:$0xff]  }
  0x1e   : > { %2098 = vmatprep.subr.bf16.mxu0 %v2833_v25  ;;  %v2890_v4 = vld [vmem:[%s4165_s1 + $0x4f0] ss:$8 sps:$4 sm:$0xff]   ;;  %v2899_v6 = vld [vmem:[%s4165_s1 + $0x504] ss:$8 sps:$4 sm:$0xff]   ;;  %v2897_v9 = vld [vmem:[%s4165_s1 + $0x500] ss:$8 sps:$4 sm:$0xff]  }
  0x1f   : > { %v2903_v11 = vld [vmem:[%s4165_s1 + $0x114] ss:$8 sps:$4 sm:$0xff]   ;;  %v2901_v13 = vld [vmem:[%s4165_s1 + $0x110] ss:$8 sps:$4 sm:$0xff]   ;;  %v2909_v15 = vld [vmem:[%s4165_s1 + $0x124] ss:$8 sps:$4 sm:$0xff]  }
  0x20   : > { %1927 = vmatpush1.bf16.msra.mxu1 %v2835_v26  ;;  %v2906_v12 = vld [vmem:[%s4165_s1 + $0x514] ss:$8 sps:$4 sm:$0xff]   ;;  %v2904_v14 = vld [vmem:[%s4165_s1 + $0x510] ss:$8 sps:$4 sm:$0xff]   ;;  %v2912_v16 = vld [vmem:[%s4165_s1 + $0x524] ss:$8 sps:$4 sm:$0xff]  }
  0x21   : > { %2099 = vmatpush1.bf16.msra.mxu0 %v2836_v27  ;;  %1928 = vmatprep.subr.bf16.mxu1 %v2837_v28  ;;  %v2907_v17 = vld [vmem:[%s4165_s1 + $0x120] ss:$8 sps:$4 sm:$0xff]   ;;  %v2915_v19 = vld [vmem:[%s4165_s1 + $0x134] ss:$8 sps:$4 sm:$0xff]   ;;  %v2913_v21 = vld [vmem:[%s4165_s1 + $0x130] ss:$8 sps:$4 sm:$0xff]  }
  0x22   : > { %2100 = vmatprep.subr.bf16.mxu0 %v2839_v29  ;;  %v2910_v18 = vld [vmem:[%s4165_s1 + $0x520] ss:$8 sps:$4 sm:$0xff]   ;;  %v2918_v20 = vld [vmem:[%s4165_s1 + $0x534] ss:$8 sps:$4 sm:$0xff]   ;;  %v2916_v22 = vld [vmem:[%s4165_s1 + $0x530] ss:$8 sps:$4 sm:$0xff]  }
  0x23   : > { %v2921_v23 = vld [vmem:[%s4165_s1 + $0x144] ss:$8 sps:$4 sm:$0xff]   ;;  %v2919_v25 = vld [vmem:[%s4165_s1 + $0x140] ss:$8 sps:$4 sm:$0xff]   ;;  %v2927_v27 = vld [vmem:[%s4165_s1 + $0x154] ss:$8 sps:$4 sm:$0xff]  }
  0x24   : > { %1929 = vmatpush1.bf16.msra.mxu1 %v2841_v30  ;;  %v2924_v24 = vld [vmem:[%s4165_s1 + $0x544] ss:$8 sps:$4 sm:$0xff]   ;;  %v2922_v26 = vld [vmem:[%s4165_s1 + $0x540] ss:$8 sps:$4 sm:$0xff]   ;;  %v2930_v28 = vld [vmem:[%s4165_s1 + $0x554] ss:$8 sps:$4 sm:$0xff]  }
  0x25   : > { %2101 = vmatpush1.bf16.msra.mxu0 %v2842_v31  ;;  %1930 = vmatprep.subr.bf16.mxu1 %v2843_v32  ;;  %v2925_v29 = vld [vmem:[%s4165_s1 + $0x150] ss:$8 sps:$4 sm:$0xff]   ;;  %v2933_v31 = vld [vmem:[%s4165_s1 + $0x164] ss:$8 sps:$4 sm:$0xff]   ;;  %v2946_v47 = vld [vmem:[%s4165_s1 + $0x580] ss:$8 sps:$4 sm:$0xff]  }
  0x26   : > { %2102 = vmatprep.subr.bf16.mxu0 %v2845_v33  ;;  %v2928_v30 = vld [vmem:[%s4165_s1 + $0x550] ss:$8 sps:$4 sm:$0xff]   ;;  %v2936_v32 = vld [vmem:[%s4165_s1 + $0x564] ss:$8 sps:$4 sm:$0xff]   ;;  %v2931_v33 = vld [vmem:[%s4165_s1 + $0x160] ss:$8 sps:$4 sm:$0xff]  }
  0x27   : > { %v2951_v48 = vld [vmem:[%s4165_s1 + $0x194] ss:$8 sps:$4 sm:$0xff]   ;;  %v2952_v52 = vld [vmem:[%s4165_s1 + $0x590] ss:$8 sps:$4 sm:$0xff]  }
  0x28   : > { %1931 = vmatpush1.bf16.msra.mxu1 %v2847_v34  ;;  %v3558_v34 = vld [vmem:[%s3399_s4 + $0x8] sm:$0xff] }
  0x29   : > { %2103 = vmatpush1.bf16.msra.mxu0 %v2848_v35  ;;  %1932 = vmatprep.subr.bf16.mxu1 %v2849_v36  ;;  %v3561_v35 = vld [vmem:[%s3399_s4 + $0x18] sm:$0xff]  ;;  %v2934_v36 = vld [vmem:[%s4165_s1 + $0x560] ss:$8 sps:$4 sm:$0xff]  }
  0x2a   : > { %2104 = vmatprep.subr.bf16.mxu0 %v2851_v37  ;;  %v2939_v37 = vld [vmem:[%s4165_s1 + $0x174] ss:$8 sps:$4 sm:$0xff]  }
  0x2c   : > { %1933 = vmatpush1.bf16.msra.mxu1 %v2853_v38  ;;  %v3571_v38 = vcombine.high %v3558_v34, %v3561_v35 }
  0x2d   : > { %2105 = vmatpush1.bf16.msra.mxu0 %v2854_v39  ;;  %1934 = vmatprep.subr.bf16.mxu1 %v2855_v40  ;;  %v3574_v39 = vld [vmem:[%s3399_s4 + $0x28] sm:$0xff]  ;;  %v2942_v40 = vld [vmem:[%s4165_s1 + $0x574] ss:$8 sps:$4 sm:$0xff]  }
  0x2e   : > { %2106 = vmatprep.subr.bf16.mxu0 %v2857_v41  ;;  %v3581_v41 = vcombine.high %v3561_v35, %v3574_v39 }
  0x30   : > { %1935 = vmatpush1.bf16.msra.mxu1 %v2859_v42  ;;  %v2937_v42 = vld [vmem:[%s4165_s1 + $0x170] ss:$8 sps:$4 sm:$0xff]  }
  0x31   : > { %2107 = vmatpush1.bf16.msra.mxu0 %v2860_v43  ;;  %1936 = vmatprep.subr.bf16.mxu1 %v2861_v44  ;;  %v2940_v43 = vld [vmem:[%s4165_s1 + $0x570] ss:$8 sps:$4 sm:$0xff]   ;;  %v2945_v44 = vld [vmem:[%s4165_s1 + $0x184] ss:$8 sps:$4 sm:$0xff]  }
  0x32   : > { %2108 = vmatprep.subr.bf16.mxu0 %v2863_v45  ;;  %v2948_v45 = vld [vmem:[%s4165_s1 + $0x584] ss:$8 sps:$4 sm:$0xff]  }
  0x34   : > { %1937 = vmatpush1.bf16.msra.mxu1 %v2865_v46  ;;  %v2943_v46 = vld [vmem:[%s4165_s1 + $0x180] ss:$8 sps:$4 sm:$0xff]  }
  0x35   : > { %2109 = vmatpush1.bf16.msra.mxu0 %v2866_v49  ;;  %1938 = vmatprep.subr.bf16.mxu1 %v2867_v50  ;;  %v2954_v49 = vld [vmem:[%s4165_s1 + $0x594] ss:$8 sps:$4 sm:$0xff]   ;;  %v2949_v50 = vld [vmem:[%s4165_s1 + $0x190] ss:$8 sps:$4 sm:$0xff]  }
  0x36   : > { %2110 = vmatprep.subr.bf16.mxu0 %v2869_v53  ;;  %v2957_v53 = vld [vmem:[%s4165_s1 + $0x1a4] ss:$8 sps:$4 sm:$0xff]  }
  0x38   : > { %1939 = vmatpush1.bf16.msra.mxu1 %v2871_v55  ;;  %v2960_v55 = vld [vmem:[%s4165_s1 + $0x5a4] ss:$8 sps:$4 sm:$0xff]  }
  0x39   : > { %2111 = vmatpush1.bf16.msra.mxu0 %v2872_v56  ;;  %1940 = vmatprep.subr.bf16.mxu1 %v2873_v57  ;;  %v2955_v56 = vld [vmem:[%s4165_s1 + $0x1a0] ss:$8 sps:$4 sm:$0xff]  }
  0x3a   : > { %2112 = vmatprep.subr.bf16.mxu0 %v2875_v58  ;;  %v2958_v57 = vld [vmem:[%s4165_s1 + $0x5a0] ss:$8 sps:$4 sm:$0xff]   ;;  %v2963_v58 = vld [vmem:[%s4165_s1 + $0x1b4] ss:$8 sps:$4 sm:$0xff]  }
  0x3c   : > { %1941 = vmatpush1.bf16.msra.mxu1 %v2877_v59  ;;  %v2966_v59 = vld [vmem:[%s4165_s1 + $0x5b4] ss:$8 sps:$4 sm:$0xff]  }
  0x3d   : > { %2113 = vmatpush1.bf16.msra.mxu0 %v2878_v60  ;;  %1942 = vmatprep.subr.bf16.mxu1 %v2879_v61  ;;  %v2961_v60 = vld [vmem:[%s4165_s1 + $0x1b0] ss:$8 sps:$4 sm:$0xff]  }
  0x3e   : > { %2114 = vmatprep.subr.bf16.mxu0 %v2881_v62  ;;  %v2964_v61 = vld [vmem:[%s4165_s1 + $0x5b0] ss:$8 sps:$4 sm:$0xff]   ;;  %v2969_v62 = vld [vmem:[%s4165_s1 + $0x1c4] ss:$8 sps:$4 sm:$0xff]  }
  0x40   : > { %1943 = vmatpush1.bf16.msra.mxu1 %v2883_v63  ;;  %v2972_v63 = vld [vmem:[%s4165_s1 + $0x5c4] ss:$8 sps:$4 sm:$0xff]  }
  0x41   : > { %2115 = vmatpush1.bf16.msra.mxu0 %v2884_v0  ;;  %1944 = vmatprep.subr.bf16.mxu1 %v2885_v1  ;;  %v2967_v0 = vld [vmem:[%s4165_s1 + $0x1c0] ss:$8 sps:$4 sm:$0xff]  }
  0x42   : > { %2116 = vmatprep.subr.bf16.mxu0 %v2887_v2  ;;  %v2970_v1 = vld [vmem:[%s4165_s1 + $0x5c0] ss:$8 sps:$4 sm:$0xff]   ;;  %v2975_v2 = vld [vmem:[%s4165_s1 + $0x1d4] ss:$8 sps:$4 sm:$0xff]  }
  0x44   : > { %1945 = vmatpush1.bf16.msra.mxu1 %v2889_v3  ;;  %v2978_v3 = vld [vmem:[%s4165_s1 + $0x5d4] ss:$8 sps:$4 sm:$0xff]  }
  0x45   : > { %2117 = vmatpush1.bf16.msra.mxu0 %v2890_v4  ;;  %1957 = vmatprep.subr.bf16.mxu1 %v2894_v5  ;;  %v2973_v4 = vld [vmem:[%s4165_s1 + $0x1d0] ss:$8 sps:$4 sm:$0xff]  }
  0x46   : > { %2129 = vmatprep.subr.bf16.mxu0 %v2899_v6  ;;  %v2976_v5 = vld [vmem:[%s4165_s1 + $0x5d0] ss:$8 sps:$4 sm:$0xff]   ;;  %v2981_v6 = vld [vmem:[%s4165_s1 + $0x1e4] ss:$8 sps:$4 sm:$0xff]  }
  0x47   : > { %1947 = vmatmul.mubr.bf16.vlgmr.msra.gmra.mrb[0].mxu1 %v3484_v10 }
  0x48   : > { %2119 = vmatmul.mubr.bf16.vlgmr.msra.gmra.mrb[0].mxu0 %v3479_v8  ;;  %1958 = vmatpush1.bf16.msra.mxu1 %v2892_v7  ;;  %v2984_v7 = vld [vmem:[%s4165_s1 + $0x5e4] ss:$8 sps:$4 sm:$0xff]  }
  0x49   : > { %2130 = vmatpush1.bf16.msra.mxu0 %v2897_v9  ;;  %1959 = vmatprep.subr.bf16.mxu1 %v2903_v11  ;;  %v2979_v9 = vld [vmem:[%s4165_s1 + $0x1e0] ss:$8 sps:$4 sm:$0xff]  }
  0x4a   : > { %2131 = vmatprep.subr.bf16.mxu0 %v2906_v12  ;;  %1989 = vmatprep.mubr.bf16.mxu1 %v3571_v38  ;;  %v2982_v11 = vld [vmem:[%s4165_s1 + $0x5e0] ss:$8 sps:$4 sm:$0xff]   ;;  %v2987_v12 = vld [vmem:[%s4165_s1 + $0x1f4] ss:$8 sps:$4 sm:$0xff]  }
  0x4b   : > { %2161 = vmatprep.mubr.bf16.mxu0 %v3581_v41 }
  0x4c   : > { %1960 = vmatpush1.bf16.msra.mxu1 %v2901_v13  ;;  %v2990_v13 = vld [vmem:[%s4165_s1 + $0x5f4] ss:$8 sps:$4 sm:$0xff]  }
  0x4d   : > { %2132 = vmatpush1.bf16.msra.mxu0 %v2904_v14  ;;  %1961 = vmatprep.subr.bf16.mxu1 %v2909_v15  ;;  %v2985_v14 = vld [vmem:[%s4165_s1 + $0x1f0] ss:$8 sps:$4 sm:$0xff]  }
  0x4e   : > { %2133 = vmatprep.subr.bf16.mxu0 %v2912_v16  ;;  %v2988_v15 = vld [vmem:[%s4165_s1 + $0x5f0] ss:$8 sps:$4 sm:$0xff]   ;;  %v2995_v16 = vld [vmem:[%s4165_s1 + $0x204] ss:$8 sps:$4 sm:$0xff]  }
  0x50   : > { %1962 = vmatpush1.bf16.msra.mxu1 %v2907_v17  ;;  %v249_v17 = vshll.u32 %v3418_v51, 16 }
  0x51   : > { %2134 = vmatpush1.bf16.msra.mxu0 %v2910_v18  ;;  %1963 = vmatprep.subr.bf16.mxu1 %v2915_v19  ;;  %v3000_v18 = vld [vmem:[%s4165_s1 + $0x604] ss:$8 sps:$4 sm:$0xff]   ;;  %v3696_v19 = vcombine.low %v3558_v34, %v3561_v35 }
  0x52   : > { %2135 = vmatprep.subr.bf16.mxu0 %v2918_v20  ;;  %v2993_v20 = vld [vmem:[%s4165_s1 + $0x200] ss:$8 sps:$4 sm:$0xff]   ;;  %v3012_v34 = vld [vmem:[%s4165_s1 + $0x624] ss:$8 sps:$4 sm:$0xff]  }
  0x54   : > { %1964 = vmatpush1.bf16.msra.mxu1 %v2913_v21  ;;  %v3703_v21 = vcombine.low %v3561_v35, %v3574_v39  ;;  %v3007_v39 = vld [vmem:[%s4165_s1 + $0x220] ss:$8 sps:$4 sm:$0xff]  }
  0x55   : > { %2136 = vmatpush1.bf16.msra.mxu0 %v2916_v22  ;;  %1965 = vmatprep.subr.bf16.mxu1 %v2921_v23  ;;  %v341_v22 = vshll.u32 %v3424_v54, 16  ;;  %v2998_v23 = vld [vmem:[%s4165_s1 + $0x600] ss:$8 sps:$4 sm:$0xff]  }
  0x56   : > { %2137 = vmatprep.subr.bf16.mxu0 %v2924_v24  ;;  %v3003_v24 = vld [vmem:[%s4165_s1 + $0x214] ss:$8 sps:$4 sm:$0xff]  }
  0x58   : > { %1966 = vmatpush1.bf16.msra.mxu1 %v2919_v25  ;;  %v3006_v25 = vld [vmem:[%s4165_s1 + $0x614] ss:$8 sps:$4 sm:$0xff]  }
  0x59   : > { %2138 = vmatpush1.bf16.msra.mxu0 %v2922_v26  ;;  %1967 = vmatprep.subr.bf16.mxu1 %v2927_v27  ;;  %v247_v26 = vshrl.u32 %v3418_v51, 16  ;;  %v251_v27 = vrot.slane %v249_v17, 1  ;;  %v3060_v17 = vld [vmem:[%s4165_s1 + $0x6a4] ss:$8 sps:$4 sm:$0xff]  }
  0x5a   : > { %2139 = vmatprep.subr.bf16.mxu0 %v2930_v28  ;;  %v3717_v28 = vld [vmem:[%s3399_s4 + $0x20] sm:$0x11] }
  0x5b   : > { %v2462_v51 = vcombine.high %v3717_v28, %v3717_v28  ;;  %v252_v35 = vor.u32 %v251_v27, %v247_v26  ;;  %v3061_v26 = vld [vmem:[%s4165_s1 + $0x2b0] ss:$8 sps:$4 sm:$0xff]  }
  0x5c   : > { %1968 = vmatpush1.bf16.msra.mxu1 %v2925_v29  ;;  %v339_v29 = vshrl.u32 %v3424_v54, 16  ;;  %v3009_v54 = vld [vmem:[%s4165_s1 + $0x224] ss:$8 sps:$4 sm:$0xff]   ;;  %v3064_v27 = vld [vmem:[%s4165_s1 + $0x6b0] ss:$8 sps:$4 sm:$0xff]  }
  0x5d   : > { %2140 = vmatpush1.bf16.msra.mxu0 %v2928_v30  ;;  %1969 = vmatprep.subr.bf16.mxu1 %v2933_v31  ;;  %v3001_v30 = vld [vmem:[%s4165_s1 + $0x210] ss:$8 sps:$4 sm:$0xff]  }
  0x5e   : > { %2141 = vmatprep.subr.bf16.mxu0 %v2936_v32  ;;  %v3004_v31 = vld [vmem:[%s4165_s1 + $0x610] ss:$8 sps:$4 sm:$0xff]   ;;  %v343_v32 = vrot.slane %v341_v22, 1  ;;  %v3063_v22 = vld [vmem:[%s4165_s1 + $0x2b4] ss:$8 sps:$4 sm:$0xff]  }
  0x60   : > { %1970 = vmatpush1.bf16.msra.mxu1 %v2931_v33  ;;  %v3731_v33 = vld [vmem:[%s3399_s4 + $0x30] sm:$0x11] }
  0x61   : > { %2142 = vmatpush1.bf16.msra.mxu0 %v2934_v36  ;;  %1971 = vmatprep.subr.bf16.mxu1 %v2939_v37  ;;  %v254_v36 = vshll.u32 %v2462_v51, 16  ;;  %v2474_v37 = vcombine.high %v3731_v33, %v3731_v33 }
  0x62   : > { %2143 = vmatprep.subr.bf16.mxu0 %v2942_v40  ;;  %v3010_v40 = vld [vmem:[%s4165_s1 + $0x620] ss:$8 sps:$4 sm:$0xff]  }
  0x64   : > { %1972 = vmatpush1.bf16.msra.mxu1 %v2937_v42  ;;  %v256_v42 = vrot.slane %v254_v36, 1 }
  0x65   : > { %2144 = vmatpush1.bf16.msra.mxu0 %v2940_v43  ;;  %1973 = vmatprep.subr.bf16.mxu1 %v2945_v44  ;;  %v344_v43 = vor.u32 %v343_v32, %v339_v29  ;;  %v346_v44 = vshll.u32 %v2474_v37, 16  ;;  %v3069_v29 = vld [vmem:[%s4165_s1 + $0x2c4] ss:$8 sps:$4 sm:$0xff]   ;;  %v3067_v37 = vld [vmem:[%s4165_s1 + $0x2c0] ss:$8 sps:$4 sm:$0xff]  }
  0x66   : > { %2145 = vmatprep.subr.bf16.mxu0 %v2948_v45  ;;  %v3015_v45 = vld [vmem:[%s4165_s1 + $0x234] ss:$8 sps:$4 sm:$0xff]   ;;  %v194_v32 = vld [vmem:[%s3399_s4 + $0x28] sm:$0x11] }
  0x67   : > { %v2463_v36 = vcombine.low %v194_v32, %v194_v32 }
  0x68   : > { %1974 = vmatpush1.bf16.msra.mxu1 %v2943_v46  ;;  %v3018_v46 = vld [vmem:[%s4165_s1 + $0x634] ss:$8 sps:$4 sm:$0xff]  }
  0x69   : > { %2146 = vmatpush1.bf16.msra.mxu0 %v2946_v47  ;;  %1975 = vmatprep.subr.bf16.mxu1 %v2951_v48  ;;  %v257_v47 = vsel %vm233_vm0, %v252_v35, %v256_v42  ;;  %v348_v48 = vrot.slane %v346_v44, 1  ;;  %v202_v35 = vld [vmem:[%s3399_s4 + $0x38] sm:$0x11]  ;;  %v237_v44 = vshll.u32 %v3484_v10, 16 }
  0x6a   : > { %2147 = vmatprep.subr.bf16.mxu0 %v2954_v49  ;;  %v3013_v49 = vld [vmem:[%s4165_s1 + $0x230] ss:$8 sps:$4 sm:$0xff]  }
  0x6c   : > { %1976 = vmatpush1.bf16.msra.mxu1 %v2949_v50  ;;  %v3016_v50 = vld [vmem:[%s4165_s1 + $0x630] ss:$8 sps:$4 sm:$0xff]  }
  0x6d   : > { %2148 = vmatpush1.bf16.msra.mxu0 %v2952_v52  ;;  %1977 = vmatprep.subr.bf16.mxu1 %v2957_v53  ;;  %v349_v52 = vsel %vm233_vm0, %v344_v43, %v348_v48  ;;  %v3021_v53 = vld [vmem:[%s4165_s1 + $0x244] ss:$8 sps:$4 sm:$0xff]   ;;  %v266_v43 = vshll.u32 %v2463_v36, 16 }
  0x6e   : > { %2149 = vmatprep.subr.bf16.mxu0 %v2960_v55  ;;  %v3024_v55 = vld [vmem:[%s4165_s1 + $0x644] ss:$8 sps:$4 sm:$0xff]  }
  0x6f   : > { %v268_v48 = vrot.slane %v266_v43, 1  ;;  %v3109_v36 = vld [vmem:[%s4165_s1 + $0x324] ss:$8 sps:$4 sm:$0xff]   ;;  %v3116_v43 = vld [vmem:[%s4165_s1 + $0x730] ss:$8 sps:$4 sm:$0xff]  }
  0x70   : > { %1978 = vmatpush1.bf16.msra.mxu1 %v2955_v56  ;;  %v3019_v56 = vld [vmem:[%s4165_s1 + $0x240] ss:$8 sps:$4 sm:$0xff]  }
  0x71   : > { %2150 = vmatpush1.bf16.msra.mxu0 %v2958_v57  ;;  %1979 = vmatprep.subr.bf16.mxu1 %v2963_v58  ;;  %v3022_v57 = vld [vmem:[%s4165_s1 + $0x640] ss:$8 sps:$4 sm:$0xff]   ;;  %v3027_v58 = vld [vmem:[%s4165_s1 + $0x254] ss:$8 sps:$4 sm:$0xff]  }
  0x72   : > { %2151 = vmatprep.subr.bf16.mxu0 %v2966_v59  ;;  %v3030_v59 = vld [vmem:[%s4165_s1 + $0x654] ss:$8 sps:$4 sm:$0xff]  }
  0x74   : > { %1980 = vmatpush1.bf16.msra.mxu1 %v2961_v60  ;;  %v3025_v60 = vld [vmem:[%s4165_s1 + $0x250] ss:$8 sps:$4 sm:$0xff]  }
  0x75   : > { %2152 = vmatpush1.bf16.msra.mxu0 %v2964_v61  ;;  %1981 = vmatprep.subr.bf16.mxu1 %v2969_v62  ;;  %v3028_v61 = vld [vmem:[%s4165_s1 + $0x650] ss:$8 sps:$4 sm:$0xff]   ;;  %v3033_v62 = vld [vmem:[%s4165_s1 + $0x264] ss:$8 sps:$4 sm:$0xff]  }
  0x76   : > { %2153 = vmatprep.subr.bf16.mxu0 %v2972_v63  ;;  %v3036_v63 = vld [vmem:[%s4165_s1 + $0x664] ss:$8 sps:$4 sm:$0xff]  }
  0x78   : > { %1982 = vmatpush1.bf16.msra.mxu1 %v2967_v0  ;;  %v3031_v0 = vld [vmem:[%s4165_s1 + $0x260] ss:$8 sps:$4 sm:$0xff]  }
  0x79   : > { %2154 = vmatpush1.bf16.msra.mxu0 %v2970_v1  ;;  %1983 = vmatprep.subr.bf16.mxu1 %v2975_v2  ;;  %v3034_v1 = vld [vmem:[%s4165_s1 + $0x660] ss:$8 sps:$4 sm:$0xff]   ;;  %v3039_v2 = vld [vmem:[%s4165_s1 + $0x274] ss:$8 sps:$4 sm:$0xff]  }
  0x7a   : > { %2155 = vmatprep.subr.bf16.mxu0 %v2978_v3  ;;  %v3042_v3 = vld [vmem:[%s4165_s1 + $0x674] ss:$8 sps:$4 sm:$0xff]  }
  0x7c   : > { %1984 = vmatpush1.bf16.msra.mxu1 %v2973_v4  ;;  %v3037_v4 = vld [vmem:[%s4165_s1 + $0x270] ss:$8 sps:$4 sm:$0xff]  }
  0x7d   : > { %2156 = vmatpush1.bf16.msra.mxu0 %v2976_v5  ;;  %1985 = vmatprep.subr.bf16.mxu1 %v2981_v6  ;;  %v3040_v5 = vld [vmem:[%s4165_s1 + $0x670] ss:$8 sps:$4 sm:$0xff]   ;;  %v3045_v6 = vld [vmem:[%s4165_s1 + $0x284] ss:$8 sps:$4 sm:$0xff]  }
  0x7e   : > { %2157 = vmatprep.subr.bf16.mxu0 %v2984_v7  ;;  %v3048_v7 = vld [vmem:[%s4165_s1 + $0x684] ss:$8 sps:$4 sm:$0xff]  }
  0x80   : > { %1986 = vmatpush1.bf16.msra.mxu1 %v2979_v9  ;;  %v3043_v9 = vld [vmem:[%s4165_s1 + $0x280] ss:$8 sps:$4 sm:$0xff]  }
  0x81   : > { %2158 = vmatpush1.bf16.msra.mxu0 %v2982_v11  ;;  %1987 = vmatprep.subr.bf16.mxu1 %v2987_v12  ;;  %v3046_v11 = vld [vmem:[%s4165_s1 + $0x680] ss:$8 sps:$4 sm:$0xff]   ;;  %v3051_v12 = vld [vmem:[%s4165_s1 + $0x294] ss:$8 sps:$4 sm:$0xff]  }
  0x82   : > { %2159 = vmatprep.subr.bf16.mxu0 %v2990_v13  ;;  %v3054_v13 = vld [vmem:[%s4165_s1 + $0x694] ss:$8 sps:$4 sm:$0xff]  }
  0x84   : > { %1988 = vmatpush1.bf16.msra.mxu1 %v2985_v14  ;;  %v3049_v14 = vld [vmem:[%s4165_s1 + $0x290] ss:$8 sps:$4 sm:$0xff]  }
  0x85   : > { %2160 = vmatpush1.bf16.msra.mxu0 %v2988_v15  ;;  %2000 = vmatprep.subr.bf16.mxu1 %v2995_v16  ;;  %v3052_v15 = vld [vmem:[%s4165_s1 + $0x690] ss:$8 sps:$4 sm:$0xff]   ;;  %v3057_v16 = vld [vmem:[%s4165_s1 + $0x2a4] ss:$8 sps:$4 sm:$0xff]  }
  0x86   : > { %2172 = vmatprep.subr.bf16.mxu0 %v3000_v18  ;;  %v3055_v18 = vld [vmem:[%s4165_s1 + $0x2a0] ss:$8 sps:$4 sm:$0xff]  }
  0x87   : > { %1990 = vmatmul.mubr.bf16.vlgmr.msra.gmra.mrb[0].mxu1 %v3696_v19 }
  0x88   : > { %2162 = vmatmul.mubr.bf16.vlgmr.msra.gmra.mrb[0].mxu0 %v3703_v21  ;;  %2001 = vmatpush1.bf16.msra.mxu1 %v2993_v20  ;;  %v3058_v20 = vld [vmem:[%s4165_s1 + $0x6a0] ss:$8 sps:$4 sm:$0xff]  }
  0x89   : > { %2173 = vmatpush1.bf16.msra.mxu0 %v2998_v23  ;;  %2002 = vmatprep.subr.bf16.mxu1 %v3003_v24  ;;  %v3066_v23 = vld [vmem:[%s4165_s1 + $0x6b4] ss:$8 sps:$4 sm:$0xff]   ;;  %v261_v24 = vshll.u32 %v3696_v19, 16 }
  0x8a   : > { %2174 = vmatprep.subr.bf16.mxu0 %v3006_v25  ;;  %2032 = vmatprep.mubr.bf16.mxu1 %v257_v47  ;;  %v353_v25 = vshll.u32 %v3703_v21, 16  ;;  %v329_v47 = vshll.u32 %v3479_v8, 16 }
  0x8b   : > { %2204 = vmatprep.mubr.bf16.mxu0 %v349_v52  ;;  %v263_v51 = vrot.slane %v261_v24, 1  ;;  %v2461_v52 = vcombine.low %v3717_v28, %v3717_v28  ;;  %v239_v28 = vrot.slane %v237_v44, 1  ;;  %v3121_v44 = vld [vmem:[%s4165_s1 + $0x344] ss:$8 sps:$4 sm:$0xff]  }
  0x8c   : > { %2003 = vmatpush1.bf16.msra.mxu1 %v3001_v30  ;;  %v3072_v30 = vld [vmem:[%s4165_s1 + $0x6c4] ss:$8 sps:$4 sm:$0xff]  }
  0x8d   : > { %2175 = vmatpush1.bf16.msra.mxu0 %v3004_v31  ;;  %2004 = vmatprep.subr.bf16.mxu1 %v3009_v54  ;;  %v259_v31 = vshrl.u32 %v3696_v19, 16  ;;  %v351_v54 = vshrl.u32 %v3703_v21, 16  ;;  %v3075_v19 = vld [vmem:[%s4165_s1 + $0x2d4] ss:$8 sps:$4 sm:$0xff]  }
  0x8e   : > { %2176 = vmatprep.subr.bf16.mxu0 %v3012_v34  ;;  %v355_v34 = vrot.slane %v353_v25, 1  ;;  %v3078_v21 = vld [vmem:[%s4165_s1 + $0x6d4] ss:$8 sps:$4 sm:$0xff]  }
  0x8f   : > { %v264_v42 = vor.u32 %v263_v51, %v259_v31  ;;  %v3103_v31 = vld [vmem:[%s4165_s1 + $0x314] ss:$8 sps:$4 sm:$0xff]  }
  0x90   : > { %2005 = vmatpush1.bf16.msra.mxu1 %v3007_v39  ;;  %v3070_v39 = vld [vmem:[%s4165_s1 + $0x6c0] ss:$8 sps:$4 sm:$0xff]   ;;  %v3106_v51 = vld [vmem:[%s4165_s1 + $0x714] ss:$8 sps:$4 sm:$0xff]  }
  0x91   : > { %2177 = vmatpush1.bf16.msra.mxu0 %v3010_v40  ;;  %2006 = vmatprep.subr.bf16.mxu1 %v3015_v45  ;;  %v2475_v40 = vcombine.low %v202_v35, %v202_v35  ;;  %v356_v45 = vor.u32 %v355_v34, %v351_v54  ;;  %v3101_v34 = vld [vmem:[%s4165_s1 + $0x310] ss:$8 sps:$4 sm:$0xff]  }
  0x92   : > { %2178 = vmatprep.subr.bf16.mxu0 %v3018_v46 }
  0x93   : > { %v358_v46 = vshll.u32 %v2475_v40, 16  ;;  %v3110_v40 = vld [vmem:[%s4165_s1 + $0x720] ss:$8 sps:$4 sm:$0xff]  }
  0x94   : > { %2007 = vmatpush1.bf16.msra.mxu1 %v3013_v49  ;;  %v3073_v49 = vld [vmem:[%s4165_s1 + $0x2d0] ss:$8 sps:$4 sm:$0xff]  }
  0x95   : > { %2179 = vmatpush1.bf16.msra.mxu0 %v3016_v50  ;;  %2008 = vmatprep.subr.bf16.mxu1 %v3021_v53  ;;  %v3076_v50 = vld [vmem:[%s4165_s1 + $0x6d0] ss:$8 sps:$4 sm:$0xff]   ;;  %v2473_v53 = vcombine.low %v3731_v33, %v3731_v33  ;;  %v327_v33 = vshrl.u32 %v3479_v8, 16 }
  0x96   : > { %2180 = vmatprep.subr.bf16.mxu0 %v3024_v55  ;;  %v360_v55 = vrot.slane %v358_v46, 1  ;;  %v3119_v46 = vld [vmem:[%s4165_s1 + $0x340] ss:$8 sps:$4 sm:$0xff]  }
  0x97   : > { %v334_v8 = vshll.u32 %v2473_v53, 16  ;;  %v3133_v53 = vld [vmem:[%s4165_s1 + $0x364] ss:$8 sps:$4 sm:$0xff]  }
  0x98   : > { %2009 = vmatpush1.bf16.msra.mxu1 %v3019_v56  ;;  %v235_v56 = vshrl.u32 %v3484_v10, 16  ;;  %v3906_v10 = vsel %vm233_vm0, %v356_v45, %v360_v55  ;;  %v3124_v45 = vld [vmem:[%s4165_s1 + $0x744] ss:$8 sps:$4 sm:$0xff]  }
  0x99   : > { %2181 = vmatpush1.bf16.msra.mxu0 %v3022_v57  ;;  %2010 = vmatprep.subr.bf16.mxu1 %v3027_v58  ;;  %v3081_v57 = vld [vmem:[%s4165_s1 + $0x2e4] ss:$8 sps:$4 sm:$0xff]  }
  0x9a   : > { %2182 = vmatprep.subr.bf16.mxu0 %v3030_v59  ;;  %v3084_v58 = vld [vmem:[%s4165_s1 + $0x6e4] ss:$8 sps:$4 sm:$0xff]   ;;  %v3901_v59 = vsel %vm233_vm0, %v264_v42, %v268_v48  ;;  %v3113_v42 = vld [vmem:[%s4165_s1 + $0x330] ss:$8 sps:$4 sm:$0xff]   ;;  %v3127_v48 = vld [vmem:[%s4165_s1 + $0x354] ss:$8 sps:$4 sm:$0xff]  }
  0x9b   : > { %v3136_v55 = vld [vmem:[%s4165_s1 + $0x764] ss:$8 sps:$4 sm:$0xff]  }
  0x9c   : > { %2011 = vmatpush1.bf16.msra.mxu1 %v3025_v60  ;;  %v273_v60 = vshll.u32 %v3571_v38, 16 }
  0x9d   : > { %2183 = vmatpush1.bf16.msra.mxu0 %v3028_v61  ;;  %2012 = vmatprep.subr.bf16.mxu1 %v3033_v62  ;;  %v331_v61 = vrot.slane %v329_v47, 1  ;;  %v2464_v62 = vcombine.high %v194_v32, %v194_v32  ;;  %v3122_v47 = vld [vmem:[%s4165_s1 + $0x740] ss:$8 sps:$4 sm:$0xff]  }
  0x9e   : > { %2184 = vmatprep.subr.bf16.mxu0 %v3036_v63  ;;  %v2476_v63 = vcombine.high %v202_v35, %v202_v35  ;;  %v3104_v35 = vld [vmem:[%s4165_s1 + $0x710] ss:$8 sps:$4 sm:$0xff]  }
  0xa0   : > { %2013 = vmatpush1.bf16.msra.mxu1 %v3031_v0  ;;  %v365_v0 = vshll.u32 %v3581_v41, 16 }
  0xa1   : > { %2185 = vmatpush1.bf16.msra.mxu0 %v3034_v1  ;;  %2014 = vmatprep.subr.bf16.mxu1 %v3039_v2  ;;  %v3079_v1 = vld [vmem:[%s4165_s1 + $0x2e0] ss:$8 sps:$4 sm:$0xff]  }
  0xa2   : > { %2186 = vmatprep.subr.bf16.mxu0 %v3042_v3  ;;  %v3082_v2 = vld [vmem:[%s4165_s1 + $0x6e0] ss:$8 sps:$4 sm:$0xff]   ;;  %v242_v3 = vshll.u32 %v2461_v52, 16  ;;  %v3128_v52 = vld [vmem:[%s4165_s1 + $0x750] ss:$8 sps:$4 sm:$0xff]  }
  0xa4   : > { %2015 = vmatpush1.bf16.msra.mxu1 %v3037_v4  ;;  %v3087_v4 = vld [vmem:[%s4165_s1 + $0x2f4] ss:$8 sps:$4 sm:$0xff]  }
  0xa5   : > { %2187 = vmatpush1.bf16.msra.mxu0 %v3040_v5  ;;  %2016 = vmatprep.subr.bf16.mxu1 %v3045_v6  ;;  %v3090_v5 = vld [vmem:[%s4165_s1 + $0x6f4] ss:$8 sps:$4 sm:$0xff]   ;;  %v271_v6 = vshrl.u32 %v3571_v38, 16  ;;  %v336_v38 = vrot.slane %v334_v8, 1  ;;  %v3152_v8 = vld [vmem:[%s4165_s1 + $0x790] ss:$8 sps:$4 sm:$0xff]  }
  0xa6   : > { %2188 = vmatprep.subr.bf16.mxu0 %v3048_v7  ;;  %v275_v7 = vrot.slane %v273_v60, 1  ;;  %v3137_v60 = vld [vmem:[%s4165_s1 + $0x370] ss:$8 sps:$4 sm:$0xff]  }
  0xa8   : > { %2017 = vmatpush1.bf16.msra.mxu1 %v3043_v9  ;;  %v278_v9 = vshll.u32 %v2464_v62, 16  ;;  %v3148_v62 = vld [vmem:[%s4165_s1 + $0x784] ss:$8 sps:$4 sm:$0xff]  }
  0xa9   : > { %2189 = vmatpush1.bf16.msra.mxu0 %v3046_v11  ;;  %2018 = vmatprep.subr.bf16.mxu1 %v3051_v12  ;;  %v363_v11 = vshrl.u32 %v3581_v41, 16  ;;  %v367_v12 = vrot.slane %v365_v0, 1  ;;  %v3094_v41 = vld [vmem:[%s4165_s1 + $0x304] ss:$8 sps:$4 sm:$0xff]   ;;  %v3146_v0 = vld [vmem:[%s4165_s1 + $0x780] ss:$8 sps:$4 sm:$0xff]  }
  0xaa   : > { %2190 = vmatprep.subr.bf16.mxu0 %v3054_v13  ;;  %v370_v13 = vshll.u32 %v2476_v63, 16  ;;  %v3143_v63 = vld [vmem:[%s4165_s1 + $0x380] ss:$8 sps:$4 sm:$0xff]  }
  0xab   : > { %v368_v24 = vor.u32 %v367_v12, %v363_v11  ;;  %v3166_v11 = vld [vmem:[%s4165_s1 + $0x7b4] ss:$8 sps:$4 sm:$0xff]   ;;  %v3161_v12 = vld [vmem:[%s4165_s1 + $0x3b0] ss:$8 sps:$4 sm:$0xff]  }
  0xac   : > { %2019 = vmatpush1.bf16.msra.mxu1 %v3049_v14  ;;  %v3085_v14 = vld [vmem:[%s4165_s1 + $0x2f0] ss:$8 sps:$4 sm:$0xff]   ;;  %v372_v25 = vrot.slane %v370_v13, 1 }
  0xad   : > { %2191 = vmatpush1.bf16.msra.mxu0 %v3052_v15  ;;  %2020 = vmatprep.subr.bf16.mxu1 %v3057_v16  ;;  %v3088_v15 = vld [vmem:[%s4165_s1 + $0x6f0] ss:$8 sps:$4 sm:$0xff]   ;;  %v240_v16 = vor.u32 %v239_v28, %v235_v56  ;;  %v3131_v56 = vld [vmem:[%s4165_s1 + $0x360] ss:$8 sps:$4 sm:$0xff]   ;;  %v3142_v28 = vld [vmem:[%s4165_s1 + $0x774] ss:$8 sps:$4 sm:$0xff]  }
  0xae   : > { %2192 = vmatprep.subr.bf16.mxu0 %v3060_v17  ;;  %v244_v17 = vrot.slane %v242_v3, 1  ;;  %v373_v54 = vsel %vm233_vm0, %v368_v24, %v372_v25  ;;  %v3149_v3 = vld [vmem:[%s4165_s1 + $0x390] ss:$8 sps:$4 sm:$0xff]   ;;  %v3179_v24 = vld [vmem:[%s4165_s1 + $0x3e0] ss:$8 sps:$4 sm:$0xff]  }
  0xaf   : > { %v3164_v13 = vld [vmem:[%s4165_s1 + $0x7b0] ss:$8 sps:$4 sm:$0xff]   ;;  %v3182_v25 = vld [vmem:[%s4165_s1 + $0x7e0] ss:$8 sps:$4 sm:$0xff]  }
  0xb0   : > { %2021 = vmatpush1.bf16.msra.mxu1 %v3055_v18  ;;  %v332_v18 = vor.u32 %v331_v61, %v327_v33  ;;  %v3140_v33 = vld [vmem:[%s4165_s1 + $0x770] ss:$8 sps:$4 sm:$0xff]   ;;  %v3145_v61 = vld [vmem:[%s4165_s1 + $0x384] ss:$8 sps:$4 sm:$0xff]  }
  0xb1   : > { %2193 = vmatpush1.bf16.msra.mxu0 %v3058_v20  ;;  %2022 = vmatprep.subr.bf16.mxu1 %v3063_v22  ;;  %v3098_v20 = vld [vmem:[%s4165_s1 + $0x704] ss:$8 sps:$4 sm:$0xff]   ;;  %v276_v22 = vor.u32 %v275_v7, %v271_v6  ;;  %v3155_v6 = vld [vmem:[%s4165_s1 + $0x3a0] ss:$8 sps:$4 sm:$0xff]  }
  0xb2   : > { %2194 = vmatprep.subr.bf16.mxu0 %v3066_v23  ;;  %v280_v23 = vrot.slane %v278_v9, 1  ;;  %v3158_v7 = vld [vmem:[%s4165_s1 + $0x7a0] ss:$8 sps:$4 sm:$0xff]   ;;  %v3163_v9 = vld [vmem:[%s4165_s1 + $0x3b4] ss:$8 sps:$4 sm:$0xff]  }
  0xb4   : > { %2023 = vmatpush1.bf16.msra.mxu1 %v3061_v26  ;;  %v3092_v26 = vld [vmem:[%s4165_s1 + $0x300] ss:$8 sps:$4 sm:$0xff]   ;;  %v281_v32 = vsel %vm233_vm0, %v276_v22, %v280_v23  ;;  %v3181_v22 = vld [vmem:[%s4165_s1 + $0x3e4] ss:$8 sps:$4 sm:$0xff]  }
  0xb5   : > { %2195 = vmatpush1.bf16.msra.mxu0 %v3064_v27  ;;  %2024 = vmatprep.subr.bf16.mxu1 %v3069_v29  ;;  %v3096_v27 = vld [vmem:[%s4165_s1 + $0x700] ss:$8 sps:$4 sm:$0xff]   ;;  %v245_v29 = vsel %vm233_vm0, %v240_v16, %v244_v17  ;;  %v3184_v23 = vld [vmem:[%s4165_s1 + $0x7e4] ss:$8 sps:$4 sm:$0xff]  }
  0xb6   : > { %2196 = vmatprep.subr.bf16.mxu0 %v3072_v30  ;;  %v337_v30 = vsel %vm233_vm0, %v332_v18, %v336_v38  ;;  %v3167_v16 = vld [vmem:[%s4165_s1 + $0x3c0] ss:$8 sps:$4 sm:$0xff]   ;;  %v3175_v18 = vld [vmem:[%s4165_s1 + $0x3d4] ss:$8 sps:$4 sm:$0xff]  }
  0xb7   : > { %v3170_v17 = vld [vmem:[%s4165_s1 + $0x7c0] ss:$8 sps:$4 sm:$0xff]   ;;  %v3178_v38 = vld [vmem:[%s4165_s1 + $0x7d4] ss:$8 sps:$4 sm:$0xff]  }
  0xb8   : > { %2025 = vmatpush1.bf16.msra.mxu1 %v3067_v37  ;;  %v3112_v37 = vld [vmem:[%s4165_s1 + $0x724] ss:$8 sps:$4 sm:$0xff]  }
  0xb9   : > { %2197 = vmatpush1.bf16.msra.mxu0 %v3070_v39  ;;  %2026 = vmatprep.subr.bf16.mxu1 %v3075_v19  ;;  %v3107_v39 = vld [vmem:[%s4165_s1 + $0x320] ss:$8 sps:$4 sm:$0xff]   ;;  %v3115_v19 = vld [vmem:[%s4165_s1 + $0x334] ss:$8 sps:$4 sm:$0xff]  }
  0xba   : > { %2198 = vmatprep.subr.bf16.mxu0 %v3078_v21  ;;  %v3118_v21 = vld [vmem:[%s4165_s1 + $0x734] ss:$8 sps:$4 sm:$0xff]  }
  0xbc   : > { %2027 = vmatpush1.bf16.msra.mxu1 %v3073_v49  ;;  %v3130_v49 = vld [vmem:[%s4165_s1 + $0x754] ss:$8 sps:$4 sm:$0xff]  }
  0xbd   : > { %2199 = vmatpush1.bf16.msra.mxu0 %v3076_v50  ;;  %2028 = vmatprep.subr.bf16.mxu1 %v3081_v57  ;;  %v3125_v50 = vld [vmem:[%s4165_s1 + $0x350] ss:$8 sps:$4 sm:$0xff]   ;;  %v3134_v57 = vld [vmem:[%s4165_s1 + $0x760] ss:$8 sps:$4 sm:$0xff]  }
  0xbe   : > { %2200 = vmatprep.subr.bf16.mxu0 %v3084_v58  ;;  %v3139_v58 = vld [vmem:[%s4165_s1 + $0x374] ss:$8 sps:$4 sm:$0xff]  }
  0xc0   : > { %2029 = vmatpush1.bf16.msra.mxu1 %v3079_v1  ;;  %v3151_v1 = vld [vmem:[%s4165_s1 + $0x394] ss:$8 sps:$4 sm:$0xff]  }
  0xc1   : > { %2201 = vmatpush1.bf16.msra.mxu0 %v3082_v2  ;;  %2030 = vmatprep.subr.bf16.mxu1 %v3087_v4  ;;  %v3154_v2 = vld [vmem:[%s4165_s1 + $0x794] ss:$8 sps:$4 sm:$0xff]   ;;  %v3157_v4 = vld [vmem:[%s4165_s1 + $0x3a4] ss:$8 sps:$4 sm:$0xff]  }
  0xc2   : > { %2202 = vmatprep.subr.bf16.mxu0 %v3090_v5  ;;  %v3160_v5 = vld [vmem:[%s4165_s1 + $0x7a4] ss:$8 sps:$4 sm:$0xff]  }
  0xc4   : > { %2031 = vmatpush1.bf16.msra.mxu1 %v3085_v14  ;;  %v3169_v14 = vld [vmem:[%s4165_s1 + $0x3c4] ss:$8 sps:$4 sm:$0xff]  }
  0xc5   : > { %2203 = vmatpush1.bf16.msra.mxu0 %v3088_v15  ;;  %2043 = vmatprep.subr.bf16.mxu1 %v3094_v41  ;;  %v3172_v15 = vld [vmem:[%s4165_s1 + $0x7c4] ss:$8 sps:$4 sm:$0xff]   ;;  %v3173_v41 = vld [vmem:[%s4165_s1 + $0x3d0] ss:$8 sps:$4 sm:$0xff]  }
  0xc6   : > { %2215 = vmatprep.subr.bf16.mxu0 %v3098_v20  ;;  %v3176_v20 = vld [vmem:[%s4165_s1 + $0x7d0] ss:$8 sps:$4 sm:$0xff]  }
  0xc7   : > { %2033 = vmatmul.mubr.bf16.vlgmr.msra.gmra.mrb[0].mxu1 %v245_v29  ;;  %v3185_v29 = vld [vmem:[%s4165_s1 + $0x3f0] ss:$8 sps:$4 sm:$0xff]  }
  0xc8   : > { %2205 = vmatmul.mubr.bf16.vlgmr.msra.gmra.mrb[0].mxu0 %v337_v30  ;;  %2044 = vmatpush1.bf16.msra.mxu1 %v3092_v26  ;;  %v3187_v26 = vld [vmem:[%s4165_s1 + $0x3f4] ss:$8 sps:$4 sm:$0xff]   ;;  %v3188_v30 = vld [vmem:[%s4165_s1 + $0x7f0] ss:$8 sps:$4 sm:$0xff]  }
  0xc9   : > { %2216 = vmatpush1.bf16.msra.mxu0 %v3096_v27  ;;  %2045 = vmatprep.subr.bf16.mxu1 %v3103_v31  ;;  %v3190_v27 = vld [vmem:[%s4165_s1 + $0x7f4] ss:$8 sps:$4 sm:$0xff]   ;;  %v2258_v31 = vlaneseq }
  0xca   : > { %2217 = vmatprep.subr.bf16.mxu0 %v3106_v51  ;;  %2075 = vmatprep.mubr.bf16.mxu1 %v281_v32 }
  0xcb   : > { %2247 = vmatprep.mubr.bf16.mxu0 %v373_v54  ;;  %v2259_v51 = vshrl.u32 %v2258_v31, 7 }
  0xcc   : > { %2046 = vmatpush1.bf16.msra.mxu1 %v3101_v34 }
  0xcd   : > { %2218 = vmatpush1.bf16.msra.mxu0 %v3104_v35  ;;  %2047 = vmatprep.subr.bf16.mxu1 %v3109_v36  ;;  %vm2260_vm1 = vcmp.lt.s32.totalorder %v2259_v51, 2 }
  0xce   : > { %2219 = vmatprep.subr.bf16.mxu0 %v3112_v37  ;;  %v3223_v37 = vmov 0.0  }
  0xd0   : > { %2048 = vmatpush1.bf16.msra.mxu1 %v3107_v39  ;;  %v2733_v39 = vsel %vm2260_vm1, 1.0, %v3223_v37 }
  0xd1   : > { %2220 = vmatpush1.bf16.msra.mxu0 %v3110_v40  ;;  %2049 = vmatprep.subr.bf16.mxu1 %v3115_v19 }
  0xd2   : > { %2221 = vmatprep.subr.bf16.mxu0 %v3118_v21 }
  0xd4   : > { %2050 = vmatpush1.bf16.msra.mxu1 %v3113_v42 }
  0xd5   : > { %2222 = vmatpush1.bf16.msra.mxu0 %v3116_v43  ;;  %2051 = vmatprep.subr.bf16.mxu1 %v3121_v44 }
  0xd6   : > { %2223 = vmatprep.subr.bf16.mxu0 %v3124_v45 }
  0xd8   : > { %2052 = vmatpush1.bf16.msra.mxu1 %v3119_v46 }
  0xd9   : > { %2224 = vmatpush1.bf16.msra.mxu0 %v3122_v47  ;;  %2053 = vmatprep.subr.bf16.mxu1 %v3127_v48 }
  0xda   : > { %2225 = vmatprep.subr.bf16.mxu0 %v3130_v49 }
  0xdc   : > { %2054 = vmatpush1.bf16.msra.mxu1 %v3125_v50 }
  0xdd   : > { %2226 = vmatpush1.bf16.msra.mxu0 %v3128_v52  ;;  %2055 = vmatprep.subr.bf16.mxu1 %v3133_v53 }
  0xde   : > { %2227 = vmatprep.subr.bf16.mxu0 %v3136_v55 }
  0xe0   : > { %2056 = vmatpush1.bf16.msra.mxu1 %v3131_v56 }
  0xe1   : > { %2228 = vmatpush1.bf16.msra.mxu0 %v3134_v57  ;;  %2057 = vmatprep.subr.bf16.mxu1 %v3139_v58 }
  0xe2   : > { %2229 = vmatprep.subr.bf16.mxu0 %v3142_v28 }
  0xe4   : > { %2058 = vmatpush1.bf16.msra.mxu1 %v3137_v60 }
  0xe5   : > { %2230 = vmatpush1.bf16.msra.mxu0 %v3140_v33  ;;  %2059 = vmatprep.subr.bf16.mxu1 %v3145_v61 }
  0xe6   : > { %2231 = vmatprep.subr.bf16.mxu0 %v3148_v62 }
  0xe8   : > { %2060 = vmatpush1.bf16.msra.mxu1 %v3143_v63 }
  0xe9   : > { %2232 = vmatpush1.bf16.msra.mxu0 %v3146_v0  ;;  %2061 = vmatprep.subr.bf16.mxu1 %v3151_v1 }
  0xea   : > { %2233 = vmatprep.subr.bf16.mxu0 %v3154_v2 }
  0xec   : > { %2062 = vmatpush1.bf16.msra.mxu1 %v3149_v3 }
  0xed   : > { %2234 = vmatpush1.bf16.msra.mxu0 %v3152_v8  ;;  %2063 = vmatprep.subr.bf16.mxu1 %v3157_v4 }
  0xee   : > { %2235 = vmatprep.subr.bf16.mxu0 %v3160_v5 }
  0xf0   : > { %2064 = vmatpush1.bf16.msra.mxu1 %v3155_v6 }
  0xf1   : > { %2236 = vmatpush1.bf16.msra.mxu0 %v3158_v7  ;;  %2065 = vmatprep.subr.bf16.mxu1 %v3163_v9 }
  0xf2   : > { %2237 = vmatprep.subr.bf16.mxu0 %v3166_v11 }
  0xf4   : > { %2066 = vmatpush1.bf16.msra.mxu1 %v3161_v12 }
  0xf5   : > { %2238 = vmatpush1.bf16.msra.mxu0 %v3164_v13  ;;  %2067 = vmatprep.subr.bf16.mxu1 %v3169_v14 }
  0xf6   : > { %2239 = vmatprep.subr.bf16.mxu0 %v3172_v15 }
  0xf8   : > { %2068 = vmatpush1.bf16.msra.mxu1 %v3167_v16 }
  0xf9   : > { %2240 = vmatpush1.bf16.msra.mxu0 %v3170_v17  ;;  %2069 = vmatprep.subr.bf16.mxu1 %v3175_v18 }
  0xfa   : > { %2241 = vmatprep.subr.bf16.mxu0 %v3178_v38 }
  0xfc   : > { %2070 = vmatpush1.bf16.msra.mxu1 %v3173_v41 }
  0xfd   : > { %2242 = vmatpush1.bf16.msra.mxu0 %v3176_v20  ;;  %2071 = vmatprep.subr.bf16.mxu1 %v3181_v22 }
  0xfe   : > { %2243 = vmatprep.subr.bf16.mxu0 %v3184_v23 }
 0x100   : > { %2072 = vmatpush1.bf16.msra.mxu1 %v3179_v24 }
 0x101   : > { %2244 = vmatpush1.bf16.msra.mxu0 %v3182_v25  ;;  %2073 = vmatprep.subr.bf16.mxu1 %v3187_v26 }
 0x102   : > { %2245 = vmatprep.subr.bf16.mxu0 %v3190_v27 }
 0x104   : > { %2074 = vmatpush1.bf16.msra.mxu1 %v3185_v29 }
 0x105   : > { %2246 = vmatpush1.bf16.msra.mxu0 %v3188_v30 }
 0x107   : > { %2076 = vmatmul.mubr.bf16.vlgmr.msra.gmra.mrb[0].mxu1 %v3901_v59 }
 0x108   : > { %2248 = vmatmul.mubr.bf16.vlgmr.msra.gmra.mrb[0].mxu0 %v3906_v10 }
 0x1da   : > { %v2077_v32 = vpop.f32.mrb[0].mxu1 }
 0x1db   : > { %v2249_v54 = vpop.f32.mrb[0].mxu0  ;;  %v2079_v35 = vpop.f32.mrb[1].mxu1 }
 0x1dc   : > { %v4127_v34 = vadd.f32 %v2249_v54, %v2077_v32  ;;  %v2251_v36 = vpop.f32.mrb[1].mxu0  ;;  %v2081_v19 = vpop.f32.mrb[2].mxu1 }
 0x1dd   : > { %v4129_v40 = vadd.f32 %v2251_v36, %v2079_v35  ;;  %v2253_v21 = vpop.f32.mrb[2].mxu0  ;;  %v2083_v10 = vpop.f32.mrb[3].mxu1 }
 0x1de   : > { %v2281_v59 = vmul.f32 %v4127_v34, %v4127_v34  ;;  %v4133_v42 = vadd.f32 %v2253_v21, %v2081_v19  ;;  %v2255_v43 = vpop.f32.mrb[3].mxu0  ;;  %v2263_v46 = vmul.f32 %v4127_v34, %v2733_v39 }
 0x1df   : > { %v2282_v44 = vmul.f32 %v4129_v40, %v4129_v40  ;;  %v4137_v45 = vadd.f32 %v2255_v43, %v2083_v10  ;;  %v2264_v49 = vmul.f32 %v4129_v40, %v2733_v39 }
 0x1e0   : > { %v2265_v47 = vmul.f32 %v4133_v42, %v2733_v39  ;;  %v2283_v48 = vmul.f32 %v4133_v42, %v4133_v42  ;;  %v2285_v53 = vmul.f32 %v2733_v39, %v2281_v59 }
 0x1e1   : > { %v2266_v50 = vmul.f32 %v4137_v45, %v2733_v39  ;;  %v2284_v52 = vmul.f32 %v4137_v45, %v4137_v45  ;;  %v2286_v57 = vmul.f32 %v2733_v39, %v2282_v44 }
 0x1e2   : > { %v2267_v55 = vadd.f32 %v2265_v47, %v2263_v46  ;;  %v2287_v56 = vmul.f32 %v2733_v39, %v2283_v48 }
 0x1e3   : > { %v2274_v58 = vadd.f32 %v2266_v50, %v2264_v49  ;;  %v2288_v28 = vmul.f32 %v2733_v39, %v2284_v52 }
 0x1e4   : > { %v2268_v60 = vrot.slane %v2267_v55, 4  ;;  %v2289_v33 = vadd.f32 %v2287_v56, %v2285_v53 }
 0x1e5   : > { %v2275_v61 = vrot.slane %v2274_v58, 4  ;;  %v2296_v62 = vadd.f32 %v2288_v28, %v2286_v57 }
 0x1e6   : > { %v2269_v63 = vadd.f32 %v2268_v60, %v2267_v55  ;;  %v2290_v0 = vrot.slane %v2289_v33, 4 }
 0x1e7   : > { %v2276_v1 = vadd.f32 %v2275_v61, %v2274_v58  ;;  %v2297_v2 = vrot.slane %v2296_v62, 4 }
 0x1e8   : > { %v2270_v3 = vrot.slane %v2269_v63, 2  ;;  %v2291_v8 = vadd.f32 %v2290_v0, %v2289_v33 }
 0x1e9   : > { %v2277_v4 = vrot.slane %v2276_v1, 2  ;;  %v2298_v5 = vadd.f32 %v2297_v2, %v2296_v62 }
 0x1ea   : > { %v2271_v6 = vadd.f32 %v2270_v3, %v2269_v63  ;;  %v2292_v7 = vrot.slane %v2291_v8, 2 }
 0x1eb   : > { %v2278_v9 = vadd.f32 %v2277_v4, %v2276_v1  ;;  %v2299_v11 = vrot.slane %v2298_v5, 2 }
 0x1ec   : > { %v2272_v12 = vrot.slane %v2271_v6, 1  ;;  %v2293_v13 = vadd.f32 %v2292_v7, %v2291_v8 }
 0x1ed   : > { %v2279_v14 = vrot.slane %v2278_v9, 1  ;;  %v2300_v15 = vadd.f32 %v2299_v11, %v2298_v5 }
 0x1ee   : > { %v2273_v16 = vadd.f32 %v2272_v12, %v2271_v6  ;;  %v2294_v17 = vrot.slane %v2293_v13, 1 }
 0x1ef   : > { %v2280_v18 = vadd.f32 %v2279_v14, %v2278_v9  ;;  %v2301_v38 = vrot.slane %v2300_v15, 1 }
 0x1f0   : > { %v2295_v41 = vadd.f32 %v2294_v17, %v2293_v13  ;;  %v2303_v20 = vmul.f32 0.25, %v2273_v16 }
 0x1f1   : > { %v2302_v22 = vadd.f32 %v2301_v38, %v2300_v15  ;;  %v2304_v23 = vmul.f32 0.25, %v2280_v18 }
 0x1f2   : > { %v2305_v24 = vmul.f32 0.25, %v2295_v41  ;;  %v2307_v25 = vmul.f32 %v2303_v20, %v2303_v20  ;;  %v2313_v26 = vsub.f32 %v4127_v34, %v2303_v20  ;;  %v2315_v27 = vsub.f32 %v4133_v42, %v2303_v20 }
 0x1f3   : > { %v2306_v29 = vmul.f32 0.25, %v2302_v22  ;;  %v2308_v30 = vmul.f32 %v2304_v23, %v2304_v23  ;;  %v2314_v31 = vsub.f32 %v4129_v40, %v2304_v23  ;;  %v2316_v51 = vsub.f32 %v4137_v45, %v2304_v23 }
 0x1f4   : > { %v2309_v32 = vsub.f32 %v2305_v24, %v2307_v25 }
 0x1f5   : > { %v2310_v54 = vsub.f32 %v2306_v29, %v2308_v30 }
 0x1f6   : > { %v2311_v35 = vmax.f32 %v2309_v32, 0.0 }
 0x1f7   : > { %v2312_v36 = vmax.f32 %v2310_v54, 0.0 }
 0x1f8   : > { %v2317_v37 = vadd.f32 1e-05, %v2311_v35 }
 0x1f9   : > { %v2318_v39 = vadd.f32 1e-05, %v2312_v36 }
 0x1fa   : > { %3195 = vrsqrt.f32 %v2317_v37 }
 0x1fb   : > { %3197 = vrsqrt.f32 %v2318_v39 }
 0x204   : > { %v3196_v19 = vpop.eup %3195 }
 0x205   : > { %v3198_v21 = vpop.eup %3197  ;;  %v2321_v34 = vmul.f32 %v3196_v19, %v2313_v26  ;;  %v2323_v59 = vmul.f32 %v3196_v19, %v2315_v27 }
 0x206   : > { %v2322_v42 = vmul.f32 %v3198_v21, %v2314_v31  ;;  %v2324_v10 = vmul.f32 %v3198_v21, %v2316_v51 }
 0x207   : > { %vm2325_vm2 = vcmp.ge.f32.partialorder %v2321_v34, 0.0  ;;  %vm2327_vm3 = vcmp.ge.f32.partialorder %v2323_v59, 0.0  ;;  %v2329_v40 = vmul.f32 0.2, %v2321_v34  ;;  %v2331_v43 = vmul.f32 0.2, %v2323_v59 }
 0x208   : > { %vm2326_vm4 = vcmp.ge.f32.partialorder %v2322_v42, 0.0  ;;  %vm2328_vm5 = vcmp.ge.f32.partialorder %v2324_v10, 0.0  ;;  %v2330_v44 = vmul.f32 0.2, %v2322_v42  ;;  %v2332_v45 = vmul.f32 0.2, %v2324_v10 }
 0x209   : > { %v2335_v46 = vsel %vm2327_vm3, %v2323_v59, %v2331_v43  ;;  %v2333_v47 = vsel %vm2325_vm2, %v2321_v34, %v2329_v40 }
 0x20a   : > { %v2334_v48 = vsel %vm2326_vm4, %v2322_v42, %v2330_v44  ;;  %v2336_v49 = vsel %vm2328_vm5, %v2324_v10, %v2332_v45 }
 0x20b   : > { %v2740_v50 = vpack.c.bf16 %v2334_v48, %v2333_v47  ;;  %v2741_v52 = vpack.c.bf16 %v2336_v49, %v2335_v46 }
 0x20d   : > { %2349 = vst [vmem:[%s187_s15] sm:$0xff] %v2740_v50  ;;  %2350 = vst [vmem:[%s187_s15 + $0x8] sm:$0xff] %v2741_v52 }
 0x20e PF: > { %s12_s11 = sadd.s32 1, %s3221_s11   ;;  %s4167_s9 = smov %s3217_s10 }
 0x20f   : > { %p9_p5 = scmp.ge.s32.totalorder %s12_s11, 4   ;;  %s4168_s10 = smov %s4170_s12 }
 0x211   :  { %11 = sbr.rel (!%p9_p5) target bundleno = 2 (0x2), region = 61 }

// kernel: discriminator_forward.8
= control target key start
LH: loop header
LB: loop body
LE: loop exit
PB: predicated region body
PF: predicated region fallthrough
CT: control target
= control target key end

     0   :  { %s10646_s9 = smov 0   ;;  %s10648_s10 = smov 0   ;;  %s12701_s0 = inlined_call_operand.vmem [shape: bf16[2,56,256], index: 0, kind: input, shape index: {}]   ;;  %s12702_s1 = inlined_call_operand.vmem [shape: bf16[4096,512], index: 1, kind: input, shape index: {}]   ;;  %s12703_s2 = inlined_call_operand.vmem [shape: bf16[2,24,512], index: 2, kind: output, shape index: {}]  }
   0x1   :  { %s10650_s11 = smov 0   ;;  %s10652_s12 = smov 0  }
   0x2   :  { %s10654_s13 = smov 0   ;;  %s10656_s14 = smov 0  }
   0x3   :  { %s10658_s15 = smov 0   ;;  %s10660_s16 = smov 0  }
   0x4   :  { %s10662_s17 = smov 0  }
   0x5 LB: > { %s21_s18 = sadd.s32 1, %s10620_s15  ;;  %s24_s19 = sadd.s32 1, %s10624_s16  ;;  %s10628_s17 = sphi %s10662_s17, %s12_s17   ;;  %s10624_s16 = sphi %s10660_s16, %s12713_s16   ;;  %s10620_s15 = sphi %s10658_s15, %s12712_s15   ;;  %s10616_s14 = sphi %s10656_s14, %s12711_s14   ;;  %s10612_s13 = sphi %s10654_s13, %s12710_s13   ;;  %s10608_s12 = sphi %s10652_s12, %s12709_s12   ;;  %s10604_s11 = sphi %s10650_s11, %s12708_s11   ;;  %s10600_s10 = sphi %s10648_s10, %s12707_s10   ;;  %s10596_s9 = sphi %s10646_s9, %s12706_s9  }
   0x6   : > { %p22_p0 = scmp.ge.s32.totalorder %s21_s18, 2  ;;  %p64_p1 = scmp.ne.s32.totalorder %s10608_s12, %s10604_s11 }
   0x7   : > { %s8967_s20 = sadd.s32 4294967295, %s10628_s17   ;;  %p65_p2 = scmp.eq.s32.totalorder %s10628_s17, 0 }
   0x8   : > { %s12715_s18 = smov (%p22_p0, %s21_s18), 0  ;;  %s12717_s19 = smov (!%p22_p0, %s24_s19), %s10624_s16 }
   0x9   : > { %p26_p3 = scmp.ge.s32.totalorder %s12717_s19, 2  ;;  %s80_s21 = ssub.s32 %s10620_s15, %s12715_s18 }
   0xa   : > { %p10702_p4 = por %p65_p2, %p64_p1  ;;  %p95_p5 = scmp.ne.s32.totalorder %s10600_s10, %s10596_s9 }
   0xb   : > { %s12719_s19 = smov (%p26_p3, %s12717_s19), 0  ;;  %s57_s23 = sadd.s32 1, %s10608_s12 }
   0xc   : > { %p96_p6 = scmp.eq.s32.totalorder %s8967_s20, 3  ;;  %s54_s24 = ssub.s32 %s10624_s16, %s12719_s19 }
   0xd   : > { %s85_s25 = sadd.s32 1, %s10600_s10  ;;  %p55_p7 = scmp.eq.s32.totalorder %s54_s24, 0 }
   0xe   : > { %s82_s26 = sor.u32 %s80_s21, %s54_s24  ;;  %p10714_p9 = por %p96_p6, %p95_p5 }
   0xf   : > { %p83_p8 = scmp.eq.s32.totalorder %s82_s26, 0  ;;  %p8970_p10 = scmp.ge.s32.totalorder %s10628_s17, 4 }
  0x10   : > { %s10719_s28 = scalar_select %p55_p7, %s10608_s12, %s57_s23  }
  0x11   : > { %s10722_s29 = scalar_select %p83_p8, %s10600_s10, %s85_s25  }
  0x12   : > { %118 = sbr.rel (%p8970_p10) target bundleno = 285 (0x11d), region = 16 }
  0x19   : > { %129 = sbr.rel (!%p10702_p4) target bundleno = 285 (0x11d), region = 24  ;;  %s131_s30 = sand.u32 (%p10702_p4), 1, %s10608_s12  }
  0x1a   : > { %s9539_s3 = sshll.u32 (%p10702_p4), %s10624_s16, 3  ;;  %s8971_s4 = sshll.u32 (%p10702_p4), %s131_s30, 12 }
  0x1b   : > { %s10732_s7 = scalar_lea.vmem (%p10702_p4), %s12702_s1, %s9539_s3  ;;  %s10737_s8 = scalar_lea.vmem (%p10702_p4), [#allocation2], %s8971_s4 }
  0x1c   : > { %v1189_v0 = vld [vmem:[%s10732_s7] sm:$0xff] (%p10702_p4)  ;;  %v1191_v1 = vld [vmem:[%s10732_s7 + $0x10] sm:$0xff] (%p10702_p4) }
  0x1d   : > { %v1193_v2 = vld [vmem:[%s10732_s7 + $0x20] sm:$0xff] (%p10702_p4)  ;;  %1190 = vst [vmem:[%s10737_s8] sm:$0xff] (%p10702_p4), %v1189_v0  ;;  %1192 = vst [vmem:[%s10737_s8 + $0x8] sm:$0xff] (%p10702_p4), %v1191_v1  ;;  %v1195_v3 = vld [vmem:[%s10732_s7 + $0x30] sm:$0xff] (%p10702_p4) }
  0x1e   : > { %1194 = vst [vmem:[%s10737_s8 + $0x10] sm:$0xff] (%p10702_p4), %v1193_v2  ;;  %v1197_v4 = vld [vmem:[%s10732_s7 + $0x40] sm:$0xff] (%p10702_p4)  ;;  %v1199_v5 = vld [vmem:[%s10732_s7 + $0x50] sm:$0xff] (%p10702_p4)  ;;  %1196 = vst [vmem:[%s10737_s8 + $0x18] sm:$0xff] (%p10702_p4), %v1195_v3 }
  0x1f   : > { %1198 = vst [vmem:[%s10737_s8 + $0x20] sm:$0xff] (%p10702_p4), %v1197_v4  ;;  %1200 = vst [vmem:[%s10737_s8 + $0x28] sm:$0xff] (%p10702_p4), %v1199_v5  ;;  %v1201_v6 = vld [vmem:[%s10732_s7 + $0x60] sm:$0xff] (%p10702_p4)  ;;  %v1203_v7 = vld [vmem:[%s10732_s7 + $0x70] sm:$0xff] (%p10702_p4) }
  0x20   : > { %v1205_v8 = vld [vmem:[%s10732_s7 + $0x80] sm:$0xff]  ;;  %1202 = vst [vmem:[%s10737_s8 + $0x30] sm:$0xff] %v1201_v6  ;;  %1204 = vst [vmem:[%s10737_s8 + $0x38] sm:$0xff] %v1203_v7  ;;  %v1207_v9 = vld [vmem:[%s10732_s7 + $0x90] sm:$0xff] }
  0x21   : > { %1206 = vst [vmem:[%s10737_s8 + $0x40] sm:$0xff] %v1205_v8  ;;  %v1209_v10 = vld [vmem:[%s10732_s7 + $0xa0] sm:$0xff]  ;;  %v1211_v11 = vld [vmem:[%s10732_s7 + $0xb0] sm:$0xff]  ;;  %1208 = vst [vmem:[%s10737_s8 + $0x48] sm:$0xff] %v1207_v9 }
  0x22   : > { %1210 = vst [vmem:[%s10737_s8 + $0x50] sm:$0xff] %v1209_v10  ;;  %1212 = vst [vmem:[%s10737_s8 + $0x58] sm:$0xff] %v1211_v11  ;;  %v1213_v12 = vld [vmem:[%s10732_s7 + $0xc0] sm:$0xff]  ;;  %v1215_v13 = vld [vmem:[%s10732_s7 + $0xd0] sm:$0xff] }
  0x23   : > { %v1217_v14 = vld [vmem:[%s10732_s7 + $0xe0] sm:$0xff]  ;;  %1214 = vst [vmem:[%s10737_s8 + $0x60] sm:$0xff] %v1213_v12  ;;  %1216 = vst [vmem:[%s10737_s8 + $0x68] sm:$0xff] %v1215_v13  ;;  %v1219_v15 = vld [vmem:[%s10732_s7 + $0xf0] sm:$0xff] }
  0x24   : > { %1218 = vst [vmem:[%s10737_s8 + $0x70] sm:$0xff] %v1217_v14  ;;  %v1221_v16 = vld [vmem:[%s10732_s7 + $0x100] sm:$0xff]  ;;  %v1223_v17 = vld [vmem:[%s10732_s7 + $0x110] sm:$0xff]  ;;  %1220 = vst [vmem:[%s10737_s8 + $0x78] sm:$0xff] %v1219_v15 }
  0x25   : > { %1222 = vst [vmem:[%s10737_s8 + $0x80] sm:$0xff] %v1221_v16  ;;  %1224 = vst [vmem:[%s10737_s8 + $0x88] sm:$0xff] %v1223_v17  ;;  %v1225_v18 = vld [vmem:[%s10732_s7 + $0x120] sm:$0xff]  ;;  %v1227_v19 = vld [vmem:[%s10732_s7 + $0x130] sm:$0xff] }
  0x26   : > { %v1229_v20 = vld [vmem:[%s10732_s7 + $0x140] sm:$0xff]  ;;  %1226 = vst [vmem:[%s10737_s8 + $0x90] sm:$0xff] %v1225_v18  ;;  %1228 = vst [vmem:[%s10737_s8 + $0x98] sm:$0xff] %v1227_v19  ;;  %v1231_v21 = vld [vmem:[%s10732_s7 + $0x150] sm:$0xff] }
  0x27   : > { %1230 = vst [vmem:[%s10737_s8 + $0xa0] sm:$0xff] %v1229_v20  ;;  %v1233_v22 = vld [vmem:[%s10732_s7 + $0x160] sm:$0xff]  ;;  %v1235_v23 = vld [vmem:[%s10732_s7 + $0x170] sm:$0xff]  ;;  %1232 = vst [vmem:[%s10737_s8 + $0xa8] sm:$0xff] %v1231_v21 }
  0x28   : > { %1234 = vst [vmem:[%s10737_s8 + $0xb0] sm:$0xff] %v1233_v22  ;;  %1236 = vst [vmem:[%s10737_s8 + $0xb8] sm:$0xff] %v1235_v23  ;;  %v1237_v24 = vld [vmem:[%s10732_s7 + $0x180] sm:$0xff]  ;;  %v1239_v25 = vld [vmem:[%s10732_s7 + $0x190] sm:$0xff] }
  0x29   : > { %v1241_v26 = vld [vmem:[%s10732_s7 + $0x1a0] sm:$0xff]  ;;  %1238 = vst [vmem:[%s10737_s8 + $0xc0] sm:$0xff] %v1237_v24  ;;  %1240 = vst [vmem:[%s10737_s8 + $0xc8] sm:$0xff] %v1239_v25  ;;  %v1243_v27 = vld [vmem:[%s10732_s7 + $0x1b0] sm:$0xff] }
  0x2a   : > { %1242 = vst [vmem:[%s10737_s8 + $0xd0] sm:$0xff] %v1241_v26  ;;  %v1245_v28 = vld [vmem:[%s10732_s7 + $0x1c0] sm:$0xff]  ;;  %v1247_v29 = vld [vmem:[%s10732_s7 + $0x1d0] sm:$0xff]  ;;  %1244 = vst [vmem:[%s10737_s8 + $0xd8] sm:$0xff] %v1243_v27 }
  0x2b   : > { %1246 = vst [vmem:[%s10737_s8 + $0xe0] sm:$0xff] %v1245_v28  ;;  %1248 = vst [vmem:[%s10737_s8 + $0xe8] sm:$0xff] %v1247_v29  ;;  %v1249_v30 = vld [vmem:[%s10732_s7 + $0x1e0] sm:$0xff]  ;;  %v1251_v31 = vld [vmem:[%s10732_s7 + $0x1f0] sm:$0xff] }
  0x2c   : > { %v1253_v32 = vld [vmem:[%s10732_s7 + $0x200] sm:$0xff]  ;;  %1250 = vst [vmem:[%s10737_s8 + $0xf0] sm:$0xff] %v1249_v30  ;;  %1252 = vst [vmem:[%s10737_s8 + $0xf8] sm:$0xff] %v1251_v31  ;;  %v1255_v33 = vld [vmem:[%s10732_s7 + $0x210] sm:$0xff] }
  0x2d   : > { %1254 = vst [vmem:[%s10737_s8 + $0x100] sm:$0xff] %v1253_v32  ;;  %v1257_v34 = vld [vmem:[%s10732_s7 + $0x220] sm:$0xff]  ;;  %v1259_v35 = vld [vmem:[%s10732_s7 + $0x230] sm:$0xff]  ;;  %1256 = vst [vmem:[%s10737_s8 + $0x108] sm:$0xff] %v1255_v33 }
  0x2e   : > { %1258 = vst [vmem:[%s10737_s8 + $0x110] sm:$0xff] %v1257_v34  ;;  %1260 = vst [vmem:[%s10737_s8 + $0x118] sm:$0xff] %v1259_v35  ;;  %v1261_v36 = vld [vmem:[%s10732_s7 + $0x240] sm:$0xff]  ;;  %v1263_v37 = vld [vmem:[%s10732_s7 + $0x250] sm:$0xff] }
  0x2f   : > { %v1265_v38 = vld [vmem:[%s10732_s7 + $0x260] sm:$0xff]  ;;  %1262 = vst [vmem:[%s10737_s8 + $0x120] sm:$0xff] %v1261_v36  ;;  %1264 = vst [vmem:[%s10737_s8 + $0x128] sm:$0xff] %v1263_v37  ;;  %v1267_v39 = vld [vmem:[%s10732_s7 + $0x270] sm:$0xff] }
  0x30   : > { %1266 = vst [vmem:[%s10737_s8 + $0x130] sm:$0xff] %v1265_v38  ;;  %v1269_v40 = vld [vmem:[%s10732_s7 + $0x280] sm:$0xff]  ;;  %v1271_v41 = vld [vmem:[%s10732_s7 + $0x290] sm:$0xff]  ;;  %1268 = vst [vmem:[%s10737_s8 + $0x138] sm:$0xff] %v1267_v39 }
  0x31   : > { %1270 = vst [vmem:[%s10737_s8 + $0x140] sm:$0xff] %v1269_v40  ;;  %1272 = vst [vmem:[%s10737_s8 + $0x148] sm:$0xff] %v1271_v41  ;;  %v1273_v42 = vld [vmem:[%s10732_s7 + $0x2a0] sm:$0xff]  ;;  %v1275_v43 = vld [vmem:[%s10732_s7 + $0x2b0] sm:$0xff] }
  0x32   : > { %v1277_v44 = vld [vmem:[%s10732_s7 + $0x2c0] sm:$0xff]  ;;  %1274 = vst [vmem:[%s10737_s8 + $0x150] sm:$0xff] %v1273_v42  ;;  %1276 = vst [vmem:[%s10737_s8 + $0x158] sm:$0xff] %v1275_v43  ;;  %v1279_v45 = vld [vmem:[%s10732_s7 + $0x2d0] sm:$0xff] }
  0x33   : > { %1278 = vst [vmem:[%s10737_s8 + $0x160] sm:$0xff] %v1277_v44  ;;  %v1281_v46 = vld [vmem:[%s10732_s7 + $0x2e0] sm:$0xff]  ;;  %v1283_v47 = vld [vmem:[%s10732_s7 + $0x2f0] sm:$0xff]  ;;  %1280 = vst [vmem:[%s10737_s8 + $0x168] sm:$0xff] %v1279_v45 }
  0x34   : > { %1282 = vst [vmem:[%s10737_s8 + $0x170] sm:$0xff] %v1281_v46  ;;  %1284 = vst [vmem:[%s10737_s8 + $0x178] sm:$0xff] %v1283_v47  ;;  %v1285_v48 = vld [vmem:[%s10732_s7 + $0x300] sm:$0xff]  ;;  %v1287_v49 = vld [vmem:[%s10732_s7 + $0x310] sm:$0xff] }
  0x35   : > { %v1289_v50 = vld [vmem:[%s10732_s7 + $0x320] sm:$0xff]  ;;  %1286 = vst [vmem:[%s10737_s8 + $0x180] sm:$0xff] %v1285_v48  ;;  %1288 = vst [vmem:[%s10737_s8 + $0x188] sm:$0xff] %v1287_v49  ;;  %v1291_v51 = vld [vmem:[%s10732_s7 + $0x330] sm:$0xff] }
  0x36   : > { %1290 = vst [vmem:[%s10737_s8 + $0x190] sm:$0xff] %v1289_v50  ;;  %v1293_v52 = vld [vmem:[%s10732_s7 + $0x340] sm:$0xff]  ;;  %v1295_v53 = vld [vmem:[%s10732_s7 + $0x350] sm:$0xff]  ;;  %1292 = vst [vmem:[%s10737_s8 + $0x198] sm:$0xff] %v1291_v51 }
  0x37   : > { %1294 = vst [vmem:[%s10737_s8 + $0x1a0] sm:$0xff] %v1293_v52  ;;  %1296 = vst [vmem:[%s10737_s8 + $0x1a8] sm:$0xff] %v1295_v53  ;;  %v1297_v54 = vld [vmem:[%s10732_s7 + $0x360] sm:$0xff]  ;;  %v1299_v55 = vld [vmem:[%s10732_s7 + $0x370] sm:$0xff] }
  0x38   : > { %v1301_v56 = vld [vmem:[%s10732_s7 + $0x380] sm:$0xff]  ;;  %1298 = vst [vmem:[%s10737_s8 + $0x1b0] sm:$0xff] %v1297_v54  ;;  %1300 = vst [vmem:[%s10737_s8 + $0x1b8] sm:$0xff] %v1299_v55  ;;  %v1303_v57 = vld [vmem:[%s10732_s7 + $0x390] sm:$0xff] }
  0x39   : > { %1302 = vst [vmem:[%s10737_s8 + $0x1c0] sm:$0xff] %v1301_v56  ;;  %v1305_v58 = vld [vmem:[%s10732_s7 + $0x3a0] sm:$0xff]  ;;  %v1307_v59 = vld [vmem:[%s10732_s7 + $0x3b0] sm:$0xff]  ;;  %1304 = vst [vmem:[%s10737_s8 + $0x1c8] sm:$0xff] %v1303_v57 }
  0x3a   : > { %1306 = vst [vmem:[%s10737_s8 + $0x1d0] sm:$0xff] %v1305_v58  ;;  %1308 = vst [vmem:[%s10737_s8 + $0x1d8] sm:$0xff] %v1307_v59  ;;  %v1309_v60 = vld [vmem:[%s10732_s7 + $0x3c0] sm:$0xff]  ;;  %v1311_v61 = vld [vmem:[%s10732_s7 + $0x3d0] sm:$0xff] }
  0x3b   : > { %v1313_v62 = vld [vmem:[%s10732_s7 + $0x3e0] sm:$0xff]  ;;  %1310 = vst [vmem:[%s10737_s8 + $0x1e0] sm:$0xff] %v1309_v60  ;;  %1312 = vst [vmem:[%s10737_s8 + $0x1e8] sm:$0xff] %v1311_v61  ;;  %v1315_v63 = vld [vmem:[%s10732_s7 + $0x3f0] sm:$0xff] }
  0x3c   : > { %1314 = vst [vmem:[%s10737_s8 + $0x1f0] sm:$0xff] %v1313_v62  ;;  %v1317_v0 = vld [vmem:[%s10732_s7 + $0x400] sm:$0xff]  ;;  %v1319_v1 = vld [vmem:[%s10732_s7 + $0x410] sm:$0xff]  ;;  %1316 = vst [vmem:[%s10737_s8 + $0x1f8] sm:$0xff] %v1315_v63 }
  0x3d   : > { %1318 = vst [vmem:[%s10737_s8 + $0x200] sm:$0xff] %v1317_v0  ;;  %1320 = vst [vmem:[%s10737_s8 + $0x208] sm:$0xff] %v1319_v1  ;;  %v1321_v2 = vld [vmem:[%s10732_s7 + $0x420] sm:$0xff]  ;;  %v1323_v3 = vld [vmem:[%s10732_s7 + $0x430] sm:$0xff] }
  0x3e   : > { %v1325_v4 = vld [vmem:[%s10732_s7 + $0x440] sm:$0xff]  ;;  %1322 = vst [vmem:[%s10737_s8 + $0x210] sm:$0xff] %v1321_v2  ;;  %1324 = vst [vmem:[%s10737_s8 + $0x218] sm:$0xff] %v1323_v3  ;;  %v1327_v5 = vld [vmem:[%s10732_s7 + $0x450] sm:$0xff] }
  0x3f   : > { %1326 = vst [vmem:[%s10737_s8 + $0x220] sm:$0xff] %v1325_v4  ;;  %v1329_v6 = vld [vmem:[%s10732_s7 + $0x460] sm:$0xff]  ;;  %v1331_v7 = vld [vmem:[%s10732_s7 + $0x470] sm:$0xff]  ;;  %1328 = vst [vmem:[%s10737_s8 + $0x228] sm:$0xff] %v1327_v5 }
  0x40   : > { %1330 = vst [vmem:[%s10737_s8 + $0x230] sm:$0xff] %v1329_v6  ;;  %1332 = vst [vmem:[%s10737_s8 + $0x238] sm:$0xff] %v1331_v7  ;;  %v1333_v8 = vld [vmem:[%s10732_s7 + $0x480] sm:$0xff]  ;;  %v1335_v9 = vld [vmem:[%s10732_s7 + $0x490] sm:$0xff] }
  0x41   : > { %v1337_v10 = vld [vmem:[%s10732_s7 + $0x4a0] sm:$0xff]  ;;  %1334 = vst [vmem:[%s10737_s8 + $0x240] sm:$0xff] %v1333_v8  ;;  %1336 = vst [vmem:[%s10737_s8 + $0x248] sm:$0xff] %v1335_v9  ;;  %v1339_v11 = vld [vmem:[%s10732_s7 + $0x4b0] sm:$0xff] }
  0x42   : > { %1338 = vst [vmem:[%s10737_s8 + $0x250] sm:$0xff] %v1337_v10  ;;  %v1341_v12 = vld [vmem:[%s10732_s7 + $0x4c0] sm:$0xff]  ;;  %v1343_v13 = vld [vmem:[%s10732_s7 + $0x4d0] sm:$0xff]  ;;  %1340 = vst [vmem:[%s10737_s8 + $0x258] sm:$0xff] %v1339_v11 }
  0x43   : > { %1342 = vst [vmem:[%s10737_s8 + $0x260] sm:$0xff] %v1341_v12  ;;  %1344 = vst [vmem:[%s10737_s8 + $0x268] sm:$0xff] %v1343_v13  ;;  %v1345_v14 = vld [vmem:[%s10732_s7 + $0x4e0] sm:$0xff]  ;;  %v1347_v15 = vld [vmem:[%s10732_s7 + $0x4f0] sm:$0xff] }
  0x44   : > { %v1349_v16 = vld [vmem:[%s10732_s7 + $0x500] sm:$0xff]  ;;  %1346 = vst [vmem:[%s10737_s8 + $0x270] sm:$0xff] %v1345_v14  ;;  %1348 = vst [vmem:[%s10737_s8 + $0x278] sm:$0xff] %v1347_v15  ;;  %v1351_v17 = vld [vmem:[%s10732_s7 + $0x510] sm:$0xff] }
  0x45   : > { %1350 = vst [vmem:[%s10737_s8 + $0x280] sm:$0xff] %v1349_v16  ;;  %v1353_v18 = vld [vmem:[%s10732_s7 + $0x520] sm:$0xff]  ;;  %v1355_v19 = vld [vmem:[%s10732_s7 + $0x530] sm:$0xff]  ;;  %1352 = vst [vmem:[%s10737_s8 + $0x288] sm:$0xff] %v1351_v17 }
  0x46   : > { %1354 = vst [vmem:[%s10737_s8 + $0x290] sm:$0xff] %v1353_v18  ;;  %1356 = vst [vmem:[%s10737_s8 + $0x298] sm:$0xff] %v1355_v19  ;;  %v1357_v20 = vld [vmem:[%s10732_s7 + $0x540] sm:$0xff]  ;;  %v1359_v21 = vld [vmem:[%s10732_s7 + $0x550] sm:$0xff] }
  0x47   : > { %v1361_v22 = vld [vmem:[%s10732_s7 + $0x560] sm:$0xff]  ;;  %1358 = vst [vmem:[%s10737_s8 + $0x2a0] sm:$0xff] %v1357_v20  ;;  %1360 = vst [vmem:[%s10737_s8 + $0x2a8] sm:$0xff] %v1359_v21  ;;  %v1363_v23 = vld [vmem:[%s10732_s7 + $0x570] sm:$0xff] }
  0x48   : > { %1362 = vst [vmem:[%s10737_s8 + $0x2b0] sm:$0xff] %v1361_v22  ;;  %v1365_v24 = vld [vmem:[%s10732_s7 + $0x580] sm:$0xff]  ;;  %v1367_v25 = vld [vmem:[%s10732_s7 + $0x590] sm:$0xff]  ;;  %1364 = vst [vmem:[%s10737_s8 + $0x2b8] sm:$0xff] %v1363_v23 }
  0x49   : > { %1366 = vst [vmem:[%s10737_s8 + $0x2c0] sm:$0xff] %v1365_v24  ;;  %1368 = vst [vmem:[%s10737_s8 + $0x2c8] sm:$0xff] %v1367_v25  ;;  %v1369_v26 = vld [vmem:[%s10732_s7 + $0x5a0] sm:$0xff]  ;;  %v1371_v27 = vld [vmem:[%s10732_s7 + $0x5b0] sm:$0xff] }
  0x4a   : > { %v1373_v28 = vld [vmem:[%s10732_s7 + $0x5c0] sm:$0xff]  ;;  %1370 = vst [vmem:[%s10737_s8 + $0x2d0] sm:$0xff] %v1369_v26  ;;  %1372 = vst [vmem:[%s10737_s8 + $0x2d8] sm:$0xff] %v1371_v27  ;;  %v1375_v29 = vld [vmem:[%s10732_s7 + $0x5d0] sm:$0xff] }
  0x4b   : > { %1374 = vst [vmem:[%s10737_s8 + $0x2e0] sm:$0xff] %v1373_v28  ;;  %v1377_v30 = vld [vmem:[%s10732_s7 + $0x5e0] sm:$0xff]  ;;  %v1379_v31 = vld [vmem:[%s10732_s7 + $0x5f0] sm:$0xff]  ;;  %1376 = vst [vmem:[%s10737_s8 + $0x2e8] sm:$0xff] %v1375_v29 }
  0x4c   : > { %1378 = vst [vmem:[%s10737_s8 + $0x2f0] sm:$0xff] %v1377_v30  ;;  %1380 = vst [vmem:[%s10737_s8 + $0x2f8] sm:$0xff] %v1379_v31  ;;  %v1381_v32 = vld [vmem:[%s10732_s7 + $0x600] sm:$0xff]  ;;  %v1383_v33 = vld [vmem:[%s10732_s7 + $0x610] sm:$0xff] }
  0x4d   : > { %v1385_v34 = vld [vmem:[%s10732_s7 + $0x620] sm:$0xff]  ;;  %1382 = vst [vmem:[%s10737_s8 + $0x300] sm:$0xff] %v1381_v32  ;;  %1384 = vst [vmem:[%s10737_s8 + $0x308] sm:$0xff] %v1383_v33  ;;  %v1387_v35 = vld [vmem:[%s10732_s7 + $0x630] sm:$0xff] }
  0x4e   : > { %1386 = vst [vmem:[%s10737_s8 + $0x310] sm:$0xff] %v1385_v34  ;;  %v1389_v36 = vld [vmem:[%s10732_s7 + $0x640] sm:$0xff]  ;;  %v1391_v37 = vld [vmem:[%s10732_s7 + $0x650] sm:$0xff]  ;;  %1388 = vst [vmem:[%s10737_s8 + $0x318] sm:$0xff] %v1387_v35 }
  0x4f   : > { %1390 = vst [vmem:[%s10737_s8 + $0x320] sm:$0xff] %v1389_v36  ;;  %1392 = vst [vmem:[%s10737_s8 + $0x328] sm:$0xff] %v1391_v37  ;;  %v1393_v38 = vld [vmem:[%s10732_s7 + $0x660] sm:$0xff]  ;;  %v1395_v39 = vld [vmem:[%s10732_s7 + $0x670] sm:$0xff] }
  0x50   : > { %v1397_v40 = vld [vmem:[%s10732_s7 + $0x680] sm:$0xff]  ;;  %1394 = vst [vmem:[%s10737_s8 + $0x330] sm:$0xff] %v1393_v38  ;;  %1396 = vst [vmem:[%s10737_s8 + $0x338] sm:$0xff] %v1395_v39  ;;  %v1399_v41 = vld [vmem:[%s10732_s7 + $0x690] sm:$0xff] }
  0x51   : > { %1398 = vst [vmem:[%s10737_s8 + $0x340] sm:$0xff] %v1397_v40  ;;  %v1401_v42 = vld [vmem:[%s10732_s7 + $0x6a0] sm:$0xff]  ;;  %v1403_v43 = vld [vmem:[%s10732_s7 + $0x6b0] sm:$0xff]  ;;  %1400 = vst [vmem:[%s10737_s8 + $0x348] sm:$0xff] %v1399_v41 }
  0x52   : > { %1402 = vst [vmem:[%s10737_s8 + $0x350] sm:$0xff] %v1401_v42  ;;  %1404 = vst [vmem:[%s10737_s8 + $0x358] sm:$0xff] %v1403_v43  ;;  %v1405_v44 = vld [vmem:[%s10732_s7 + $0x6c0] sm:$0xff]  ;;  %v1407_v45 = vld [vmem:[%s10732_s7 + $0x6d0] sm:$0xff] }
  0x53   : > { %v1409_v46 = vld [vmem:[%s10732_s7 + $0x6e0] sm:$0xff]  ;;  %1406 = vst [vmem:[%s10737_s8 + $0x360] sm:$0xff] %v1405_v44  ;;  %1408 = vst [vmem:[%s10737_s8 + $0x368] sm:$0xff] %v1407_v45  ;;  %v1411_v47 = vld [vmem:[%s10732_s7 + $0x6f0] sm:$0xff] }
  0x54   : > { %1410 = vst [vmem:[%s10737_s8 + $0x370] sm:$0xff] %v1409_v46  ;;  %v1413_v48 = vld [vmem:[%s10732_s7 + $0x700] sm:$0xff]  ;;  %v1415_v49 = vld [vmem:[%s10732_s7 + $0x710] sm:$0xff]  ;;  %1412 = vst [vmem:[%s10737_s8 + $0x378] sm:$0xff] %v1411_v47 }
  0x55   : > { %1414 = vst [vmem:[%s10737_s8 + $0x380] sm:$0xff] %v1413_v48  ;;  %1416 = vst [vmem:[%s10737_s8 + $0x388] sm:$0xff] %v1415_v49  ;;  %v1417_v50 = vld [vmem:[%s10732_s7 + $0x720] sm:$0xff]  ;;  %v1419_v51 = vld [vmem:[%s10732_s7 + $0x730] sm:$0xff] }
  0x56   : > { %v1421_v52 = vld [vmem:[%s10732_s7 + $0x740] sm:$0xff]  ;;  %1418 = vst [vmem:[%s10737_s8 + $0x390] sm:$0xff] %v1417_v50  ;;  %1420 = vst [vmem:[%s10737_s8 + $0x398] sm:$0xff] %v1419_v51  ;;  %v1423_v53 = vld [vmem:[%s10732_s7 + $0x750] sm:$0xff] }
  0x57   : > { %1422 = vst [vmem:[%s10737_s8 + $0x3a0] sm:$0xff] %v1421_v52  ;;  %v1425_v54 = vld [vmem:[%s10732_s7 + $0x760] sm:$0xff]  ;;  %v1427_v55 = vld [vmem:[%s10732_s7 + $0x770] sm:$0xff]  ;;  %1424 = vst [vmem:[%s10737_s8 + $0x3a8] sm:$0xff] %v1423_v53 }
  0x58   : > { %1426 = vst [vmem:[%s10737_s8 + $0x3b0] sm:$0xff] %v1425_v54  ;;  %1428 = vst [vmem:[%s10737_s8 + $0x3b8] sm:$0xff] %v1427_v55  ;;  %v1429_v56 = vld [vmem:[%s10732_s7 + $0x780] sm:$0xff]  ;;  %v1431_v57 = vld [vmem:[%s10732_s7 + $0x790] sm:$0xff] }
  0x59   : > { %v1433_v58 = vld [vmem:[%s10732_s7 + $0x7a0] sm:$0xff]  ;;  %1430 = vst [vmem:[%s10737_s8 + $0x3c0] sm:$0xff] %v1429_v56  ;;  %1432 = vst [vmem:[%s10737_s8 + $0x3c8] sm:$0xff] %v1431_v57  ;;  %v1435_v59 = vld [vmem:[%s10732_s7 + $0x7b0] sm:$0xff] }
  0x5a   : > { %1434 = vst [vmem:[%s10737_s8 + $0x3d0] sm:$0xff] %v1433_v58  ;;  %v1437_v60 = vld [vmem:[%s10732_s7 + $0x7c0] sm:$0xff]  ;;  %v1439_v61 = vld [vmem:[%s10732_s7 + $0x7d0] sm:$0xff]  ;;  %1436 = vst [vmem:[%s10737_s8 + $0x3d8] sm:$0xff] %v1435_v59 }
  0x5b   : > { %1438 = vst [vmem:[%s10737_s8 + $0x3e0] sm:$0xff] %v1437_v60  ;;  %1440 = vst [vmem:[%s10737_s8 + $0x3e8] sm:$0xff] %v1439_v61  ;;  %v1441_v62 = vld [vmem:[%s10732_s7 + $0x7e0] sm:$0xff]  ;;  %v1443_v63 = vld [vmem:[%s10732_s7 + $0x7f0] sm:$0xff] }
  0x5c   : > { %v1445_v0 = vld [vmem:[%s10732_s7 + $0x800] sm:$0xff]  ;;  %1442 = vst [vmem:[%s10737_s8 + $0x3f0] sm:$0xff] %v1441_v62  ;;  %1444 = vst [vmem:[%s10737_s8 + $0x3f8] sm:$0xff] %v1443_v63  ;;  %v1447_v1 = vld [vmem:[%s10732_s7 + $0x810] sm:$0xff] }
  0x5d   : > { %1446 = vst [vmem:[%s10737_s8 + $0x400] sm:$0xff] %v1445_v0  ;;  %v1449_v2 = vld [vmem:[%s10732_s7 + $0x820] sm:$0xff]  ;;  %v1451_v3 = vld [vmem:[%s10732_s7 + $0x830] sm:$0xff]  ;;  %1448 = vst [vmem:[%s10737_s8 + $0x408] sm:$0xff] %v1447_v1 }
  0x5e   : > { %1450 = vst [vmem:[%s10737_s8 + $0x410] sm:$0xff] %v1449_v2  ;;  %1452 = vst [vmem:[%s10737_s8 + $0x418] sm:$0xff] %v1451_v3  ;;  %v1453_v4 = vld [vmem:[%s10732_s7 + $0x840] sm:$0xff]  ;;  %v1455_v5 = vld [vmem:[%s10732_s7 + $0x850] sm:$0xff] }
  0x5f   : > { %v1457_v6 = vld [vmem:[%s10732_s7 + $0x860] sm:$0xff]  ;;  %1454 = vst [vmem:[%s10737_s8 + $0x420] sm:$0xff] %v1453_v4  ;;  %1456 = vst [vmem:[%s10737_s8 + $0x428] sm:$0xff] %v1455_v5  ;;  %v1459_v7 = vld [vmem:[%s10732_s7 + $0x870] sm:$0xff] }
  0x60   : > { %1458 = vst [vmem:[%s10737_s8 + $0x430] sm:$0xff] %v1457_v6  ;;  %v1461_v8 = vld [vmem:[%s10732_s7 + $0x880] sm:$0xff]  ;;  %v1463_v9 = vld [vmem:[%s10732_s7 + $0x890] sm:$0xff]  ;;  %1460 = vst [vmem:[%s10737_s8 + $0x438] sm:$0xff] %v1459_v7 }
  0x61   : > { %1462 = vst [vmem:[%s10737_s8 + $0x440] sm:$0xff] %v1461_v8  ;;  %1464 = vst [vmem:[%s10737_s8 + $0x448] sm:$0xff] %v1463_v9  ;;  %v1465_v10 = vld [vmem:[%s10732_s7 + $0x8a0] sm:$0xff]  ;;  %v1467_v11 = vld [vmem:[%s10732_s7 + $0x8b0] sm:$0xff] }
  0x62   : > { %v1469_v12 = vld [vmem:[%s10732_s7 + $0x8c0] sm:$0xff]  ;;  %1466 = vst [vmem:[%s10737_s8 + $0x450] sm:$0xff] %v1465_v10  ;;  %1468 = vst [vmem:[%s10737_s8 + $0x458] sm:$0xff] %v1467_v11  ;;  %v1471_v13 = vld [vmem:[%s10732_s7 + $0x8d0] sm:$0xff] }
  0x63   : > { %1470 = vst [vmem:[%s10737_s8 + $0x460] sm:$0xff] %v1469_v12  ;;  %v1473_v14 = vld [vmem:[%s10732_s7 + $0x8e0] sm:$0xff]  ;;  %v1475_v15 = vld [vmem:[%s10732_s7 + $0x8f0] sm:$0xff]  ;;  %1472 = vst [vmem:[%s10737_s8 + $0x468] sm:$0xff] %v1471_v13 }
  0x64   : > { %1474 = vst [vmem:[%s10737_s8 + $0x470] sm:$0xff] %v1473_v14  ;;  %1476 = vst [vmem:[%s10737_s8 + $0x478] sm:$0xff] %v1475_v15  ;;  %v1477_v16 = vld [vmem:[%s10732_s7 + $0x900] sm:$0xff]  ;;  %v1479_v17 = vld [vmem:[%s10732_s7 + $0x910] sm:$0xff] }
  0x65   : > { %v1481_v18 = vld [vmem:[%s10732_s7 + $0x920] sm:$0xff]  ;;  %1478 = vst [vmem:[%s10737_s8 + $0x480] sm:$0xff] %v1477_v16  ;;  %1480 = vst [vmem:[%s10737_s8 + $0x488] sm:$0xff] %v1479_v17  ;;  %v1483_v19 = vld [vmem:[%s10732_s7 + $0x930] sm:$0xff] }
  0x66   : > { %1482 = vst [vmem:[%s10737_s8 + $0x490] sm:$0xff] %v1481_v18  ;;  %v1485_v20 = vld [vmem:[%s10732_s7 + $0x940] sm:$0xff]  ;;  %v1487_v21 = vld [vmem:[%s10732_s7 + $0x950] sm:$0xff]  ;;  %1484 = vst [vmem:[%s10737_s8 + $0x498] sm:$0xff] %v1483_v19 }
  0x67   : > { %1486 = vst [vmem:[%s10737_s8 + $0x4a0] sm:$0xff] %v1485_v20  ;;  %1488 = vst [vmem:[%s10737_s8 + $0x4a8] sm:$0xff] %v1487_v21  ;;  %v1489_v22 = vld [vmem:[%s10732_s7 + $0x960] sm:$0xff]  ;;  %v1491_v23 = vld [vmem:[%s10732_s7 + $0x970] sm:$0xff] }
  0x68   : > { %v1493_v24 = vld [vmem:[%s10732_s7 + $0x980] sm:$0xff]  ;;  %1490 = vst [vmem:[%s10737_s8 + $0x4b0] sm:$0xff] %v1489_v22  ;;  %1492 = vst [vmem:[%s10737_s8 + $0x4b8] sm:$0xff] %v1491_v23  ;;  %v1495_v25 = vld [vmem:[%s10732_s7 + $0x990] sm:$0xff] }
  0x69   : > { %1494 = vst [vmem:[%s10737_s8 + $0x4c0] sm:$0xff] %v1493_v24  ;;  %v1497_v26 = vld [vmem:[%s10732_s7 + $0x9a0] sm:$0xff]  ;;  %v1499_v27 = vld [vmem:[%s10732_s7 + $0x9b0] sm:$0xff]  ;;  %1496 = vst [vmem:[%s10737_s8 + $0x4c8] sm:$0xff] %v1495_v25 }
  0x6a   : > { %1498 = vst [vmem:[%s10737_s8 + $0x4d0] sm:$0xff] %v1497_v26  ;;  %1500 = vst [vmem:[%s10737_s8 + $0x4d8] sm:$0xff] %v1499_v27  ;;  %v1501_v28 = vld [vmem:[%s10732_s7 + $0x9c0] sm:$0xff]  ;;  %v1503_v29 = vld [vmem:[%s10732_s7 + $0x9d0] sm:$0xff] }
  0x6b   : > { %v1505_v30 = vld [vmem:[%s10732_s7 + $0x9e0] sm:$0xff]  ;;  %1502 = vst [vmem:[%s10737_s8 + $0x4e0] sm:$0xff] %v1501_v28  ;;  %1504 = vst [vmem:[%s10737_s8 + $0x4e8] sm:$0xff] %v1503_v29  ;;  %v1507_v31 = vld [vmem:[%s10732_s7 + $0x9f0] sm:$0xff] }
  0x6c   : > { %1506 = vst [vmem:[%s10737_s8 + $0x4f0] sm:$0xff] %v1505_v30  ;;  %v1509_v32 = vld [vmem:[%s10732_s7 + $0xa00] sm:$0xff]  ;;  %v1511_v33 = vld [vmem:[%s10732_s7 + $0xa10] sm:$0xff]  ;;  %1508 = vst [vmem:[%s10737_s8 + $0x4f8] sm:$0xff] %v1507_v31 }
  0x6d   : > { %1510 = vst [vmem:[%s10737_s8 + $0x500] sm:$0xff] %v1509_v32  ;;  %1512 = vst [vmem:[%s10737_s8 + $0x508] sm:$0xff] %v1511_v33  ;;  %v1513_v34 = vld [vmem:[%s10732_s7 + $0xa20] sm:$0xff]  ;;  %v1515_v35 = vld [vmem:[%s10732_s7 + $0xa30] sm:$0xff] }
  0x6e   : > { %v1517_v36 = vld [vmem:[%s10732_s7 + $0xa40] sm:$0xff]  ;;  %1514 = vst [vmem:[%s10737_s8 + $0x510] sm:$0xff] %v1513_v34  ;;  %1516 = vst [vmem:[%s10737_s8 + $0x518] sm:$0xff] %v1515_v35  ;;  %v1519_v37 = vld [vmem:[%s10732_s7 + $0xa50] sm:$0xff] }
  0x6f   : > { %1518 = vst [vmem:[%s10737_s8 + $0x520] sm:$0xff] %v1517_v36  ;;  %v1521_v38 = vld [vmem:[%s10732_s7 + $0xa60] sm:$0xff]  ;;  %v1523_v39 = vld [vmem:[%s10732_s7 + $0xa70] sm:$0xff]  ;;  %1520 = vst [vmem:[%s10737_s8 + $0x528] sm:$0xff] %v1519_v37 }
  0x70   : > { %1522 = vst [vmem:[%s10737_s8 + $0x530] sm:$0xff] %v1521_v38  ;;  %1524 = vst [vmem:[%s10737_s8 + $0x538] sm:$0xff] %v1523_v39  ;;  %v1525_v40 = vld [vmem:[%s10732_s7 + $0xa80] sm:$0xff]  ;;  %v1527_v41 = vld [vmem:[%s10732_s7 + $0xa90] sm:$0xff] }
  0x71   : > { %v1529_v42 = vld [vmem:[%s10732_s7 + $0xaa0] sm:$0xff]  ;;  %1526 = vst [vmem:[%s10737_s8 + $0x540] sm:$0xff] %v1525_v40  ;;  %1528 = vst [vmem:[%s10737_s8 + $0x548] sm:$0xff] %v1527_v41  ;;  %v1531_v43 = vld [vmem:[%s10732_s7 + $0xab0] sm:$0xff] }
  0x72   : > { %1530 = vst [vmem:[%s10737_s8 + $0x550] sm:$0xff] %v1529_v42  ;;  %v1533_v44 = vld [vmem:[%s10732_s7 + $0xac0] sm:$0xff]  ;;  %v1535_v45 = vld [vmem:[%s10732_s7 + $0xad0] sm:$0xff]  ;;  %1532 = vst [vmem:[%s10737_s8 + $0x558] sm:$0xff] %v1531_v43 }
  0x73   : > { %1534 = vst [vmem:[%s10737_s8 + $0x560] sm:$0xff] %v1533_v44  ;;  %1536 = vst [vmem:[%s10737_s8 + $0x568] sm:$0xff] %v1535_v45  ;;  %v1537_v46 = vld [vmem:[%s10732_s7 + $0xae0] sm:$0xff]  ;;  %v1539_v47 = vld [vmem:[%s10732_s7 + $0xaf0] sm:$0xff] }
  0x74   : > { %v1541_v48 = vld [vmem:[%s10732_s7 + $0xb00] sm:$0xff]  ;;  %1538 = vst [vmem:[%s10737_s8 + $0x570] sm:$0xff] %v1537_v46  ;;  %1540 = vst [vmem:[%s10737_s8 + $0x578] sm:$0xff] %v1539_v47  ;;  %v1543_v49 = vld [vmem:[%s10732_s7 + $0xb10] sm:$0xff] }
  0x75   : > { %1542 = vst [vmem:[%s10737_s8 + $0x580] sm:$0xff] %v1541_v48  ;;  %v1545_v50 = vld [vmem:[%s10732_s7 + $0xb20] sm:$0xff]  ;;  %v1547_v51 = vld [vmem:[%s10732_s7 + $0xb30] sm:$0xff]  ;;  %1544 = vst [vmem:[%s10737_s8 + $0x588] sm:$0xff] %v1543_v49 }
  0x76   : > { %1546 = vst [vmem:[%s10737_s8 + $0x590] sm:$0xff] %v1545_v50  ;;  %1548 = vst [vmem:[%s10737_s8 + $0x598] sm:$0xff] %v1547_v51  ;;  %v1549_v52 = vld [vmem:[%s10732_s7 + $0xb40] sm:$0xff]  ;;  %v1551_v53 = vld [vmem:[%s10732_s7 + $0xb50] sm:$0xff] }
  0x77   : > { %v1553_v54 = vld [vmem:[%s10732_s7 + $0xb60] sm:$0xff]  ;;  %1550 = vst [vmem:[%s10737_s8 + $0x5a0] sm:$0xff] %v1549_v52  ;;  %1552 = vst [vmem:[%s10737_s8 + $0x5a8] sm:$0xff] %v1551_v53  ;;  %v1555_v55 = vld [vmem:[%s10732_s7 + $0xb70] sm:$0xff] }
  0x78   : > { %1554 = vst [vmem:[%s10737_s8 + $0x5b0] sm:$0xff] %v1553_v54  ;;  %v1557_v56 = vld [vmem:[%s10732_s7 + $0xb80] sm:$0xff]  ;;  %v1559_v57 = vld [vmem:[%s10732_s7 + $0xb90] sm:$0xff]  ;;  %1556 = vst [vmem:[%s10737_s8 + $0x5b8] sm:$0xff] %v1555_v55 }
  0x79   : > { %1558 = vst [vmem:[%s10737_s8 + $0x5c0] sm:$0xff] %v1557_v56  ;;  %1560 = vst [vmem:[%s10737_s8 + $0x5c8] sm:$0xff] %v1559_v57  ;;  %v1561_v58 = vld [vmem:[%s10732_s7 + $0xba0] sm:$0xff]  ;;  %v1563_v59 = vld [vmem:[%s10732_s7 + $0xbb0] sm:$0xff] }
  0x7a   : > { %v1565_v60 = vld [vmem:[%s10732_s7 + $0xbc0] sm:$0xff]  ;;  %1562 = vst [vmem:[%s10737_s8 + $0x5d0] sm:$0xff] %v1561_v58  ;;  %1564 = vst [vmem:[%s10737_s8 + $0x5d8] sm:$0xff] %v1563_v59  ;;  %v1567_v61 = vld [vmem:[%s10732_s7 + $0xbd0] sm:$0xff] }
  0x7b   : > { %1566 = vst [vmem:[%s10737_s8 + $0x5e0] sm:$0xff] %v1565_v60  ;;  %v1569_v62 = vld [vmem:[%s10732_s7 + $0xbe0] sm:$0xff]  ;;  %v1571_v63 = vld [vmem:[%s10732_s7 + $0xbf0] sm:$0xff]  ;;  %1568 = vst [vmem:[%s10737_s8 + $0x5e8] sm:$0xff] %v1567_v61 }
  0x7c   : > { %1570 = vst [vmem:[%s10737_s8 + $0x5f0] sm:$0xff] %v1569_v62  ;;  %1572 = vst [vmem:[%s10737_s8 + $0x5f8] sm:$0xff] %v1571_v63  ;;  %v1573_v0 = vld [vmem:[%s10732_s7 + $0xc00] sm:$0xff]  ;;  %v1575_v1 = vld [vmem:[%s10732_s7 + $0xc10] sm:$0xff] }
  0x7d   : > { %v1577_v2 = vld [vmem:[%s10732_s7 + $0xc20] sm:$0xff]  ;;  %1574 = vst [vmem:[%s10737_s8 + $0x600] sm:$0xff] %v1573_v0  ;;  %1576 = vst [vmem:[%s10737_s8 + $0x608] sm:$0xff] %v1575_v1  ;;  %v1579_v3 = vld [vmem:[%s10732_s7 + $0xc30] sm:$0xff] }
  0x7e   : > { %1578 = vst [vmem:[%s10737_s8 + $0x610] sm:$0xff] %v1577_v2  ;;  %v1581_v4 = vld [vmem:[%s10732_s7 + $0xc40] sm:$0xff]  ;;  %v1583_v5 = vld [vmem:[%s10732_s7 + $0xc50] sm:$0xff]  ;;  %1580 = vst [vmem:[%s10737_s8 + $0x618] sm:$0xff] %v1579_v3 }
  0x7f   : > { %1582 = vst [vmem:[%s10737_s8 + $0x620] sm:$0xff] %v1581_v4  ;;  %1584 = vst [vmem:[%s10737_s8 + $0x628] sm:$0xff] %v1583_v5  ;;  %v1585_v6 = vld [vmem:[%s10732_s7 + $0xc60] sm:$0xff]  ;;  %v1587_v7 = vld [vmem:[%s10732_s7 + $0xc70] sm:$0xff] }
  0x80   : > { %v1589_v8 = vld [vmem:[%s10732_s7 + $0xc80] sm:$0xff]  ;;  %1586 = vst [vmem:[%s10737_s8 + $0x630] sm:$0xff] %v1585_v6  ;;  %1588 = vst [vmem:[%s10737_s8 + $0x638] sm:$0xff] %v1587_v7  ;;  %v1591_v9 = vld [vmem:[%s10732_s7 + $0xc90] sm:$0xff] }
  0x81   : > { %1590 = vst [vmem:[%s10737_s8 + $0x640] sm:$0xff] %v1589_v8  ;;  %v1593_v10 = vld [vmem:[%s10732_s7 + $0xca0] sm:$0xff]  ;;  %v1595_v11 = vld [vmem:[%s10732_s7 + $0xcb0] sm:$0xff]  ;;  %1592 = vst [vmem:[%s10737_s8 + $0x648] sm:$0xff] %v1591_v9 }
  0x82   : > { %1594 = vst [vmem:[%s10737_s8 + $0x650] sm:$0xff] %v1593_v10  ;;  %1596 = vst [vmem:[%s10737_s8 + $0x658] sm:$0xff] %v1595_v11  ;;  %v1597_v12 = vld [vmem:[%s10732_s7 + $0xcc0] sm:$0xff]  ;;  %v1599_v13 = vld [vmem:[%s10732_s7 + $0xcd0] sm:$0xff] }
  0x83   : > { %v1601_v14 = vld [vmem:[%s10732_s7 + $0xce0] sm:$0xff]  ;;  %1598 = vst [vmem:[%s10737_s8 + $0x660] sm:$0xff] %v1597_v12  ;;  %1600 = vst [vmem:[%s10737_s8 + $0x668] sm:$0xff] %v1599_v13  ;;  %v1603_v15 = vld [vmem:[%s10732_s7 + $0xcf0] sm:$0xff] }
  0x84   : > { %1602 = vst [vmem:[%s10737_s8 + $0x670] sm:$0xff] %v1601_v14  ;;  %v1605_v16 = vld [vmem:[%s10732_s7 + $0xd00] sm:$0xff]  ;;  %v1607_v17 = vld [vmem:[%s10732_s7 + $0xd10] sm:$0xff]  ;;  %1604 = vst [vmem:[%s10737_s8 + $0x678] sm:$0xff] %v1603_v15 }
  0x85   : > { %1606 = vst [vmem:[%s10737_s8 + $0x680] sm:$0xff] %v1605_v16  ;;  %1608 = vst [vmem:[%s10737_s8 + $0x688] sm:$0xff] %v1607_v17  ;;  %v1609_v18 = vld [vmem:[%s10732_s7 + $0xd20] sm:$0xff]  ;;  %v1611_v19 = vld [vmem:[%s10732_s7 + $0xd30] sm:$0xff] }
  0x86   : > { %v1613_v20 = vld [vmem:[%s10732_s7 + $0xd40] sm:$0xff]  ;;  %1610 = vst [vmem:[%s10737_s8 + $0x690] sm:$0xff] %v1609_v18  ;;  %1612 = vst [vmem:[%s10737_s8 + $0x698] sm:$0xff] %v1611_v19  ;;  %v1615_v21 = vld [vmem:[%s10732_s7 + $0xd50] sm:$0xff] }
  0x87   : > { %1614 = vst [vmem:[%s10737_s8 + $0x6a0] sm:$0xff] %v1613_v20  ;;  %v1617_v22 = vld [vmem:[%s10732_s7 + $0xd60] sm:$0xff]  ;;  %v1619_v23 = vld [vmem:[%s10732_s7 + $0xd70] sm:$0xff]  ;;  %1616 = vst [vmem:[%s10737_s8 + $0x6a8] sm:$0xff] %v1615_v21 }
  0x88   : > { %1618 = vst [vmem:[%s10737_s8 + $0x6b0] sm:$0xff] %v1617_v22  ;;  %1620 = vst [vmem:[%s10737_s8 + $0x6b8] sm:$0xff] %v1619_v23  ;;  %v1621_v24 = vld [vmem:[%s10732_s7 + $0xd80] sm:$0xff]  ;;  %v1623_v25 = vld [vmem:[%s10732_s7 + $0xd90] sm:$0xff] }
  0x89   : > { %v1625_v26 = vld [vmem:[%s10732_s7 + $0xda0] sm:$0xff]  ;;  %1622 = vst [vmem:[%s10737_s8 + $0x6c0] sm:$0xff] %v1621_v24  ;;  %1624 = vst [vmem:[%s10737_s8 + $0x6c8] sm:$0xff] %v1623_v25  ;;  %v1627_v27 = vld [vmem:[%s10732_s7 + $0xdb0] sm:$0xff] }
  0x8a   : > { %1626 = vst [vmem:[%s10737_s8 + $0x6d0] sm:$0xff] %v1625_v26  ;;  %v1629_v28 = vld [vmem:[%s10732_s7 + $0xdc0] sm:$0xff]  ;;  %v1631_v29 = vld [vmem:[%s10732_s7 + $0xdd0] sm:$0xff]  ;;  %1628 = vst [vmem:[%s10737_s8 + $0x6d8] sm:$0xff] %v1627_v27 }
  0x8b   : > { %1630 = vst [vmem:[%s10737_s8 + $0x6e0] sm:$0xff] %v1629_v28  ;;  %1632 = vst [vmem:[%s10737_s8 + $0x6e8] sm:$0xff] %v1631_v29  ;;  %v1633_v30 = vld [vmem:[%s10732_s7 + $0xde0] sm:$0xff]  ;;  %v1635_v31 = vld [vmem:[%s10732_s7 + $0xdf0] sm:$0xff] }
  0x8c   : > { %v1637_v32 = vld [vmem:[%s10732_s7 + $0xe00] sm:$0xff]  ;;  %1634 = vst [vmem:[%s10737_s8 + $0x6f0] sm:$0xff] %v1633_v30  ;;  %1636 = vst [vmem:[%s10737_s8 + $0x6f8] sm:$0xff] %v1635_v31  ;;  %v1639_v33 = vld [vmem:[%s10732_s7 + $0xe10] sm:$0xff] }
  0x8d   : > { %1638 = vst [vmem:[%s10737_s8 + $0x700] sm:$0xff] %v1637_v32  ;;  %v1641_v34 = vld [vmem:[%s10732_s7 + $0xe20] sm:$0xff]  ;;  %v1643_v35 = vld [vmem:[%s10732_s7 + $0xe30] sm:$0xff]  ;;  %1640 = vst [vmem:[%s10737_s8 + $0x708] sm:$0xff] %v1639_v33 }
  0x8e   : > { %1642 = vst [vmem:[%s10737_s8 + $0x710] sm:$0xff] %v1641_v34  ;;  %1644 = vst [vmem:[%s10737_s8 + $0x718] sm:$0xff] %v1643_v35  ;;  %v1645_v36 = vld [vmem:[%s10732_s7 + $0xe40] sm:$0xff]  ;;  %v1647_v37 = vld [vmem:[%s10732_s7 + $0xe50] sm:$0xff] }
  0x8f   : > { %v1649_v38 = vld [vmem:[%s10732_s7 + $0xe60] sm:$0xff]  ;;  %1646 = vst [vmem:[%s10737_s8 + $0x720] sm:$0xff] %v1645_v36  ;;  %1648 = vst [vmem:[%s10737_s8 + $0x728] sm:$0xff] %v1647_v37  ;;  %v1651_v39 = vld [vmem:[%s10732_s7 + $0xe70] sm:$0xff] }
  0x90   : > { %1650 = vst [vmem:[%s10737_s8 + $0x730] sm:$0xff] %v1649_v38  ;;  %v1653_v40 = vld [vmem:[%s10732_s7 + $0xe80] sm:$0xff]  ;;  %v1655_v41 = vld [vmem:[%s10732_s7 + $0xe90] sm:$0xff]  ;;  %1652 = vst [vmem:[%s10737_s8 + $0x738] sm:$0xff] %v1651_v39 }
  0x91   : > { %1654 = vst [vmem:[%s10737_s8 + $0x740] sm:$0xff] %v1653_v40  ;;  %1656 = vst [vmem:[%s10737_s8 + $0x748] sm:$0xff] %v1655_v41  ;;  %v1657_v42 = vld [vmem:[%s10732_s7 + $0xea0] sm:$0xff]  ;;  %v1659_v43 = vld [vmem:[%s10732_s7 + $0xeb0] sm:$0xff] }
  0x92   : > { %v1661_v44 = vld [vmem:[%s10732_s7 + $0xec0] sm:$0xff]  ;;  %1658 = vst [vmem:[%s10737_s8 + $0x750] sm:$0xff] %v1657_v42  ;;  %1660 = vst [vmem:[%s10737_s8 + $0x758] sm:$0xff] %v1659_v43  ;;  %v1663_v45 = vld [vmem:[%s10732_s7 + $0xed0] sm:$0xff] }
  0x93   : > { %1662 = vst [vmem:[%s10737_s8 + $0x760] sm:$0xff] %v1661_v44  ;;  %v1665_v46 = vld [vmem:[%s10732_s7 + $0xee0] sm:$0xff]  ;;  %v1667_v47 = vld [vmem:[%s10732_s7 + $0xef0] sm:$0xff]  ;;  %1664 = vst [vmem:[%s10737_s8 + $0x768] sm:$0xff] %v1663_v45 }
  0x94   : > { %1666 = vst [vmem:[%s10737_s8 + $0x770] sm:$0xff] %v1665_v46  ;;  %1668 = vst [vmem:[%s10737_s8 + $0x778] sm:$0xff] %v1667_v47  ;;  %v1669_v48 = vld [vmem:[%s10732_s7 + $0xf00] sm:$0xff]  ;;  %v1671_v49 = vld [vmem:[%s10732_s7 + $0xf10] sm:$0xff] }
  0x95   : > { %v1673_v50 = vld [vmem:[%s10732_s7 + $0xf20] sm:$0xff]  ;;  %1670 = vst [vmem:[%s10737_s8 + $0x780] sm:$0xff] %v1669_v48  ;;  %1672 = vst [vmem:[%s10737_s8 + $0x788] sm:$0xff] %v1671_v49  ;;  %v1675_v51 = vld [vmem:[%s10732_s7 + $0xf30] sm:$0xff] }
  0x96   : > { %1674 = vst [vmem:[%s10737_s8 + $0x790] sm:$0xff] %v1673_v50  ;;  %v1677_v52 = vld [vmem:[%s10732_s7 + $0xf40] sm:$0xff]  ;;  %v1679_v53 = vld [vmem:[%s10732_s7 + $0xf50] sm:$0xff]  ;;  %1676 = vst [vmem:[%s10737_s8 + $0x798] sm:$0xff] %v1675_v51 }
  0x97   : > { %1678 = vst [vmem:[%s10737_s8 + $0x7a0] sm:$0xff] %v1677_v52  ;;  %1680 = vst [vmem:[%s10737_s8 + $0x7a8] sm:$0xff] %v1679_v53  ;;  %v1681_v54 = vld [vmem:[%s10732_s7 + $0xf60] sm:$0xff]  ;;  %v1683_v55 = vld [vmem:[%s10732_s7 + $0xf70] sm:$0xff] }
  0x98   : > { %v1685_v56 = vld [vmem:[%s10732_s7 + $0xf80] sm:$0xff]  ;;  %1682 = vst [vmem:[%s10737_s8 + $0x7b0] sm:$0xff] %v1681_v54  ;;  %1684 = vst [vmem:[%s10737_s8 + $0x7b8] sm:$0xff] %v1683_v55  ;;  %v1687_v57 = vld [vmem:[%s10732_s7 + $0xf90] sm:$0xff] }
  0x99   : > { %1686 = vst [vmem:[%s10737_s8 + $0x7c0] sm:$0xff] %v1685_v56  ;;  %v1689_v58 = vld [vmem:[%s10732_s7 + $0xfa0] sm:$0xff]  ;;  %v1691_v59 = vld [vmem:[%s10732_s7 + $0xfb0] sm:$0xff]  ;;  %1688 = vst [vmem:[%s10737_s8 + $0x7c8] sm:$0xff] %v1687_v57 }
  0x9a   : > { %1690 = vst [vmem:[%s10737_s8 + $0x7d0] sm:$0xff] %v1689_v58  ;;  %1692 = vst [vmem:[%s10737_s8 + $0x7d8] sm:$0xff] %v1691_v59  ;;  %v1693_v60 = vld [vmem:[%s10732_s7 + $0xfc0] sm:$0xff]  ;;  %v1695_v61 = vld [vmem:[%s10732_s7 + $0xfd0] sm:$0xff] }
  0x9b   : > { %v1697_v62 = vld [vmem:[%s10732_s7 + $0xfe0] sm:$0xff]  ;;  %1694 = vst [vmem:[%s10737_s8 + $0x7e0] sm:$0xff] %v1693_v60  ;;  %1696 = vst [vmem:[%s10737_s8 + $0x7e8] sm:$0xff] %v1695_v61  ;;  %v1699_v63 = vld [vmem:[%s10732_s7 + $0xff0] sm:$0xff] }
  0x9c   : > { %1698 = vst [vmem:[%s10737_s8 + $0x7f0] sm:$0xff] %v1697_v62  ;;  %v1701_v0 = vld [vmem:[%s10732_s7 + $0x1000] sm:$0xff]  ;;  %v1703_v1 = vld [vmem:[%s10732_s7 + $0x1010] sm:$0xff]  ;;  %1700 = vst [vmem:[%s10737_s8 + $0x7f8] sm:$0xff] %v1699_v63 }
  0x9d   : > { %1702 = vst [vmem:[%s10737_s8 + $0x800] sm:$0xff] %v1701_v0  ;;  %1704 = vst [vmem:[%s10737_s8 + $0x808] sm:$0xff] %v1703_v1  ;;  %v1705_v2 = vld [vmem:[%s10732_s7 + $0x1020] sm:$0xff]  ;;  %v1707_v3 = vld [vmem:[%s10732_s7 + $0x1030] sm:$0xff] }
  0x9e   : > { %v1709_v4 = vld [vmem:[%s10732_s7 + $0x1040] sm:$0xff]  ;;  %1706 = vst [vmem:[%s10737_s8 + $0x810] sm:$0xff] %v1705_v2  ;;  %1708 = vst [vmem:[%s10737_s8 + $0x818] sm:$0xff] %v1707_v3  ;;  %v1711_v5 = vld [vmem:[%s10732_s7 + $0x1050] sm:$0xff] }
  0x9f   : > { %1710 = vst [vmem:[%s10737_s8 + $0x820] sm:$0xff] %v1709_v4  ;;  %v1713_v6 = vld [vmem:[%s10732_s7 + $0x1060] sm:$0xff]  ;;  %v1715_v7 = vld [vmem:[%s10732_s7 + $0x1070] sm:$0xff]  ;;  %1712 = vst [vmem:[%s10737_s8 + $0x828] sm:$0xff] %v1711_v5 }
  0xa0   : > { %1714 = vst [vmem:[%s10737_s8 + $0x830] sm:$0xff] %v1713_v6  ;;  %1716 = vst [vmem:[%s10737_s8 + $0x838] sm:$0xff] %v1715_v7  ;;  %v1717_v8 = vld [vmem:[%s10732_s7 + $0x1080] sm:$0xff]  ;;  %v1719_v9 = vld [vmem:[%s10732_s7 + $0x1090] sm:$0xff] }
  0xa1   : > { %v1721_v10 = vld [vmem:[%s10732_s7 + $0x10a0] sm:$0xff]  ;;  %1718 = vst [vmem:[%s10737_s8 + $0x840] sm:$0xff] %v1717_v8  ;;  %1720 = vst [vmem:[%s10737_s8 + $0x848] sm:$0xff] %v1719_v9  ;;  %v1723_v11 = vld [vmem:[%s10732_s7 + $0x10b0] sm:$0xff] }
  0xa2   : > { %1722 = vst [vmem:[%s10737_s8 + $0x850] sm:$0xff] %v1721_v10  ;;  %v1725_v12 = vld [vmem:[%s10732_s7 + $0x10c0] sm:$0xff]  ;;  %v1727_v13 = vld [vmem:[%s10732_s7 + $0x10d0] sm:$0xff]  ;;  %1724 = vst [vmem:[%s10737_s8 + $0x858] sm:$0xff] %v1723_v11 }
  0xa3   : > { %1726 = vst [vmem:[%s10737_s8 + $0x860] sm:$0xff] %v1725_v12  ;;  %1728 = vst [vmem:[%s10737_s8 + $0x868] sm:$0xff] %v1727_v13  ;;  %v1729_v14 = vld [vmem:[%s10732_s7 + $0x10e0] sm:$0xff]  ;;  %v1731_v15 = vld [vmem:[%s10732_s7 + $0x10f0] sm:$0xff] }
  0xa4   : > { %v1733_v16 = vld [vmem:[%s10732_s7 + $0x1100] sm:$0xff]  ;;  %1730 = vst [vmem:[%s10737_s8 + $0x870] sm:$0xff] %v1729_v14  ;;  %1732 = vst [vmem:[%s10737_s8 + $0x878] sm:$0xff] %v1731_v15  ;;  %v1735_v17 = vld [vmem:[%s10732_s7 + $0x1110] sm:$0xff] }
  0xa5   : > { %1734 = vst [vmem:[%s10737_s8 + $0x880] sm:$0xff] %v1733_v16  ;;  %v1737_v18 = vld [vmem:[%s10732_s7 + $0x1120] sm:$0xff]  ;;  %v1739_v19 = vld [vmem:[%s10732_s7 + $0x1130] sm:$0xff]  ;;  %1736 = vst [vmem:[%s10737_s8 + $0x888] sm:$0xff] %v1735_v17 }
  0xa6   : > { %1738 = vst [vmem:[%s10737_s8 + $0x890] sm:$0xff] %v1737_v18  ;;  %1740 = vst [vmem:[%s10737_s8 + $0x898] sm:$0xff] %v1739_v19  ;;  %v1741_v20 = vld [vmem:[%s10732_s7 + $0x1140] sm:$0xff]  ;;  %v1743_v21 = vld [vmem:[%s10732_s7 + $0x1150] sm:$0xff] }
  0xa7   : > { %v1745_v22 = vld [vmem:[%s10732_s7 + $0x1160] sm:$0xff]  ;;  %1742 = vst [vmem:[%s10737_s8 + $0x8a0] sm:$0xff] %v1741_v20  ;;  %1744 = vst [vmem:[%s10737_s8 + $0x8a8] sm:$0xff] %v1743_v21  ;;  %v1747_v23 = vld [vmem:[%s10732_s7 + $0x1170] sm:$0xff] }
  0xa8   : > { %1746 = vst [vmem:[%s10737_s8 + $0x8b0] sm:$0xff] %v1745_v22  ;;  %v1749_v24 = vld [vmem:[%s10732_s7 + $0x1180] sm:$0xff]  ;;  %v1751_v25 = vld [vmem:[%s10732_s7 + $0x1190] sm:$0xff]  ;;  %1748 = vst [vmem:[%s10737_s8 + $0x8b8] sm:$0xff] %v1747_v23 }
  0xa9   : > { %1750 = vst [vmem:[%s10737_s8 + $0x8c0] sm:$0xff] %v1749_v24  ;;  %1752 = vst [vmem:[%s10737_s8 + $0x8c8] sm:$0xff] %v1751_v25  ;;  %v1753_v26 = vld [vmem:[%s10732_s7 + $0x11a0] sm:$0xff]  ;;  %v1755_v27 = vld [vmem:[%s10732_s7 + $0x11b0] sm:$0xff] }
  0xaa   : > { %v1757_v28 = vld [vmem:[%s10732_s7 + $0x11c0] sm:$0xff]  ;;  %1754 = vst [vmem:[%s10737_s8 + $0x8d0] sm:$0xff] %v1753_v26  ;;  %1756 = vst [vmem:[%s10737_s8 + $0x8d8] sm:$0xff] %v1755_v27  ;;  %v1759_v29 = vld [vmem:[%s10732_s7 + $0x11d0] sm:$0xff] }
  0xab   : > { %1758 = vst [vmem:[%s10737_s8 + $0x8e0] sm:$0xff] %v1757_v28  ;;  %v1761_v30 = vld [vmem:[%s10732_s7 + $0x11e0] sm:$0xff]  ;;  %v1763_v31 = vld [vmem:[%s10732_s7 + $0x11f0] sm:$0xff]  ;;  %1760 = vst [vmem:[%s10737_s8 + $0x8e8] sm:$0xff] %v1759_v29 }
  0xac   : > { %1762 = vst [vmem:[%s10737_s8 + $0x8f0] sm:$0xff] %v1761_v30  ;;  %1764 = vst [vmem:[%s10737_s8 + $0x8f8] sm:$0xff] %v1763_v31  ;;  %v1765_v32 = vld [vmem:[%s10732_s7 + $0x1200] sm:$0xff]  ;;  %v1767_v33 = vld [vmem:[%s10732_s7 + $0x1210] sm:$0xff] }
  0xad   : > { %v1769_v34 = vld [vmem:[%s10732_s7 + $0x1220] sm:$0xff]  ;;  %1766 = vst [vmem:[%s10737_s8 + $0x900] sm:$0xff] %v1765_v32  ;;  %1768 = vst [vmem:[%s10737_s8 + $0x908] sm:$0xff] %v1767_v33  ;;  %v1771_v35 = vld [vmem:[%s10732_s7 + $0x1230] sm:$0xff] }
  0xae   : > { %1770 = vst [vmem:[%s10737_s8 + $0x910] sm:$0xff] %v1769_v34  ;;  %v1773_v36 = vld [vmem:[%s10732_s7 + $0x1240] sm:$0xff]  ;;  %v1775_v37 = vld [vmem:[%s10732_s7 + $0x1250] sm:$0xff]  ;;  %1772 = vst [vmem:[%s10737_s8 + $0x918] sm:$0xff] %v1771_v35 }
  0xaf   : > { %1774 = vst [vmem:[%s10737_s8 + $0x920] sm:$0xff] %v1773_v36  ;;  %1776 = vst [vmem:[%s10737_s8 + $0x928] sm:$0xff] %v1775_v37  ;;  %v1777_v38 = vld [vmem:[%s10732_s7 + $0x1260] sm:$0xff]  ;;  %v1779_v39 = vld [vmem:[%s10732_s7 + $0x1270] sm:$0xff] }
  0xb0   : > { %v1781_v40 = vld [vmem:[%s10732_s7 + $0x1280] sm:$0xff]  ;;  %1778 = vst [vmem:[%s10737_s8 + $0x930] sm:$0xff] %v1777_v38  ;;  %1780 = vst [vmem:[%s10737_s8 + $0x938] sm:$0xff] %v1779_v39  ;;  %v1783_v41 = vld [vmem:[%s10732_s7 + $0x1290] sm:$0xff] }
  0xb1   : > { %1782 = vst [vmem:[%s10737_s8 + $0x940] sm:$0xff] %v1781_v40  ;;  %v1785_v42 = vld [vmem:[%s10732_s7 + $0x12a0] sm:$0xff]  ;;  %v1787_v43 = vld [vmem:[%s10732_s7 + $0x12b0] sm:$0xff]  ;;  %1784 = vst [vmem:[%s10737_s8 + $0x948] sm:$0xff] %v1783_v41 }
  0xb2   : > { %1786 = vst [vmem:[%s10737_s8 + $0x950] sm:$0xff] %v1785_v42  ;;  %1788 = vst [vmem:[%s10737_s8 + $0x958] sm:$0xff] %v1787_v43  ;;  %v1789_v44 = vld [vmem:[%s10732_s7 + $0x12c0] sm:$0xff]  ;;  %v1791_v45 = vld [vmem:[%s10732_s7 + $0x12d0] sm:$0xff] }
  0xb3   : > { %v1793_v46 = vld [vmem:[%s10732_s7 + $0x12e0] sm:$0xff]  ;;  %1790 = vst [vmem:[%s10737_s8 + $0x960] sm:$0xff] %v1789_v44  ;;  %1792 = vst [vmem:[%s10737_s8 + $0x968] sm:$0xff] %v1791_v45  ;;  %v1795_v47 = vld [vmem:[%s10732_s7 + $0x12f0] sm:$0xff] }
  0xb4   : > { %1794 = vst [vmem:[%s10737_s8 + $0x970] sm:$0xff] %v1793_v46  ;;  %v1797_v48 = vld [vmem:[%s10732_s7 + $0x1300] sm:$0xff]  ;;  %v1799_v49 = vld [vmem:[%s10732_s7 + $0x1310] sm:$0xff]  ;;  %1796 = vst [vmem:[%s10737_s8 + $0x978] sm:$0xff] %v1795_v47 }
  0xb5   : > { %1798 = vst [vmem:[%s10737_s8 + $0x980] sm:$0xff] %v1797_v48  ;;  %1800 = vst [vmem:[%s10737_s8 + $0x988] sm:$0xff] %v1799_v49  ;;  %v1801_v50 = vld [vmem:[%s10732_s7 + $0x1320] sm:$0xff]  ;;  %v1803_v51 = vld [vmem:[%s10732_s7 + $0x1330] sm:$0xff] }
  0xb6   : > { %v1805_v52 = vld [vmem:[%s10732_s7 + $0x1340] sm:$0xff]  ;;  %1802 = vst [vmem:[%s10737_s8 + $0x990] sm:$0xff] %v1801_v50  ;;  %1804 = vst [vmem:[%s10737_s8 + $0x998] sm:$0xff] %v1803_v51  ;;  %v1807_v53 = vld [vmem:[%s10732_s7 + $0x1350] sm:$0xff] }
  0xb7   : > { %1806 = vst [vmem:[%s10737_s8 + $0x9a0] sm:$0xff] %v1805_v52  ;;  %v1809_v54 = vld [vmem:[%s10732_s7 + $0x1360] sm:$0xff]  ;;  %v1811_v55 = vld [vmem:[%s10732_s7 + $0x1370] sm:$0xff]  ;;  %1808 = vst [vmem:[%s10737_s8 + $0x9a8] sm:$0xff] %v1807_v53 }
  0xb8   : > { %1810 = vst [vmem:[%s10737_s8 + $0x9b0] sm:$0xff] %v1809_v54  ;;  %1812 = vst [vmem:[%s10737_s8 + $0x9b8] sm:$0xff] %v1811_v55  ;;  %v1813_v56 = vld [vmem:[%s10732_s7 + $0x1380] sm:$0xff]  ;;  %v1815_v57 = vld [vmem:[%s10732_s7 + $0x1390] sm:$0xff] }
  0xb9   : > { %v1817_v58 = vld [vmem:[%s10732_s7 + $0x13a0] sm:$0xff]  ;;  %1814 = vst [vmem:[%s10737_s8 + $0x9c0] sm:$0xff] %v1813_v56  ;;  %1816 = vst [vmem:[%s10737_s8 + $0x9c8] sm:$0xff] %v1815_v57  ;;  %v1819_v59 = vld [vmem:[%s10732_s7 + $0x13b0] sm:$0xff] }
  0xba   : > { %1818 = vst [vmem:[%s10737_s8 + $0x9d0] sm:$0xff] %v1817_v58  ;;  %v1821_v60 = vld [vmem:[%s10732_s7 + $0x13c0] sm:$0xff]  ;;  %v1823_v61 = vld [vmem:[%s10732_s7 + $0x13d0] sm:$0xff]  ;;  %1820 = vst [vmem:[%s10737_s8 + $0x9d8] sm:$0xff] %v1819_v59 }
  0xbb   : > { %1822 = vst [vmem:[%s10737_s8 + $0x9e0] sm:$0xff] %v1821_v60  ;;  %1824 = vst [vmem:[%s10737_s8 + $0x9e8] sm:$0xff] %v1823_v61  ;;  %v1825_v62 = vld [vmem:[%s10732_s7 + $0x13e0] sm:$0xff]  ;;  %v1827_v63 = vld [vmem:[%s10732_s7 + $0x13f0] sm:$0xff] }
  0xbc   : > { %v1829_v0 = vld [vmem:[%s10732_s7 + $0x1400] sm:$0xff]  ;;  %1826 = vst [vmem:[%s10737_s8 + $0x9f0] sm:$0xff] %v1825_v62  ;;  %1828 = vst [vmem:[%s10737_s8 + $0x9f8] sm:$0xff] %v1827_v63  ;;  %v1831_v1 = vld [vmem:[%s10732_s7 + $0x1410] sm:$0xff] }
  0xbd   : > { %1830 = vst [vmem:[%s10737_s8 + $0xa00] sm:$0xff] %v1829_v0  ;;  %v1833_v2 = vld [vmem:[%s10732_s7 + $0x1420] sm:$0xff]  ;;  %v1835_v3 = vld [vmem:[%s10732_s7 + $0x1430] sm:$0xff]  ;;  %1832 = vst [vmem:[%s10737_s8 + $0xa08] sm:$0xff] %v1831_v1 }
  0xbe   : > { %1834 = vst [vmem:[%s10737_s8 + $0xa10] sm:$0xff] %v1833_v2  ;;  %1836 = vst [vmem:[%s10737_s8 + $0xa18] sm:$0xff] %v1835_v3  ;;  %v1837_v4 = vld [vmem:[%s10732_s7 + $0x1440] sm:$0xff]  ;;  %v1839_v5 = vld [vmem:[%s10732_s7 + $0x1450] sm:$0xff] }
  0xbf   : > { %v1841_v6 = vld [vmem:[%s10732_s7 + $0x1460] sm:$0xff]  ;;  %1838 = vst [vmem:[%s10737_s8 + $0xa20] sm:$0xff] %v1837_v4  ;;  %1840 = vst [vmem:[%s10737_s8 + $0xa28] sm:$0xff] %v1839_v5  ;;  %v1843_v7 = vld [vmem:[%s10732_s7 + $0x1470] sm:$0xff] }
  0xc0   : > { %1842 = vst [vmem:[%s10737_s8 + $0xa30] sm:$0xff] %v1841_v6  ;;  %v1845_v8 = vld [vmem:[%s10732_s7 + $0x1480] sm:$0xff]  ;;  %v1847_v9 = vld [vmem:[%s10732_s7 + $0x1490] sm:$0xff]  ;;  %1844 = vst [vmem:[%s10737_s8 + $0xa38] sm:$0xff] %v1843_v7 }
  0xc1   : > { %1846 = vst [vmem:[%s10737_s8 + $0xa40] sm:$0xff] %v1845_v8  ;;  %1848 = vst [vmem:[%s10737_s8 + $0xa48] sm:$0xff] %v1847_v9  ;;  %v1849_v10 = vld [vmem:[%s10732_s7 + $0x14a0] sm:$0xff]  ;;  %v1851_v11 = vld [vmem:[%s10732_s7 + $0x14b0] sm:$0xff] }
  0xc2   : > { %v1853_v12 = vld [vmem:[%s10732_s7 + $0x14c0] sm:$0xff]  ;;  %1850 = vst [vmem:[%s10737_s8 + $0xa50] sm:$0xff] %v1849_v10  ;;  %1852 = vst [vmem:[%s10737_s8 + $0xa58] sm:$0xff] %v1851_v11  ;;  %v1855_v13 = vld [vmem:[%s10732_s7 + $0x14d0] sm:$0xff] }
  0xc3   : > { %1854 = vst [vmem:[%s10737_s8 + $0xa60] sm:$0xff] %v1853_v12  ;;  %v1857_v14 = vld [vmem:[%s10732_s7 + $0x14e0] sm:$0xff]  ;;  %v1859_v15 = vld [vmem:[%s10732_s7 + $0x14f0] sm:$0xff]  ;;  %1856 = vst [vmem:[%s10737_s8 + $0xa68] sm:$0xff] %v1855_v13 }
  0xc4   : > { %1858 = vst [vmem:[%s10737_s8 + $0xa70] sm:$0xff] %v1857_v14  ;;  %1860 = vst [vmem:[%s10737_s8 + $0xa78] sm:$0xff] %v1859_v15  ;;  %v1861_v16 = vld [vmem:[%s10732_s7 + $0x1500] sm:$0xff]  ;;  %v1863_v17 = vld [vmem:[%s10732_s7 + $0x1510] sm:$0xff] }
  0xc5   : > { %v1865_v18 = vld [vmem:[%s10732_s7 + $0x1520] sm:$0xff]  ;;  %1862 = vst [vmem:[%s10737_s8 + $0xa80] sm:$0xff] %v1861_v16  ;;  %1864 = vst [vmem:[%s10737_s8 + $0xa88] sm:$0xff] %v1863_v17  ;;  %v1867_v19 = vld [vmem:[%s10732_s7 + $0x1530] sm:$0xff] }
  0xc6   : > { %1866 = vst [vmem:[%s10737_s8 + $0xa90] sm:$0xff] %v1865_v18  ;;  %v1869_v20 = vld [vmem:[%s10732_s7 + $0x1540] sm:$0xff]  ;;  %v1871_v21 = vld [vmem:[%s10732_s7 + $0x1550] sm:$0xff]  ;;  %1868 = vst [vmem:[%s10737_s8 + $0xa98] sm:$0xff] %v1867_v19 }
  0xc7   : > { %1870 = vst [vmem:[%s10737_s8 + $0xaa0] sm:$0xff] %v1869_v20  ;;  %1872 = vst [vmem:[%s10737_s8 + $0xaa8] sm:$0xff] %v1871_v21  ;;  %v1873_v22 = vld [vmem:[%s10732_s7 + $0x1560] sm:$0xff]  ;;  %v1875_v23 = vld [vmem:[%s10732_s7 + $0x1570] sm:$0xff] }
  0xc8   : > { %v1877_v24 = vld [vmem:[%s10732_s7 + $0x1580] sm:$0xff]  ;;  %1874 = vst [vmem:[%s10737_s8 + $0xab0] sm:$0xff] %v1873_v22  ;;  %1876 = vst [vmem:[%s10737_s8 + $0xab8] sm:$0xff] %v1875_v23  ;;  %v1879_v25 = vld [vmem:[%s10732_s7 + $0x1590] sm:$0xff] }
  0xc9   : > { %1878 = vst [vmem:[%s10737_s8 + $0xac0] sm:$0xff] %v1877_v24  ;;  %v1881_v26 = vld [vmem:[%s10732_s7 + $0x15a0] sm:$0xff]  ;;  %v1883_v27 = vld [vmem:[%s10732_s7 + $0x15b0] sm:$0xff]  ;;  %1880 = vst [vmem:[%s10737_s8 + $0xac8] sm:$0xff] %v1879_v25 }
  0xca   : > { %1882 = vst [vmem:[%s10737_s8 + $0xad0] sm:$0xff] %v1881_v26  ;;  %1884 = vst [vmem:[%s10737_s8 + $0xad8] sm:$0xff] %v1883_v27  ;;  %v1885_v28 = vld [vmem:[%s10732_s7 + $0x15c0] sm:$0xff]  ;;  %v1887_v29 = vld [vmem:[%s10732_s7 + $0x15d0] sm:$0xff] }
  0xcb   : > { %v1889_v30 = vld [vmem:[%s10732_s7 + $0x15e0] sm:$0xff]  ;;  %1886 = vst [vmem:[%s10737_s8 + $0xae0] sm:$0xff] %v1885_v28  ;;  %1888 = vst [vmem:[%s10737_s8 + $0xae8] sm:$0xff] %v1887_v29  ;;  %v1891_v31 = vld [vmem:[%s10732_s7 + $0x15f0] sm:$0xff] }
  0xcc   : > { %1890 = vst [vmem:[%s10737_s8 + $0xaf0] sm:$0xff] %v1889_v30  ;;  %v1893_v32 = vld [vmem:[%s10732_s7 + $0x1600] sm:$0xff]  ;;  %v1895_v33 = vld [vmem:[%s10732_s7 + $0x1610] sm:$0xff]  ;;  %1892 = vst [vmem:[%s10737_s8 + $0xaf8] sm:$0xff] %v1891_v31 }
  0xcd   : > { %1894 = vst [vmem:[%s10737_s8 + $0xb00] sm:$0xff] %v1893_v32  ;;  %1896 = vst [vmem:[%s10737_s8 + $0xb08] sm:$0xff] %v1895_v33  ;;  %v1897_v34 = vld [vmem:[%s10732_s7 + $0x1620] sm:$0xff]  ;;  %v1899_v35 = vld [vmem:[%s10732_s7 + $0x1630] sm:$0xff] }
  0xce   : > { %v1901_v36 = vld [vmem:[%s10732_s7 + $0x1640] sm:$0xff]  ;;  %1898 = vst [vmem:[%s10737_s8 + $0xb10] sm:$0xff] %v1897_v34  ;;  %1900 = vst [vmem:[%s10737_s8 + $0xb18] sm:$0xff] %v1899_v35  ;;  %v1903_v37 = vld [vmem:[%s10732_s7 + $0x1650] sm:$0xff] }
  0xcf   : > { %1902 = vst [vmem:[%s10737_s8 + $0xb20] sm:$0xff] %v1901_v36  ;;  %v1905_v38 = vld [vmem:[%s10732_s7 + $0x1660] sm:$0xff]  ;;  %v1907_v39 = vld [vmem:[%s10732_s7 + $0x1670] sm:$0xff]  ;;  %1904 = vst [vmem:[%s10737_s8 + $0xb28] sm:$0xff] %v1903_v37 }
  0xd0   : > { %1906 = vst [vmem:[%s10737_s8 + $0xb30] sm:$0xff] %v1905_v38  ;;  %1908 = vst [vmem:[%s10737_s8 + $0xb38] sm:$0xff] %v1907_v39  ;;  %v1909_v40 = vld [vmem:[%s10732_s7 + $0x1680] sm:$0xff]  ;;  %v1911_v41 = vld [vmem:[%s10732_s7 + $0x1690] sm:$0xff] }
  0xd1   : > { %v1913_v42 = vld [vmem:[%s10732_s7 + $0x16a0] sm:$0xff]  ;;  %1910 = vst [vmem:[%s10737_s8 + $0xb40] sm:$0xff] %v1909_v40  ;;  %1912 = vst [vmem:[%s10737_s8 + $0xb48] sm:$0xff] %v1911_v41  ;;  %v1915_v43 = vld [vmem:[%s10732_s7 + $0x16b0] sm:$0xff] }
  0xd2   : > { %1914 = vst [vmem:[%s10737_s8 + $0xb50] sm:$0xff] %v1913_v42  ;;  %v1917_v44 = vld [vmem:[%s10732_s7 + $0x16c0] sm:$0xff]  ;;  %v1919_v45 = vld [vmem:[%s10732_s7 + $0x16d0] sm:$0xff]  ;;  %1916 = vst [vmem:[%s10737_s8 + $0xb58] sm:$0xff] %v1915_v43 }
  0xd3   : > { %1918 = vst [vmem:[%s10737_s8 + $0xb60] sm:$0xff] %v1917_v44  ;;  %1920 = vst [vmem:[%s10737_s8 + $0xb68] sm:$0xff] %v1919_v45  ;;  %v1921_v46 = vld [vmem:[%s10732_s7 + $0x16e0] sm:$0xff]  ;;  %v1923_v47 = vld [vmem:[%s10732_s7 + $0x16f0] sm:$0xff] }
  0xd4   : > { %v1925_v48 = vld [vmem:[%s10732_s7 + $0x1700] sm:$0xff]  ;;  %1922 = vst [vmem:[%s10737_s8 + $0xb70] sm:$0xff] %v1921_v46  ;;  %1924 = vst [vmem:[%s10737_s8 + $0xb78] sm:$0xff] %v1923_v47  ;;  %v1927_v49 = vld [vmem:[%s10732_s7 + $0x1710] sm:$0xff] }
  0xd5   : > { %1926 = vst [vmem:[%s10737_s8 + $0xb80] sm:$0xff] %v1925_v48  ;;  %v1929_v50 = vld [vmem:[%s10732_s7 + $0x1720] sm:$0xff]  ;;  %v1931_v51 = vld [vmem:[%s10732_s7 + $0x1730] sm:$0xff]  ;;  %1928 = vst [vmem:[%s10737_s8 + $0xb88] sm:$0xff] %v1927_v49 }
  0xd6   : > { %1930 = vst [vmem:[%s10737_s8 + $0xb90] sm:$0xff] %v1929_v50  ;;  %1932 = vst [vmem:[%s10737_s8 + $0xb98] sm:$0xff] %v1931_v51  ;;  %v1933_v52 = vld [vmem:[%s10732_s7 + $0x1740] sm:$0xff]  ;;  %v1935_v53 = vld [vmem:[%s10732_s7 + $0x1750] sm:$0xff] }
  0xd7   : > { %v1937_v54 = vld [vmem:[%s10732_s7 + $0x1760] sm:$0xff]  ;;  %1934 = vst [vmem:[%s10737_s8 + $0xba0] sm:$0xff] %v1933_v52  ;;  %1936 = vst [vmem:[%s10737_s8 + $0xba8] sm:$0xff] %v1935_v53  ;;  %v1939_v55 = vld [vmem:[%s10732_s7 + $0x1770] sm:$0xff] }
  0xd8   : > { %1938 = vst [vmem:[%s10737_s8 + $0xbb0] sm:$0xff] %v1937_v54  ;;  %v1941_v56 = vld [vmem:[%s10732_s7 + $0x1780] sm:$0xff]  ;;  %v1943_v57 = vld [vmem:[%s10732_s7 + $0x1790] sm:$0xff]  ;;  %1940 = vst [vmem:[%s10737_s8 + $0xbb8] sm:$0xff] %v1939_v55 }
  0xd9   : > { %1942 = vst [vmem:[%s10737_s8 + $0xbc0] sm:$0xff] %v1941_v56  ;;  %1944 = vst [vmem:[%s10737_s8 + $0xbc8] sm:$0xff] %v1943_v57  ;;  %v1945_v58 = vld [vmem:[%s10732_s7 + $0x17a0] sm:$0xff]  ;;  %v1947_v59 = vld [vmem:[%s10732_s7 + $0x17b0] sm:$0xff] }
  0xda   : > { %v1949_v60 = vld [vmem:[%s10732_s7 + $0x17c0] sm:$0xff]  ;;  %1946 = vst [vmem:[%s10737_s8 + $0xbd0] sm:$0xff] %v1945_v58  ;;  %1948 = vst [vmem:[%s10737_s8 + $0xbd8] sm:$0xff] %v1947_v59  ;;  %v1951_v61 = vld [vmem:[%s10732_s7 + $0x17d0] sm:$0xff] }
  0xdb   : > { %1950 = vst [vmem:[%s10737_s8 + $0xbe0] sm:$0xff] %v1949_v60  ;;  %v1953_v62 = vld [vmem:[%s10732_s7 + $0x17e0] sm:$0xff]  ;;  %v1955_v63 = vld [vmem:[%s10732_s7 + $0x17f0] sm:$0xff]  ;;  %1952 = vst [vmem:[%s10737_s8 + $0xbe8] sm:$0xff] %v1951_v61 }
  0xdc   : > { %1954 = vst [vmem:[%s10737_s8 + $0xbf0] sm:$0xff] %v1953_v62  ;;  %1956 = vst [vmem:[%s10737_s8 + $0xbf8] sm:$0xff] %v1955_v63  ;;  %v1957_v0 = vld [vmem:[%s10732_s7 + $0x1800] sm:$0xff]  ;;  %v1959_v1 = vld [vmem:[%s10732_s7 + $0x1810] sm:$0xff] }
  0xdd   : > { %v1961_v2 = vld [vmem:[%s10732_s7 + $0x1820] sm:$0xff]  ;;  %1958 = vst [vmem:[%s10737_s8 + $0xc00] sm:$0xff] %v1957_v0  ;;  %1960 = vst [vmem:[%s10737_s8 + $0xc08] sm:$0xff] %v1959_v1  ;;  %v1963_v3 = vld [vmem:[%s10732_s7 + $0x1830] sm:$0xff] }
  0xde   : > { %1962 = vst [vmem:[%s10737_s8 + $0xc10] sm:$0xff] %v1961_v2  ;;  %v1965_v4 = vld [vmem:[%s10732_s7 + $0x1840] sm:$0xff]  ;;  %v1967_v5 = vld [vmem:[%s10732_s7 + $0x1850] sm:$0xff]  ;;  %1964 = vst [vmem:[%s10737_s8 + $0xc18] sm:$0xff] %v1963_v3 }
  0xdf   : > { %1966 = vst [vmem:[%s10737_s8 + $0xc20] sm:$0xff] %v1965_v4  ;;  %1968 = vst [vmem:[%s10737_s8 + $0xc28] sm:$0xff] %v1967_v5  ;;  %v1969_v6 = vld [vmem:[%s10732_s7 + $0x1860] sm:$0xff]  ;;  %v1971_v7 = vld [vmem:[%s10732_s7 + $0x1870] sm:$0xff] }
  0xe0   : > { %v1973_v8 = vld [vmem:[%s10732_s7 + $0x1880] sm:$0xff]  ;;  %1970 = vst [vmem:[%s10737_s8 + $0xc30] sm:$0xff] %v1969_v6  ;;  %1972 = vst [vmem:[%s10737_s8 + $0xc38] sm:$0xff] %v1971_v7  ;;  %v1975_v9 = vld [vmem:[%s10732_s7 + $0x1890] sm:$0xff] }
  0xe1   : > { %1974 = vst [vmem:[%s10737_s8 + $0xc40] sm:$0xff] %v1973_v8  ;;  %v1977_v10 = vld [vmem:[%s10732_s7 + $0x18a0] sm:$0xff]  ;;  %v1979_v11 = vld [vmem:[%s10732_s7 + $0x18b0] sm:$0xff]  ;;  %1976 = vst [vmem:[%s10737_s8 + $0xc48] sm:$0xff] %v1975_v9 }
  0xe2   : > { %1978 = vst [vmem:[%s10737_s8 + $0xc50] sm:$0xff] %v1977_v10  ;;  %1980 = vst [vmem:[%s10737_s8 + $0xc58] sm:$0xff] %v1979_v11  ;;  %v1981_v12 = vld [vmem:[%s10732_s7 + $0x18c0] sm:$0xff]  ;;  %v1983_v13 = vld [vmem:[%s10732_s7 + $0x18d0] sm:$0xff] }
  0xe3   : > { %v1985_v14 = vld [vmem:[%s10732_s7 + $0x18e0] sm:$0xff]  ;;  %1982 = vst [vmem:[%s10737_s8 + $0xc60] sm:$0xff] %v1981_v12  ;;  %1984 = vst [vmem:[%s10737_s8 + $0xc68] sm:$0xff] %v1983_v13  ;;  %v1987_v15 = vld [vmem:[%s10732_s7 + $0x18f0] sm:$0xff] }
  0xe4   : > { %1986 = vst [vmem:[%s10737_s8 + $0xc70] sm:$0xff] %v1985_v14  ;;  %v1989_v16 = vld [vmem:[%s10732_s7 + $0x1900] sm:$0xff]  ;;  %v1991_v17 = vld [vmem:[%s10732_s7 + $0x1910] sm:$0xff]  ;;  %1988 = vst [vmem:[%s10737_s8 + $0xc78] sm:$0xff] %v1987_v15 }
  0xe5   : > { %1990 = vst [vmem:[%s10737_s8 + $0xc80] sm:$0xff] %v1989_v16  ;;  %1992 = vst [vmem:[%s10737_s8 + $0xc88] sm:$0xff] %v1991_v17  ;;  %v1993_v18 = vld [vmem:[%s10732_s7 + $0x1920] sm:$0xff]  ;;  %v1995_v19 = vld [vmem:[%s10732_s7 + $0x1930] sm:$0xff] }
  0xe6   : > { %v1997_v20 = vld [vmem:[%s10732_s7 + $0x1940] sm:$0xff]  ;;  %1994 = vst [vmem:[%s10737_s8 + $0xc90] sm:$0xff] %v1993_v18  ;;  %1996 = vst [vmem:[%s10737_s8 + $0xc98] sm:$0xff] %v1995_v19  ;;  %v1999_v21 = vld [vmem:[%s10732_s7 + $0x1950] sm:$0xff] }
  0xe7   : > { %1998 = vst [vmem:[%s10737_s8 + $0xca0] sm:$0xff] %v1997_v20  ;;  %v2001_v22 = vld [vmem:[%s10732_s7 + $0x1960] sm:$0xff]  ;;  %v2003_v23 = vld [vmem:[%s10732_s7 + $0x1970] sm:$0xff]  ;;  %2000 = vst [vmem:[%s10737_s8 + $0xca8] sm:$0xff] %v1999_v21 }
  0xe8   : > { %2002 = vst [vmem:[%s10737_s8 + $0xcb0] sm:$0xff] %v2001_v22  ;;  %2004 = vst [vmem:[%s10737_s8 + $0xcb8] sm:$0xff] %v2003_v23  ;;  %v2005_v24 = vld [vmem:[%s10732_s7 + $0x1980] sm:$0xff]  ;;  %v2007_v25 = vld [vmem:[%s10732_s7 + $0x1990] sm:$0xff] }
  0xe9   : > { %v2009_v26 = vld [vmem:[%s10732_s7 + $0x19a0] sm:$0xff]  ;;  %2006 = vst [vmem:[%s10737_s8 + $0xcc0] sm:$0xff] %v2005_v24  ;;  %2008 = vst [vmem:[%s10737_s8 + $0xcc8] sm:$0xff] %v2007_v25  ;;  %v2011_v27 = vld [vmem:[%s10732_s7 + $0x19b0] sm:$0xff] }
  0xea   : > { %2010 = vst [vmem:[%s10737_s8 + $0xcd0] sm:$0xff] %v2009_v26  ;;  %v2013_v28 = vld [vmem:[%s10732_s7 + $0x19c0] sm:$0xff]  ;;  %v2015_v29 = vld [vmem:[%s10732_s7 + $0x19d0] sm:$0xff]  ;;  %2012 = vst [vmem:[%s10737_s8 + $0xcd8] sm:$0xff] %v2011_v27 }
  0xeb   : > { %2014 = vst [vmem:[%s10737_s8 + $0xce0] sm:$0xff] %v2013_v28  ;;  %2016 = vst [vmem:[%s10737_s8 + $0xce8] sm:$0xff] %v2015_v29  ;;  %v2017_v30 = vld [vmem:[%s10732_s7 + $0x19e0] sm:$0xff]  ;;  %v2019_v31 = vld [vmem:[%s10732_s7 + $0x19f0] sm:$0xff] }
  0xec   : > { %v2021_v32 = vld [vmem:[%s10732_s7 + $0x1a00] sm:$0xff]  ;;  %2018 = vst [vmem:[%s10737_s8 + $0xcf0] sm:$0xff] %v2017_v30  ;;  %2020 = vst [vmem:[%s10737_s8 + $0xcf8] sm:$0xff] %v2019_v31  ;;  %v2023_v33 = vld [vmem:[%s10732_s7 + $0x1a10] sm:$0xff] }
  0xed   : > { %2022 = vst [vmem:[%s10737_s8 + $0xd00] sm:$0xff] %v2021_v32  ;;  %v2025_v34 = vld [vmem:[%s10732_s7 + $0x1a20] sm:$0xff]  ;;  %v2027_v35 = vld [vmem:[%s10732_s7 + $0x1a30] sm:$0xff]  ;;  %2024 = vst [vmem:[%s10737_s8 + $0xd08] sm:$0xff] %v2023_v33 }
  0xee   : > { %2026 = vst [vmem:[%s10737_s8 + $0xd10] sm:$0xff] %v2025_v34  ;;  %2028 = vst [vmem:[%s10737_s8 + $0xd18] sm:$0xff] %v2027_v35  ;;  %v2029_v36 = vld [vmem:[%s10732_s7 + $0x1a40] sm:$0xff]  ;;  %v2031_v37 = vld [vmem:[%s10732_s7 + $0x1a50] sm:$0xff] }
  0xef   : > { %v2033_v38 = vld [vmem:[%s10732_s7 + $0x1a60] sm:$0xff]  ;;  %2030 = vst [vmem:[%s10737_s8 + $0xd20] sm:$0xff] %v2029_v36  ;;  %2032 = vst [vmem:[%s10737_s8 + $0xd28] sm:$0xff] %v2031_v37  ;;  %v2035_v39 = vld [vmem:[%s10732_s7 + $0x1a70] sm:$0xff] }
  0xf0   : > { %2034 = vst [vmem:[%s10737_s8 + $0xd30] sm:$0xff] %v2033_v38  ;;  %v2037_v40 = vld [vmem:[%s10732_s7 + $0x1a80] sm:$0xff]  ;;  %v2039_v41 = vld [vmem:[%s10732_s7 + $0x1a90] sm:$0xff]  ;;  %2036 = vst [vmem:[%s10737_s8 + $0xd38] sm:$0xff] %v2035_v39 }
  0xf1   : > { %2038 = vst [vmem:[%s10737_s8 + $0xd40] sm:$0xff] %v2037_v40  ;;  %2040 = vst [vmem:[%s10737_s8 + $0xd48] sm:$0xff] %v2039_v41  ;;  %v2041_v42 = vld [vmem:[%s10732_s7 + $0x1aa0] sm:$0xff]  ;;  %v2043_v43 = vld [vmem:[%s10732_s7 + $0x1ab0] sm:$0xff] }
  0xf2   : > { %v2045_v44 = vld [vmem:[%s10732_s7 + $0x1ac0] sm:$0xff]  ;;  %2042 = vst [vmem:[%s10737_s8 + $0xd50] sm:$0xff] %v2041_v42  ;;  %2044 = vst [vmem:[%s10737_s8 + $0xd58] sm:$0xff] %v2043_v43  ;;  %v2047_v45 = vld [vmem:[%s10732_s7 + $0x1ad0] sm:$0xff] }
  0xf3   : > { %2046 = vst [vmem:[%s10737_s8 + $0xd60] sm:$0xff] %v2045_v44  ;;  %v2049_v46 = vld [vmem:[%s10732_s7 + $0x1ae0] sm:$0xff]  ;;  %v2051_v47 = vld [vmem:[%s10732_s7 + $0x1af0] sm:$0xff]  ;;  %2048 = vst [vmem:[%s10737_s8 + $0xd68] sm:$0xff] %v2047_v45 }
  0xf4   : > { %2050 = vst [vmem:[%s10737_s8 + $0xd70] sm:$0xff] %v2049_v46  ;;  %2052 = vst [vmem:[%s10737_s8 + $0xd78] sm:$0xff] %v2051_v47  ;;  %v2053_v48 = vld [vmem:[%s10732_s7 + $0x1b00] sm:$0xff]  ;;  %v2055_v49 = vld [vmem:[%s10732_s7 + $0x1b10] sm:$0xff] }
  0xf5   : > { %v2057_v50 = vld [vmem:[%s10732_s7 + $0x1b20] sm:$0xff]  ;;  %2054 = vst [vmem:[%s10737_s8 + $0xd80] sm:$0xff] %v2053_v48  ;;  %2056 = vst [vmem:[%s10737_s8 + $0xd88] sm:$0xff] %v2055_v49  ;;  %v2059_v51 = vld [vmem:[%s10732_s7 + $0x1b30] sm:$0xff] }
  0xf6   : > { %2058 = vst [vmem:[%s10737_s8 + $0xd90] sm:$0xff] %v2057_v50  ;;  %v2061_v52 = vld [vmem:[%s10732_s7 + $0x1b40] sm:$0xff]  ;;  %v2063_v53 = vld [vmem:[%s10732_s7 + $0x1b50] sm:$0xff]  ;;  %2060 = vst [vmem:[%s10737_s8 + $0xd98] sm:$0xff] %v2059_v51 }
  0xf7   : > { %2062 = vst [vmem:[%s10737_s8 + $0xda0] sm:$0xff] %v2061_v52  ;;  %2064 = vst [vmem:[%s10737_s8 + $0xda8] sm:$0xff] %v2063_v53  ;;  %v2065_v54 = vld [vmem:[%s10732_s7 + $0x1b60] sm:$0xff]  ;;  %v2067_v55 = vld [vmem:[%s10732_s7 + $0x1b70] sm:$0xff] }
  0xf8   : > { %v2069_v56 = vld [vmem:[%s10732_s7 + $0x1b80] sm:$0xff]  ;;  %2066 = vst [vmem:[%s10737_s8 + $0xdb0] sm:$0xff] %v2065_v54  ;;  %2068 = vst [vmem:[%s10737_s8 + $0xdb8] sm:$0xff] %v2067_v55  ;;  %v2071_v57 = vld [vmem:[%s10732_s7 + $0x1b90] sm:$0xff] }
  0xf9   : > { %2070 = vst [vmem:[%s10737_s8 + $0xdc0] sm:$0xff] %v2069_v56  ;;  %v2073_v58 = vld [vmem:[%s10732_s7 + $0x1ba0] sm:$0xff]  ;;  %v2075_v59 = vld [vmem:[%s10732_s7 + $0x1bb0] sm:$0xff]  ;;  %2072 = vst [vmem:[%s10737_s8 + $0xdc8] sm:$0xff] %v2071_v57 }
  0xfa   : > { %2074 = vst [vmem:[%s10737_s8 + $0xdd0] sm:$0xff] %v2073_v58  ;;  %2076 = vst [vmem:[%s10737_s8 + $0xdd8] sm:$0xff] %v2075_v59  ;;  %v2077_v60 = vld [vmem:[%s10732_s7 + $0x1bc0] sm:$0xff]  ;;  %v2079_v61 = vld [vmem:[%s10732_s7 + $0x1bd0] sm:$0xff] }
  0xfb   : > { %v2081_v62 = vld [vmem:[%s10732_s7 + $0x1be0] sm:$0xff]  ;;  %2078 = vst [vmem:[%s10737_s8 + $0xde0] sm:$0xff] %v2077_v60  ;;  %2080 = vst [vmem:[%s10737_s8 + $0xde8] sm:$0xff] %v2079_v61  ;;  %v2083_v63 = vld [vmem:[%s10732_s7 + $0x1bf0] sm:$0xff] }
  0xfc   : > { %2082 = vst [vmem:[%s10737_s8 + $0xdf0] sm:$0xff] %v2081_v62  ;;  %v2085_v0 = vld [vmem:[%s10732_s7 + $0x1c00] sm:$0xff]  ;;  %v2087_v1 = vld [vmem:[%s10732_s7 + $0x1c10] sm:$0xff]  ;;  %2084 = vst [vmem:[%s10737_s8 + $0xdf8] sm:$0xff] %v2083_v63 }
  0xfd   : > { %2086 = vst [vmem:[%s10737_s8 + $0xe00] sm:$0xff] %v2085_v0  ;;  %2088 = vst [vmem:[%s10737_s8 + $0xe08] sm:$0xff] %v2087_v1  ;;  %v2089_v2 = vld [vmem:[%s10732_s7 + $0x1c20] sm:$0xff]  ;;  %v2091_v3 = vld [vmem:[%s10732_s7 + $0x1c30] sm:$0xff] }
  0xfe   : > { %v2093_v4 = vld [vmem:[%s10732_s7 + $0x1c40] sm:$0xff]  ;;  %2090 = vst [vmem:[%s10737_s8 + $0xe10] sm:$0xff] %v2089_v2  ;;  %2092 = vst [vmem:[%s10737_s8 + $0xe18] sm:$0xff] %v2091_v3  ;;  %v2095_v5 = vld [vmem:[%s10732_s7 + $0x1c50] sm:$0xff] }
  0xff   : > { %2094 = vst [vmem:[%s10737_s8 + $0xe20] sm:$0xff] %v2093_v4  ;;  %v2097_v6 = vld [vmem:[%s10732_s7 + $0x1c60] sm:$0xff]  ;;  %v2099_v7 = vld [vmem:[%s10732_s7 + $0x1c70] sm:$0xff]  ;;  %2096 = vst [vmem:[%s10737_s8 + $0xe28] sm:$0xff] %v2095_v5 }
 0x100   : > { %2098 = vst [vmem:[%s10737_s8 + $0xe30] sm:$0xff] %v2097_v6  ;;  %2100 = vst [vmem:[%s10737_s8 + $0xe38] sm:$0xff] %v2099_v7  ;;  %v2101_v8 = vld [vmem:[%s10732_s7 + $0x1c80] sm:$0xff]  ;;  %v2103_v9 = vld [vmem:[%s10732_s7 + $0x1c90] sm:$0xff] }
 0x101   : > { %v2105_v10 = vld [vmem:[%s10732_s7 + $0x1ca0] sm:$0xff]  ;;  %2102 = vst [vmem:[%s10737_s8 + $0xe40] sm:$0xff] %v2101_v8  ;;  %2104 = vst [vmem:[%s10737_s8 + $0xe48] sm:$0xff] %v2103_v9  ;;  %v2107_v11 = vld [vmem:[%s10732_s7 + $0x1cb0] sm:$0xff] }
 0x102   : > { %2106 = vst [vmem:[%s10737_s8 + $0xe50] sm:$0xff] %v2105_v10  ;;  %v2109_v12 = vld [vmem:[%s10732_s7 + $0x1cc0] sm:$0xff]  ;;  %v2111_v13 = vld [vmem:[%s10732_s7 + $0x1cd0] sm:$0xff]  ;;  %2108 = vst [vmem:[%s10737_s8 + $0xe58] sm:$0xff] %v2107_v11 }
 0x103   : > { %2110 = vst [vmem:[%s10737_s8 + $0xe60] sm:$0xff] %v2109_v12  ;;  %2112 = vst [vmem:[%s10737_s8 + $0xe68] sm:$0xff] %v2111_v13  ;;  %v2113_v14 = vld [vmem:[%s10732_s7 + $0x1ce0] sm:$0xff]  ;;  %v2115_v15 = vld [vmem:[%s10732_s7 + $0x1cf0] sm:$0xff] }
 0x104   : > { %v2117_v16 = vld [vmem:[%s10732_s7 + $0x1d00] sm:$0xff]  ;;  %2114 = vst [vmem:[%s10737_s8 + $0xe70] sm:$0xff] %v2113_v14  ;;  %2116 = vst [vmem:[%s10737_s8 + $0xe78] sm:$0xff] %v2115_v15  ;;  %v2119_v17 = vld [vmem:[%s10732_s7 + $0x1d10] sm:$0xff] }
 0x105   : > { %2118 = vst [vmem:[%s10737_s8 + $0xe80] sm:$0xff] %v2117_v16  ;;  %v2121_v18 = vld [vmem:[%s10732_s7 + $0x1d20] sm:$0xff]  ;;  %v2123_v19 = vld [vmem:[%s10732_s7 + $0x1d30] sm:$0xff]  ;;  %2120 = vst [vmem:[%s10737_s8 + $0xe88] sm:$0xff] %v2119_v17 }
 0x106   : > { %2122 = vst [vmem:[%s10737_s8 + $0xe90] sm:$0xff] %v2121_v18  ;;  %2124 = vst [vmem:[%s10737_s8 + $0xe98] sm:$0xff] %v2123_v19  ;;  %v2125_v20 = vld [vmem:[%s10732_s7 + $0x1d40] sm:$0xff]  ;;  %v2127_v21 = vld [vmem:[%s10732_s7 + $0x1d50] sm:$0xff] }
 0x107   : > { %v2129_v22 = vld [vmem:[%s10732_s7 + $0x1d60] sm:$0xff]  ;;  %2126 = vst [vmem:[%s10737_s8 + $0xea0] sm:$0xff] %v2125_v20  ;;  %2128 = vst [vmem:[%s10737_s8 + $0xea8] sm:$0xff] %v2127_v21  ;;  %v2131_v23 = vld [vmem:[%s10732_s7 + $0x1d70] sm:$0xff] }
 0x108   : > { %2130 = vst [vmem:[%s10737_s8 + $0xeb0] sm:$0xff] %v2129_v22  ;;  %v2133_v24 = vld [vmem:[%s10732_s7 + $0x1d80] sm:$0xff]  ;;  %v2135_v25 = vld [vmem:[%s10732_s7 + $0x1d90] sm:$0xff]  ;;  %2132 = vst [vmem:[%s10737_s8 + $0xeb8] sm:$0xff] %v2131_v23 }
 0x109   : > { %2134 = vst [vmem:[%s10737_s8 + $0xec0] sm:$0xff] %v2133_v24  ;;  %2136 = vst [vmem:[%s10737_s8 + $0xec8] sm:$0xff] %v2135_v25  ;;  %v2137_v26 = vld [vmem:[%s10732_s7 + $0x1da0] sm:$0xff]  ;;  %v2139_v27 = vld [vmem:[%s10732_s7 + $0x1db0] sm:$0xff] }
 0x10a   : > { %v2141_v28 = vld [vmem:[%s10732_s7 + $0x1dc0] sm:$0xff]  ;;  %2138 = vst [vmem:[%s10737_s8 + $0xed0] sm:$0xff] %v2137_v26  ;;  %2140 = vst [vmem:[%s10737_s8 + $0xed8] sm:$0xff] %v2139_v27  ;;  %v2143_v29 = vld [vmem:[%s10732_s7 + $0x1dd0] sm:$0xff] }
 0x10b   : > { %2142 = vst [vmem:[%s10737_s8 + $0xee0] sm:$0xff] %v2141_v28  ;;  %v2145_v30 = vld [vmem:[%s10732_s7 + $0x1de0] sm:$0xff]  ;;  %v2147_v31 = vld [vmem:[%s10732_s7 + $0x1df0] sm:$0xff]  ;;  %2144 = vst [vmem:[%s10737_s8 + $0xee8] sm:$0xff] %v2143_v29 }
 0x10c   : > { %2146 = vst [vmem:[%s10737_s8 + $0xef0] sm:$0xff] %v2145_v30  ;;  %2148 = vst [vmem:[%s10737_s8 + $0xef8] sm:$0xff] %v2147_v31  ;;  %v2149_v32 = vld [vmem:[%s10732_s7 + $0x1e00] sm:$0xff]  ;;  %v2151_v33 = vld [vmem:[%s10732_s7 + $0x1e10] sm:$0xff] }
 0x10d   : > { %v2153_v34 = vld [vmem:[%s10732_s7 + $0x1e20] sm:$0xff]  ;;  %2150 = vst [vmem:[%s10737_s8 + $0xf00] sm:$0xff] %v2149_v32  ;;  %2152 = vst [vmem:[%s10737_s8 + $0xf08] sm:$0xff] %v2151_v33  ;;  %v2155_v35 = vld [vmem:[%s10732_s7 + $0x1e30] sm:$0xff] }
 0x10e   : > { %2154 = vst [vmem:[%s10737_s8 + $0xf10] sm:$0xff] %v2153_v34  ;;  %v2157_v36 = vld [vmem:[%s10732_s7 + $0x1e40] sm:$0xff]  ;;  %v2159_v37 = vld [vmem:[%s10732_s7 + $0x1e50] sm:$0xff]  ;;  %2156 = vst [vmem:[%s10737_s8 + $0xf18] sm:$0xff] %v2155_v35 }
 0x10f   : > { %2158 = vst [vmem:[%s10737_s8 + $0xf20] sm:$0xff] %v2157_v36  ;;  %2160 = vst [vmem:[%s10737_s8 + $0xf28] sm:$0xff] %v2159_v37  ;;  %v2161_v38 = vld [vmem:[%s10732_s7 + $0x1e60] sm:$0xff]  ;;  %v2163_v39 = vld [vmem:[%s10732_s7 + $0x1e70] sm:$0xff] }
 0x110   : > { %v2165_v40 = vld [vmem:[%s10732_s7 + $0x1e80] sm:$0xff]  ;;  %2162 = vst [vmem:[%s10737_s8 + $0xf30] sm:$0xff] %v2161_v38  ;;  %2164 = vst [vmem:[%s10737_s8 + $0xf38] sm:$0xff] %v2163_v39  ;;  %v2167_v41 = vld [vmem:[%s10732_s7 + $0x1e90] sm:$0xff] }
 0x111   : > { %2166 = vst [vmem:[%s10737_s8 + $0xf40] sm:$0xff] %v2165_v40  ;;  %v2169_v42 = vld [vmem:[%s10732_s7 + $0x1ea0] sm:$0xff]  ;;  %v2171_v43 = vld [vmem:[%s10732_s7 + $0x1eb0] sm:$0xff]  ;;  %2168 = vst [vmem:[%s10737_s8 + $0xf48] sm:$0xff] %v2167_v41 }
 0x112   : > { %2170 = vst [vmem:[%s10737_s8 + $0xf50] sm:$0xff] %v2169_v42  ;;  %2172 = vst [vmem:[%s10737_s8 + $0xf58] sm:$0xff] %v2171_v43  ;;  %v2173_v44 = vld [vmem:[%s10732_s7 + $0x1ec0] sm:$0xff]  ;;  %v2175_v45 = vld [vmem:[%s10732_s7 + $0x1ed0] sm:$0xff] }
 0x113   : > { %v2177_v46 = vld [vmem:[%s10732_s7 + $0x1ee0] sm:$0xff]  ;;  %2174 = vst [vmem:[%s10737_s8 + $0xf60] sm:$0xff] %v2173_v44  ;;  %2176 = vst [vmem:[%s10737_s8 + $0xf68] sm:$0xff] %v2175_v45  ;;  %v2179_v47 = vld [vmem:[%s10732_s7 + $0x1ef0] sm:$0xff] }
 0x114   : > { %2178 = vst [vmem:[%s10737_s8 + $0xf70] sm:$0xff] %v2177_v46  ;;  %v2181_v48 = vld [vmem:[%s10732_s7 + $0x1f00] sm:$0xff]  ;;  %v2183_v49 = vld [vmem:[%s10732_s7 + $0x1f10] sm:$0xff]  ;;  %2180 = vst [vmem:[%s10737_s8 + $0xf78] sm:$0xff] %v2179_v47 }
 0x115   : > { %2182 = vst [vmem:[%s10737_s8 + $0xf80] sm:$0xff] %v2181_v48  ;;  %2184 = vst [vmem:[%s10737_s8 + $0xf88] sm:$0xff] %v2183_v49  ;;  %v2185_v50 = vld [vmem:[%s10732_s7 + $0x1f20] sm:$0xff]  ;;  %v2187_v51 = vld [vmem:[%s10732_s7 + $0x1f30] sm:$0xff] }
 0x116   : > { %v2189_v52 = vld [vmem:[%s10732_s7 + $0x1f40] sm:$0xff]  ;;  %2186 = vst [vmem:[%s10737_s8 + $0xf90] sm:$0xff] %v2185_v50  ;;  %2188 = vst [vmem:[%s10737_s8 + $0xf98] sm:$0xff] %v2187_v51  ;;  %v2191_v53 = vld [vmem:[%s10732_s7 + $0x1f50] sm:$0xff] }
 0x117   : > { %2190 = vst [vmem:[%s10737_s8 + $0xfa0] sm:$0xff] %v2189_v52  ;;  %v2193_v54 = vld [vmem:[%s10732_s7 + $0x1f60] sm:$0xff]  ;;  %v2195_v55 = vld [vmem:[%s10732_s7 + $0x1f70] sm:$0xff]  ;;  %2192 = vst [vmem:[%s10737_s8 + $0xfa8] sm:$0xff] %v2191_v53 }
 0x118   : > { %2194 = vst [vmem:[%s10737_s8 + $0xfb0] sm:$0xff] %v2193_v54  ;;  %2196 = vst [vmem:[%s10737_s8 + $0xfb8] sm:$0xff] %v2195_v55  ;;  %v2197_v56 = vld [vmem:[%s10732_s7 + $0x1f80] sm:$0xff]  ;;  %v2199_v57 = vld [vmem:[%s10732_s7 + $0x1f90] sm:$0xff] }
 0x119   : > { %v2201_v58 = vld [vmem:[%s10732_s7 + $0x1fa0] sm:$0xff]  ;;  %2198 = vst [vmem:[%s10737_s8 + $0xfc0] sm:$0xff] %v2197_v56  ;;  %2200 = vst [vmem:[%s10737_s8 + $0xfc8] sm:$0xff] %v2199_v57  ;;  %v2203_v59 = vld [vmem:[%s10732_s7 + $0x1fb0] sm:$0xff] }
 0x11a   : > { %2202 = vst [vmem:[%s10737_s8 + $0xfd0] sm:$0xff] %v2201_v58  ;;  %v2205_v60 = vld [vmem:[%s10732_s7 + $0x1fc0] sm:$0xff]  ;;  %v2207_v61 = vld [vmem:[%s10732_s7 + $0x1fd0] sm:$0xff]  ;;  %2204 = vst [vmem:[%s10737_s8 + $0xfd8] sm:$0xff] %v2203_v59 }
 0x11b   : > { %2206 = vst [vmem:[%s10737_s8 + $0xfe0] sm:$0xff] %v2205_v60  ;;  %2208 = vst [vmem:[%s10737_s8 + $0xfe8] sm:$0xff] %v2207_v61  ;;  %v2209_v62 = vld [vmem:[%s10732_s7 + $0x1fe0] sm:$0xff]  ;;  %v2211_v63 = vld [vmem:[%s10732_s7 + $0x1ff0] sm:$0xff] }
 0x11c   : > { %2210 = vst [vmem:[%s10737_s8 + $0xff0] sm:$0xff] %v2209_v62  ;;  %2212 = vst [vmem:[%s10737_s8 + $0xff8] sm:$0xff] %v2211_v63 }
 0x11d PF: > { %p8974_p11 = scmp.ge.s32.totalorder %s10628_s17, 1  ;;  %p4301_p12 = scmp.lt.s32.totalorder %s10628_s17, 5 }
 0x11f   : > { %p4302_p13 = pnand %p8974_p11, %p4301_p12 }
 0x120   : > { %s4308_s20 = sand.u32 (!%p4302_p13), 1, %s10604_s11   ;;  %p4333_p0 = scmp.lt.s32.totalorder (!%p4302_p13), %s10612_s13, 1  ;;  %vm4383_vm0 = vsmask.f32 (!%p4302_p13), 7424  ;;  %vm4423_vm1 = vcmask (!%p4302_p13), 1046528  }
 0x121   : > { %4305 = sbr.rel (%p4302_p13) target bundleno = 1083 (0x43b), region = 76  ;;  %s8975_s21 = sshll.u32 (!%p4302_p13), %s4308_s20, 12  ;;  %vm4439_vm2 = vsmask.f32 (!%p4302_p13), 6400 }
 0x122   : > { %s11763_s22 = scalar_lea.vmem (!%p4302_p13), [#allocation2], %s8975_s21  ;;  %s4330_s30 = sand.u32 (!%p4302_p13), 1, %s10596_s9  }
 0x123   : > { %v9737_v0 = vld [vmem:[%s11763_s22 + $0x4] ss:$8 sps:$4 sm:$0xff] (!%p4302_p13)   ;;  %v9741_v2 = vld [vmem:[%s11763_s22] ss:$8 sps:$4 sm:$0xff] (!%p4302_p13)   ;;  %v9743_v4 = vld [vmem:[%s11763_s22 + $0x14] ss:$8 sps:$4 sm:$0xff] (!%p4302_p13)  }
 0x124   : > { %v9739_v1 = vld [vmem:[%s11763_s22 + $0x804] ss:$8 sps:$4 sm:$0xff] (!%p4302_p13)   ;;  %7885 = vmatprep.subr.bf16.mxu1 (!%p4302_p13), %v9737_v0  ;;  %v9742_v3 = vld [vmem:[%s11763_s22 + $0x800] ss:$8 sps:$4 sm:$0xff] (!%p4302_p13)   ;;  %v9745_v5 = vld [vmem:[%s11763_s22 + $0x814] ss:$8 sps:$4 sm:$0xff] (!%p4302_p13)  }
 0x125   : > { %8293 = vmatprep.subr.bf16.mxu0 (!%p4302_p13), %v9739_v1  ;;  %7886 = vmatpush1.bf16.msra.mxu1 (!%p4302_p13), %v9741_v2  ;;  %v9747_v6 = vld [vmem:[%s11763_s22 + $0x10] ss:$8 sps:$4 sm:$0xff] (!%p4302_p13)   ;;  %v9749_v8 = vld [vmem:[%s11763_s22 + $0x24] ss:$8 sps:$4 sm:$0xff] (!%p4302_p13)   ;;  %v9753_v10 = vld [vmem:[%s11763_s22 + $0x20] ss:$8 sps:$4 sm:$0xff] (!%p4302_p13)  }
 0x126   : > { %8294 = vmatpush1.bf16.msra.mxu0 (!%p4302_p13), %v9742_v3  ;;  %7887 = vmatprep.subr.bf16.mxu1 (!%p4302_p13), %v9743_v4  ;;  %v9748_v7 = vld [vmem:[%s11763_s22 + $0x810] ss:$8 sps:$4 sm:$0xff] (!%p4302_p13)   ;;  %v9751_v9 = vld [vmem:[%s11763_s22 + $0x824] ss:$8 sps:$4 sm:$0xff] (!%p4302_p13)   ;;  %v9754_v11 = vld [vmem:[%s11763_s22 + $0x820] ss:$8 sps:$4 sm:$0xff] (!%p4302_p13)  }
 0x127   : > { %8295 = vmatprep.subr.bf16.mxu0 (!%p4302_p13), %v9745_v5  ;;  %v9755_v12 = vld [vmem:[%s11763_s22 + $0x34] ss:$8 sps:$4 sm:$0xff] (!%p4302_p13)   ;;  %v9759_v14 = vld [vmem:[%s11763_s22 + $0x30] ss:$8 sps:$4 sm:$0xff] (!%p4302_p13)   ;;  %v9761_v16 = vld [vmem:[%s11763_s22 + $0x44] ss:$8 sps:$4 sm:$0xff] (!%p4302_p13)  }
 0x128   : > { %v9757_v13 = vld [vmem:[%s11763_s22 + $0x834] ss:$8 sps:$4 sm:$0xff]   ;;  %v9760_v15 = vld [vmem:[%s11763_s22 + $0x830] ss:$8 sps:$4 sm:$0xff]   ;;  %v9763_v17 = vld [vmem:[%s11763_s22 + $0x844] ss:$8 sps:$4 sm:$0xff]  }
 0x129   : > { %7888 = vmatpush1.bf16.msra.mxu1 %v9747_v6  ;;  %v9765_v18 = vld [vmem:[%s11763_s22 + $0x40] ss:$8 sps:$4 sm:$0xff]   ;;  %v9767_v20 = vld [vmem:[%s11763_s22 + $0x54] ss:$8 sps:$4 sm:$0xff]   ;;  %v9771_v22 = vld [vmem:[%s11763_s22 + $0x50] ss:$8 sps:$4 sm:$0xff]  }
 0x12a   : > { %8296 = vmatpush1.bf16.msra.mxu0 %v9748_v7  ;;  %7889 = vmatprep.subr.bf16.mxu1 %v9749_v8  ;;  %v9766_v19 = vld [vmem:[%s11763_s22 + $0x840] ss:$8 sps:$4 sm:$0xff]   ;;  %v9769_v21 = vld [vmem:[%s11763_s22 + $0x854] ss:$8 sps:$4 sm:$0xff]   ;;  %v9772_v23 = vld [vmem:[%s11763_s22 + $0x850] ss:$8 sps:$4 sm:$0xff]  }
 0x12b   : > { %8297 = vmatprep.subr.bf16.mxu0 %v9751_v9  ;;  %v9773_v24 = vld [vmem:[%s11763_s22 + $0x64] ss:$8 sps:$4 sm:$0xff]   ;;  %v9777_v26 = vld [vmem:[%s11763_s22 + $0x60] ss:$8 sps:$4 sm:$0xff]   ;;  %v9779_v28 = vld [vmem:[%s11763_s22 + $0x74] ss:$8 sps:$4 sm:$0xff]  }
 0x12c   : > { %v9775_v25 = vld [vmem:[%s11763_s22 + $0x864] ss:$8 sps:$4 sm:$0xff]   ;;  %v9778_v27 = vld [vmem:[%s11763_s22 + $0x860] ss:$8 sps:$4 sm:$0xff]   ;;  %v9781_v29 = vld [vmem:[%s11763_s22 + $0x874] ss:$8 sps:$4 sm:$0xff]  }
 0x12d   : > { %7890 = vmatpush1.bf16.msra.mxu1 %v9753_v10  ;;  %v9783_v30 = vld [vmem:[%s11763_s22 + $0x70] ss:$8 sps:$4 sm:$0xff]   ;;  %v9785_v32 = vld [vmem:[%s11763_s22 + $0x84] ss:$8 sps:$4 sm:$0xff]   ;;  %v9789_v34 = vld [vmem:[%s11763_s22 + $0x80] ss:$8 sps:$4 sm:$0xff]  }
 0x12e   : > { %8298 = vmatpush1.bf16.msra.mxu0 %v9754_v11  ;;  %7891 = vmatprep.subr.bf16.mxu1 %v9755_v12  ;;  %v9784_v31 = vld [vmem:[%s11763_s22 + $0x870] ss:$8 sps:$4 sm:$0xff]   ;;  %v9787_v33 = vld [vmem:[%s11763_s22 + $0x884] ss:$8 sps:$4 sm:$0xff]   ;;  %v9790_v35 = vld [vmem:[%s11763_s22 + $0x880] ss:$8 sps:$4 sm:$0xff]  }
 0x12f   : > { %8299 = vmatprep.subr.bf16.mxu0 %v9757_v13  ;;  %s4334_s11 = scalar_select %p4333_p0, %s10612_s13, 1  ;;  %v9791_v36 = vld [vmem:[%s11763_s22 + $0x94] ss:$8 sps:$4 sm:$0xff]   ;;  %v9795_v38 = vld [vmem:[%s11763_s22 + $0x90] ss:$8 sps:$4 sm:$0xff]  }
 0x130   : > { %v9793_v37 = vld [vmem:[%s11763_s22 + $0x894] ss:$8 sps:$4 sm:$0xff]   ;;  %v9796_v39 = vld [vmem:[%s11763_s22 + $0x890] ss:$8 sps:$4 sm:$0xff]   ;;  %v9797_v40 = vld [vmem:[%s11763_s22 + $0xa4] ss:$8 sps:$4 sm:$0xff]  }
 0x131   : > { %7892 = vmatpush1.bf16.msra.mxu1 %v9759_v14  ;;  %s9662_s23 = smul.u32 56, %s4334_s11  ;;  %v9799_v41 = vld [vmem:[%s11763_s22 + $0x8a4] ss:$8 sps:$4 sm:$0xff]   ;;  %v9801_v42 = vld [vmem:[%s11763_s22 + $0xa0] ss:$8 sps:$4 sm:$0xff]   ;;  %s9535_s4 = sshll.u32 (%p10714_p9), %s10616_s14, 1 }
 0x132   : > { %8300 = vmatpush1.bf16.msra.mxu0 %v9760_v15  ;;  %7893 = vmatprep.subr.bf16.mxu1 %v9761_v16  ;;  %v9802_v43 = vld [vmem:[%s11763_s22 + $0x8a0] ss:$8 sps:$4 sm:$0xff]   ;;  %v9803_v44 = vld [vmem:[%s11763_s22 + $0xb4] ss:$8 sps:$4 sm:$0xff]   ;;  %v9807_v46 = vld [vmem:[%s11763_s22 + $0xb0] ss:$8 sps:$4 sm:$0xff]  }
 0x133   : > { %8301 = vmatprep.subr.bf16.mxu0 %v9763_v17  ;;  %s11814_s26 = scalar_lea.vmem %s12701_s0, %s9662_s23  ;;  %v9805_v45 = vld [vmem:[%s11763_s22 + $0x8b4] ss:$8 sps:$4 sm:$0xff]   ;;  %v9808_v47 = vld [vmem:[%s11763_s22 + $0x8b0] ss:$8 sps:$4 sm:$0xff]   ;;  %v9809_v50 = vld [vmem:[%s11763_s22 + $0xc4] ss:$8 sps:$4 sm:$0xff]  }
 0x134   : > { %v4340_v48 = vld [vmem:[%s11814_s26] sm:$0xff]  ;;  %v11822_v49 = vld [vmem:[%s11814_s26 + $0x8] sm:$0xff]  ;;  %v11830_v53 = vld [vmem:[%s11814_s26 + $0x10] sm:$0xff]  ;;  %s9661_s3 = smul.u32 24, %s4330_s30 }
 0x135   : > { %7894 = vmatpush1.bf16.msra.mxu1 %v9765_v18  ;;  %v9811_v51 = vld [vmem:[%s11763_s22 + $0x8c4] ss:$8 sps:$4 sm:$0xff]   ;;  %v11827_v52 = vcombine.high %v4340_v48, %v11822_v49  ;;  %v11833_v54 = vld [vmem:[%s11814_s26 + $0x18] sm:$0xff]  ;;  %v9813_v56 = vld [vmem:[%s11763_s22 + $0xc0] ss:$8 sps:$4 sm:$0xff]   ;;  %v11858_v8 = vcombine.low %v4340_v48, %v11822_v49  ;;  %v8980_v14 = vcombine.high %v11830_v53, %v11830_v53  ;;  %s9663_s5 = smul.u32 (%p10714_p9), 12, %s10612_s13 }
 0x136   : > { %8302 = vmatpush1.bf16.msra.mxu0 %v9766_v19  ;;  %7895 = vmatprep.subr.bf16.mxu1 %v9767_v20  ;;  %v11838_v55 = vcombine.high %v11830_v53, %v11833_v54  ;;  %v9814_v57 = vld [vmem:[%s11763_s22 + $0x8c0] ss:$8 sps:$4 sm:$0xff]   ;;  %v9815_v58 = vld [vmem:[%s11763_s22 + $0xd4] ss:$8 sps:$4 sm:$0xff]   ;;  %v9819_v60 = vld [vmem:[%s11763_s22 + $0xd0] ss:$8 sps:$4 sm:$0xff]   ;;  %v11862_v9 = vcombine.low %v11830_v53, %v11833_v54  ;;  %v8979_v19 = vcombine.low %v11830_v53, %v11830_v53 }
 0x137   : > { %8303 = vmatprep.subr.bf16.mxu0 %v9769_v21  ;;  %7917 = vmatprep.mubr.bf16.mxu1 %v11827_v52  ;;  %v9817_v59 = vld [vmem:[%s11763_s22 + $0x8d4] ss:$8 sps:$4 sm:$0xff]   ;;  %v9820_v61 = vld [vmem:[%s11763_s22 + $0x8d0] ss:$8 sps:$4 sm:$0xff]   ;;  %v9821_v62 = vld [vmem:[%s11763_s22 + $0xe4] ss:$8 sps:$4 sm:$0xff]   ;;  %s8832_s6 = sadd.s32 (%p10714_p9), %s9663_s5, %s9535_s4 }
 0x138   : > { %8325 = vmatprep.mubr.bf16.mxu0 %v11838_v55  ;;  %v9823_v63 = vld [vmem:[%s11763_s22 + $0x8e4] ss:$8 sps:$4 sm:$0xff]   ;;  %v9825_v0 = vld [vmem:[%s11763_s22 + $0xe0] ss:$8 sps:$4 sm:$0xff]   ;;  %v9827_v2 = vld [vmem:[%s11763_s22 + $0xf4] ss:$8 sps:$4 sm:$0xff]  }
 0x139   : > { %7896 = vmatpush1.bf16.msra.mxu1 %v9771_v22  ;;  %v9826_v1 = vld [vmem:[%s11763_s22 + $0x8e0] ss:$8 sps:$4 sm:$0xff]   ;;  %v9829_v3 = vld [vmem:[%s11763_s22 + $0x8f4] ss:$8 sps:$4 sm:$0xff]   ;;  %v9831_v4 = vld [vmem:[%s11763_s22 + $0xf0] ss:$8 sps:$4 sm:$0xff]  }
 0x13a   : > { %8304 = vmatpush1.bf16.msra.mxu0 %v9772_v23  ;;  %7897 = vmatprep.subr.bf16.mxu1 %v9773_v24  ;;  %v9832_v5 = vld [vmem:[%s11763_s22 + $0x8f0] ss:$8 sps:$4 sm:$0xff]   ;;  %v9836_v6 = vld [vmem:[%s11763_s22 + $0x104] ss:$8 sps:$4 sm:$0xff]   ;;  %v9834_v10 = vld [vmem:[%s11763_s22 + $0x100] ss:$8 sps:$4 sm:$0xff]  }
 0x13b   : > { %8305 = vmatprep.subr.bf16.mxu0 %v9775_v25  ;;  %v9840_v7 = vld [vmem:[%s11763_s22 + $0x904] ss:$8 sps:$4 sm:$0xff]   ;;  %v9838_v11 = vld [vmem:[%s11763_s22 + $0x900] ss:$8 sps:$4 sm:$0xff]   ;;  %v9845_v12 = vld [vmem:[%s11763_s22 + $0x114] ss:$8 sps:$4 sm:$0xff]  }
 0x13c   : > { %v9848_v13 = vld [vmem:[%s11763_s22 + $0x914] ss:$8 sps:$4 sm:$0xff]   ;;  %v9843_v15 = vld [vmem:[%s11763_s22 + $0x110] ss:$8 sps:$4 sm:$0xff]   ;;  %v9851_v17 = vld [vmem:[%s11763_s22 + $0x124] ss:$8 sps:$4 sm:$0xff]  }
 0x13d   : > { %7898 = vmatpush1.bf16.msra.mxu1 %v9777_v26  ;;  %v9846_v16 = vld [vmem:[%s11763_s22 + $0x910] ss:$8 sps:$4 sm:$0xff]   ;;  %v9854_v18 = vld [vmem:[%s11763_s22 + $0x924] ss:$8 sps:$4 sm:$0xff]   ;;  %v9849_v20 = vld [vmem:[%s11763_s22 + $0x120] ss:$8 sps:$4 sm:$0xff]  }
 0x13e   : > { %8306 = vmatpush1.bf16.msra.mxu0 %v9778_v27  ;;  %7899 = vmatprep.subr.bf16.mxu1 %v9779_v28  ;;  %v9852_v21 = vld [vmem:[%s11763_s22 + $0x920] ss:$8 sps:$4 sm:$0xff]   ;;  %v9857_v22 = vld [vmem:[%s11763_s22 + $0x134] ss:$8 sps:$4 sm:$0xff]   ;;  %v9855_v24 = vld [vmem:[%s11763_s22 + $0x130] ss:$8 sps:$4 sm:$0xff]  }
 0x13f   : > { %8307 = vmatprep.subr.bf16.mxu0 %v9781_v29  ;;  %v9860_v23 = vld [vmem:[%s11763_s22 + $0x934] ss:$8 sps:$4 sm:$0xff]   ;;  %v9858_v25 = vld [vmem:[%s11763_s22 + $0x930] ss:$8 sps:$4 sm:$0xff]   ;;  %v9863_v26 = vld [vmem:[%s11763_s22 + $0x144] ss:$8 sps:$4 sm:$0xff]  }
 0x140   : > { %v9866_v27 = vld [vmem:[%s11763_s22 + $0x944] ss:$8 sps:$4 sm:$0xff]   ;;  %v9861_v28 = vld [vmem:[%s11763_s22 + $0x140] ss:$8 sps:$4 sm:$0xff]   ;;  %v4615_v48 = vshrl.u32 %v11838_v55, 16  ;;  %s4332_s9 = scalar_lea.vmem [#allocation3], %s9661_s3 }
 0x141   : > { %7900 = vmatpush1.bf16.msra.mxu1 %v9783_v30  ;;  %v9864_v29 = vld [vmem:[%s11763_s22 + $0x940] ss:$8 sps:$4 sm:$0xff]   ;;  %v9869_v30 = vld [vmem:[%s11763_s22 + $0x154] ss:$8 sps:$4 sm:$0xff]   ;;  %s9536_s7 = sshll.u32 (%p10714_p9), %s8832_s6, 2 }
 0x142   : > { %8308 = vmatpush1.bf16.msra.mxu0 %v9784_v31  ;;  %7901 = vmatprep.subr.bf16.mxu1 %v9785_v32  ;;  %v9872_v31 = vld [vmem:[%s11763_s22 + $0x954] ss:$8 sps:$4 sm:$0xff]   ;;  %v4399_v32 = vshll.u32 %v11827_v52, 16  ;;  %s8834_s21 = scalar_lea.vmem (%p10714_p9), %s12703_s2, %s9536_s7 }
 0x143   : > { %8309 = vmatprep.subr.bf16.mxu0 %v9787_v33  ;;  %v9867_v33 = vld [vmem:[%s11763_s22 + $0x150] ss:$8 sps:$4 sm:$0xff]  }
 0x145   : > { %7902 = vmatpush1.bf16.msra.mxu1 %v9789_v34  ;;  %v11893_v34 = vld [vmem:[%s11814_s26 + $0x20] sm:$0xff] }
 0x146   : > { %8310 = vmatpush1.bf16.msra.mxu0 %v9790_v35  ;;  %7903 = vmatprep.subr.bf16.mxu1 %v9791_v36  ;;  %v4617_v35 = vshll.u32 %v11838_v55, 16  ;;  %v9870_v36 = vld [vmem:[%s11763_s22 + $0x950] ss:$8 sps:$4 sm:$0xff]  }
 0x147   : > { %8311 = vmatprep.subr.bf16.mxu0 %v9793_v37  ;;  %v9875_v37 = vld [vmem:[%s11763_s22 + $0x164] ss:$8 sps:$4 sm:$0xff]   ;;  %v9882_v55 = vld [vmem:[%s11763_s22 + $0x970] ss:$8 sps:$4 sm:$0xff]  }
 0x149   : > { %7904 = vmatpush1.bf16.msra.mxu1 %v9795_v38  ;;  %v9000_v38 = vcombine.high %v11893_v34, %v11893_v34 }
 0x14a   : > { %8312 = vmatpush1.bf16.msra.mxu0 %v9796_v39  ;;  %7905 = vmatprep.subr.bf16.mxu1 %v9797_v40  ;;  %v8999_v39 = vcombine.low %v11893_v34, %v11893_v34  ;;  %v9878_v40 = vld [vmem:[%s11763_s22 + $0x964] ss:$8 sps:$4 sm:$0xff]  }
 0x14b   : > { %8313 = vmatprep.subr.bf16.mxu0 %v9799_v41  ;;  %v4397_v41 = vshrl.u32 %v11827_v52, 16  ;;  %v11917_v52 = vld [vmem:[%s11814_s26 + $0x28] sm:$0x11] }
 0x14d   : > { %7906 = vmatpush1.bf16.msra.mxu1 %v9801_v42  ;;  %v4401_v42 = vrot.slane %v4399_v32, 1  ;;  %v9924_v32 = vld [vmem:[%s11763_s22 + $0x1e4] ss:$8 sps:$4 sm:$0xff]  }
 0x14e   : > { %8314 = vmatpush1.bf16.msra.mxu0 %v9802_v43  ;;  %7907 = vmatprep.subr.bf16.mxu1 %v9803_v44  ;;  %v9873_v43 = vld [vmem:[%s11763_s22 + $0x160] ss:$8 sps:$4 sm:$0xff]  }
 0x14f   : > { %8315 = vmatprep.subr.bf16.mxu0 %v9805_v45  ;;  %v9876_v44 = vld [vmem:[%s11763_s22 + $0x960] ss:$8 sps:$4 sm:$0xff]   ;;  %v11907_v45 = vld [vmem:[%s11814_s26 + $0x18] sm:$0x11] }
 0x151   : > { %7908 = vmatpush1.bf16.msra.mxu1 %v9807_v46  ;;  %v9881_v46 = vld [vmem:[%s11763_s22 + $0x174] ss:$8 sps:$4 sm:$0xff]  }
 0x152   : > { %8316 = vmatpush1.bf16.msra.mxu0 %v9808_v47  ;;  %7909 = vmatprep.subr.bf16.mxu1 %v9809_v50  ;;  %v11912_v47 = vcombine.high %v11830_v53, %v11907_v45  ;;  %v4619_v50 = vrot.slane %v4617_v35, 1  ;;  %v4385_v35 = vshrl.u32 %v11858_v8, 16 }
 0x153   : > { %8317 = vmatprep.subr.bf16.mxu0 %v9811_v51  ;;  %v9884_v51 = vld [vmem:[%s11763_s22 + $0x974] ss:$8 sps:$4 sm:$0xff]  }
 0x155   : > { %7910 = vmatpush1.bf16.msra.mxu1 %v9813_v56  ;;  %v4402_v56 = vor.u32 %v4401_v42, %v4397_v41  ;;  %v9933_v42 = vld [vmem:[%s11763_s22 + $0x1f4] ss:$8 sps:$4 sm:$0xff]  }
 0x156   : > { %8318 = vmatpush1.bf16.msra.mxu0 %v9814_v57  ;;  %7911 = vmatprep.subr.bf16.mxu1 %v9815_v58  ;;  %v4404_v57 = vshll.u32 %v11912_v47, 16  ;;  %v11922_v58 = vcombine.high %v11893_v34, %v11917_v52 }
 0x157   : > { %8319 = vmatprep.subr.bf16.mxu0 %v9817_v59  ;;  %v9879_v59 = vld [vmem:[%s11763_s22 + $0x170] ss:$8 sps:$4 sm:$0xff]  }
 0x159   : > { %7912 = vmatpush1.bf16.msra.mxu1 %v9819_v60  ;;  %v11926_v60 = vrot.slane %v4404_v57, 1  ;;  %v9939_v57 = vld [vmem:[%s11763_s22 + $0x200] ss:$8 sps:$4 sm:$0xff]  }
 0x15a   : > { %8320 = vmatpush1.bf16.msra.mxu0 %v9820_v61  ;;  %7913 = vmatprep.subr.bf16.mxu1 %v9821_v62  ;;  %v4620_v61 = vor.u32 %v4619_v50, %v4615_v48  ;;  %v4622_v62 = vshll.u32 %v11922_v58, 16  ;;  %v9941_v50 = vld [vmem:[%s11763_s22 + $0x204] ss:$8 sps:$4 sm:$0xff]  }
 0x15b   : > { %8321 = vmatprep.subr.bf16.mxu0 %v9823_v63  ;;  %v9887_v63 = vld [vmem:[%s11763_s22 + $0x184] ss:$8 sps:$4 sm:$0xff]  }
 0x15d   : > { %7914 = vmatpush1.bf16.msra.mxu1 %v9825_v0  ;;  %v9890_v0 = vld [vmem:[%s11763_s22 + $0x984] ss:$8 sps:$4 sm:$0xff]  }
 0x15e   : > { %8322 = vmatpush1.bf16.msra.mxu0 %v9826_v1  ;;  %7915 = vmatprep.subr.bf16.mxu1 %v9827_v2  ;;  %v4407_v1 = vsel %vm4383_vm0, %v4402_v56, %v11926_v60  ;;  %v11933_v2 = vrot.slane %v4622_v62, 1  ;;  %v4629_v56 = vshrl.u32 %v11922_v58, 16  ;;  %v9949_v62 = vld [vmem:[%s11763_s22 + $0x214] ss:$8 sps:$4 sm:$0xff]  }
 0x15f   : > { %8323 = vmatprep.subr.bf16.mxu0 %v9829_v3  ;;  %v9885_v3 = vld [vmem:[%s11763_s22 + $0x180] ss:$8 sps:$4 sm:$0xff]  }
 0x161   : > { %7916 = vmatpush1.bf16.msra.mxu1 %v9831_v4  ;;  %v9888_v4 = vld [vmem:[%s11763_s22 + $0x980] ss:$8 sps:$4 sm:$0xff]  }
 0x162   : > { %8324 = vmatpush1.bf16.msra.mxu0 %v9832_v5  ;;  %7936 = vmatprep.subr.bf16.mxu1 %v9836_v6  ;;  %v4625_v5 = vsel %vm4383_vm0, %v4620_v61, %v11933_v2  ;;  %v9893_v6 = vld [vmem:[%s11763_s22 + $0x194] ss:$8 sps:$4 sm:$0xff]  }
 0x163   : > { %8344 = vmatprep.subr.bf16.mxu0 %v9840_v7  ;;  %v9896_v7 = vld [vmem:[%s11763_s22 + $0x994] ss:$8 sps:$4 sm:$0xff]  }
 0x164   : > { %7918 = vmatmul.mubr.bf16.vlgmr.msra.gmra.mrb[0].mxu1 %v11858_v8 }
 0x165   : > { %8326 = vmatmul.mubr.bf16.vlgmr.msra.gmra.mrb[0].mxu0 %v11862_v9  ;;  %7937 = vmatpush1.bf16.msra.mxu1 %v9834_v10  ;;  %v9891_v10 = vld [vmem:[%s11763_s22 + $0x190] ss:$8 sps:$4 sm:$0xff]  }
 0x166   : > { %8345 = vmatpush1.bf16.msra.mxu0 %v9838_v11  ;;  %7938 = vmatprep.subr.bf16.mxu1 %v9845_v12  ;;  %v9894_v11 = vld [vmem:[%s11763_s22 + $0x990] ss:$8 sps:$4 sm:$0xff]   ;;  %v9899_v12 = vld [vmem:[%s11763_s22 + $0x1a4] ss:$8 sps:$4 sm:$0xff]  }
 0x167   : > { %8346 = vmatprep.subr.bf16.mxu0 %v9848_v13  ;;  %7927 = vmatprep.mubr.bf16.mxu1 %v8980_v14  ;;  %v9902_v13 = vld [vmem:[%s11763_s22 + $0x9a4] ss:$8 sps:$4 sm:$0xff]   ;;  %v9897_v14 = vld [vmem:[%s11763_s22 + $0x1a0] ss:$8 sps:$4 sm:$0xff]  }
 0x168   : > { %8335 = vmatprep.mubr.bf16.mxu0 %v9000_v38  ;;  %v9922_v38 = vld [vmem:[%s11763_s22 + $0x1e0] ss:$8 sps:$4 sm:$0xff]  }
 0x169   : > { %7939 = vmatpush1.bf16.msra.mxu1 %v9843_v15  ;;  %v9900_v15 = vld [vmem:[%s11763_s22 + $0x9a0] ss:$8 sps:$4 sm:$0xff]  }
 0x16a   : > { %8347 = vmatpush1.bf16.msra.mxu0 %v9846_v16  ;;  %7940 = vmatprep.subr.bf16.mxu1 %v9851_v17  ;;  %v9905_v16 = vld [vmem:[%s11763_s22 + $0x1b4] ss:$8 sps:$4 sm:$0xff]  }
 0x16b   : > { %8348 = vmatprep.subr.bf16.mxu0 %v9854_v18  ;;  %v9908_v17 = vld [vmem:[%s11763_s22 + $0x9b4] ss:$8 sps:$4 sm:$0xff]   ;;  %v9903_v18 = vld [vmem:[%s11763_s22 + $0x1b0] ss:$8 sps:$4 sm:$0xff]  }
 0x16c   : > { %7928 = vmatmul.mubr.bf16.gmra.mrb[4].mxu1 %v8979_v19  ;;  %v9906_v19 = vld [vmem:[%s11763_s22 + $0x9b0] ss:$8 sps:$4 sm:$0xff]  }
 0x16d   : > { %7941 = vmatpush1.bf16.msra.mxu1 %v9849_v20  ;;  %8336 = vmatmul.mubr.bf16.gmra.mrb[4].mxu0 %v8999_v39  ;;  %v9911_v20 = vld [vmem:[%s11763_s22 + $0x1c4] ss:$8 sps:$4 sm:$0xff]   ;;  %v9926_v39 = vld [vmem:[%s11763_s22 + $0x9e0] ss:$8 sps:$4 sm:$0xff]  }
 0x16e   : > { %8349 = vmatpush1.bf16.msra.mxu0 %v9852_v21  ;;  %7942 = vmatprep.subr.bf16.mxu1 %v9857_v22  ;;  %v9914_v21 = vld [vmem:[%s11763_s22 + $0x9c4] ss:$8 sps:$4 sm:$0xff]   ;;  %v9909_v22 = vld [vmem:[%s11763_s22 + $0x1c0] ss:$8 sps:$4 sm:$0xff]  }
 0x16f   : > { %8350 = vmatprep.subr.bf16.mxu0 %v9860_v23  ;;  %7968 = vmatprep.mubr.bf16.mxu1 %v4407_v1  ;;  %v9912_v23 = vld [vmem:[%s11763_s22 + $0x9c0] ss:$8 sps:$4 sm:$0xff]  }
 0x170   : > { %8376 = vmatprep.mubr.bf16.mxu0 %v4625_v5  ;;  %v9950_v5 = vld [vmem:[%s11763_s22 + $0xa10] ss:$8 sps:$4 sm:$0xff]  }
 0x171   : > { %7943 = vmatpush1.bf16.msra.mxu1 %v9855_v24  ;;  %v9917_v24 = vld [vmem:[%s11763_s22 + $0x1d4] ss:$8 sps:$4 sm:$0xff]  }
 0x172   : > { %8351 = vmatpush1.bf16.msra.mxu0 %v9858_v25  ;;  %7944 = vmatprep.subr.bf16.mxu1 %v9863_v26  ;;  %v9920_v25 = vld [vmem:[%s11763_s22 + $0x9d4] ss:$8 sps:$4 sm:$0xff]   ;;  %v4387_v26 = vshll.u32 %v11858_v8, 16  ;;  %v9931_v8 = vld [vmem:[%s11763_s22 + $0x1f0] ss:$8 sps:$4 sm:$0xff]  }
 0x173   : > { %8352 = vmatprep.subr.bf16.mxu0 %v9866_v27  ;;  %v4605_v27 = vshll.u32 %v11862_v9, 16 }
 0x175   : > { %7945 = vmatpush1.bf16.msra.mxu1 %v9861_v28  ;;  %v9915_v28 = vld [vmem:[%s11763_s22 + $0x1d0] ss:$8 sps:$4 sm:$0xff]  }
 0x176   : > { %8353 = vmatpush1.bf16.msra.mxu0 %v9864_v29  ;;  %7946 = vmatprep.subr.bf16.mxu1 %v9869_v30  ;;  %v9918_v29 = vld [vmem:[%s11763_s22 + $0x9d0] ss:$8 sps:$4 sm:$0xff]   ;;  %v11963_v30 = vcombine.low %v11830_v53, %v11907_v45  ;;  %v4607_v53 = vrot.slane %v4605_v27, 1  ;;  %v9965_v27 = vld [vmem:[%s11763_s22 + $0x240] ss:$8 sps:$4 sm:$0xff]  }
 0x177   : > { %8354 = vmatprep.subr.bf16.mxu0 %v9872_v31  ;;  %v11967_v31 = vcombine.low %v11893_v34, %v11917_v52  ;;  %v4411_v52 = vshrl.u32 %v11912_v47, 16 }
 0x179   : > { %7947 = vmatpush1.bf16.msra.mxu1 %v9867_v33  ;;  %v9928_v33 = vld [vmem:[%s11763_s22 + $0x9e4] ss:$8 sps:$4 sm:$0xff]   ;;  %v4610_v41 = vshll.u32 %v11967_v31, 16  ;;  %v4413_v1 = vor.u32 %v4411_v52, %v11926_v60 }
 0x17a   : > { %8355 = vmatpush1.bf16.msra.mxu0 %v9870_v36  ;;  %7948 = vmatprep.subr.bf16.mxu1 %v9875_v37  ;;  %v4389_v36 = vrot.slane %v4387_v26, 1  ;;  %v4603_v37 = vshrl.u32 %v11862_v9, 16  ;;  %v9934_v9 = vld [vmem:[%s11763_s22 + $0x9f0] ss:$8 sps:$4 sm:$0xff]   ;;  %v9970_v26 = vld [vmem:[%s11763_s22 + $0xa44] ss:$8 sps:$4 sm:$0xff]  }
 0x17b   : > { %8356 = vmatprep.subr.bf16.mxu0 %v9878_v40  ;;  %v4392_v40 = vshll.u32 %v11963_v30, 16  ;;  %v4612_v48 = vrot.slane %v4610_v41, 1  ;;  %v9983_v41 = vld [vmem:[%s11763_s22 + $0x270] ss:$8 sps:$4 sm:$0xff]   ;;  %v10006_v52 = vld [vmem:[%s11763_s22 + $0xaa4] ss:$8 sps:$4 sm:$0xff]  }
 0x17d   : > { %7949 = vmatpush1.bf16.msra.mxu1 %v9873_v43  ;;  %v9936_v43 = vld [vmem:[%s11763_s22 + $0x9f4] ss:$8 sps:$4 sm:$0xff]   ;;  %v4394_v45 = vrot.slane %v4392_v40, 1 }
 0x17e   : > { %8357 = vmatpush1.bf16.msra.mxu0 %v9876_v44  ;;  %7950 = vmatprep.subr.bf16.mxu1 %v9881_v46  ;;  %v4390_v44 = vor.u32 %v4389_v36, %v4385_v35  ;;  %v4608_v46 = vor.u32 %v4607_v53, %v4603_v37  ;;  %v9974_v35 = vld [vmem:[%s11763_s22 + $0xa50] ss:$8 sps:$4 sm:$0xff]   ;;  %v9979_v36 = vld [vmem:[%s11763_s22 + $0x264] ss:$8 sps:$4 sm:$0xff]   ;;  %v9980_v53 = vld [vmem:[%s11763_s22 + $0xa60] ss:$8 sps:$4 sm:$0xff]  }
 0x17f   : > { %8358 = vmatprep.subr.bf16.mxu0 %v9884_v51  ;;  %v9946_v51 = vld [vmem:[%s11763_s22 + $0xa04] ss:$8 sps:$4 sm:$0xff]   ;;  %v9988_v40 = vld [vmem:[%s11763_s22 + $0xa74] ss:$8 sps:$4 sm:$0xff]  }
 0x180   : > { %v4613_v61 = vsel %vm4383_vm0, %v4608_v46, %v4612_v48  ;;  %v9982_v37 = vld [vmem:[%s11763_s22 + $0xa64] ss:$8 sps:$4 sm:$0xff]   ;;  %v10000_v46 = vld [vmem:[%s11763_s22 + $0xa94] ss:$8 sps:$4 sm:$0xff]  }
 0x181   : > { %7951 = vmatpush1.bf16.msra.mxu1 %v9879_v59  ;;  %v9944_v59 = vld [vmem:[%s11763_s22 + $0xa00] ss:$8 sps:$4 sm:$0xff]  }
 0x182   : > { %8359 = vmatpush1.bf16.msra.mxu0 %v9882_v55  ;;  %7952 = vmatprep.subr.bf16.mxu1 %v9887_v63  ;;  %v4395_v55 = vsel %vm4383_vm0, %v4390_v44, %v4394_v45  ;;  %v9952_v63 = vld [vmem:[%s11763_s22 + $0xa14] ss:$8 sps:$4 sm:$0xff]   ;;  %v9992_v44 = vld [vmem:[%s11763_s22 + $0xa80] ss:$8 sps:$4 sm:$0xff]  }
 0x183   : > { %8360 = vmatprep.subr.bf16.mxu0 %v9890_v0  ;;  %v9947_v0 = vld [vmem:[%s11763_s22 + $0x210] ss:$8 sps:$4 sm:$0xff]  }
 0x185   : > { %7953 = vmatpush1.bf16.msra.mxu1 %v9885_v3  ;;  %v4631_v3 = vor.u32 %v4629_v56, %v11933_v2  ;;  %v12007_v2 = vld [vmem:[%s11814_s26 + $0x10] sm:$0xee]  ;;  %v10001_v56 = vld [vmem:[%s11763_s22 + $0x2a0] ss:$8 sps:$4 sm:$0xff]  }
 0x186   : > { %8361 = vmatpush1.bf16.msra.mxu0 %v9888_v4  ;;  %7954 = vmatprep.subr.bf16.mxu1 %v9893_v6  ;;  %v4408_v4 = vshrl.u32 %v11963_v30, 16  ;;  %v4626_v6 = vshrl.u32 %v11967_v31, 16 }
 0x187   : > { %8362 = vmatprep.subr.bf16.mxu0 %v9896_v7  ;;  %v11998_v7 = vld [vmem:[%s11814_s26] sm:$0xee] }
 0x188   : > { %v12004_v60 = vcombine.high %v11998_v7, %v11822_v49  ;;  %v4428_v49 = vrot.slane %v11912_v47, 1  ;;  %v10061_v47 = vld [vmem:[%s11763_s22 + $0x334] ss:$8 sps:$4 sm:$0xff]  }
 0x189   : > { %7955 = vmatpush1.bf16.msra.mxu1 %v9891_v10  ;;  %v9955_v10 = vld [vmem:[%s11763_s22 + $0x224] ss:$8 sps:$4 sm:$0xff]  }
 0x18a   : > { %8363 = vmatpush1.bf16.msra.mxu0 %v9894_v11  ;;  %7956 = vmatprep.subr.bf16.mxu1 %v9899_v12  ;;  %v9958_v11 = vld [vmem:[%s11763_s22 + $0xa24] ss:$8 sps:$4 sm:$0xff]   ;;  %v9953_v12 = vld [vmem:[%s11763_s22 + $0x220] ss:$8 sps:$4 sm:$0xff]  }
 0x18b   : > { %8364 = vmatprep.subr.bf16.mxu0 %v9902_v13  ;;  %v4410_v13 = vor.u32 %v4408_v4, %v4394_v45  ;;  %v9997_v45 = vld [vmem:[%s11763_s22 + $0x294] ss:$8 sps:$4 sm:$0xff]  }
 0x18c   : > { %v10021_v4 = vld [vmem:[%s11763_s22 + $0x2d4] ss:$8 sps:$4 sm:$0xff]  }
 0x18d   : > { %7957 = vmatpush1.bf16.msra.mxu1 %v9897_v14  ;;  %v12012_v14 = vcombine.high %v12007_v2, %v11833_v54  ;;  %v9961_v54 = vld [vmem:[%s11763_s22 + $0x234] ss:$8 sps:$4 sm:$0xff]  }
 0x18e   : > { %8365 = vmatpush1.bf16.msra.mxu0 %v9900_v15  ;;  %7958 = vmatprep.subr.bf16.mxu1 %v9905_v16  ;;  %v4628_v15 = vor.u32 %v4626_v6, %v4612_v48  ;;  %v4427_v16 = vrot.slane %v12004_v60, 1  ;;  %v9995_v48 = vld [vmem:[%s11763_s22 + $0x290] ss:$8 sps:$4 sm:$0xff]  }
 0x18f   : > { %8366 = vmatprep.subr.bf16.mxu0 %v9908_v17  ;;  %v4645_v17 = vrot.slane %v11922_v58, 1  ;;  %v10019_v6 = vld [vmem:[%s11763_s22 + $0x2d0] ss:$8 sps:$4 sm:$0xff]   ;;  %v10064_v58 = vld [vmem:[%s11763_s22 + $0xb34] ss:$8 sps:$4 sm:$0xff]  }
 0x191   : > { %7959 = vmatpush1.bf16.msra.mxu1 %v9903_v18  ;;  %v9956_v18 = vld [vmem:[%s11763_s22 + $0xa20] ss:$8 sps:$4 sm:$0xff]  }
 0x192   : > { %8367 = vmatpush1.bf16.msra.mxu0 %v9906_v19  ;;  %7960 = vmatprep.subr.bf16.mxu1 %v9911_v20  ;;  %v4644_v19 = vrot.slane %v12012_v14, 1  ;;  %v9964_v20 = vld [vmem:[%s11763_s22 + $0xa34] ss:$8 sps:$4 sm:$0xff]  }
 0x193   : > { %8368 = vmatprep.subr.bf16.mxu0 %v9914_v21  ;;  %v9959_v21 = vld [vmem:[%s11763_s22 + $0x230] ss:$8 sps:$4 sm:$0xff]  }
 0x195   : > { %7961 = vmatpush1.bf16.msra.mxu1 %v9909_v22  ;;  %v4429_v22 = vsel %vm4423_vm1, %v4427_v16, %v4428_v49  ;;  %v12074_v16 = vld [vmem:[%s11814_s26 + $0x8] sm:$0xff] }
 0x196   : > { %8369 = vmatpush1.bf16.msra.mxu0 %v9912_v23  ;;  %7962 = vmatprep.subr.bf16.mxu1 %v9917_v24  ;;  %v4646_v23 = vsel %vm4423_vm1, %v4644_v19, %v4645_v17  ;;  %v9962_v24 = vld [vmem:[%s11763_s22 + $0xa30] ss:$8 sps:$4 sm:$0xff]  }
 0x197   : > { %8370 = vmatprep.subr.bf16.mxu0 %v9920_v25  ;;  %v9967_v25 = vld [vmem:[%s11763_s22 + $0x244] ss:$8 sps:$4 sm:$0xff]   ;;  %v12081_v19 = vld [vmem:[%s11814_s26 + $0x18] sm:$0xff] }
 0x199   : > { %7963 = vmatpush1.bf16.msra.mxu1 %v9915_v28  ;;  %v9968_v28 = vld [vmem:[%s11763_s22 + $0xa40] ss:$8 sps:$4 sm:$0xff]  }
 0x19a   : > { %8371 = vmatpush1.bf16.msra.mxu0 %v9918_v29  ;;  %7964 = vmatprep.subr.bf16.mxu1 %v9924_v32  ;;  %v9973_v29 = vld [vmem:[%s11763_s22 + $0x254] ss:$8 sps:$4 sm:$0xff]  }
 0x19b   : > { %8372 = vmatprep.subr.bf16.mxu0 %v9928_v33  ;;  %v9976_v32 = vld [vmem:[%s11763_s22 + $0xa54] ss:$8 sps:$4 sm:$0xff]   ;;  %v9971_v33 = vld [vmem:[%s11763_s22 + $0x250] ss:$8 sps:$4 sm:$0xff]  }
 0x19d   : > { %7965 = vmatpush1.bf16.msra.mxu1 %v9922_v38  ;;  %v9977_v38 = vld [vmem:[%s11763_s22 + $0x260] ss:$8 sps:$4 sm:$0xff]  }
 0x19e   : > { %8373 = vmatpush1.bf16.msra.mxu0 %v9926_v39  ;;  %7966 = vmatprep.subr.bf16.mxu1 %v9933_v42  ;;  %v9985_v39 = vld [vmem:[%s11763_s22 + $0x274] ss:$8 sps:$4 sm:$0xff]   ;;  %v9986_v42 = vld [vmem:[%s11763_s22 + $0xa70] ss:$8 sps:$4 sm:$0xff]  }
 0x19f   : > { %8374 = vmatprep.subr.bf16.mxu0 %v9936_v43  ;;  %v9991_v43 = vld [vmem:[%s11763_s22 + $0x284] ss:$8 sps:$4 sm:$0xff]  }
 0x1a1   : > { %7967 = vmatpush1.bf16.msra.mxu1 %v9931_v8  ;;  %v9994_v8 = vld [vmem:[%s11763_s22 + $0xa84] ss:$8 sps:$4 sm:$0xff]  }
 0x1a2   : > { %8375 = vmatpush1.bf16.msra.mxu0 %v9934_v9  ;;  %7987 = vmatprep.subr.bf16.mxu1 %v9941_v50  ;;  %v9989_v9 = vld [vmem:[%s11763_s22 + $0x280] ss:$8 sps:$4 sm:$0xff]   ;;  %v9998_v50 = vld [vmem:[%s11763_s22 + $0xa90] ss:$8 sps:$4 sm:$0xff]  }
 0x1a3   : > { %8395 = vmatprep.subr.bf16.mxu0 %v9946_v51  ;;  %v10003_v51 = vld [vmem:[%s11763_s22 + $0x2a4] ss:$8 sps:$4 sm:$0xff]  }
 0x1a4   : > { %7969 = vmatmul.mubr.bf16.vlgmr.msra.gmra.mrb[0].mxu1 %v4395_v55  ;;  %v10012_v55 = vld [vmem:[%s11763_s22 + $0xab4] ss:$8 sps:$4 sm:$0xff]  }
 0x1a5   : > { %8377 = vmatmul.mubr.bf16.vlgmr.msra.gmra.mrb[0].mxu0 %v4613_v61  ;;  %7988 = vmatpush1.bf16.msra.mxu1 %v9939_v57  ;;  %v10004_v57 = vld [vmem:[%s11763_s22 + $0xaa0] ss:$8 sps:$4 sm:$0xff]   ;;  %v10007_v61 = vld [vmem:[%s11763_s22 + $0x2b0] ss:$8 sps:$4 sm:$0xff]  }
 0x1a6   : > { %8396 = vmatpush1.bf16.msra.mxu0 %v9944_v59  ;;  %7989 = vmatprep.subr.bf16.mxu1 %v9949_v62  ;;  %v10009_v59 = vld [vmem:[%s11763_s22 + $0x2b4] ss:$8 sps:$4 sm:$0xff]   ;;  %v10010_v62 = vld [vmem:[%s11763_s22 + $0xab0] ss:$8 sps:$4 sm:$0xff]  }
 0x1a7   : > { %8397 = vmatprep.subr.bf16.mxu0 %v9952_v63  ;;  %7978 = vmatprep.mubr.bf16.mxu1 %v4413_v1  ;;  %v10015_v63 = vld [vmem:[%s11763_s22 + $0x2c4] ss:$8 sps:$4 sm:$0xff]   ;;  %v10013_v1 = vld [vmem:[%s11763_s22 + $0x2c0] ss:$8 sps:$4 sm:$0xff]  }
 0x1a8   : > { %8386 = vmatprep.mubr.bf16.mxu0 %v4631_v3  ;;  %v10016_v3 = vld [vmem:[%s11763_s22 + $0xac0] ss:$8 sps:$4 sm:$0xff]  }
 0x1a9   : > { %7990 = vmatpush1.bf16.msra.mxu1 %v9947_v0  ;;  %v10018_v0 = vld [vmem:[%s11763_s22 + $0xac4] ss:$8 sps:$4 sm:$0xff]  }
 0x1aa   : > { %8398 = vmatpush1.bf16.msra.mxu0 %v9950_v5  ;;  %7991 = vmatprep.subr.bf16.mxu1 %v9955_v10  ;;  %v10024_v5 = vld [vmem:[%s11763_s22 + $0xad4] ss:$8 sps:$4 sm:$0xff]   ;;  %v10022_v10 = vld [vmem:[%s11763_s22 + $0xad0] ss:$8 sps:$4 sm:$0xff]  }
 0x1ab   : > { %8399 = vmatprep.subr.bf16.mxu0 %v9958_v11  ;;  %v10027_v11 = vld [vmem:[%s11763_s22 + $0x2e4] ss:$8 sps:$4 sm:$0xff]  }
 0x1ac   : > { %7979 = vmatmul.mubr.bf16.gmra.mrb[4].mxu1 %v4410_v13  ;;  %v10025_v13 = vld [vmem:[%s11763_s22 + $0x2e0] ss:$8 sps:$4 sm:$0xff]  }
 0x1ad   : > { %8387 = vmatmul.mubr.bf16.gmra.mrb[4].mxu0 %v4628_v15  ;;  %7992 = vmatpush1.bf16.msra.mxu1 %v9953_v12  ;;  %v10030_v12 = vld [vmem:[%s11763_s22 + $0xae4] ss:$8 sps:$4 sm:$0xff]   ;;  %v10028_v15 = vld [vmem:[%s11763_s22 + $0xae0] ss:$8 sps:$4 sm:$0xff]  }
 0x1ae   : > { %8400 = vmatpush1.bf16.msra.mxu0 %v9956_v18  ;;  %7993 = vmatprep.subr.bf16.mxu1 %v9961_v54  ;;  %v12078_v18 = vcombine.low %v11998_v7, %v12074_v16  ;;  %v12085_v54 = vcombine.low %v12007_v2, %v12081_v19  ;;  %v4425_v7 = vrot.slane %v11963_v30, 1  ;;  %v10067_v30 = vld [vmem:[%s11763_s22 + $0x344] ss:$8 sps:$4 sm:$0xff]  }
 0x1af   : > { %8401 = vmatprep.subr.bf16.mxu0 %v9964_v20  ;;  %8019 = vmatprep.mubr.bf16.mxu1 %v4429_v22  ;;  %v12088_v20 = vld [vmem:[%s11814_s26 + $0x18] sm:$0x33] }
 0x1b0   : > { %8427 = vmatprep.mubr.bf16.mxu0 %v4646_v23  ;;  %v10033_v22 = vld [vmem:[%s11763_s22 + $0x2f4] ss:$8 sps:$4 sm:$0xff]  }
 0x1b1   : > { %7994 = vmatpush1.bf16.msra.mxu1 %v9959_v21  ;;  %v12091_v21 = vld [vmem:[%s11814_s26 + $0x28] sm:$0x33]  ;;  %v10036_v23 = vld [vmem:[%s11763_s22 + $0xaf4] ss:$8 sps:$4 sm:$0xff]  }
 0x1b2   : > { %8402 = vmatpush1.bf16.msra.mxu0 %v9962_v24  ;;  %7995 = vmatprep.subr.bf16.mxu1 %v9967_v25  ;;  %v10031_v24 = vld [vmem:[%s11763_s22 + $0x2f0] ss:$8 sps:$4 sm:$0xff]   ;;  %v9006_v2 = vcombine.high %v11893_v34, %v12091_v21  ;;  %v4461_v34 = vshll.u32 %v12004_v60, 16 }
 0x1b3   : > { %8403 = vmatprep.subr.bf16.mxu0 %v9970_v26  ;;  %v12098_v25 = vld [vmem:[%s11814_s26 + $0x10] sm:$0xff] }
 0x1b4   : > { %v8986_v26 = vcombine.high %v12098_v25, %v12088_v20 }
 0x1b5   : > { %7996 = vmatpush1.bf16.msra.mxu1 %v9965_v27  ;;  %v10034_v27 = vld [vmem:[%s11763_s22 + $0xaf0] ss:$8 sps:$4 sm:$0xff]  }
 0x1b6   : > { %8404 = vmatpush1.bf16.msra.mxu0 %v9968_v28  ;;  %7997 = vmatprep.subr.bf16.mxu1 %v9973_v29  ;;  %v4424_v28 = vrot.slane %v12078_v18, 1  ;;  %v4641_v29 = vrot.slane %v12085_v54, 1 }
 0x1b7   : > { %8405 = vmatprep.subr.bf16.mxu0 %v9976_v32  ;;  %v4642_v32 = vrot.slane %v11967_v31, 1  ;;  %v10039_v31 = vld [vmem:[%s11763_s22 + $0x300] ss:$8 sps:$4 sm:$0xff]  }
 0x1b9   : > { %7998 = vmatpush1.bf16.msra.mxu1 %v9971_v33  ;;  %v10041_v33 = vld [vmem:[%s11763_s22 + $0x304] ss:$8 sps:$4 sm:$0xff]  }
 0x1ba   : > { %8406 = vmatpush1.bf16.msra.mxu0 %v9974_v35  ;;  %7999 = vmatprep.subr.bf16.mxu1 %v9979_v36  ;;  %v10046_v35 = vld [vmem:[%s11763_s22 + $0xb04] ss:$8 sps:$4 sm:$0xff]   ;;  %v4458_v36 = vshrl.u32 %v12004_v60, 16  ;;  %v10049_v60 = vld [vmem:[%s11763_s22 + $0x314] ss:$8 sps:$4 sm:$0xff]  }
 0x1bb   : > { %8407 = vmatprep.subr.bf16.mxu0 %v9982_v37  ;;  %v4674_v37 = vshrl.u32 %v12012_v14, 16 }
 0x1bd   : > { %8000 = vmatpush1.bf16.msra.mxu1 %v9977_v38  ;;  %v4677_v38 = vshll.u32 %v12012_v14, 16  ;;  %v10052_v14 = vld [vmem:[%s11763_s22 + $0xb14] ss:$8 sps:$4 sm:$0xff]  }
 0x1be   : > { %8408 = vmatpush1.bf16.msra.mxu0 %v9980_v53  ;;  %8001 = vmatprep.subr.bf16.mxu1 %v9985_v39  ;;  %v4466_v53 = vshrl.u32 %v8986_v26, 16  ;;  %v4469_v39 = vshll.u32 %v8986_v26, 16  ;;  %v10080_v26 = vld [vmem:[%s11763_s22 + $0xb60] ss:$8 sps:$4 sm:$0xff]  }
 0x1bf   : > { %8409 = vmatprep.subr.bf16.mxu0 %v9988_v40  ;;  %v4682_v40 = vshrl.u32 %v9006_v2, 16 }
 0x1c1   : > { %8002 = vmatpush1.bf16.msra.mxu1 %v9983_v41  ;;  %v4685_v41 = vshll.u32 %v9006_v2, 16  ;;  %v10085_v2 = vld [vmem:[%s11763_s22 + $0x374] ss:$8 sps:$4 sm:$0xff]  }
 0x1c2   : > { %8410 = vmatpush1.bf16.msra.mxu0 %v9986_v42  ;;  %8003 = vmatprep.subr.bf16.mxu1 %v9991_v43  ;;  %v10044_v42 = vld [vmem:[%s11763_s22 + $0xb00] ss:$8 sps:$4 sm:$0xff]   ;;  %v4426_v43 = vsel %vm4423_vm1, %v4424_v28, %v4425_v7  ;;  %v10083_v28 = vld [vmem:[%s11763_s22 + $0x370] ss:$8 sps:$4 sm:$0xff]  }
 0x1c3   : > { %8411 = vmatprep.subr.bf16.mxu0 %v9994_v8  ;;  %v4643_v8 = vsel %vm4423_vm1, %v4641_v29, %v4642_v32  ;;  %v10086_v29 = vld [vmem:[%s11763_s22 + $0xb70] ss:$8 sps:$4 sm:$0xff]  }
 0x1c5   : > { %8004 = vmatpush1.bf16.msra.mxu1 %v9989_v9  ;;  %v4460_v9 = vrot.slane %v4458_v36, 1  ;;  %v10092_v36 = vld [vmem:[%s11763_s22 + $0xb80] ss:$8 sps:$4 sm:$0xff]  }
 0x1c6   : > { %8412 = vmatpush1.bf16.msra.mxu0 %v9992_v44  ;;  %8005 = vmatprep.subr.bf16.mxu1 %v9997_v45  ;;  %v4463_v44 = vrot.slane %v4461_v34, 2  ;;  %v4676_v45 = vrot.slane %v4674_v37, 1  ;;  %v10097_v34 = vld [vmem:[%s11763_s22 + $0x394] ss:$8 sps:$4 sm:$0xff]  }
 0x1c7   : > { %8413 = vmatprep.subr.bf16.mxu0 %v10000_v46  ;;  %v4679_v46 = vrot.slane %v4677_v38, 2  ;;  %v10100_v37 = vld [vmem:[%s11763_s22 + $0xb94] ss:$8 sps:$4 sm:$0xff]   ;;  %v10095_v38 = vld [vmem:[%s11763_s22 + $0x390] ss:$8 sps:$4 sm:$0xff]  }
 0x1c9   : > { %8006 = vmatpush1.bf16.msra.mxu1 %v9995_v48  ;;  %v4468_v48 = vrot.slane %v4466_v53, 1  ;;  %v10098_v53 = vld [vmem:[%s11763_s22 + $0xb90] ss:$8 sps:$4 sm:$0xff]  }
 0x1ca   : > { %8414 = vmatpush1.bf16.msra.mxu0 %v9998_v50  ;;  %8007 = vmatprep.subr.bf16.mxu1 %v10003_v51  ;;  %v4471_v50 = vrot.slane %v4469_v39, 2  ;;  %v4684_v51 = vrot.slane %v4682_v40, 1  ;;  %v10103_v39 = vld [vmem:[%s11763_s22 + $0x3a4] ss:$8 sps:$4 sm:$0xff]  }
 0x1cb   : > { %8415 = vmatprep.subr.bf16.mxu0 %v10006_v52  ;;  %v4687_v52 = vrot.slane %v4685_v41, 2  ;;  %v10106_v40 = vld [vmem:[%s11763_s22 + $0xba4] ss:$8 sps:$4 sm:$0xff]   ;;  %v10101_v41 = vld [vmem:[%s11763_s22 + $0x3a0] ss:$8 sps:$4 sm:$0xff]  }
 0x1cd   : > { %8008 = vmatpush1.bf16.msra.mxu1 %v10001_v56  ;;  %v10047_v56 = vld [vmem:[%s11763_s22 + $0x310] ss:$8 sps:$4 sm:$0xff]  }
 0x1ce   : > { %8416 = vmatpush1.bf16.msra.mxu0 %v10004_v57  ;;  %8009 = vmatprep.subr.bf16.mxu1 %v10009_v59  ;;  %v10050_v57 = vld [vmem:[%s11763_s22 + $0xb10] ss:$8 sps:$4 sm:$0xff]   ;;  %v10055_v59 = vld [vmem:[%s11763_s22 + $0x324] ss:$8 sps:$4 sm:$0xff]  }
 0x1cf   : > { %8417 = vmatprep.subr.bf16.mxu0 %v10012_v55  ;;  %v10058_v55 = vld [vmem:[%s11763_s22 + $0xb24] ss:$8 sps:$4 sm:$0xff]  }
 0x1d1   : > { %8010 = vmatpush1.bf16.msra.mxu1 %v10007_v61  ;;  %v4464_v61 = vor.u32 %v4463_v44, %v4460_v9  ;;  %v10118_v9 = vld [vmem:[%s11763_s22 + $0xbc4] ss:$8 sps:$4 sm:$0xff]   ;;  %v10113_v44 = vld [vmem:[%s11763_s22 + $0x3c0] ss:$8 sps:$4 sm:$0xff]  }
 0x1d2   : > { %8418 = vmatpush1.bf16.msra.mxu0 %v10010_v62  ;;  %8011 = vmatprep.subr.bf16.mxu1 %v10015_v63  ;;  %v12130_v62 = vor.u32 %v4471_v50, %v4468_v48  ;;  %v4680_v63 = vor.u32 %v4679_v46, %v4676_v45  ;;  %v10116_v45 = vld [vmem:[%s11763_s22 + $0xbc0] ss:$8 sps:$4 sm:$0xff]   ;;  %v8985_v46 = vcombine.low %v12098_v25, %v12088_v20  ;;  %v4657_v20 = vshrl.u32 %v12085_v54, 16 }
 0x1d3   : > { %8419 = vmatprep.subr.bf16.mxu0 %v10018_v0  ;;  %v12132_v0 = vor.u32 %v4687_v52, %v4684_v51  ;;  %v12185_v48 = vld [vmem:[%s11814_s26 + $0x20] sm:$0xff]  ;;  %v10121_v51 = vld [vmem:[%s11763_s22 + $0x3d4] ss:$8 sps:$4 sm:$0xff]  }
 0x1d4   : > { %v9005_v50 = vcombine.low %v12185_v48, %v12091_v21  ;;  %v10124_v52 = vld [vmem:[%s11763_s22 + $0xbd4] ss:$8 sps:$4 sm:$0xff]   ;;  %v4449_v21 = vshrl.u32 %v8985_v46, 16 }
 0x1d5   : > { %8012 = vmatpush1.bf16.msra.mxu1 %v10013_v1  ;;  %v10053_v1 = vld [vmem:[%s11763_s22 + $0x320] ss:$8 sps:$4 sm:$0xff]  }
 0x1d6   : > { %8420 = vmatpush1.bf16.msra.mxu0 %v10016_v3  ;;  %8013 = vmatprep.subr.bf16.mxu1 %v10021_v4  ;;  %v10056_v3 = vld [vmem:[%s11763_s22 + $0xb20] ss:$8 sps:$4 sm:$0xff]   ;;  %v10059_v4 = vld [vmem:[%s11763_s22 + $0x330] ss:$8 sps:$4 sm:$0xff]  }
 0x1d7   : > { %8421 = vmatprep.subr.bf16.mxu0 %v10024_v5  ;;  %v10062_v5 = vld [vmem:[%s11763_s22 + $0xb30] ss:$8 sps:$4 sm:$0xff]  }
 0x1d9   : > { %8014 = vmatpush1.bf16.msra.mxu1 %v10019_v6  ;;  %v10070_v6 = vld [vmem:[%s11763_s22 + $0xb44] ss:$8 sps:$4 sm:$0xff]  }
 0x1da   : > { %8422 = vmatpush1.bf16.msra.mxu0 %v10022_v10  ;;  %8015 = vmatprep.subr.bf16.mxu1 %v10027_v11  ;;  %v10065_v10 = vld [vmem:[%s11763_s22 + $0x340] ss:$8 sps:$4 sm:$0xff]  }
 0x1db   : > { %8423 = vmatprep.subr.bf16.mxu0 %v10030_v12  ;;  %v10068_v11 = vld [vmem:[%s11763_s22 + $0xb40] ss:$8 sps:$4 sm:$0xff]   ;;  %v10073_v12 = vld [vmem:[%s11763_s22 + $0x354] ss:$8 sps:$4 sm:$0xff]  }
 0x1dd   : > { %8016 = vmatpush1.bf16.msra.mxu1 %v10025_v13  ;;  %v10076_v13 = vld [vmem:[%s11763_s22 + $0xb54] ss:$8 sps:$4 sm:$0xff]  }
 0x1de   : > { %8424 = vmatpush1.bf16.msra.mxu0 %v10028_v15  ;;  %8017 = vmatprep.subr.bf16.mxu1 %v10033_v22  ;;  %v10071_v15 = vld [vmem:[%s11763_s22 + $0x350] ss:$8 sps:$4 sm:$0xff]  }
 0x1df   : > { %8425 = vmatprep.subr.bf16.mxu0 %v10036_v23  ;;  %v10074_v22 = vld [vmem:[%s11763_s22 + $0xb50] ss:$8 sps:$4 sm:$0xff]   ;;  %v10079_v23 = vld [vmem:[%s11763_s22 + $0x364] ss:$8 sps:$4 sm:$0xff]  }
 0x1e1   : > { %8018 = vmatpush1.bf16.msra.mxu1 %v10031_v24  ;;  %v10082_v24 = vld [vmem:[%s11763_s22 + $0xb64] ss:$8 sps:$4 sm:$0xff]  }
 0x1e2   : > { %8426 = vmatpush1.bf16.msra.mxu0 %v10034_v27  ;;  %8038 = vmatprep.subr.bf16.mxu1 %v10041_v33  ;;  %v10088_v27 = vld [vmem:[%s11763_s22 + $0xb74] ss:$8 sps:$4 sm:$0xff]   ;;  %v10094_v33 = vld [vmem:[%s11763_s22 + $0xb84] ss:$8 sps:$4 sm:$0xff]  }
 0x1e3   : > { %8446 = vmatprep.subr.bf16.mxu0 %v10046_v35  ;;  %v10089_v35 = vld [vmem:[%s11763_s22 + $0x380] ss:$8 sps:$4 sm:$0xff]  }
 0x1e4   : > { %8020 = vmatmul.mubr.bf16.vlgmr.msra.gmra.mrb[0].mxu1 %v4426_v43  ;;  %v10112_v43 = vld [vmem:[%s11763_s22 + $0xbb4] ss:$8 sps:$4 sm:$0xff]  }
 0x1e5   : > { %8428 = vmatmul.mubr.bf16.vlgmr.msra.gmra.mrb[0].mxu0 %v4643_v8  ;;  %8039 = vmatpush1.bf16.msra.mxu1 %v10039_v31  ;;  %v10104_v31 = vld [vmem:[%s11763_s22 + $0xba0] ss:$8 sps:$4 sm:$0xff]   ;;  %v10107_v8 = vld [vmem:[%s11763_s22 + $0x3b0] ss:$8 sps:$4 sm:$0xff]  }
 0x1e6   : > { %8447 = vmatpush1.bf16.msra.mxu0 %v10044_v42  ;;  %8040 = vmatprep.subr.bf16.mxu1 %v10049_v60  ;;  %v10109_v42 = vld [vmem:[%s11763_s22 + $0x3b4] ss:$8 sps:$4 sm:$0xff]   ;;  %v10110_v60 = vld [vmem:[%s11763_s22 + $0xbb0] ss:$8 sps:$4 sm:$0xff]  }
 0x1e7   : > { %8448 = vmatprep.subr.bf16.mxu0 %v10052_v14  ;;  %8029 = vmatprep.mubr.bf16.mxu1 %v4428_v49  ;;  %v4473_v49 = vsel %vm4439_vm2, %v4464_v61, %v12130_v62  ;;  %v10115_v14 = vld [vmem:[%s11763_s22 + $0x3c4] ss:$8 sps:$4 sm:$0xff]   ;;  %v4660_v61 = vshll.u32 %v12085_v54, 16 }
 0x1e8   : > { %8437 = vmatprep.mubr.bf16.mxu0 %v4645_v17  ;;  %v4689_v17 = vsel %vm4439_vm2, %v4680_v63, %v12132_v0  ;;  %v4452_v63 = vshll.u32 %v8985_v46, 16  ;;  %v10182_v46 = vld [vmem:[%s11763_s22 + $0xc64] ss:$8 sps:$4 sm:$0xff]  }
 0x1e9   : > { %8041 = vmatpush1.bf16.msra.mxu1 %v10047_v56  ;;  %v10119_v56 = vld [vmem:[%s11763_s22 + $0x3d0] ss:$8 sps:$4 sm:$0xff]   ;;  %v4662_v54 = vrot.slane %v4660_v61, 2  ;;  %v10189_v61 = vld [vmem:[%s11763_s22 + $0x480] ss:$8 sps:$4 sm:$0xff]  }
 0x1ea   : > { %8449 = vmatpush1.bf16.msra.mxu0 %v10050_v57  ;;  %8042 = vmatprep.subr.bf16.mxu1 %v10055_v59  ;;  %v4441_v57 = vshrl.u32 %v12078_v18, 16  ;;  %v4444_v59 = vshll.u32 %v12078_v18, 16 }
 0x1eb   : > { %8450 = vmatprep.subr.bf16.mxu0 %v10058_v55  ;;  %v10122_v55 = vld [vmem:[%s11763_s22 + $0xbd0] ss:$8 sps:$4 sm:$0xff]  }
 0x1ec   : > { %8030 = vmatmul.mubr.bf16.gmra.mrb[4].mxu1 %v4425_v7  ;;  %v10077_v7 = vld [vmem:[%s11763_s22 + $0x360] ss:$8 sps:$4 sm:$0xff]   ;;  %v4443_v18 = vrot.slane %v4441_v57, 1  ;;  %v10183_v57 = vld [vmem:[%s11763_s22 + $0x470] ss:$8 sps:$4 sm:$0xff]  }
 0x1ed   : > { %8438 = vmatmul.mubr.bf16.gmra.mrb[4].mxu0 %v4642_v32  ;;  %8043 = vmatpush1.bf16.msra.mxu1 %v10053_v1  ;;  %v10091_v32 = vld [vmem:[%s11763_s22 + $0x384] ss:$8 sps:$4 sm:$0xff]   ;;  %v4665_v1 = vshrl.u32 %v9005_v50, 16 }
 0x1ee   : > { %8451 = vmatpush1.bf16.msra.mxu0 %v10056_v3  ;;  %8044 = vmatprep.subr.bf16.mxu1 %v10061_v47  ;;  %v4668_v3 = vshll.u32 %v9005_v50, 16  ;;  %v10127_v47 = vld [vmem:[%s11763_s22 + $0x3e4] ss:$8 sps:$4 sm:$0xff]   ;;  %v10177_v50 = vld [vmem:[%s11763_s22 + $0x460] ss:$8 sps:$4 sm:$0xff]  }
 0x1ef   : > { %8452 = vmatprep.subr.bf16.mxu0 %v10064_v58  ;;  %8070 = vmatprep.mubr.bf16.mxu1 %v4473_v49  ;;  %v10130_v58 = vld [vmem:[%s11763_s22 + $0xbe4] ss:$8 sps:$4 sm:$0xff]   ;;  %v10125_v49 = vld [vmem:[%s11763_s22 + $0x3e0] ss:$8 sps:$4 sm:$0xff]  }
 0x1f0   : > { %8478 = vmatprep.mubr.bf16.mxu0 %v4689_v17  ;;  %v4446_v17 = vrot.slane %v4444_v59, 2  ;;  %v10186_v59 = vld [vmem:[%s11763_s22 + $0xc70] ss:$8 sps:$4 sm:$0xff]  }
 0x1f1   : > { %8045 = vmatpush1.bf16.msra.mxu1 %v10059_v4  ;;  %v10128_v4 = vld [vmem:[%s11763_s22 + $0xbe0] ss:$8 sps:$4 sm:$0xff]  }
 0x1f2   : > { %8453 = vmatpush1.bf16.msra.mxu0 %v10062_v5  ;;  %8046 = vmatprep.subr.bf16.mxu1 %v10067_v30  ;;  %v4659_v5 = vrot.slane %v4657_v20, 1  ;;  %v4451_v30 = vrot.slane %v4449_v21, 1  ;;  %v10194_v20 = vld [vmem:[%s11763_s22 + $0xc84] ss:$8 sps:$4 sm:$0xff]   ;;  %v10192_v21 = vld [vmem:[%s11763_s22 + $0xc80] ss:$8 sps:$4 sm:$0xff]  }
 0x1f3   : > { %8454 = vmatprep.subr.bf16.mxu0 %v10070_v6  ;;  %v4454_v6 = vrot.slane %v4452_v63, 2  ;;  %v10197_v63 = vld [vmem:[%s11763_s22 + $0x494] ss:$8 sps:$4 sm:$0xff]  }
 0x1f5   : > { %8047 = vmatpush1.bf16.msra.mxu1 %v10065_v10  ;;  %v4667_v10 = vrot.slane %v4665_v1, 1  ;;  %v10200_v1 = vld [vmem:[%s11763_s22 + $0xc94] ss:$8 sps:$4 sm:$0xff]  }
 0x1f6   : > { %8455 = vmatpush1.bf16.msra.mxu0 %v10068_v11  ;;  %8048 = vmatprep.subr.bf16.mxu1 %v10073_v12  ;;  %v4670_v11 = vrot.slane %v4668_v3, 2  ;;  %v10133_v12 = vld [vmem:[%s11763_s22 + $0x3f4] ss:$8 sps:$4 sm:$0xff]   ;;  %v10195_v3 = vld [vmem:[%s11763_s22 + $0x490] ss:$8 sps:$4 sm:$0xff]  }
 0x1f7   : > { %8456 = vmatprep.subr.bf16.mxu0 %v10076_v13  ;;  %v10136_v13 = vld [vmem:[%s11763_s22 + $0xbf4] ss:$8 sps:$4 sm:$0xff]  }
 0x1f9   : > { %8049 = vmatpush1.bf16.msra.mxu1 %v10071_v15  ;;  %v4447_v15 = vor.u32 %v4446_v17, %v4443_v18  ;;  %v10201_v18 = vld [vmem:[%s11763_s22 + $0x4a0] ss:$8 sps:$4 sm:$0xff]  }
 0x1fa   : > { %8457 = vmatpush1.bf16.msra.mxu0 %v10074_v22  ;;  %8050 = vmatprep.subr.bf16.mxu1 %v10079_v23  ;;  %v10131_v22 = vld [vmem:[%s11763_s22 + $0x3f0] ss:$8 sps:$4 sm:$0xff]   ;;  %v10204_v17 = vld [vmem:[%s11763_s22 + $0xca0] ss:$8 sps:$4 sm:$0xff]  }
 0x1fb   : > { %8458 = vmatprep.subr.bf16.mxu0 %v10082_v24  ;;  %v10134_v23 = vld [vmem:[%s11763_s22 + $0xbf0] ss:$8 sps:$4 sm:$0xff]   ;;  %v4455_v24 = vor.u32 %v4454_v6, %v4451_v30  ;;  %v10215_v6 = vld [vmem:[%s11763_s22 + $0x4c4] ss:$8 sps:$4 sm:$0xff]  }
 0x1fc   : > { %v10210_v30 = vld [vmem:[%s11763_s22 + $0xcb0] ss:$8 sps:$4 sm:$0xff]  }
 0x1fd   : > { %8051 = vmatpush1.bf16.msra.mxu1 %v10077_v7  ;;  %v4663_v7 = vor.u32 %v4662_v54, %v4659_v5  ;;  %v10212_v5 = vld [vmem:[%s11763_s22 + $0xcb4] ss:$8 sps:$4 sm:$0xff]   ;;  %v10207_v54 = vld [vmem:[%s11763_s22 + $0x4b0] ss:$8 sps:$4 sm:$0xff]  }
 0x1fe   : > { %8459 = vmatpush1.bf16.msra.mxu0 %v10080_v26  ;;  %8052 = vmatprep.subr.bf16.mxu1 %v10085_v2  ;;  %v4671_v26 = vor.u32 %v4670_v11, %v4667_v10  ;;  %v10141_v2 = vld [vmem:[%s11763_s22 + $0x404] ss:$8 sps:$4 sm:$0xff]   ;;  %v10213_v11 = vld [vmem:[%s11763_s22 + $0x4c0] ss:$8 sps:$4 sm:$0xff]  }
 0x1ff   : > { %8460 = vmatprep.subr.bf16.mxu0 %v10088_v27  ;;  %v10146_v27 = vld [vmem:[%s11763_s22 + $0xc04] ss:$8 sps:$4 sm:$0xff]  }
 0x200   : > { %v10218_v10 = vld [vmem:[%s11763_s22 + $0xcc4] ss:$8 sps:$4 sm:$0xff]  }
 0x201   : > { %8053 = vmatpush1.bf16.msra.mxu1 %v10083_v28  ;;  %v10139_v28 = vld [vmem:[%s11763_s22 + $0x400] ss:$8 sps:$4 sm:$0xff]  }
 0x202   : > { %8461 = vmatpush1.bf16.msra.mxu0 %v10086_v29  ;;  %8054 = vmatprep.subr.bf16.mxu1 %v10091_v32  ;;  %v10144_v29 = vld [vmem:[%s11763_s22 + $0xc00] ss:$8 sps:$4 sm:$0xff]   ;;  %v4456_v32 = vsel %vm4439_vm2, %v4447_v15, %v4455_v24  ;;  %v10224_v15 = vld [vmem:[%s11763_s22 + $0xcd4] ss:$8 sps:$4 sm:$0xff]  }
 0x203   : > { %8462 = vmatprep.subr.bf16.mxu0 %v10094_v33  ;;  %v4672_v33 = vsel %vm4439_vm2, %v4663_v7, %v4671_v26  ;;  %v10230_v7 = vld [vmem:[%s11763_s22 + $0xce4] ss:$8 sps:$4 sm:$0xff]  }
 0x205   : > { %8055 = vmatpush1.bf16.msra.mxu1 %v10089_v35  ;;  %v10149_v35 = vld [vmem:[%s11763_s22 + $0x414] ss:$8 sps:$4 sm:$0xff]  }
 0x206   : > { %8463 = vmatpush1.bf16.msra.mxu0 %v10092_v36  ;;  %8056 = vmatprep.subr.bf16.mxu1 %v10097_v34  ;;  %v10152_v36 = vld [vmem:[%s11763_s22 + $0xc14] ss:$8 sps:$4 sm:$0xff]   ;;  %v10147_v34 = vld [vmem:[%s11763_s22 + $0x410] ss:$8 sps:$4 sm:$0xff]  }
 0x207   : > { %8464 = vmatprep.subr.bf16.mxu0 %v10100_v37  ;;  %v10150_v37 = vld [vmem:[%s11763_s22 + $0xc10] ss:$8 sps:$4 sm:$0xff]  }
 0x209   : > { %8057 = vmatpush1.bf16.msra.mxu1 %v10095_v38  ;;  %v10155_v38 = vld [vmem:[%s11763_s22 + $0x424] ss:$8 sps:$4 sm:$0xff]  }
 0x20a   : > { %8465 = vmatpush1.bf16.msra.mxu0 %v10098_v53  ;;  %8058 = vmatprep.subr.bf16.mxu1 %v10103_v39  ;;  %v10158_v53 = vld [vmem:[%s11763_s22 + $0xc24] ss:$8 sps:$4 sm:$0xff]   ;;  %v10153_v39 = vld [vmem:[%s11763_s22 + $0x420] ss:$8 sps:$4 sm:$0xff]  }
 0x20b   : > { %8466 = vmatprep.subr.bf16.mxu0 %v10106_v40  ;;  %v10156_v40 = vld [vmem:[%s11763_s22 + $0xc20] ss:$8 sps:$4 sm:$0xff]  }
 0x20d   : > { %8059 = vmatpush1.bf16.msra.mxu1 %v10101_v41  ;;  %v10161_v41 = vld [vmem:[%s11763_s22 + $0x434] ss:$8 sps:$4 sm:$0xff]  }
 0x20e   : > { %8467 = vmatpush1.bf16.msra.mxu0 %v10104_v31  ;;  %8060 = vmatprep.subr.bf16.mxu1 %v10109_v42  ;;  %v10164_v31 = vld [vmem:[%s11763_s22 + $0xc34] ss:$8 sps:$4 sm:$0xff]   ;;  %v12225_v42 = vcombine.high %v12074_v16, %v12098_v25  ;;  %v10170_v16 = vld [vmem:[%s11763_s22 + $0xc44] ss:$8 sps:$4 sm:$0xff]   ;;  %v10168_v25 = vld [vmem:[%s11763_s22 + $0xc40] ss:$8 sps:$4 sm:$0xff]  }
 0x20f   : > { %8468 = vmatprep.subr.bf16.mxu0 %v10112_v43  ;;  %v10162_v43 = vld [vmem:[%s11763_s22 + $0xc30] ss:$8 sps:$4 sm:$0xff]  }
 0x211   : > { %8061 = vmatpush1.bf16.msra.mxu1 %v10107_v8  ;;  %v10167_v8 = vld [vmem:[%s11763_s22 + $0x444] ss:$8 sps:$4 sm:$0xff]  }
 0x212   : > { %8469 = vmatpush1.bf16.msra.mxu0 %v10110_v60  ;;  %8062 = vmatprep.subr.bf16.mxu1 %v10115_v14  ;;  %v10173_v60 = vld [vmem:[%s11763_s22 + $0x454] ss:$8 sps:$4 sm:$0xff]  }
 0x213   : > { %8470 = vmatprep.subr.bf16.mxu0 %v10118_v9  ;;  %v10176_v14 = vld [vmem:[%s11763_s22 + $0xc54] ss:$8 sps:$4 sm:$0xff]   ;;  %v10171_v9 = vld [vmem:[%s11763_s22 + $0x450] ss:$8 sps:$4 sm:$0xff]  }
 0x215   : > { %8063 = vmatpush1.bf16.msra.mxu1 %v10113_v44  ;;  %v10174_v44 = vld [vmem:[%s11763_s22 + $0xc50] ss:$8 sps:$4 sm:$0xff]  }
 0x216   : > { %8471 = vmatpush1.bf16.msra.mxu0 %v10116_v45  ;;  %8064 = vmatprep.subr.bf16.mxu1 %v10121_v51  ;;  %v10179_v45 = vld [vmem:[%s11763_s22 + $0x464] ss:$8 sps:$4 sm:$0xff]   ;;  %v10180_v51 = vld [vmem:[%s11763_s22 + $0xc60] ss:$8 sps:$4 sm:$0xff]  }
 0x217   : > { %8472 = vmatprep.subr.bf16.mxu0 %v10124_v52  ;;  %v10185_v52 = vld [vmem:[%s11763_s22 + $0x474] ss:$8 sps:$4 sm:$0xff]  }
 0x219   : > { %8065 = vmatpush1.bf16.msra.mxu1 %v10119_v56  ;;  %v10188_v56 = vld [vmem:[%s11763_s22 + $0xc74] ss:$8 sps:$4 sm:$0xff]  }
 0x21a   : > { %8473 = vmatpush1.bf16.msra.mxu0 %v10122_v55  ;;  %8066 = vmatprep.subr.bf16.mxu1 %v10127_v47  ;;  %v10191_v55 = vld [vmem:[%s11763_s22 + $0x484] ss:$8 sps:$4 sm:$0xff]   ;;  %v10198_v47 = vld [vmem:[%s11763_s22 + $0xc90] ss:$8 sps:$4 sm:$0xff]  }
 0x21b   : > { %8474 = vmatprep.subr.bf16.mxu0 %v10130_v58  ;;  %v10203_v58 = vld [vmem:[%s11763_s22 + $0x4a4] ss:$8 sps:$4 sm:$0xff]  }
 0x21d   : > { %8067 = vmatpush1.bf16.msra.mxu1 %v10125_v49  ;;  %v10206_v49 = vld [vmem:[%s11763_s22 + $0xca4] ss:$8 sps:$4 sm:$0xff]  }
 0x21e   : > { %8475 = vmatpush1.bf16.msra.mxu0 %v10128_v4  ;;  %8068 = vmatprep.subr.bf16.mxu1 %v10133_v12  ;;  %v10209_v4 = vld [vmem:[%s11763_s22 + $0x4b4] ss:$8 sps:$4 sm:$0xff]   ;;  %v10216_v12 = vld [vmem:[%s11763_s22 + $0xcc0] ss:$8 sps:$4 sm:$0xff]  }
 0x21f   : > { %8476 = vmatprep.subr.bf16.mxu0 %v10136_v13  ;;  %v10221_v13 = vld [vmem:[%s11763_s22 + $0x4d4] ss:$8 sps:$4 sm:$0xff]  }
 0x221   : > { %8069 = vmatpush1.bf16.msra.mxu1 %v10131_v22  ;;  %v10219_v22 = vld [vmem:[%s11763_s22 + $0x4d0] ss:$8 sps:$4 sm:$0xff]  }
 0x222   : > { %8477 = vmatpush1.bf16.msra.mxu0 %v10134_v23  ;;  %8089 = vmatprep.subr.bf16.mxu1 %v10141_v2  ;;  %v10222_v23 = vld [vmem:[%s11763_s22 + $0xcd0] ss:$8 sps:$4 sm:$0xff]   ;;  %v10228_v2 = vld [vmem:[%s11763_s22 + $0xce0] ss:$8 sps:$4 sm:$0xff]  }
 0x223   : > { %8497 = vmatprep.subr.bf16.mxu0 %v10146_v27  ;;  %v10233_v27 = vld [vmem:[%s11763_s22 + $0x4f4] ss:$8 sps:$4 sm:$0xff]  }
 0x224   : > { %8071 = vmatmul.mubr.bf16.vlgmr.msra.gmra.mrb[0].mxu1 %v4456_v32  ;;  %v10236_v32 = vld [vmem:[%s11763_s22 + $0xcf4] ss:$8 sps:$4 sm:$0xff]  }
 0x225   : > { %8479 = vmatmul.mubr.bf16.vlgmr.msra.gmra.mrb[0].mxu0 %v4672_v33  ;;  %8090 = vmatpush1.bf16.msra.mxu1 %v10139_v28  ;;  %v12278_v28 = vld [vmem:[%s11814_s26 + $0x18] sm:$0xff]  ;;  %v12285_v33 = vld [vmem:[%s11814_s26 + $0x20] sm:$0x11] }
 0x226   : > { %8498 = vmatpush1.bf16.msra.mxu0 %v10144_v29  ;;  %8091 = vmatprep.subr.bf16.mxu1 %v10149_v35  ;;  %v12281_v29 = vld [vmem:[%s11814_s26 + $0x20] sm:$0xff]  ;;  %v10231_v35 = vld [vmem:[%s11763_s22 + $0x4f0] ss:$8 sps:$4 sm:$0xff]  }
 0x227   : > { %8499 = vmatprep.subr.bf16.mxu0 %v10152_v36  ;;  %8080 = vmatprep.mubr.bf16.mxu1 %v12130_v62  ;;  %v9008_v62 = vcombine.high %v12081_v19, %v12185_v48  ;;  %v10165_v19 = vld [vmem:[%s11763_s22 + $0x440] ss:$8 sps:$4 sm:$0xff]   ;;  %v9012_v36 = vcombine.high %v12278_v28, %v12281_v29 }
 0x228   : > { %8488 = vmatprep.mubr.bf16.mxu0 %v12132_v0  ;;  %v10159_v0 = vld [vmem:[%s11763_s22 + $0x430] ss:$8 sps:$4 sm:$0xff]  }
 0x229   : > { %8092 = vmatpush1.bf16.msra.mxu1 %v10147_v34  ;;  %v10234_v34 = vld [vmem:[%s11763_s22 + $0xcf0] ss:$8 sps:$4 sm:$0xff]  }
 0x22a   : > { %8500 = vmatpush1.bf16.msra.mxu0 %v10150_v37  ;;  %8093 = vmatprep.subr.bf16.mxu1 %v10155_v38  ;;  %v4358_v37 = vld [vmem:[%s11814_s26 + $0x30] sm:$0x11]  ;;  %v4509_v38 = vshll.u32 %v12225_v42, 16 }
 0x22b   : > { %8501 = vmatprep.subr.bf16.mxu0 %v10158_v53  ;;  %v10240_v53 = vld [vmem:[%s11763_s22 + $0x504] ss:$8 sps:$4 sm:$0xff]  }
 0x22c   : > { %8081 = vmatmul.mubr.bf16.gmra.mrb[4].mxu1 %v4455_v24  ;;  %v10227_v24 = vld [vmem:[%s11763_s22 + $0x4e4] ss:$8 sps:$4 sm:$0xff]  }
 0x22d   : > { %8489 = vmatmul.mubr.bf16.gmra.mrb[4].mxu0 %v4671_v26  ;;  %8094 = vmatpush1.bf16.msra.mxu1 %v10153_v39  ;;  %v10225_v26 = vld [vmem:[%s11763_s22 + $0x4e0] ss:$8 sps:$4 sm:$0xff]   ;;  %v10244_v39 = vld [vmem:[%s11763_s22 + $0xd04] ss:$8 sps:$4 sm:$0xff]  }
 0x22e   : > { %8502 = vmatpush1.bf16.msra.mxu0 %v10156_v40  ;;  %8095 = vmatprep.subr.bf16.mxu1 %v10161_v41  ;;  %v12296_v40 = vld [vmem:[%s11814_s26 + $0x28] sm:$0xff] }
 0x22f   : > { %8503 = vmatprep.subr.bf16.mxu0 %v10164_v31  ;;  %8121 = vmatprep.mubr.bf16.mxu1 %v12225_v42  ;;  %v10238_v41 = vld [vmem:[%s11763_s22 + $0x500] ss:$8 sps:$4 sm:$0xff]  }
 0x230   : > { %8529 = vmatprep.mubr.bf16.mxu0 %v9008_v62  ;;  %v10555_v31 = vld [vmem:[%s11814_s26 + $0x8] sm:$0xff]  ;;  %v12301_v62 = vld [vmem:[%s11814_s26 + $0x10] sm:$0xff] }
 0x231   : > { %8096 = vmatpush1.bf16.msra.mxu1 %v10159_v0  ;;  %v12304_v0 = vcombine.low %v10555_v31, %v12301_v62  ;;  %v10288_v31 = vld [vmem:[%s11763_s22 + $0xd74] ss:$8 sps:$4 sm:$0xff]  }
 0x232   : > { %8504 = vmatpush1.bf16.msra.mxu0 %v10162_v43  ;;  %8097 = vmatprep.subr.bf16.mxu1 %v10167_v8  ;;  %v12307_v43 = vld [vmem:[%s11814_s26 + $0x18] sm:$0xff] }
 0x233   : > { %8505 = vmatprep.subr.bf16.mxu0 %v10170_v16  ;;  %v9007_v8 = vcombine.low %v12307_v43, %v12185_v48  ;;  %v12313_v16 = vcombine.high %v12307_v43, %v12285_v33  ;;  %v8990_v48 = vcombine.high %v12307_v43, %v12307_v43 }
 0x235   : > { %8098 = vmatpush1.bf16.msra.mxu1 %v10165_v19  ;;  %v4359_v19 = vld [vmem:[%s11814_s26 + $0x18] sm:$0xee] }
 0x236   : > { %8506 = vmatpush1.bf16.msra.mxu0 %v10168_v25  ;;  %8099 = vmatprep.subr.bf16.mxu1 %v10173_v60  ;;  %v12317_v25 = vcombine.high %v12296_v40, %v4358_v37  ;;  %v4736_v60 = vshll.u32 %v9012_v36, 16 }
 0x237   : > { %8507 = vmatprep.subr.bf16.mxu0 %v10176_v14  ;;  %v12320_v14 = vcombine.low %v4359_v19, %v12281_v29 }
 0x239   : > { %8100 = vmatpush1.bf16.msra.mxu1 %v10171_v9  ;;  %v12323_v9 = vcombine.high %v4359_v19, %v12281_v29  ;;  %v10286_v19 = vld [vmem:[%s11763_s22 + $0xd70] ss:$8 sps:$4 sm:$0xff]  }
 0x23a   : > { %8508 = vmatpush1.bf16.msra.mxu0 %v10174_v44  ;;  %8101 = vmatprep.subr.bf16.mxu1 %v10179_v45  ;;  %v10242_v44 = vld [vmem:[%s11763_s22 + $0xd00] ss:$8 sps:$4 sm:$0xff]   ;;  %v10249_v45 = vld [vmem:[%s11763_s22 + $0x514] ss:$8 sps:$4 sm:$0xff]  }
 0x23b   : > { %8509 = vmatprep.subr.bf16.mxu0 %v10182_v46  ;;  %v4507_v46 = vshrl.u32 %v12225_v42, 16  ;;  %v4734_v42 = vshrl.u32 %v9012_v36, 16  ;;  %v10271_v36 = vld [vmem:[%s11763_s22 + $0x550] ss:$8 sps:$4 sm:$0xff]  }
 0x23d   : > { %8102 = vmatpush1.bf16.msra.mxu1 %v10177_v50  ;;  %v10252_v50 = vld [vmem:[%s11763_s22 + $0xd14] ss:$8 sps:$4 sm:$0xff]  }
 0x23e   : > { %8510 = vmatpush1.bf16.msra.mxu0 %v10180_v51  ;;  %8103 = vmatprep.subr.bf16.mxu1 %v10185_v52  ;;  %v4511_v51 = vrot.slane %v4509_v38, 1  ;;  %v12332_v52 = vcombine.low %v12296_v40, %v4358_v37  ;;  %v10279_v37 = vld [vmem:[%s11763_s22 + $0x564] ss:$8 sps:$4 sm:$0xff]  }
 0x23f   : > { %8511 = vmatprep.subr.bf16.mxu0 %v10188_v56  ;;  %v4763_v56 = vrot.slane %v12323_v9, 1  ;;  %v10282_v38 = vld [vmem:[%s11763_s22 + $0xd64] ss:$8 sps:$4 sm:$0xff]  }
 0x241   : > { %8104 = vmatpush1.bf16.msra.mxu1 %v10183_v57  ;;  %v4764_v57 = vrot.slane %v12317_v25, 1 }
 0x242   : > { %8512 = vmatpush1.bf16.msra.mxu0 %v10186_v59  ;;  %8105 = vmatprep.subr.bf16.mxu1 %v10191_v55  ;;  %v9010_v59 = vcombine.high %v12296_v40, %v12296_v40  ;;  %v4514_v55 = vshll.u32 %v12313_v16, 16 }
 0x243   : > { %8513 = vmatprep.subr.bf16.mxu0 %v10194_v20  ;;  %v4760_v20 = vrot.slane %v12320_v14, 1 }
 0x245   : > { %8106 = vmatpush1.bf16.msra.mxu1 %v10189_v61  ;;  %v4738_v61 = vrot.slane %v4736_v60, 1  ;;  %v10291_v60 = vld [vmem:[%s11763_s22 + $0x584] ss:$8 sps:$4 sm:$0xff]  }
 0x246   : > { %8514 = vmatpush1.bf16.msra.mxu0 %v10192_v21  ;;  %8107 = vmatprep.subr.bf16.mxu1 %v10197_v63  ;;  %v4741_v21 = vshll.u32 %v12317_v25, 16  ;;  %v12345_v63 = vsel %vm4423_vm1, %v4763_v56, %v4764_v57  ;;  %v10298_v56 = vld [vmem:[%s11763_s22 + $0xd90] ss:$8 sps:$4 sm:$0xff]  }
 0x247   : > { %8515 = vmatprep.subr.bf16.mxu0 %v10200_v1  ;;  %v4761_v1 = vrot.slane %v12332_v52, 1 }
 0x249   : > { %8108 = vmatpush1.bf16.msra.mxu1 %v10195_v3  ;;  %v10247_v3 = vld [vmem:[%s11763_s22 + $0x510] ss:$8 sps:$4 sm:$0xff]  }
 0x24a   : > { %8516 = vmatpush1.bf16.msra.mxu0 %v10198_v47  ;;  %8109 = vmatprep.subr.bf16.mxu1 %v10203_v58  ;;  %v10250_v47 = vld [vmem:[%s11763_s22 + $0xd10] ss:$8 sps:$4 sm:$0xff]   ;;  %v10255_v58 = vld [vmem:[%s11763_s22 + $0x524] ss:$8 sps:$4 sm:$0xff]  }
 0x24b   : > { %8517 = vmatprep.subr.bf16.mxu0 %v10206_v49  ;;  %v10258_v49 = vld [vmem:[%s11763_s22 + $0xd24] ss:$8 sps:$4 sm:$0xff]  }
 0x24d   : > { %8110 = vmatpush1.bf16.msra.mxu1 %v10201_v18  ;;  %v12355_v18 = vsel %vm4423_vm1, %v4760_v20, %v4761_v1  ;;  %v10304_v20 = vld [vmem:[%s11763_s22 + $0xda0] ss:$8 sps:$4 sm:$0xff]  }
 0x24e   : > { %8518 = vmatpush1.bf16.msra.mxu0 %v10204_v17  ;;  %8111 = vmatprep.subr.bf16.mxu1 %v10209_v4  ;;  %v8989_v17 = vcombine.low %v12307_v43, %v12307_v43  ;;  %v4512_v4 = vor.u32 %v4511_v51, %v4507_v46  ;;  %v10297_v46 = vld [vmem:[%s11763_s22 + $0x594] ss:$8 sps:$4 sm:$0xff]   ;;  %v10295_v51 = vld [vmem:[%s11763_s22 + $0x590] ss:$8 sps:$4 sm:$0xff]  }
 0x24f   : > { %8519 = vmatprep.subr.bf16.mxu0 %v10212_v5  ;;  %v9009_v5 = vcombine.low %v12296_v40, %v12296_v40 }
 0x251   : > { %8112 = vmatpush1.bf16.msra.mxu1 %v10207_v54  ;;  %v12361_v54 = vrot.slane %v4514_v55, 1  ;;  %v10306_v55 = vld [vmem:[%s11763_s22 + $0xda4] ss:$8 sps:$4 sm:$0xff]  }
 0x252   : > { %8520 = vmatpush1.bf16.msra.mxu0 %v10210_v30  ;;  %8113 = vmatprep.subr.bf16.mxu1 %v10215_v6  ;;  %v4739_v30 = vor.u32 %v4738_v61, %v4734_v42  ;;  %v12363_v6 = vrot.slane %v4741_v21, 1  ;;  %v10301_v42 = vld [vmem:[%s11763_s22 + $0x5a0] ss:$8 sps:$4 sm:$0xff]   ;;  %v10309_v61 = vld [vmem:[%s11763_s22 + $0x5b4] ss:$8 sps:$4 sm:$0xff]  }
 0x253   : > { %8521 = vmatprep.subr.bf16.mxu0 %v10218_v10  ;;  %v10253_v10 = vld [vmem:[%s11763_s22 + $0x520] ss:$8 sps:$4 sm:$0xff]   ;;  %v10312_v21 = vld [vmem:[%s11763_s22 + $0xdb4] ss:$8 sps:$4 sm:$0xff]  }
 0x255   : > { %8114 = vmatpush1.bf16.msra.mxu1 %v10213_v11  ;;  %v10256_v11 = vld [vmem:[%s11763_s22 + $0xd20] ss:$8 sps:$4 sm:$0xff]  }
 0x256   : > { %8522 = vmatpush1.bf16.msra.mxu0 %v10216_v12  ;;  %8115 = vmatprep.subr.bf16.mxu1 %v10221_v13  ;;  %v10261_v12 = vld [vmem:[%s11763_s22 + $0x534] ss:$8 sps:$4 sm:$0xff]  }
 0x257   : > { %8523 = vmatprep.subr.bf16.mxu0 %v10224_v15  ;;  %v10264_v13 = vld [vmem:[%s11763_s22 + $0xd34] ss:$8 sps:$4 sm:$0xff]   ;;  %v4517_v15 = vsel %vm4383_vm0, %v4512_v4, %v12361_v54  ;;  %v10316_v4 = vld [vmem:[%s11763_s22 + $0xdc0] ss:$8 sps:$4 sm:$0xff]  }
 0x259   : > { %8116 = vmatpush1.bf16.msra.mxu1 %v10219_v22  ;;  %v4744_v22 = vsel %vm4383_vm0, %v4739_v30, %v12363_v6  ;;  %v10321_v30 = vld [vmem:[%s11763_s22 + $0x5d4] ss:$8 sps:$4 sm:$0xff]  }
 0x25a   : > { %8524 = vmatpush1.bf16.msra.mxu0 %v10222_v23  ;;  %8117 = vmatprep.subr.bf16.mxu1 %v10227_v24  ;;  %v10259_v23 = vld [vmem:[%s11763_s22 + $0x530] ss:$8 sps:$4 sm:$0xff]  }
 0x25b   : > { %8525 = vmatprep.subr.bf16.mxu0 %v10230_v7  ;;  %v10262_v24 = vld [vmem:[%s11763_s22 + $0xd30] ss:$8 sps:$4 sm:$0xff]   ;;  %v10267_v7 = vld [vmem:[%s11763_s22 + $0x544] ss:$8 sps:$4 sm:$0xff]  }
 0x25d   : > { %8118 = vmatpush1.bf16.msra.mxu1 %v10225_v26  ;;  %v10270_v26 = vld [vmem:[%s11763_s22 + $0xd44] ss:$8 sps:$4 sm:$0xff]  }
 0x25e   : > { %8526 = vmatpush1.bf16.msra.mxu0 %v10228_v2  ;;  %8119 = vmatprep.subr.bf16.mxu1 %v10233_v27  ;;  %v10265_v2 = vld [vmem:[%s11763_s22 + $0x540] ss:$8 sps:$4 sm:$0xff]  }
 0x25f   : > { %8527 = vmatprep.subr.bf16.mxu0 %v10236_v32  ;;  %v10268_v27 = vld [vmem:[%s11763_s22 + $0xd40] ss:$8 sps:$4 sm:$0xff]   ;;  %v10273_v32 = vld [vmem:[%s11763_s22 + $0x554] ss:$8 sps:$4 sm:$0xff]  }
 0x261   : > { %8120 = vmatpush1.bf16.msra.mxu1 %v10231_v35  ;;  %v10276_v35 = vld [vmem:[%s11763_s22 + $0xd54] ss:$8 sps:$4 sm:$0xff]  }
 0x262   : > { %8528 = vmatpush1.bf16.msra.mxu0 %v10234_v34  ;;  %8140 = vmatprep.subr.bf16.mxu1 %v10240_v53  ;;  %v10274_v34 = vld [vmem:[%s11763_s22 + $0xd50] ss:$8 sps:$4 sm:$0xff]   ;;  %v10277_v53 = vld [vmem:[%s11763_s22 + $0x560] ss:$8 sps:$4 sm:$0xff]  }
 0x263   : > { %8548 = vmatprep.subr.bf16.mxu0 %v10244_v39  ;;  %v10280_v39 = vld [vmem:[%s11763_s22 + $0xd60] ss:$8 sps:$4 sm:$0xff]  }
 0x264   : > { %8122 = vmatmul.mubr.bf16.vlgmr.msra.gmra.mrb[0].mxu1 %v12304_v0 }
 0x265   : > { %8530 = vmatmul.mubr.bf16.vlgmr.msra.gmra.mrb[0].mxu0 %v9007_v8  ;;  %8141 = vmatpush1.bf16.msra.mxu1 %v10238_v41  ;;  %v10285_v41 = vld [vmem:[%s11763_s22 + $0x574] ss:$8 sps:$4 sm:$0xff]   ;;  %v10283_v8 = vld [vmem:[%s11763_s22 + $0x570] ss:$8 sps:$4 sm:$0xff]  }
 0x266   : > { %8549 = vmatpush1.bf16.msra.mxu0 %v10242_v44  ;;  %8142 = vmatprep.subr.bf16.mxu1 %v10249_v45  ;;  %v10294_v44 = vld [vmem:[%s11763_s22 + $0xd84] ss:$8 sps:$4 sm:$0xff]   ;;  %v10289_v45 = vld [vmem:[%s11763_s22 + $0x580] ss:$8 sps:$4 sm:$0xff]  }
 0x267   : > { %8550 = vmatprep.subr.bf16.mxu0 %v10252_v50  ;;  %8131 = vmatprep.mubr.bf16.mxu1 %v8990_v48  ;;  %v10292_v48 = vld [vmem:[%s11763_s22 + $0xd80] ss:$8 sps:$4 sm:$0xff]   ;;  %v10300_v50 = vld [vmem:[%s11763_s22 + $0xd94] ss:$8 sps:$4 sm:$0xff]  }
 0x268   : > { %8539 = vmatprep.mubr.bf16.mxu0 %v9010_v59  ;;  %v10303_v59 = vld [vmem:[%s11763_s22 + $0x5a4] ss:$8 sps:$4 sm:$0xff]  }
 0x269   : > { %8143 = vmatpush1.bf16.msra.mxu1 %v10247_v3  ;;  %v10307_v3 = vld [vmem:[%s11763_s22 + $0x5b0] ss:$8 sps:$4 sm:$0xff]  }
 0x26a   : > { %8551 = vmatpush1.bf16.msra.mxu0 %v10250_v47  ;;  %8144 = vmatprep.subr.bf16.mxu1 %v10255_v58  ;;  %v10310_v47 = vld [vmem:[%s11763_s22 + $0xdb0] ss:$8 sps:$4 sm:$0xff]   ;;  %v10315_v58 = vld [vmem:[%s11763_s22 + $0x5c4] ss:$8 sps:$4 sm:$0xff]  }
 0x26b   : > { %8552 = vmatprep.subr.bf16.mxu0 %v10258_v49  ;;  %v10318_v49 = vld [vmem:[%s11763_s22 + $0xdc4] ss:$8 sps:$4 sm:$0xff]  }
 0x26c   : > { %8132 = vmatmul.mubr.bf16.gmra.mrb[4].mxu1 %v8989_v17  ;;  %v10313_v17 = vld [vmem:[%s11763_s22 + $0x5c0] ss:$8 sps:$4 sm:$0xff]  }
 0x26d   : > { %8540 = vmatmul.mubr.bf16.gmra.mrb[4].mxu0 %v9009_v5  ;;  %8145 = vmatpush1.bf16.msra.mxu1 %v10253_v10  ;;  %v9011_v5 = vcombine.low %v12278_v28, %v12281_v29  ;;  %v10324_v10 = vld [vmem:[%s11763_s22 + $0xdd4] ss:$8 sps:$4 sm:$0xff]   ;;  %v10328_v28 = vld [vmem:[%s11763_s22 + $0x5e4] ss:$8 sps:$4 sm:$0xff]  }
 0x26e   : > { %8553 = vmatpush1.bf16.msra.mxu0 %v10256_v11  ;;  %8146 = vmatprep.subr.bf16.mxu1 %v10261_v12  ;;  %v4497_v11 = vshll.u32 %v12304_v0, 16  ;;  %v10319_v12 = vld [vmem:[%s11763_s22 + $0x5d0] ss:$8 sps:$4 sm:$0xff]   ;;  %v10332_v29 = vld [vmem:[%s11763_s22 + $0xde4] ss:$8 sps:$4 sm:$0xff]  }
 0x26f   : > { %8554 = vmatprep.subr.bf16.mxu0 %v10264_v13  ;;  %8172 = vmatprep.mubr.bf16.mxu1 %v4517_v15  ;;  %v10322_v13 = vld [vmem:[%s11763_s22 + $0xdd0] ss:$8 sps:$4 sm:$0xff]   ;;  %v12420_v15 = vcombine.low %v12307_v43, %v12285_v33  ;;  %v4722_v33 = vshrl.u32 %v9011_v5, 16 }
 0x270   : > { %8580 = vmatprep.mubr.bf16.mxu0 %v4744_v22  ;;  %v4724_v22 = vshll.u32 %v9011_v5, 16  ;;  %v10367_v5 = vld [vmem:[%s11763_s22 + $0x634] ss:$8 sps:$4 sm:$0xff]  }
 0x271   : > { %8147 = vmatpush1.bf16.msra.mxu1 %v10259_v23  ;;  %v10326_v23 = vld [vmem:[%s11763_s22 + $0x5e0] ss:$8 sps:$4 sm:$0xff]  }
 0x272   : > { %8555 = vmatpush1.bf16.msra.mxu0 %v10262_v24  ;;  %8148 = vmatprep.subr.bf16.mxu1 %v10267_v7  ;;  %v4495_v24 = vshrl.u32 %v12304_v0, 16  ;;  %v4499_v7 = vrot.slane %v4497_v11, 1  ;;  %v10335_v0 = vld [vmem:[%s11763_s22 + $0x5f0] ss:$8 sps:$4 sm:$0xff]  }
 0x273   : > { %8556 = vmatprep.subr.bf16.mxu0 %v10270_v26  ;;  %v10330_v26 = vld [vmem:[%s11763_s22 + $0xde0] ss:$8 sps:$4 sm:$0xff]   ;;  %v10365_v11 = vld [vmem:[%s11763_s22 + $0x630] ss:$8 sps:$4 sm:$0xff]  }
 0x275   : > { %8149 = vmatpush1.bf16.msra.mxu1 %v10265_v2  ;;  %v4502_v2 = vshll.u32 %v12420_v15, 16 }
 0x276   : > { %8557 = vmatpush1.bf16.msra.mxu0 %v10268_v27  ;;  %8150 = vmatprep.subr.bf16.mxu1 %v10273_v32  ;;  %v4726_v27 = vrot.slane %v4724_v22, 1  ;;  %v4729_v32 = vshll.u32 %v12332_v52, 16  ;;  %v10376_v22 = vld [vmem:[%s11763_s22 + $0xe44] ss:$8 sps:$4 sm:$0xff]  }
 0x277   : > { %8558 = vmatprep.subr.bf16.mxu0 %v10276_v35  ;;  %v10337_v35 = vld [vmem:[%s11763_s22 + $0x5f4] ss:$8 sps:$4 sm:$0xff]  }
 0x279   : > { %8151 = vmatpush1.bf16.msra.mxu1 %v10271_v36  ;;  %v10340_v36 = vld [vmem:[%s11763_s22 + $0xdf4] ss:$8 sps:$4 sm:$0xff]  }
 0x27a   : > { %8559 = vmatpush1.bf16.msra.mxu0 %v10274_v34  ;;  %8152 = vmatprep.subr.bf16.mxu1 %v10279_v37  ;;  %v10338_v34 = vld [vmem:[%s11763_s22 + $0xdf0] ss:$8 sps:$4 sm:$0xff]   ;;  %v4500_v37 = vor.u32 %v4499_v7, %v4495_v24  ;;  %v10382_v24 = vld [vmem:[%s11763_s22 + $0xe54] ss:$8 sps:$4 sm:$0xff]  }
 0x27b   : > { %8560 = vmatprep.subr.bf16.mxu0 %v10282_v38  ;;  %v4504_v38 = vrot.slane %v4502_v2, 1  ;;  %v10377_v7 = vld [vmem:[%s11763_s22 + $0x650] ss:$8 sps:$4 sm:$0xff]   ;;  %v10388_v2 = vld [vmem:[%s11763_s22 + $0xe64] ss:$8 sps:$4 sm:$0xff]  }
 0x27d   : > { %8153 = vmatpush1.bf16.msra.mxu1 %v10277_v53  ;;  %v4727_v53 = vor.u32 %v4726_v27, %v4722_v33  ;;  %v10383_v33 = vld [vmem:[%s11763_s22 + $0x660] ss:$8 sps:$4 sm:$0xff]  }
 0x27e   : > { %8561 = vmatpush1.bf16.msra.mxu0 %v10280_v39  ;;  %8154 = vmatprep.subr.bf16.mxu1 %v10285_v41  ;;  %v4731_v39 = vrot.slane %v4729_v32, 1  ;;  %v10345_v41 = vld [vmem:[%s11763_s22 + $0x604] ss:$8 sps:$4 sm:$0xff]   ;;  %v10386_v27 = vld [vmem:[%s11763_s22 + $0xe60] ss:$8 sps:$4 sm:$0xff]  }
 0x27f   : > { %8562 = vmatprep.subr.bf16.mxu0 %v10288_v31  ;;  %v10352_v31 = vld [vmem:[%s11763_s22 + $0xe04] ss:$8 sps:$4 sm:$0xff]   ;;  %v10391_v32 = vld [vmem:[%s11763_s22 + $0x674] ss:$8 sps:$4 sm:$0xff]  }
 0x281   : > { %8155 = vmatpush1.bf16.msra.mxu1 %v10283_v8  ;;  %v4521_v8 = vshrl.u32 %v12313_v16, 16 }
 0x282   : > { %8563 = vmatpush1.bf16.msra.mxu0 %v10286_v19  ;;  %8156 = vmatprep.subr.bf16.mxu1 %v10291_v60  ;;  %v4748_v19 = vshrl.u32 %v12317_v25, 16  ;;  %v10343_v60 = vld [vmem:[%s11763_s22 + $0x600] ss:$8 sps:$4 sm:$0xff]  }
 0x283   : > { %8564 = vmatprep.subr.bf16.mxu0 %v10294_v44  ;;  %v10350_v44 = vld [vmem:[%s11763_s22 + $0xe00] ss:$8 sps:$4 sm:$0xff]  }
 0x285   : > { %8157 = vmatpush1.bf16.msra.mxu1 %v10289_v45  ;;  %v4505_v45 = vsel %vm4383_vm0, %v4500_v37, %v4504_v38  ;;  %v10400_v37 = vld [vmem:[%s11763_s22 + $0xe84] ss:$8 sps:$4 sm:$0xff]  }
 0x286   : > { %8565 = vmatpush1.bf16.msra.mxu0 %v10292_v48  ;;  %8158 = vmatprep.subr.bf16.mxu1 %v10297_v46  ;;  %v4732_v48 = vsel %vm4383_vm0, %v4727_v53, %v4731_v39  ;;  %v12442_v46 = vld [vmem:[%s11814_s26 + $0x8] sm:$0xee] }
 0x287   : > { %8566 = vmatprep.subr.bf16.mxu0 %v10300_v50  ;;  %v10355_v50 = vld [vmem:[%s11763_s22 + $0x614] ss:$8 sps:$4 sm:$0xff]   ;;  %v10398_v53 = vld [vmem:[%s11763_s22 + $0xe80] ss:$8 sps:$4 sm:$0xff]  }
 0x289   : > { %8159 = vmatpush1.bf16.msra.mxu1 %v10295_v51  ;;  %v10358_v51 = vld [vmem:[%s11763_s22 + $0xe14] ss:$8 sps:$4 sm:$0xff]  }
 0x28a   : > { %8567 = vmatpush1.bf16.msra.mxu0 %v10298_v56  ;;  %8160 = vmatprep.subr.bf16.mxu1 %v10303_v59  ;;  %v4523_v56 = vor.u32 %v4521_v8, %v12361_v54  ;;  %v4750_v59 = vor.u32 %v4748_v19, %v12363_v6  ;;  %v10361_v54 = vld [vmem:[%s11763_s22 + $0x624] ss:$8 sps:$4 sm:$0xff]   ;;  %v10404_v8 = vld [vmem:[%s11763_s22 + $0xe90] ss:$8 sps:$4 sm:$0xff]  }
 0x28b   : > { %8568 = vmatprep.subr.bf16.mxu0 %v10306_v55  ;;  %v4518_v55 = vshrl.u32 %v12420_v15, 16  ;;  %v10364_v6 = vld [vmem:[%s11763_s22 + $0xe24] ss:$8 sps:$4 sm:$0xff]  }
 0x28c   : > { %v10409_v19 = vld [vmem:[%s11763_s22 + $0x6a4] ss:$8 sps:$4 sm:$0xff]  }
 0x28d   : > { %8161 = vmatpush1.bf16.msra.mxu1 %v10301_v42  ;;  %v4745_v42 = vshrl.u32 %v12332_v52, 16  ;;  %v10473_v52 = vld [vmem:[%s11763_s22 + $0x744] ss:$8 sps:$4 sm:$0xff]  }
 0x28e   : > { %8569 = vmatpush1.bf16.msra.mxu0 %v10304_v20  ;;  %8162 = vmatprep.subr.bf16.mxu1 %v10309_v61  ;;  %v12452_v20 = vcombine.high %v12442_v46, %v12301_v62  ;;  %v10353_v61 = vld [vmem:[%s11763_s22 + $0x610] ss:$8 sps:$4 sm:$0xff]  }
 0x28f   : > { %8570 = vmatprep.subr.bf16.mxu0 %v10312_v21  ;;  %v10356_v21 = vld [vmem:[%s11763_s22 + $0xe10] ss:$8 sps:$4 sm:$0xff]  }
 0x291   : > { %8163 = vmatpush1.bf16.msra.mxu1 %v10307_v3  ;;  %v4520_v3 = vor.u32 %v4518_v55, %v4504_v38  ;;  %v10395_v38 = vld [vmem:[%s11763_s22 + $0x680] ss:$8 sps:$4 sm:$0xff]   ;;  %v10424_v55 = vld [vmem:[%s11763_s22 + $0xec4] ss:$8 sps:$4 sm:$0xff]  }
 0x292   : > { %8571 = vmatpush1.bf16.msra.mxu0 %v10310_v47  ;;  %8164 = vmatprep.subr.bf16.mxu1 %v10315_v58  ;;  %v4747_v47 = vor.u32 %v4745_v42, %v4731_v39  ;;  %v4536_v58 = vrot.slane %v12452_v20, 1  ;;  %v10403_v39 = vld [vmem:[%s11763_s22 + $0x694] ss:$8 sps:$4 sm:$0xff]   ;;  %v10419_v42 = vld [vmem:[%s11763_s22 + $0x6c0] ss:$8 sps:$4 sm:$0xff]  }
 0x293   : > { %8572 = vmatprep.subr.bf16.mxu0 %v10318_v49  ;;  %v4537_v49 = vrot.slane %v12313_v16, 1  ;;  %v10467_v16 = vld [vmem:[%s11763_s22 + $0x734] ss:$8 sps:$4 sm:$0xff]  }
 0x295   : > { %8165 = vmatpush1.bf16.msra.mxu1 %v10313_v17  ;;  %v10359_v17 = vld [vmem:[%s11763_s22 + $0x620] ss:$8 sps:$4 sm:$0xff]  }
 0x296   : > { %8573 = vmatpush1.bf16.msra.mxu0 %v10316_v4  ;;  %8166 = vmatprep.subr.bf16.mxu1 %v10321_v30  ;;  %v10362_v4 = vld [vmem:[%s11763_s22 + $0xe20] ss:$8 sps:$4 sm:$0xff]   ;;  %v10370_v30 = vld [vmem:[%s11763_s22 + $0xe34] ss:$8 sps:$4 sm:$0xff]  }
 0x297   : > { %8574 = vmatprep.subr.bf16.mxu0 %v10324_v10  ;;  %v4538_v10 = vsel %vm4423_vm1, %v4536_v58, %v4537_v49  ;;  %v10436_v58 = vld [vmem:[%s11763_s22 + $0xee4] ss:$8 sps:$4 sm:$0xff]  }
 0x299   : > { %8167 = vmatpush1.bf16.msra.mxu1 %v10319_v12  ;;  %v10368_v12 = vld [vmem:[%s11763_s22 + $0xe30] ss:$8 sps:$4 sm:$0xff]  }
 0x29a   : > { %8575 = vmatpush1.bf16.msra.mxu0 %v10322_v13  ;;  %8168 = vmatprep.subr.bf16.mxu1 %v10328_v28  ;;  %v10373_v13 = vld [vmem:[%s11763_s22 + $0x644] ss:$8 sps:$4 sm:$0xff]   ;;  %v10371_v28 = vld [vmem:[%s11763_s22 + $0x640] ss:$8 sps:$4 sm:$0xff]  }
 0x29b   : > { %8576 = vmatprep.subr.bf16.mxu0 %v10332_v29  ;;  %v10374_v29 = vld [vmem:[%s11763_s22 + $0xe40] ss:$8 sps:$4 sm:$0xff]  }
 0x29d   : > { %8169 = vmatpush1.bf16.msra.mxu1 %v10326_v23  ;;  %v10379_v23 = vld [vmem:[%s11763_s22 + $0x654] ss:$8 sps:$4 sm:$0xff]  }
 0x29e   : > { %8577 = vmatpush1.bf16.msra.mxu0 %v10330_v26  ;;  %8170 = vmatprep.subr.bf16.mxu1 %v10337_v35  ;;  %v10380_v26 = vld [vmem:[%s11763_s22 + $0xe50] ss:$8 sps:$4 sm:$0xff]   ;;  %v10394_v35 = vld [vmem:[%s11763_s22 + $0xe74] ss:$8 sps:$4 sm:$0xff]  }
 0x29f   : > { %8578 = vmatprep.subr.bf16.mxu0 %v10340_v36  ;;  %v10389_v36 = vld [vmem:[%s11763_s22 + $0x670] ss:$8 sps:$4 sm:$0xff]  }
 0x2a1   : > { %8171 = vmatpush1.bf16.msra.mxu1 %v10335_v0  ;;  %v10392_v0 = vld [vmem:[%s11763_s22 + $0xe70] ss:$8 sps:$4 sm:$0xff]  }
 0x2a2   : > { %8579 = vmatpush1.bf16.msra.mxu0 %v10338_v34  ;;  %8191 = vmatprep.subr.bf16.mxu1 %v10345_v41  ;;  %v10397_v34 = vld [vmem:[%s11763_s22 + $0x684] ss:$8 sps:$4 sm:$0xff]   ;;  %v10406_v41 = vld [vmem:[%s11763_s22 + $0xe94] ss:$8 sps:$4 sm:$0xff]  }
 0x2a3   : > { %8599 = vmatprep.subr.bf16.mxu0 %v10352_v31  ;;  %v10401_v31 = vld [vmem:[%s11763_s22 + $0x690] ss:$8 sps:$4 sm:$0xff]  }
 0x2a4   : > { %8173 = vmatmul.mubr.bf16.vlgmr.msra.gmra.mrb[0].mxu1 %v4505_v45  ;;  %v10410_v45 = vld [vmem:[%s11763_s22 + $0xea0] ss:$8 sps:$4 sm:$0xff]  }
 0x2a5   : > { %8581 = vmatmul.mubr.bf16.vlgmr.msra.gmra.mrb[0].mxu0 %v4732_v48  ;;  %8192 = vmatpush1.bf16.msra.mxu1 %v10343_v60  ;;  %v10412_v60 = vld [vmem:[%s11763_s22 + $0xea4] ss:$8 sps:$4 sm:$0xff]   ;;  %v10415_v48 = vld [vmem:[%s11763_s22 + $0x6b4] ss:$8 sps:$4 sm:$0xff]  }
 0x2a6   : > { %8600 = vmatpush1.bf16.msra.mxu0 %v10350_v44  ;;  %8193 = vmatprep.subr.bf16.mxu1 %v10355_v50  ;;  %v10407_v44 = vld [vmem:[%s11763_s22 + $0x6a0] ss:$8 sps:$4 sm:$0xff]   ;;  %v10418_v50 = vld [vmem:[%s11763_s22 + $0xeb4] ss:$8 sps:$4 sm:$0xff]  }
 0x2a7   : > { %8601 = vmatprep.subr.bf16.mxu0 %v10358_v51  ;;  %8182 = vmatprep.mubr.bf16.mxu1 %v4523_v56  ;;  %v10413_v51 = vld [vmem:[%s11763_s22 + $0x6b0] ss:$8 sps:$4 sm:$0xff]  }
 0x2a8   : > { %8590 = vmatprep.mubr.bf16.mxu0 %v4750_v59  ;;  %v10416_v56 = vld [vmem:[%s11763_s22 + $0xeb0] ss:$8 sps:$4 sm:$0xff]   ;;  %v10421_v59 = vld [vmem:[%s11763_s22 + $0x6c4] ss:$8 sps:$4 sm:$0xff]  }
 0x2a9   : > { %8194 = vmatpush1.bf16.msra.mxu1 %v10353_v61  ;;  %v10422_v61 = vld [vmem:[%s11763_s22 + $0xec0] ss:$8 sps:$4 sm:$0xff]  }
 0x2aa   : > { %8602 = vmatpush1.bf16.msra.mxu0 %v10356_v21  ;;  %8195 = vmatprep.subr.bf16.mxu1 %v10361_v54  ;;  %v10427_v21 = vld [vmem:[%s11763_s22 + $0x6d4] ss:$8 sps:$4 sm:$0xff]  }
 0x2ab   : > { %8603 = vmatprep.subr.bf16.mxu0 %v10364_v6  ;;  %v10430_v54 = vld [vmem:[%s11763_s22 + $0xed4] ss:$8 sps:$4 sm:$0xff]   ;;  %v10425_v6 = vld [vmem:[%s11763_s22 + $0x6d0] ss:$8 sps:$4 sm:$0xff]  }
 0x2ac   : > { %8183 = vmatmul.mubr.bf16.gmra.mrb[4].mxu1 %v4520_v3  ;;  %v10428_v3 = vld [vmem:[%s11763_s22 + $0xed0] ss:$8 sps:$4 sm:$0xff]  }
 0x2ad   : > { %8591 = vmatmul.mubr.bf16.gmra.mrb[4].mxu0 %v4747_v47  ;;  %8196 = vmatpush1.bf16.msra.mxu1 %v10359_v17  ;;  %v10433_v47 = vld [vmem:[%s11763_s22 + $0x6e4] ss:$8 sps:$4 sm:$0xff]  }
 0x2ae   : > { %8604 = vmatpush1.bf16.msra.mxu0 %v10362_v4  ;;  %8197 = vmatprep.subr.bf16.mxu1 %v10367_v5  ;;  %v12513_v17 = vld [vmem:[%s11814_s26 + $0x20] sm:$0x33] }
 0x2af   : > { %8605 = vmatprep.subr.bf16.mxu0 %v10370_v30  ;;  %8223 = vmatprep.mubr.bf16.mxu1 %v4538_v10  ;;  %v10431_v4 = vld [vmem:[%s11763_s22 + $0x6e0] ss:$8 sps:$4 sm:$0xff]   ;;  %v12519_v30 = vcombine.low %v12442_v46, %v12301_v62  ;;  %v12522_v10 = vld [vmem:[%s11814_s26 + $0x30] sm:$0x33]  ;;  %v4534_v46 = vrot.slane %v12420_v15, 1 }
 0x2b0   : > { %8631 = vmatprep.mubr.bf16.mxu0 %v12345_v63  ;;  %v10385_v63 = vld [vmem:[%s11763_s22 + $0x664] ss:$8 sps:$4 sm:$0xff]   ;;  %v10434_v5 = vld [vmem:[%s11763_s22 + $0xee0] ss:$8 sps:$4 sm:$0xff]  }
 0x2b1   : > { %8198 = vmatpush1.bf16.msra.mxu1 %v10365_v11  ;;  %v10439_v11 = vld [vmem:[%s11763_s22 + $0x6f4] ss:$8 sps:$4 sm:$0xff]   ;;  %v4533_v62 = vrot.slane %v12519_v30, 1  ;;  %v10445_v15 = vld [vmem:[%s11763_s22 + $0x700] ss:$8 sps:$4 sm:$0xff]  }
 0x2b2   : > { %8606 = vmatpush1.bf16.msra.mxu0 %v10368_v12  ;;  %8199 = vmatprep.subr.bf16.mxu1 %v10373_v13  ;;  %v10442_v12 = vld [vmem:[%s11763_s22 + $0xef4] ss:$8 sps:$4 sm:$0xff]   ;;  %v8996_v13 = vcombine.high %v12307_v43, %v12513_v17 }
 0x2b3   : > { %8607 = vmatprep.subr.bf16.mxu0 %v10376_v22  ;;  %v9018_v22 = vcombine.high %v12296_v40, %v12522_v10 }
 0x2b5   : > { %8200 = vmatpush1.bf16.msra.mxu1 %v10371_v28  ;;  %v10437_v28 = vld [vmem:[%s11763_s22 + $0x6f0] ss:$8 sps:$4 sm:$0xff]  }
 0x2b6   : > { %8608 = vmatpush1.bf16.msra.mxu0 %v10374_v29  ;;  %8201 = vmatprep.subr.bf16.mxu1 %v10379_v23  ;;  %v10440_v29 = vld [vmem:[%s11763_s22 + $0xef0] ss:$8 sps:$4 sm:$0xff]   ;;  %v10447_v23 = vld [vmem:[%s11763_s22 + $0x704] ss:$8 sps:$4 sm:$0xff]  }
 0x2b7   : > { %8609 = vmatprep.subr.bf16.mxu0 %v10382_v24  ;;  %v10452_v24 = vld [vmem:[%s11763_s22 + $0xf04] ss:$8 sps:$4 sm:$0xff]  }
 0x2b9   : > { %8202 = vmatpush1.bf16.msra.mxu1 %v10377_v7  ;;  %v4566_v7 = vshrl.u32 %v12452_v20, 16 }
 0x2ba   : > { %8610 = vmatpush1.bf16.msra.mxu0 %v10380_v26  ;;  %8203 = vmatprep.subr.bf16.mxu1 %v10385_v63  ;;  %v4569_v26 = vshll.u32 %v12452_v20, 16  ;;  %v4574_v63 = vshrl.u32 %v8996_v13, 16  ;;  %v10458_v20 = vld [vmem:[%s11763_s22 + $0xf14] ss:$8 sps:$4 sm:$0xff]  }
 0x2bb   : > { %8611 = vmatprep.subr.bf16.mxu0 %v10388_v2  ;;  %v4577_v2 = vshll.u32 %v8996_v13, 16  ;;  %v10494_v13 = vld [vmem:[%s11763_s22 + $0xf74] ss:$8 sps:$4 sm:$0xff]  }
 0x2bd   : > { %8204 = vmatpush1.bf16.msra.mxu1 %v10383_v33  ;;  %v4793_v33 = vshrl.u32 %v12323_v9, 16 }
 0x2be   : > { %8612 = vmatpush1.bf16.msra.mxu0 %v10386_v27  ;;  %8205 = vmatprep.subr.bf16.mxu1 %v10391_v32  ;;  %v4796_v27 = vshll.u32 %v12323_v9, 16  ;;  %v4801_v32 = vshrl.u32 %v9018_v22, 16  ;;  %v4579_v9 = vrot.slane %v4577_v2, 2  ;;  %v10509_v2 = vld [vmem:[%s11763_s22 + $0x7a4] ss:$8 sps:$4 sm:$0xff]  }
 0x2bf   : > { %8613 = vmatprep.subr.bf16.mxu0 %v10394_v35  ;;  %v4804_v35 = vshll.u32 %v9018_v22, 16  ;;  %v10489_v22 = vld [vmem:[%s11763_s22 + $0x770] ss:$8 sps:$4 sm:$0xff]  }
 0x2c1   : > { %8206 = vmatpush1.bf16.msra.mxu1 %v10389_v36  ;;  %v10450_v36 = vld [vmem:[%s11763_s22 + $0xf00] ss:$8 sps:$4 sm:$0xff]  }
 0x2c2   : > { %8614 = vmatpush1.bf16.msra.mxu0 %v10392_v0  ;;  %8207 = vmatprep.subr.bf16.mxu1 %v10397_v34  ;;  %v4535_v0 = vsel %vm4423_vm1, %v4533_v62, %v4534_v46  ;;  %v10455_v34 = vld [vmem:[%s11763_s22 + $0x714] ss:$8 sps:$4 sm:$0xff]   ;;  %v10500_v62 = vld [vmem:[%s11763_s22 + $0xf84] ss:$8 sps:$4 sm:$0xff]  }
 0x2c3   : > { %8615 = vmatprep.subr.bf16.mxu0 %v10400_v37  ;;  %v4568_v37 = vrot.slane %v4566_v7, 1  ;;  %v10506_v7 = vld [vmem:[%s11763_s22 + $0xf94] ss:$8 sps:$4 sm:$0xff]  }
 0x2c5   : > { %8208 = vmatpush1.bf16.msra.mxu1 %v10395_v38  ;;  %v4571_v38 = vrot.slane %v4569_v26, 2  ;;  %v10501_v26 = vld [vmem:[%s11763_s22 + $0x790] ss:$8 sps:$4 sm:$0xff]  }
 0x2c6   : > { %8616 = vmatpush1.bf16.msra.mxu0 %v10398_v53  ;;  %8209 = vmatprep.subr.bf16.mxu1 %v10403_v39  ;;  %v4576_v53 = vrot.slane %v4574_v63, 1  ;;  %v4795_v39 = vrot.slane %v4793_v33, 1  ;;  %v10504_v63 = vld [vmem:[%s11763_s22 + $0xf90] ss:$8 sps:$4 sm:$0xff]   ;;  %v10512_v33 = vld [vmem:[%s11763_s22 + $0xfa4] ss:$8 sps:$4 sm:$0xff]  }
 0x2c7   : > { %8617 = vmatprep.subr.bf16.mxu0 %v10406_v41  ;;  %v4798_v41 = vrot.slane %v4796_v27, 2  ;;  %v10507_v27 = vld [vmem:[%s11763_s22 + $0x7a0] ss:$8 sps:$4 sm:$0xff]  }
 0x2c9   : > { %8210 = vmatpush1.bf16.msra.mxu1 %v10401_v31  ;;  %v4803_v31 = vrot.slane %v4801_v32, 1  ;;  %v10510_v32 = vld [vmem:[%s11763_s22 + $0xfa0] ss:$8 sps:$4 sm:$0xff]  }
 0x2ca   : > { %8618 = vmatpush1.bf16.msra.mxu0 %v10404_v8  ;;  %8211 = vmatprep.subr.bf16.mxu1 %v10409_v19  ;;  %v4806_v8 = vrot.slane %v4804_v35, 2  ;;  %v10453_v19 = vld [vmem:[%s11763_s22 + $0x710] ss:$8 sps:$4 sm:$0xff]   ;;  %v10515_v35 = vld [vmem:[%s11763_s22 + $0x7b4] ss:$8 sps:$4 sm:$0xff]  }
 0x2cb   : > { %8619 = vmatprep.subr.bf16.mxu0 %v10412_v60  ;;  %v10456_v60 = vld [vmem:[%s11763_s22 + $0xf10] ss:$8 sps:$4 sm:$0xff]  }
 0x2cd   : > { %8212 = vmatpush1.bf16.msra.mxu1 %v10407_v44  ;;  %v10461_v44 = vld [vmem:[%s11763_s22 + $0x724] ss:$8 sps:$4 sm:$0xff]  }
 0x2ce   : > { %8620 = vmatpush1.bf16.msra.mxu0 %v10410_v45  ;;  %8213 = vmatprep.subr.bf16.mxu1 %v10415_v48  ;;  %v10464_v45 = vld [vmem:[%s11763_s22 + $0xf24] ss:$8 sps:$4 sm:$0xff]   ;;  %v12554_v48 = vor.u32 %v4579_v9, %v4576_v53  ;;  %v10522_v53 = vld [vmem:[%s11763_s22 + $0xfc0] ss:$8 sps:$4 sm:$0xff]   ;;  %v9017_v9 = vcombine.low %v12296_v40, %v12522_v10  ;;  %v4776_v40 = vshrl.u32 %v12320_v14, 16  ;;  %v4779_v10 = vshll.u32 %v12320_v14, 16 }
 0x2cf   : > { %8621 = vmatprep.subr.bf16.mxu0 %v10418_v50  ;;  %v4799_v50 = vor.u32 %v4798_v41, %v4795_v39  ;;  %v10527_v39 = vld [vmem:[%s11763_s22 + $0x7d4] ss:$8 sps:$4 sm:$0xff]  }
 0x2d0   : > { %v10530_v41 = vld [vmem:[%s11763_s22 + $0xfd4] ss:$8 sps:$4 sm:$0xff]   ;;  %v4781_v14 = vrot.slane %v4779_v10, 2 }
 0x2d1   : > { %8214 = vmatpush1.bf16.msra.mxu1 %v10413_v51  ;;  %v12556_v51 = vor.u32 %v4806_v8, %v4803_v31  ;;  %v10525_v31 = vld [vmem:[%s11763_s22 + $0x7d0] ss:$8 sps:$4 sm:$0xff]   ;;  %v4549_v8 = vshrl.u32 %v12519_v30, 16 }
 0x2d2   : > { %8622 = vmatpush1.bf16.msra.mxu0 %v10416_v56  ;;  %8215 = vmatprep.subr.bf16.mxu1 %v10421_v59  ;;  %v10459_v56 = vld [vmem:[%s11763_s22 + $0x720] ss:$8 sps:$4 sm:$0xff]  }
 0x2d3   : > { %8623 = vmatprep.subr.bf16.mxu0 %v10424_v55  ;;  %v10462_v59 = vld [vmem:[%s11763_s22 + $0xf20] ss:$8 sps:$4 sm:$0xff]   ;;  %v10465_v55 = vld [vmem:[%s11763_s22 + $0x730] ss:$8 sps:$4 sm:$0xff]  }
 0x2d5   : > { %8216 = vmatpush1.bf16.msra.mxu1 %v10419_v42  ;;  %v10468_v42 = vld [vmem:[%s11763_s22 + $0xf30] ss:$8 sps:$4 sm:$0xff]  }
 0x2d6   : > { %8624 = vmatpush1.bf16.msra.mxu0 %v10422_v61  ;;  %8217 = vmatprep.subr.bf16.mxu1 %v10427_v21  ;;  %v10476_v61 = vld [vmem:[%s11763_s22 + $0xf44] ss:$8 sps:$4 sm:$0xff]   ;;  %v10474_v21 = vld [vmem:[%s11763_s22 + $0xf40] ss:$8 sps:$4 sm:$0xff]  }
 0x2d7   : > { %8625 = vmatprep.subr.bf16.mxu0 %v10430_v54  ;;  %v10479_v54 = vld [vmem:[%s11763_s22 + $0x754] ss:$8 sps:$4 sm:$0xff]  }
 0x2d9   : > { %8218 = vmatpush1.bf16.msra.mxu1 %v10425_v6  ;;  %v10482_v6 = vld [vmem:[%s11763_s22 + $0xf54] ss:$8 sps:$4 sm:$0xff]  }
 0x2da   : > { %8626 = vmatpush1.bf16.msra.mxu0 %v10428_v3  ;;  %8219 = vmatprep.subr.bf16.mxu1 %v10433_v47  ;;  %v10477_v3 = vld [vmem:[%s11763_s22 + $0x750] ss:$8 sps:$4 sm:$0xff]  }
 0x2db   : > { %8627 = vmatprep.subr.bf16.mxu0 %v10436_v58  ;;  %v10480_v47 = vld [vmem:[%s11763_s22 + $0xf50] ss:$8 sps:$4 sm:$0xff]   ;;  %v10485_v58 = vld [vmem:[%s11763_s22 + $0x764] ss:$8 sps:$4 sm:$0xff]  }
 0x2dd   : > { %8220 = vmatpush1.bf16.msra.mxu1 %v10431_v4  ;;  %v10488_v4 = vld [vmem:[%s11763_s22 + $0xf64] ss:$8 sps:$4 sm:$0xff]  }
 0x2de   : > { %8628 = vmatpush1.bf16.msra.mxu0 %v10434_v5  ;;  %8221 = vmatprep.subr.bf16.mxu1 %v10439_v11  ;;  %v10483_v5 = vld [vmem:[%s11763_s22 + $0x760] ss:$8 sps:$4 sm:$0xff]  }
 0x2df   : > { %8629 = vmatprep.subr.bf16.mxu0 %v10442_v12  ;;  %v10486_v11 = vld [vmem:[%s11763_s22 + $0xf60] ss:$8 sps:$4 sm:$0xff]   ;;  %v10491_v12 = vld [vmem:[%s11763_s22 + $0x774] ss:$8 sps:$4 sm:$0xff]  }
 0x2e1   : > { %8222 = vmatpush1.bf16.msra.mxu1 %v10437_v28  ;;  %v10492_v28 = vld [vmem:[%s11763_s22 + $0xf70] ss:$8 sps:$4 sm:$0xff]  }
 0x2e2   : > { %8630 = vmatpush1.bf16.msra.mxu0 %v10440_v29  ;;  %8242 = vmatprep.subr.bf16.mxu1 %v10447_v23  ;;  %v10497_v29 = vld [vmem:[%s11763_s22 + $0x784] ss:$8 sps:$4 sm:$0xff]   ;;  %v10498_v23 = vld [vmem:[%s11763_s22 + $0xf80] ss:$8 sps:$4 sm:$0xff]  }
 0x2e3   : > { %8650 = vmatprep.subr.bf16.mxu0 %v10452_v24  ;;  %v10503_v24 = vld [vmem:[%s11763_s22 + $0x794] ss:$8 sps:$4 sm:$0xff]  }
 0x2e4   : > { %8224 = vmatmul.mubr.bf16.vlgmr.msra.gmra.mrb[0].mxu1 %v4535_v0  ;;  %v10516_v0 = vld [vmem:[%s11763_s22 + $0xfb0] ss:$8 sps:$4 sm:$0xff]  }
 0x2e5   : > { %8632 = vmatmul.mubr.bf16.vlgmr.msra.gmra.mrb[0].mxu0 %v12355_v18  ;;  %8243 = vmatpush1.bf16.msra.mxu1 %v10445_v15  ;;  %v4572_v18 = vor.u32 %v4571_v38, %v4568_v37  ;;  %v10518_v15 = vld [vmem:[%s11763_s22 + $0xfb4] ss:$8 sps:$4 sm:$0xff]   ;;  %v8995_v37 = vcombine.low %v12307_v43, %v12513_v17  ;;  %v10519_v38 = vld [vmem:[%s11763_s22 + $0x7c0] ss:$8 sps:$4 sm:$0xff]   ;;  %v4552_v43 = vshll.u32 %v12519_v30, 16  ;;  %v4551_v30 = vrot.slane %v4549_v8, 1 }
 0x2e6   : > { %8651 = vmatpush1.bf16.msra.mxu0 %v10450_v36  ;;  %8244 = vmatprep.subr.bf16.mxu1 %v10455_v34  ;;  %v10513_v36 = vld [vmem:[%s11763_s22 + $0x7b0] ss:$8 sps:$4 sm:$0xff]   ;;  %v10521_v34 = vld [vmem:[%s11763_s22 + $0x7c4] ss:$8 sps:$4 sm:$0xff]  }
 0x2e7   : > { %8652 = vmatprep.subr.bf16.mxu0 %v10458_v20  ;;  %8233 = vmatprep.mubr.bf16.mxu1 %v4537_v49  ;;  %v10470_v49 = vld [vmem:[%s11763_s22 + $0xf34] ss:$8 sps:$4 sm:$0xff]   ;;  %v4581_v25 = vsel %vm4439_vm2, %v4572_v18, %v12554_v48  ;;  %v10524_v20 = vld [vmem:[%s11763_s22 + $0xfc4] ss:$8 sps:$4 sm:$0xff]   ;;  %v4557_v17 = vshrl.u32 %v8995_v37, 16 }
 0x2e8   : > { %8641 = vmatprep.mubr.bf16.mxu0 %v4764_v57  ;;  %v4808_v57 = vsel %vm4439_vm2, %v4799_v50, %v12556_v51  ;;  %v10533_v18 = vld [vmem:[%s11763_s22 + $0x7e4] ss:$8 sps:$4 sm:$0xff]  }
 0x2e9   : > { %8245 = vmatpush1.bf16.msra.mxu1 %v10453_v19  ;;  %v4560_v19 = vshll.u32 %v8995_v37, 16  ;;  %v10536_v50 = vld [vmem:[%s11763_s22 + $0xfe4] ss:$8 sps:$4 sm:$0xff]  }
 0x2ea   : > { %8653 = vmatpush1.bf16.msra.mxu0 %v10456_v60  ;;  %8246 = vmatprep.subr.bf16.mxu1 %v10461_v44  ;;  %v10528_v60 = vld [vmem:[%s11763_s22 + $0xfd0] ss:$8 sps:$4 sm:$0xff]   ;;  %v4784_v44 = vshrl.u32 %v9017_v9, 16 }
 0x2eb   : > { %8654 = vmatprep.subr.bf16.mxu0 %v10464_v45  ;;  %v4787_v45 = vshll.u32 %v9017_v9, 16 }
 0x2ec   : > { %8234 = vmatmul.mubr.bf16.gmra.mrb[4].mxu1 %v4534_v46  ;;  %v10495_v46 = vld [vmem:[%s11763_s22 + $0x780] ss:$8 sps:$4 sm:$0xff]  }
 0x2ed   : > { %8642 = vmatmul.mubr.bf16.gmra.mrb[4].mxu0 %v4761_v1  ;;  %8247 = vmatpush1.bf16.msra.mxu1 %v10459_v56  ;;  %v10471_v1 = vld [vmem:[%s11763_s22 + $0x740] ss:$8 sps:$4 sm:$0xff]  }
 0x2ee   : > { %8655 = vmatpush1.bf16.msra.mxu0 %v10462_v59  ;;  %8248 = vmatprep.subr.bf16.mxu1 %v10467_v16  ;;  %v10531_v56 = vld [vmem:[%s11763_s22 + $0x7e0] ss:$8 sps:$4 sm:$0xff]   ;;  %v4554_v59 = vrot.slane %v4552_v43, 2  ;;  %v4559_v16 = vrot.slane %v4557_v17, 1 }
 0x2ef   : > { %8656 = vmatprep.subr.bf16.mxu0 %v10470_v49  ;;  %8274 = vmatprep.mubr.bf16.mxu1 %v4581_v25  ;;  %v4562_v49 = vrot.slane %v4560_v19, 2  ;;  %v10534_v25 = vld [vmem:[%s11763_s22 + $0xfe0] ss:$8 sps:$4 sm:$0xff]  }
 0x2f0   : > { %8682 = vmatprep.mubr.bf16.mxu0 %v4808_v57  ;;  %v4778_v57 = vrot.slane %v4776_v40, 1 }
 0x2f1   : > { %8249 = vmatpush1.bf16.msra.mxu1 %v10465_v55  ;;  %v4786_v55 = vrot.slane %v4784_v44, 1 }
 0x2f2   : > { %8657 = vmatpush1.bf16.msra.mxu0 %v10468_v42  ;;  %8250 = vmatprep.subr.bf16.mxu1 %v10473_v52  ;;  %v4789_v42 = vrot.slane %v4787_v45, 2  ;;  %v10539_v52 = vld [vmem:[%s11763_s22 + $0x7f4] ss:$8 sps:$4 sm:$0xff]  }
 0x2f3   : > { %8658 = vmatprep.subr.bf16.mxu0 %v10476_v61  ;;  %v10542_v61 = vld [vmem:[%s11763_s22 + $0xff4] ss:$8 sps:$4 sm:$0xff]  }
 0x2f5   : > { %8251 = vmatpush1.bf16.msra.mxu1 %v10471_v1  ;;  %v4555_v1 = vor.u32 %v4554_v59, %v4551_v30 }
 0x2f6   : > { %8659 = vmatpush1.bf16.msra.mxu0 %v10474_v21  ;;  %8252 = vmatprep.subr.bf16.mxu1 %v10479_v54  ;;  %v10537_v21 = vld [vmem:[%s11763_s22 + $0x7f0] ss:$8 sps:$4 sm:$0xff]  }
 0x2f7   : > { %8660 = vmatprep.subr.bf16.mxu0 %v10482_v6  ;;  %v10540_v54 = vld [vmem:[%s11763_s22 + $0xff0] ss:$8 sps:$4 sm:$0xff]   ;;  %v4563_v6 = vor.u32 %v4562_v49, %v4559_v16 }
 0x2f9   : > { %8253 = vmatpush1.bf16.msra.mxu1 %v10477_v3  ;;  %v4782_v3 = vor.u32 %v4781_v14, %v4778_v57 }
 0x2fa   : > { %8661 = vmatpush1.bf16.msra.mxu0 %v10480_v47  ;;  %8254 = vmatprep.subr.bf16.mxu1 %v10485_v58  ;;  %v4790_v47 = vor.u32 %v4789_v42, %v4786_v55  ;;  %v4564_v58 = vsel %vm4439_vm2, %v4555_v1, %v4563_v6 }
 0x2fb   : > { %8662 = vmatprep.subr.bf16.mxu0 %v10488_v4 }
 0x2fc   : > { %v4791_v4 = vsel %vm4439_vm2, %v4782_v3, %v4790_v47 }
 0x2fd   : > { %8255 = vmatpush1.bf16.msra.mxu1 %v10483_v5  ;;  %v8701_v5 = vlaneseq }
 0x2fe   : > { %8663 = vmatpush1.bf16.msra.mxu0 %v10486_v11  ;;  %8256 = vmatprep.subr.bf16.mxu1 %v10491_v12 }
 0x2ff   : > { %8664 = vmatprep.subr.bf16.mxu0 %v10494_v13  ;;  %v8702_v11 = vshrl.u32 %v8701_v5, 7 }
 0x301   : > { %8257 = vmatpush1.bf16.msra.mxu1 %v10489_v22  ;;  %vm8703_vm3 = vcmp.lt.s32.totalorder %v8702_v11, 3 }
 0x302   : > { %8665 = vmatpush1.bf16.msra.mxu0 %v10492_v28  ;;  %8258 = vmatprep.subr.bf16.mxu1 %v10497_v29 }
 0x303   : > { %8666 = vmatprep.subr.bf16.mxu0 %v10500_v62  ;;  %v10630_v62 = vmov 0.0  }
 0x305   : > { %8259 = vmatpush1.bf16.msra.mxu1 %v10495_v46  ;;  %v9531_v46 = vsel %vm8703_vm3, 1.0, %v10630_v62 }
 0x306   : > { %8667 = vmatpush1.bf16.msra.mxu0 %v10498_v23  ;;  %8260 = vmatprep.subr.bf16.mxu1 %v10503_v24 }
 0x307   : > { %8668 = vmatprep.subr.bf16.mxu0 %v10506_v7 }
 0x309   : > { %8261 = vmatpush1.bf16.msra.mxu1 %v10501_v26 }
 0x30a   : > { %8669 = vmatpush1.bf16.msra.mxu0 %v10504_v63  ;;  %8262 = vmatprep.subr.bf16.mxu1 %v10509_v2 }
 0x30b   : > { %8670 = vmatprep.subr.bf16.mxu0 %v10512_v33 }
 0x30d   : > { %8263 = vmatpush1.bf16.msra.mxu1 %v10507_v27 }
 0x30e   : > { %8671 = vmatpush1.bf16.msra.mxu0 %v10510_v32  ;;  %8264 = vmatprep.subr.bf16.mxu1 %v10515_v35 }
 0x30f   : > { %8672 = vmatprep.subr.bf16.mxu0 %v10518_v15 }
 0x311   : > { %8265 = vmatpush1.bf16.msra.mxu1 %v10513_v36 }
 0x312   : > { %8673 = vmatpush1.bf16.msra.mxu0 %v10516_v0  ;;  %8266 = vmatprep.subr.bf16.mxu1 %v10521_v34 }
 0x313   : > { %8674 = vmatprep.subr.bf16.mxu0 %v10524_v20 }
 0x315   : > { %8267 = vmatpush1.bf16.msra.mxu1 %v10519_v38 }
 0x316   : > { %8675 = vmatpush1.bf16.msra.mxu0 %v10522_v53  ;;  %8268 = vmatprep.subr.bf16.mxu1 %v10527_v39 }
 0x317   : > { %8676 = vmatprep.subr.bf16.mxu0 %v10530_v41 }
 0x319   : > { %8269 = vmatpush1.bf16.msra.mxu1 %v10525_v31 }
 0x31a   : > { %8677 = vmatpush1.bf16.msra.mxu0 %v10528_v60  ;;  %8270 = vmatprep.subr.bf16.mxu1 %v10533_v18 }
 0x31b   : > { %8678 = vmatprep.subr.bf16.mxu0 %v10536_v50 }
 0x31d   : > { %8271 = vmatpush1.bf16.msra.mxu1 %v10531_v56 }
 0x31e   : > { %8679 = vmatpush1.bf16.msra.mxu0 %v10534_v25  ;;  %8272 = vmatprep.subr.bf16.mxu1 %v10539_v52 }
 0x31f   : > { %8680 = vmatprep.subr.bf16.mxu0 %v10542_v61 }
 0x321   : > { %8273 = vmatpush1.bf16.msra.mxu1 %v10537_v21 }
 0x322   : > { %8681 = vmatpush1.bf16.msra.mxu0 %v10540_v54 }
 0x324   : > { %8275 = vmatmul.mubr.bf16.vlgmr.msra.gmra.mrb[0].mxu1 %v4564_v58 }
 0x325   : > { %8683 = vmatmul.mubr.bf16.vlgmr.msra.gmra.mrb[0].mxu0 %v4791_v4  ;;  %8284 = vmatprep.mubr.bf16.mxu1 %v12554_v48 }
 0x326   : > { %8692 = vmatprep.mubr.bf16.mxu0 %v12556_v51 }
 0x32c   : > { %8285 = vmatmul.mubr.bf16.gmra.mrb[4].mxu1 %v4563_v6 }
 0x32d   : > { %8693 = vmatmul.mubr.bf16.gmra.mrb[4].mxu0 %v4790_v47 }
 0x3f7   : > { %v8276_v12 = vpop.f32.mrb[0].mxu1 }
 0x3f8   : > { %v8684_v13 = vpop.f32.mrb[0].mxu0  ;;  %v8278_v28 = vpop.f32.mrb[1].mxu1 }
 0x3f9   : > { %v12630_v22 = vadd.f32 %v8684_v13, %v8276_v12  ;;  %v8686_v29 = vpop.f32.mrb[1].mxu0  ;;  %v8280_v24 = vpop.f32.mrb[2].mxu1 }
 0x3fa   : > { %v12632_v23 = vadd.f32 %v8686_v29, %v8278_v28  ;;  %v8688_v7 = vpop.f32.mrb[2].mxu0  ;;  %v8282_v26 = vpop.f32.mrb[3].mxu1 }
 0x3fb   : > { %v8728_v48 = vmul.f32 %v12630_v22, %v12630_v22  ;;  %v12636_v51 = vadd.f32 %v8688_v7, %v8280_v24  ;;  %v8690_v63 = vpop.f32.mrb[3].mxu0  ;;  %v8706_v27 = vmul.f32 %v12630_v22, %v9531_v46 }
 0x3fc   : > { %v8729_v2 = vmul.f32 %v12632_v23, %v12632_v23  ;;  %v12640_v33 = vadd.f32 %v8690_v63, %v8282_v26  ;;  %v8707_v15 = vmul.f32 %v12632_v23, %v9531_v46 }
 0x3fd   : > { %v8708_v32 = vmul.f32 %v12636_v51, %v9531_v46  ;;  %v8730_v35 = vmul.f32 %v12636_v51, %v12636_v51  ;;  %v8734_v34 = vmul.f32 %v9531_v46, %v8728_v48 }
 0x3fe   : > { %v8709_v36 = vmul.f32 %v12640_v33, %v9531_v46  ;;  %v8731_v0 = vmul.f32 %v12640_v33, %v12640_v33  ;;  %v8735_v38 = vmul.f32 %v9531_v46, %v8729_v2 }
 0x3ff   : > { %v8712_v20 = vadd.f32 %v8708_v32, %v8706_v27  ;;  %v8736_v37 = vmul.f32 %v9531_v46, %v8730_v35  ;;  %v8286_v39 = vpop.f32.mrb[4].mxu1 }
 0x400   : > { %v8720_v53 = vadd.f32 %v8709_v36, %v8707_v15  ;;  %v8737_v9 = vmul.f32 %v9531_v46, %v8731_v0  ;;  %v8694_v41 = vpop.f32.mrb[4].mxu0  ;;  %v8288_v43 = vpop.f32.mrb[5].mxu1 }
 0x401   : > { %v8740_v31 = vadd.f32 %v8736_v37, %v8734_v34  ;;  %v12650_v8 = vadd.f32 %v8694_v41, %v8286_v39  ;;  %v8696_v17 = vpop.f32.mrb[5].mxu0  ;;  %v8290_v40 = vpop.f32.mrb[6].mxu1 }
 0x402   : > { %v8748_v19 = vadd.f32 %v8737_v9, %v8735_v38  ;;  %v12652_v60 = vadd.f32 %v8696_v17, %v8288_v43  ;;  %v8698_v10 = vpop.f32.mrb[6].mxu0  ;;  %v8291_v18 = vpop.f32.mrb[7].mxu1 }
 0x403   : > { %v8710_v44 = vmul.f32 %v12650_v8, %v9531_v46  ;;  %v8732_v45 = vmul.f32 %v12650_v8, %v12650_v8  ;;  %v8699_v50 = vpop.f32.mrb[7].mxu0 }
 0x404   : > { %v8711_v56 = vmul.f32 %v12652_v60, %v9531_v46  ;;  %v8733_v30 = vmul.f32 %v12652_v60, %v12652_v60 }
 0x405   : > { %v8713_v59 = vadd.f32 %v8712_v20, %v8710_v44  ;;  %v8738_v16 = vmul.f32 %v9531_v46, %v8732_v45 }
 0x406   : > { %v8721_v49 = vadd.f32 %v8720_v53, %v8711_v56  ;;  %v8739_v25 = vmul.f32 %v9531_v46, %v8733_v30 }
 0x407   : > { %v8714_v57 = vrot.slane %v8713_v59, 4  ;;  %v8741_v14 = vadd.f32 %v8740_v31, %v8738_v16 }
 0x408   : > { %v8722_v55 = vrot.slane %v8721_v49, 4  ;;  %v8749_v42 = vadd.f32 %v8748_v19, %v8739_v25 }
 0x409   : > { %v8715_v52 = vadd.f32 %v8714_v57, %v8713_v59  ;;  %v8742_v61 = vrot.slane %v8741_v14, 4 }
 0x40a   : > { %v8723_v1 = vadd.f32 %v8722_v55, %v8721_v49  ;;  %v8750_v21 = vrot.slane %v8749_v42, 4 }
 0x40b   : > { %v8716_v54 = vrot.slane %v8715_v52, 2  ;;  %v8743_v6 = vadd.f32 %v8742_v61, %v8741_v14 }
 0x40c   : > { %v8724_v3 = vrot.slane %v8723_v1, 2  ;;  %v8751_v47 = vadd.f32 %v8750_v21, %v8749_v42 }
 0x40d   : > { %v8717_v58 = vadd.f32 %v8716_v54, %v8715_v52  ;;  %v8744_v4 = vrot.slane %v8743_v6, 2 }
 0x40e   : > { %v8725_v5 = vadd.f32 %v8724_v3, %v8723_v1  ;;  %v8752_v11 = vrot.slane %v8751_v47, 2 }
 0x40f   : > { %v8718_v12 = vrot.slane %v8717_v58, 1  ;;  %v8745_v13 = vadd.f32 %v8744_v4, %v8743_v6 }
 0x410   : > { %v8726_v28 = vrot.slane %v8725_v5, 1  ;;  %v8753_v29 = vadd.f32 %v8752_v11, %v8751_v47 }
 0x411   : > { %v8719_v62 = vadd.f32 %v8718_v12, %v8717_v58  ;;  %v8746_v46 = vrot.slane %v8745_v13, 1 }
 0x412   : > { %v8727_v24 = vadd.f32 %v8726_v28, %v8725_v5  ;;  %v8754_v7 = vrot.slane %v8753_v29, 1 }
 0x413   : > { %v8747_v48 = vadd.f32 %v8746_v46, %v8745_v13  ;;  %v8756_v26 = vmul.f32 0.11111111, %v8719_v62 }
 0x414   : > { %v8755_v63 = vadd.f32 %v8754_v7, %v8753_v29  ;;  %v8757_v2 = vmul.f32 0.11111111, %v8727_v24 }
 0x415   : > { %v8758_v27 = vmul.f32 0.11111111, %v8747_v48  ;;  %v8760_v32 = vmul.f32 %v8756_v26, %v8756_v26  ;;  %v8766_v35 = vsub.f32 %v12630_v22, %v8756_v26  ;;  %v8768_v15 = vsub.f32 %v12636_v51, %v8756_v26 }
 0x416   : > { %v8770_v36 = vsub.f32 %v12650_v8, %v8756_v26  ;;  %v8759_v0 = vmul.f32 0.11111111, %v8755_v63  ;;  %v8761_v34 = vmul.f32 %v8757_v2, %v8757_v2  ;;  %v8767_v20 = vsub.f32 %v12632_v23, %v8757_v2 }
 0x417   : > { %v8762_v37 = vsub.f32 %v8758_v27, %v8760_v32  ;;  %v8769_v38 = vsub.f32 %v12640_v33, %v8757_v2  ;;  %v8771_v53 = vsub.f32 %v12652_v60, %v8757_v2 }
 0x418   : > { %v8763_v9 = vsub.f32 %v8759_v0, %v8761_v34 }
 0x419   : > { %v8764_v39 = vmax.f32 %v8762_v37, 0.0 }
 0x41a   : > { %v8765_v41 = vmax.f32 %v8763_v9, 0.0 }
 0x41b   : > { %v8772_v31 = vadd.f32 1e-05, %v8764_v39 }
 0x41c   : > { %v8773_v43 = vadd.f32 1e-05, %v8765_v41 }
 0x41d   : > { %10547 = vrsqrt.f32 %v8772_v31 }
 0x41e   : > { %10549 = vrsqrt.f32 %v8773_v43 }
 0x427   : > { %v10548_v22 = vpop.eup %10547 }
 0x428   : > { %v10550_v51 = vpop.eup %10549  ;;  %v8776_v8 = vmul.f32 %v10548_v22, %v8766_v35  ;;  %v8778_v17 = vmul.f32 %v10548_v22, %v8768_v15  ;;  %v8780_v19 = vmul.f32 %v10548_v22, %v8770_v36 }
 0x429   : > { %v8777_v40 = vmul.f32 %v10550_v51, %v8767_v20  ;;  %v8779_v23 = vmul.f32 %v10550_v51, %v8769_v38  ;;  %v8781_v10 = vmul.f32 %v10550_v51, %v8771_v53 }
 0x42a   : > { %vm8786_vm4 = vcmp.ge.f32.partialorder %v8780_v19, 0.0  ;;  %v8792_v33 = vmul.f32 0.2, %v8780_v19  ;;  %vm8782_vm5 = vcmp.ge.f32.partialorder %v8776_v8, 0.0  ;;  %vm8784_vm6 = vcmp.ge.f32.partialorder %v8778_v17, 0.0 }
 0x42b   : > { %vm8783_vm7 = vcmp.ge.f32.partialorder %v8777_v40, 0.0  ;;  %vm8785_vm8 = vcmp.ge.f32.partialorder %v8779_v23, 0.0  ;;  %vm8787_vm9 = vcmp.ge.f32.partialorder %v8781_v10, 0.0  ;;  %v8788_v60 = vmul.f32 0.2, %v8776_v8 }
 0x42c   : > { %v8789_v44 = vmul.f32 0.2, %v8777_v40  ;;  %v8790_v45 = vmul.f32 0.2, %v8778_v17  ;;  %v8791_v18 = vmul.f32 0.2, %v8779_v23  ;;  %v8798_v50 = vsel %vm8786_vm4, %v8780_v19, %v8792_v33 }
 0x42d   : > { %v8793_v56 = vmul.f32 0.2, %v8781_v10  ;;  %v8794_v30 = vsel %vm8782_vm5, %v8776_v8, %v8788_v60  ;;  %8829 = sbr.rel (!%p10714_p9) target bundleno = 1083 (0x43b), region = 84 }
 0x42e   : > { %v8795_v59 = vsel %vm8783_vm7, %v8777_v40, %v8789_v44  ;;  %v8796_v16 = vsel %vm8784_vm6, %v8778_v17, %v8790_v45  ;;  %v8797_v49 = vsel %vm8785_vm8, %v8779_v23, %v8791_v18 }
 0x42f   : > { %v8799_v25 = vsel %vm8787_vm9, %v8781_v10, %v8793_v56  ;;  %v9540_v57 = vpack.c.bf16 %v8795_v59, %v8794_v30  ;;  %v9541_v14 = vpack.c.bf16 %v8797_v49, %v8796_v16 }
 0x430   : > { %v9542_v55 = vpack.c.bf16 %v8799_v25, %v8798_v50 }
 0x431   : > { %8820 = vst [vmem:[%s4332_s9] sm:$0xff] %v9540_v57  ;;  %8821 = vst [vmem:[%s4332_s9 + $0x8] sm:$0xff] %v9541_v14 }
 0x432   : > { %8822 = vst [vmem:[%s4332_s9 + $0x10] sm:$0xff] %v9542_v55 }
 0x438   : > { %v8866_v42 = vld [vmem:[%s4332_s9] sm:$0xff]  ;;  %v8868_v52 = vld [vmem:[%s4332_s9 + $0x8] sm:$0xff] }
 0x439   : > { %v8870_v61 = vld [vmem:[%s4332_s9 + $0x10] sm:$0xff]  ;;  %8867 = vst [vmem:[%s8834_s21] sm:$0xff] %v8866_v42  ;;  %8869 = vst [vmem:[%s8834_s21 + $0x10] sm:$0xff] %v8868_v52 }
 0x43a   : > { %8871 = vst [vmem:[%s8834_s21 + $0x20] sm:$0xff] %v8870_v61 }
 0x43b PF: > { %s12_s17 = sadd.s32 1, %s10628_s17   ;;  %s12706_s9 = smov %s10600_s10 }
 0x43c   : > { %p9_p1 = scmp.ge.s32.totalorder %s12_s17, 6   ;;  %s12707_s10 = smov %s10722_s29 }
 0x43d   : > { %s12708_s11 = smov %s10608_s12  ;;  %s12709_s12 = smov %s10719_s28 }
 0x43e   : > { %s12710_s13 = smov %s10620_s15  ;;  %s12711_s14 = smov %s10624_s16 }
 0x43f   : > { %s12712_s15 = smov %s12715_s18  ;;  %s12713_s16 = smov %s12719_s19 }
 0x440   :  { %11 = sbr.rel (!%p9_p1) target bundleno = 5 (0x5), region = 162 }

// kernel: discriminator_forward.9
= control target key start
LH: loop header
LB: loop body
LE: loop exit
PB: predicated region body
PF: predicated region fallthrough
CT: control target
= control target key end

     0   :  { %s9207_s9 = smov 0   ;;  %s9209_s10 = smov 0   ;;  %s11647_s0 = inlined_call_operand.vmem [shape: bf16[2,64,512], index: 0, kind: input, shape index: {}]   ;;  %s11648_s1 = inlined_call_operand.vmem [shape: bf16[8192,128], index: 1, kind: input, shape index: {}]   ;;  %s11649_s2 = inlined_call_operand.vmem [shape: f32[2,32,128], index: 2, kind: output, shape index: {}]  }
   0x1   :  { %s9211_s11 = smov 0  }
   0x2 LB: > { %s21_s12 = sadd.s32 1, %s9186_s10  ;;  %p7043_p0 = scmp.ge.s32.totalorder %s9190_s11, 1  ;;  %s9190_s11 = sphi %s9211_s11, %s12_s11   ;;  %s9186_s10 = sphi %s9209_s10, %s11651_s10   ;;  %s9182_s9 = sphi %s9207_s9, %s11650_s9  }
   0x3   : > { %p22_p1 = scmp.ge.s32.totalorder %s21_s12, 2  ;;  %p135_p2 = scmp.lt.s32.totalorder %s9190_s11, 3 }
   0x5   : > { %s11653_s12 = smov (%p22_p1, %s21_s12), 0  ;;  %p136_p3 = pnand %p7043_p0, %p135_p2 }
   0x6   : > { %v8564_v0 = vld [vmem:[%s11648_s1 + $0x40] sm:$0xff] (!%p136_p3)   ;;  %v8568_v4 = vld [vmem:[%s11648_s1 + $0x48] sm:$0xff] (!%p136_p3)   ;;  %v8572_v8 = vld [vmem:[%s11648_s1 + $0x50] sm:$0xff] (!%p136_p3)   ;;  %p164_p4 = scmp.lt.s32.totalorder (!%p136_p3), %s9182_s9, 1  ;;  %vm278_vm0 = vsmask.f32 (!%p136_p3), 7424 }
   0x7   : > { %139 = sbr.rel (%p136_p3) target bundleno = 759 (0x2f7), region = 28  ;;  %v8565_v1 = vld [vmem:[%s11648_s1 + $0xc0] sm:$0xff] (!%p136_p3)   ;;  %7644 = vmatprep.subr.bf16.mxu0 (!%p136_p3), %v8564_v0  ;;  %v8569_v5 = vld [vmem:[%s11648_s1 + $0xc8] sm:$0xff] (!%p136_p3)   ;;  %v8573_v9 = vld [vmem:[%s11648_s1 + $0xd0] sm:$0xff] (!%p136_p3)   ;;  %vm377_vm1 = vcmask (!%p136_p3), 1046528  }
   0x8   : > { %v8566_v2 = vld [vmem:[%s11648_s1] sm:$0xff] (!%p136_p3)   ;;  %7672 = vmatprep.subr.bf16.mxu1 (!%p136_p3), %v8565_v1  ;;  %v8570_v6 = vld [vmem:[%s11648_s1 + $0x8] sm:$0xff] (!%p136_p3)   ;;  %v8574_v10 = vld [vmem:[%s11648_s1 + $0x10] sm:$0xff] (!%p136_p3)   ;;  %vm416_vm2 = vsmask.f32 (!%p136_p3), 6400 }
   0x9   : > { %v8567_v3 = vld [vmem:[%s11648_s1 + $0x80] sm:$0xff] (!%p136_p3)   ;;  %7645 = vmatpush3.bf16.msra.mxu0 (!%p136_p3), %v8566_v2  ;;  %v8571_v7 = vld [vmem:[%s11648_s1 + $0x88] sm:$0xff] (!%p136_p3)   ;;  %v8575_v11 = vld [vmem:[%s11648_s1 + $0x90] sm:$0xff] (!%p136_p3)  }
   0xa   : > { %7673 = vmatpush3.bf16.msra.mxu1 (!%p136_p3), %v8567_v3  ;;  %7646 = vmatprep.subr.bf16.mxu0 (!%p136_p3), %v8568_v4  ;;  %v8576_v12 = vld [vmem:[%s11648_s1 + $0x58] sm:$0xff] (!%p136_p3)   ;;  %v8580_v16 = vld [vmem:[%s11648_s1 + $0x60] sm:$0xff] (!%p136_p3)   ;;  %v8584_v20 = vld [vmem:[%s11648_s1 + $0x68] sm:$0xff] (!%p136_p3)  }
   0xb   : > { %7674 = vmatprep.subr.bf16.mxu1 (!%p136_p3), %v8569_v5  ;;  %v8577_v13 = vld [vmem:[%s11648_s1 + $0xd8] sm:$0xff] (!%p136_p3)   ;;  %v8581_v17 = vld [vmem:[%s11648_s1 + $0xe0] sm:$0xff] (!%p136_p3)   ;;  %v8585_v21 = vld [vmem:[%s11648_s1 + $0xe8] sm:$0xff] (!%p136_p3)  }
   0xc   : > { %v8578_v14 = vld [vmem:[%s11648_s1 + $0x18] sm:$0xff] (!%p136_p3)   ;;  %v8582_v18 = vld [vmem:[%s11648_s1 + $0x20] sm:$0xff] (!%p136_p3)   ;;  %v8586_v22 = vld [vmem:[%s11648_s1 + $0x28] sm:$0xff] (!%p136_p3)  }
   0xd   : > { %7647 = vmatpush3.bf16.msra.mxu0 (!%p136_p3), %v8570_v6  ;;  %v8579_v15 = vld [vmem:[%s11648_s1 + $0x98] sm:$0xff] (!%p136_p3)   ;;  %v8583_v19 = vld [vmem:[%s11648_s1 + $0xa0] sm:$0xff] (!%p136_p3)   ;;  %v8587_v23 = vld [vmem:[%s11648_s1 + $0xa8] sm:$0xff] (!%p136_p3)  }
   0xe   : > { %7675 = vmatpush3.bf16.msra.mxu1 %v8571_v7  ;;  %7648 = vmatprep.subr.bf16.mxu0 %v8572_v8  ;;  %s11655_s9 = smov (!%p164_p4, %s9182_s9), 1  ;;  %v8588_v24 = vld [vmem:[%s11648_s1 + $0x70] sm:$0xff]   ;;  %v8592_v28 = vld [vmem:[%s11648_s1 + $0x78] sm:$0xff]   ;;  %v8600_v40 = vld [vmem:[%s11648_s1 + $0x140] sm:$0xff]  }
   0xf   : > { %7676 = vmatprep.subr.bf16.mxu1 %v8573_v9  ;;  %v8589_v25 = vld [vmem:[%s11648_s1 + $0xf0] sm:$0xff]   ;;  %s7642_s19 = sshll.u32 %s11655_s9, 7  ;;  %v8593_v29 = vld [vmem:[%s11648_s1 + $0xf8] sm:$0xff]   ;;  %v8601_v41 = vld [vmem:[%s11648_s1 + $0x1c0] sm:$0xff]  }
  0x10   : > { %v8590_v26 = vld [vmem:[%s11648_s1 + $0x30] sm:$0xff]   ;;  %s9325_s28 = scalar_lea.vmem %s11647_s0, %s7642_s19  ;;  %v8594_v30 = vld [vmem:[%s11648_s1 + $0x38] sm:$0xff]   ;;  %v8602_v42 = vld [vmem:[%s11648_s1 + $0x100] sm:$0xff]  }
  0x11   : > { %7649 = vmatpush3.bf16.msra.mxu0 %v8574_v10  ;;  %v8591_v27 = vld [vmem:[%s11648_s1 + $0xb0] sm:$0xff]   ;;  %v8595_v31 = vld [vmem:[%s11648_s1 + $0xb8] sm:$0xff]   ;;  %v182_v32 = vld [vmem:[%s9325_s28] sm:$0xff] }
  0x12   : > { %7677 = vmatpush3.bf16.msra.mxu1 %v8575_v11  ;;  %7650 = vmatprep.subr.bf16.mxu0 %v8576_v12  ;;  %v9335_v33 = vld [vmem:[%s9325_s28 + $0x10] sm:$0xff]  ;;  %v183_v34 = vld [vmem:[%s9325_s28 + $0x8] sm:$0xff]  ;;  %v9342_v36 = vld [vmem:[%s9325_s28 + $0x18] sm:$0xff] }
  0x13   : > { %7678 = vmatprep.subr.bf16.mxu1 %v8577_v13  ;;  %v9339_v35 = vcombine.high %v182_v32, %v9335_v33  ;;  %v9345_v37 = vcombine.low %v182_v32, %v9335_v33  ;;  %v9348_v38 = vcombine.high %v183_v34, %v9342_v36  ;;  %v9351_v39 = vcombine.low %v183_v34, %v9342_v36  ;;  %v8603_v43 = vld [vmem:[%s11648_s1 + $0x180] sm:$0xff]   ;;  %v8604_v44 = vld [vmem:[%s11648_s1 + $0x148] sm:$0xff]   ;;  %v8608_v48 = vld [vmem:[%s11648_s1 + $0x150] sm:$0xff]  }
  0x14   : > { %v8605_v45 = vld [vmem:[%s11648_s1 + $0x1c8] sm:$0xff]   ;;  %v8609_v49 = vld [vmem:[%s11648_s1 + $0x1d0] sm:$0xff]   ;;  %v8612_v52 = vld [vmem:[%s11648_s1 + $0x158] sm:$0xff]  }
  0x15   : > { %7651 = vmatpush3.bf16.msra.mxu0 %v8578_v14  ;;  %5405 = vmatprep.mubr.bf16.mxu0 %v9339_v35  ;;  %v8606_v46 = vld [vmem:[%s11648_s1 + $0x108] sm:$0xff]   ;;  %v8610_v50 = vld [vmem:[%s11648_s1 + $0x110] sm:$0xff]   ;;  %v8613_v53 = vld [vmem:[%s11648_s1 + $0x1d8] sm:$0xff]   ;;  %v294_v55 = vshll.u32 %v9339_v35, 16  ;;  %v280_v57 = vshrl.u32 %v9345_v37, 16  ;;  %v282_v59 = vshll.u32 %v9345_v37, 16 }
  0x16   : > { %7679 = vmatpush3.bf16.msra.mxu1 %v8579_v15  ;;  %7652 = vmatprep.subr.bf16.mxu0 %v8580_v16  ;;  %v8607_v47 = vld [vmem:[%s11648_s1 + $0x188] sm:$0xff]   ;;  %v8611_v51 = vld [vmem:[%s11648_s1 + $0x190] sm:$0xff]   ;;  %v8614_v54 = vld [vmem:[%s11648_s1 + $0x118] sm:$0xff]   ;;  %v318_v61 = vshll.u32 %v9348_v38, 16  ;;  %v306_v63 = vshll.u32 %v9351_v39, 16  ;;  %v292_v2 = vshrl.u32 %v9339_v35, 16 }
  0x17   : > { %7680 = vmatprep.subr.bf16.mxu1 %v8581_v17  ;;  %5454 = vmatprep.mubr.bf16.mxu1 %v9348_v38  ;;  %v8615_v56 = vld [vmem:[%s11648_s1 + $0x198] sm:$0xff]   ;;  %v8616_v58 = vld [vmem:[%s11648_s1 + $0x160] sm:$0xff]   ;;  %v8620_v1 = vld [vmem:[%s11648_s1 + $0x168] sm:$0xff]   ;;  %v296_v4 = vrot.slane %v294_v55, 1  ;;  %v304_v5 = vshrl.u32 %v9351_v39, 16  ;;  %v316_v9 = vshrl.u32 %v9348_v38, 16 }
  0x18   : > { %v8617_v60 = vld [vmem:[%s11648_s1 + $0x1e0] sm:$0xff]   ;;  %v8621_v3 = vld [vmem:[%s11648_s1 + $0x1e8] sm:$0xff]   ;;  %v188_v7 = vld [vmem:[%s9325_s28 + $0x30] sm:$0xff]  ;;  %v320_v10 = vrot.slane %v318_v61, 1  ;;  %v284_v11 = vrot.slane %v282_v59, 1  ;;  %v308_v15 = vrot.slane %v306_v63, 1 }
  0x19   : > { %7653 = vmatpush3.bf16.msra.mxu0 %v8582_v18  ;;  %v8618_v62 = vld [vmem:[%s11648_s1 + $0x120] sm:$0xff]   ;;  %v187_v8 = vld [vmem:[%s9325_s28 + $0x28] sm:$0xff]  ;;  %v189_v13 = vld [vmem:[%s9325_s28 + $0x38] sm:$0xff] }
  0x1a   : > { %7681 = vmatpush3.bf16.msra.mxu1 %v8583_v19  ;;  %7654 = vmatprep.subr.bf16.mxu0 %v8584_v20  ;;  %v8619_v0 = vld [vmem:[%s11648_s1 + $0x1a0] sm:$0xff]   ;;  %v9439_v16 = vcombine.high %v187_v8, %v189_v13  ;;  %v8624_v17 = vld [vmem:[%s11648_s1 + $0x128] sm:$0xff]   ;;  %v9444_v18 = vcombine.low %v187_v8, %v189_v13  ;;  %v297_v20 = vor.u32 %v296_v4, %v292_v2  ;;  %v8632_v32 = vld [vmem:[%s11648_s1 + $0x178] sm:$0xff]  }
  0x1b   : > { %7682 = vmatprep.subr.bf16.mxu1 %v8585_v21  ;;  %v186_v6 = vld [vmem:[%s9325_s28 + $0x20] sm:$0xff]  ;;  %v8625_v19 = vld [vmem:[%s11648_s1 + $0x1a8] sm:$0xff]   ;;  %v285_v35 = vor.u32 %v284_v11, %v280_v57  ;;  %v8633_v38 = vld [vmem:[%s11648_s1 + $0x1f8] sm:$0xff]  }
  0x1c   : > { %v9434_v12 = vcombine.high %v186_v6, %v188_v7  ;;  %v9437_v14 = vcombine.low %v186_v6, %v188_v7  ;;  %v351_v55 = vshrl.u32 %v9439_v16, 16  ;;  %v190_v57 = vld [vmem:[%s9325_s28 + $0x40] sm:$0x11]  ;;  %v8646_v61 = vld [vmem:[%s11648_s1 + $0x250] sm:$0xff]  }
  0x1d   : > { %7655 = vmatpush3.bf16.msra.mxu0 %v8586_v22  ;;  %v8628_v22 = vld [vmem:[%s11648_s1 + $0x170] sm:$0xff]   ;;  %v9522_v59 = vcombine.high %v190_v57, %v190_v57 }
  0x1e   : > { %7683 = vmatpush3.bf16.msra.mxu1 %v8587_v23  ;;  %7656 = vmatprep.subr.bf16.mxu0 %v8588_v24  ;;  %v299_v21 = vshll.u32 %v9434_v12, 16  ;;  %v321_v23 = vor.u32 %v320_v10, %v316_v9  ;;  %v323_v24 = vshll.u32 %v9439_v16, 16  ;;  %v8649_v7 = vld [vmem:[%s11648_s1 + $0x210] sm:$0xff]  }
  0x1f   : > { %7684 = vmatprep.subr.bf16.mxu1 %v8589_v25  ;;  %v8629_v25 = vld [vmem:[%s11648_s1 + $0x1f0] sm:$0xff]   ;;  %v339_v2 = vshll.u32 %v9522_v59, 16 }
  0x20   : > { %v8650_v13 = vld [vmem:[%s11648_s1 + $0x290] sm:$0xff]  }
  0x21   : > { %7657 = vmatpush3.bf16.msra.mxu0 %v8590_v26  ;;  %v301_v26 = vrot.slane %v299_v21, 1  ;;  %v341_v9 = vrot.slane %v339_v2, 1  ;;  %v192_v2 = vld [vmem:[%s9325_s28] sm:$0xee] }
  0x22   : > { %7685 = vmatpush3.bf16.msra.mxu1 %v8591_v27  ;;  %7658 = vmatprep.subr.bf16.mxu0 %v8592_v28  ;;  %v8630_v27 = vld [vmem:[%s11648_s1 + $0x130] sm:$0xff]   ;;  %v325_v28 = vrot.slane %v323_v24, 1 }
  0x23   : > { %7686 = vmatprep.subr.bf16.mxu1 %v8593_v29  ;;  %v8631_v29 = vld [vmem:[%s11648_s1 + $0x1b0] sm:$0xff]  }
  0x24   : > { %v326_v34 = vsel %vm278_vm0, %v321_v23, %v325_v28  ;;  %v9549_v6 = vor.u32 %v351_v55, %v325_v28 }
  0x25   : > { %7659 = vmatpush3.bf16.msra.mxu0 %v8594_v30  ;;  %v302_v30 = vsel %vm278_vm0, %v297_v20, %v301_v26 }
  0x26   : > { %7687 = vmatpush3.bf16.msra.mxu1 %v8595_v31  ;;  %7700 = vmatprep.subr.bf16.mxu0 %v8600_v40  ;;  %v287_v31 = vshll.u32 %v9437_v14, 16  ;;  %v309_v40 = vor.u32 %v308_v15, %v304_v5 }
  0x27   : > { %7728 = vmatprep.subr.bf16.mxu1 %v8601_v41  ;;  %v8634_v41 = vld [vmem:[%s11648_s1 + $0x138] sm:$0xff]  }
  0x28   : > { %5406 = vmatmul.mubr.bf16.vlgmr.msra.gmra.mrb[0].mxu0 %v9345_v37  ;;  %v311_v37 = vshll.u32 %v9444_v18, 16 }
  0x29   : > { %5455 = vmatmul.mubr.bf16.vlgmr.msra.gmra.mrb[0].mxu1 %v9351_v39  ;;  %7701 = vmatpush3.bf16.msra.mxu0 %v8602_v42  ;;  %v289_v39 = vrot.slane %v287_v31, 1 }
  0x2a   : > { %7729 = vmatpush3.bf16.msra.mxu1 %v8603_v43  ;;  %7702 = vmatprep.subr.bf16.mxu0 %v8604_v44  ;;  %v313_v42 = vrot.slane %v311_v37, 1  ;;  %v8635_v43 = vld [vmem:[%s11648_s1 + $0x1b8] sm:$0xff]  }
  0x2b   : > { %7730 = vmatprep.subr.bf16.mxu1 %v8605_v45  ;;  %5413 = vmatprep.mubr.bf16.mxu0 %v9434_v12  ;;  %v290_v44 = vsel %vm278_vm0, %v285_v35, %v289_v39  ;;  %v8636_v45 = vld [vmem:[%s11648_s1 + $0x240] sm:$0xff]  }
  0x2c   : > { %5462 = vmatprep.mubr.bf16.mxu1 %v9439_v16  ;;  %v8659_v35 = vld [vmem:[%s11648_s1 + $0x2a0] sm:$0xff]  }
  0x2d   : > { %7703 = vmatpush3.bf16.msra.mxu0 %v8606_v46  ;;  %v314_v46 = vsel %vm278_vm0, %v309_v40, %v313_v42  ;;  %v382_v40 = vrot.slane %v9434_v12, 1 }
  0x2e   : > { %7731 = vmatpush3.bf16.msra.mxu1 %v8607_v47  ;;  %7704 = vmatprep.subr.bf16.mxu0 %v8608_v48  ;;  %v8637_v47 = vld [vmem:[%s11648_s1 + $0x2c0] sm:$0xff]  }
  0x2f   : > { %7732 = vmatprep.subr.bf16.mxu1 %v8609_v49  ;;  %v8638_v48 = vld [vmem:[%s11648_s1 + $0x200] sm:$0xff]  }
  0x30   : > { %5414 = vmatmul.mubr.bf16.gmra.mrb[4].mxu0 %v9437_v14  ;;  %v8639_v49 = vld [vmem:[%s11648_s1 + $0x280] sm:$0xff]  }
  0x31   : > { %7705 = vmatpush3.bf16.msra.mxu0 %v8610_v50  ;;  %5463 = vmatmul.mubr.bf16.gmra.mrb[4].mxu1 %v9444_v18  ;;  %v8640_v50 = vld [vmem:[%s11648_s1 + $0x248] sm:$0xff]  }
  0x32   : > { %7733 = vmatpush3.bf16.msra.mxu1 %v8611_v51  ;;  %7706 = vmatprep.subr.bf16.mxu0 %v8612_v52  ;;  %v335_v51 = vshrl.u32 %v9434_v12, 16  ;;  %v8641_v52 = vld [vmem:[%s11648_s1 + $0x2c8] sm:$0xff]  }
  0x33   : > { %7734 = vmatprep.subr.bf16.mxu1 %v8613_v53  ;;  %5503 = vmatprep.mubr.bf16.mxu0 %v302_v30  ;;  %v327_v53 = vshrl.u32 %v9437_v14, 16  ;;  %v8656_v30 = vld [vmem:[%s11648_s1 + $0x260] sm:$0xff]  }
  0x34   : > { %5552 = vmatprep.mubr.bf16.mxu1 %v326_v34  ;;  %v8658_v34 = vld [vmem:[%s11648_s1 + $0x220] sm:$0xff]  }
  0x35   : > { %7707 = vmatpush3.bf16.msra.mxu0 %v8614_v54  ;;  %v8642_v54 = vld [vmem:[%s11648_s1 + $0x208] sm:$0xff]   ;;  %v9535_v63 = vor.u32 %v327_v53, %v289_v39 }
  0x36   : > { %7735 = vmatpush3.bf16.msra.mxu1 %v8615_v56  ;;  %7708 = vmatprep.subr.bf16.mxu0 %v8616_v58  ;;  %v8643_v56 = vld [vmem:[%s11648_s1 + $0x288] sm:$0xff]   ;;  %v343_v58 = vshrl.u32 %v9444_v18, 16 }
  0x37   : > { %7736 = vmatprep.subr.bf16.mxu1 %v8617_v60  ;;  %v9524_v60 = vcombine.low %v190_v57, %v190_v57  ;;  %v8661_v39 = vld [vmem:[%s11648_s1 + $0x2e8] sm:$0xff]   ;;  %v8669_v57 = vld [vmem:[%s11648_s1 + $0x2f8] sm:$0xff]  }
  0x38   : > { %v9556_v8 = vor.u32 %v343_v58, %v313_v42  ;;  %v388_v42 = vrot.slane %v9439_v16, 1 }
  0x39   : > { %7709 = vmatpush3.bf16.msra.mxu0 %v8618_v62  ;;  %v9531_v62 = vor.u32 %v335_v51, %v301_v26  ;;  %v8654_v26 = vld [vmem:[%s11648_s1 + $0x218] sm:$0xff]  }
  0x3a   : > { %7737 = vmatpush3.bf16.msra.mxu1 %v8619_v0  ;;  %7710 = vmatprep.subr.bf16.mxu0 %v8620_v1  ;;  %v8647_v0 = vld [vmem:[%s11648_s1 + $0x2d0] sm:$0xff]   ;;  %v191_v1 = vld [vmem:[%s9325_s28 + $0x48] sm:$0x11] }
  0x3b   : > { %7738 = vmatprep.subr.bf16.mxu1 %v8621_v3  ;;  %v331_v3 = vshll.u32 %v9524_v60, 16  ;;  %v9543_v4 = vcombine.high %v191_v1, %v191_v1  ;;  %v9545_v5 = vcombine.low %v191_v1, %v191_v1  ;;  %v8671_v1 = vld [vmem:[%s11648_s1 + $0x2b8] sm:$0xff]  }
  0x3d   : > { %7711 = vmatpush3.bf16.msra.mxu0 %v8624_v17  ;;  %v333_v10 = vrot.slane %v331_v3, 1  ;;  %v355_v11 = vshll.u32 %v9543_v4, 16  ;;  %v347_v15 = vshll.u32 %v9545_v5, 16  ;;  %v8652_v17 = vld [vmem:[%s11648_s1 + $0x258] sm:$0xff]   ;;  %v461_v3 = vrot.slane %v351_v55, 1 }
  0x3e   : > { %7739 = vmatpush3.bf16.msra.mxu1 %v8625_v19  ;;  %7712 = vmatprep.subr.bf16.mxu0 %v8628_v22  ;;  %v342_v19 = vsel %vm278_vm0, %v9531_v62, %v341_v9  ;;  %v193_v9 = vld [vmem:[%s9325_s28 + $0x8] sm:$0xee] }
  0x3f   : > { %7740 = vmatprep.subr.bf16.mxu1 %v8629_v25  ;;  %v334_v20 = vsel %vm278_vm0, %v9535_v63, %v333_v10  ;;  %v357_v22 = vrot.slane %v355_v11, 1  ;;  %v349_v23 = vrot.slane %v347_v15, 1  ;;  %v8653_v25 = vld [vmem:[%s11648_s1 + $0x2d8] sm:$0xff]   ;;  %v9654_v10 = vcombine.low %v193_v9, %v9342_v36  ;;  %v8676_v11 = vld [vmem:[%s11648_s1 + $0x340] sm:$0xff]  }
  0x41   : > { %7713 = vmatpush3.bf16.msra.mxu0 %v8630_v27  ;;  %v358_v27 = vsel %vm278_vm0, %v9549_v6, %v357_v22  ;;  %v350_v28 = vsel %vm278_vm0, %v9556_v8, %v349_v23  ;;  %v8679_v22 = vld [vmem:[%s11648_s1 + $0x380] sm:$0xff]  }
  0x42   : > { %7741 = vmatpush3.bf16.msra.mxu1 %v8631_v29  ;;  %7714 = vmatprep.subr.bf16.mxu0 %v8632_v32  ;;  %v8655_v29 = vld [vmem:[%s11648_s1 + $0x298] sm:$0xff]   ;;  %v8657_v32 = vld [vmem:[%s11648_s1 + $0x2e0] sm:$0xff]  }
  0x43   : > { %7742 = vmatprep.subr.bf16.mxu1 %v8633_v38  ;;  %v8660_v38 = vld [vmem:[%s11648_s1 + $0x268] sm:$0xff]  }
  0x45   : > { %7715 = vmatpush3.bf16.msra.mxu0 %v8634_v41  ;;  %v8662_v41 = vld [vmem:[%s11648_s1 + $0x228] sm:$0xff]  }
  0x46   : > { %7743 = vmatpush3.bf16.msra.mxu1 %v8635_v43  ;;  %7756 = vmatprep.subr.bf16.mxu0 %v8636_v45  ;;  %v8663_v43 = vld [vmem:[%s11648_s1 + $0x2a8] sm:$0xff]   ;;  %v8664_v45 = vld [vmem:[%s11648_s1 + $0x270] sm:$0xff]  }
  0x47   : > { %7784 = vmatprep.subr.bf16.mxu1 %v8637_v47  ;;  %v8665_v47 = vld [vmem:[%s11648_s1 + $0x2f0] sm:$0xff]  }
  0x48   : > { %5504 = vmatmul.mubr.bf16.vlgmr.msra.gmra.mrb[8].mxu0 %v290_v44  ;;  %v379_v44 = vrot.slane %v9437_v14, 1 }
  0x49   : > { %5553 = vmatmul.mubr.bf16.vlgmr.msra.gmra.mrb[8].mxu1 %v314_v46  ;;  %7757 = vmatpush3.bf16.msra.mxu0 %v8638_v48  ;;  %v385_v46 = vrot.slane %v9444_v18, 1  ;;  %v9619_v48 = vrot.slane %v335_v51, 1  ;;  %v8668_v51 = vld [vmem:[%s11648_s1 + $0x278] sm:$0xff]  }
  0x4a   : > { %7785 = vmatpush3.bf16.msra.mxu1 %v8639_v49  ;;  %7758 = vmatprep.subr.bf16.mxu0 %v8640_v50  ;;  %v8666_v49 = vld [vmem:[%s11648_s1 + $0x230] sm:$0xff]   ;;  %v392_v50 = vrot.slane %v9522_v59, 1  ;;  %v394_v59 = vrot.slane %v9545_v5, 1  ;;  %v8690_v5 = vld [vmem:[%s11648_s1 + $0x318] sm:$0xff]  }
  0x4b   : > { %7786 = vmatprep.subr.bf16.mxu1 %v8641_v52  ;;  %5511 = vmatprep.mubr.bf16.mxu0 %v342_v19  ;;  %v8667_v52 = vld [vmem:[%s11648_s1 + $0x2b0] sm:$0xff]   ;;  %v384_v19 = vrot.slane %v9654_v10, 1 }
  0x4c   : > { %5560 = vmatprep.mubr.bf16.mxu1 %v358_v27  ;;  %v8680_v27 = vld [vmem:[%s11648_s1 + $0x348] sm:$0xff]  }
  0x4d   : > { %7759 = vmatpush3.bf16.msra.mxu0 %v8642_v54  ;;  %v390_v54 = vrot.slane %v9524_v60, 1  ;;  %v395_v60 = vsel %vm377_vm1, %v385_v46, %v394_v59  ;;  %v8691_v59 = vld [vmem:[%s11648_s1 + $0x398] sm:$0xff]  }
  0x4e   : > { %7787 = vmatpush3.bf16.msra.mxu1 %v8643_v56  ;;  %7760 = vmatprep.subr.bf16.mxu0 %v8646_v61  ;;  %v396_v56 = vrot.slane %v9543_v4, 1  ;;  %v8670_v61 = vld [vmem:[%s11648_s1 + $0x238] sm:$0xff]   ;;  %v9649_v4 = vcombine.low %v192_v2, %v9335_v33 }
  0x4f   : > { %7788 = vmatprep.subr.bf16.mxu1 %v8647_v0  ;;  %v438_v0 = vrot.slane %v299_v21, 2  ;;  %v7063_v21 = vcombine.high %v193_v9, %v9342_v36  ;;  %v8695_v9 = vld [vmem:[%s11648_s1 + $0x3a0] sm:$0xff]  }
  0x50   : > { %5512 = vmatmul.mubr.bf16.gmra.mrb[12].mxu0 %v334_v20  ;;  %v378_v15 = vrot.slane %v9649_v4, 1 }
  0x51   : > { %7761 = vmatpush3.bf16.msra.mxu0 %v8649_v7  ;;  %5561 = vmatmul.mubr.bf16.gmra.mrb[12].mxu1 %v350_v28  ;;  %v7061_v7 = vcombine.high %v192_v2, %v9335_v33  ;;  %v8677_v33 = vld [vmem:[%s11648_s1 + $0x3c0] sm:$0xff]   ;;  %v387_v36 = vrot.slane %v7063_v21, 1  ;;  %v449_v2 = vrot.slane %v343_v58, 1  ;;  %v450_v58 = vrot.slane %v311_v37, 2 }
  0x52   : > { %7789 = vmatpush3.bf16.msra.mxu1 %v8650_v13  ;;  %7762 = vmatprep.subr.bf16.mxu0 %v8652_v17  ;;  %v462_v13 = vrot.slane %v323_v24, 2  ;;  %v8678_v17 = vld [vmem:[%s11648_s1 + $0x300] sm:$0xff]   ;;  %v380_v20 = vsel %vm377_vm1, %v378_v15, %v379_v44  ;;  %v442_v37 = vshrl.u32 %v9654_v10, 16  ;;  %v8699_v15 = vld [vmem:[%s11648_s1 + $0x3a8] sm:$0xff]  }
  0x53   : > { %7790 = vmatprep.subr.bf16.mxu1 %v8653_v25  ;;  %v381_v55 = vrot.slane %v7061_v7, 1  ;;  %v430_v23 = vshrl.u32 %v7061_v7, 16  ;;  %v389_v25 = vsel %vm377_vm1, %v387_v36, %v388_v42  ;;  %v433_v28 = vshll.u32 %v7061_v7, 16  ;;  %v8694_v7 = vld [vmem:[%s11648_s1 + $0x320] sm:$0xff]   ;;  %v8701_v36 = vld [vmem:[%s11648_s1 + $0x3f0] sm:$0xff]  }
  0x54   : > { %5650 = vmatprep.mubr.bf16.mxu1 %v389_v25  ;;  %v8705_v25 = vld [vmem:[%s11648_s1 + $0x3f8] sm:$0xff]  }
  0x55   : > { %7763 = vmatpush3.bf16.msra.mxu0 %v8654_v26  ;;  %v383_v24 = vsel %vm377_vm1, %v381_v55, %v382_v40  ;;  %v386_v26 = vsel %vm377_vm1, %v384_v19, %v385_v46  ;;  %v8698_v55 = vld [vmem:[%s11648_s1 + $0x328] sm:$0xff]  }
  0x56   : > { %7791 = vmatpush3.bf16.msra.mxu1 %v8655_v29  ;;  %7764 = vmatprep.subr.bf16.mxu0 %v8656_v30  ;;  %v8681_v29 = vld [vmem:[%s11648_s1 + $0x3c8] sm:$0xff]   ;;  %v393_v30 = vsel %vm377_vm1, %v382_v40, %v392_v50  ;;  %v8684_v40 = vld [vmem:[%s11648_s1 + $0x350] sm:$0xff]   ;;  %v391_v50 = vsel %vm377_vm1, %v379_v44, %v390_v54  ;;  %v8688_v44 = vld [vmem:[%s11648_s1 + $0x358] sm:$0xff]  }
  0x57   : > { %7792 = vmatprep.subr.bf16.mxu1 %v8657_v32  ;;  %5601 = vmatprep.mubr.bf16.mxu0 %v383_v24  ;;  %v432_v32 = vrot.slane %v430_v23, 1  ;;  %v8702_v24 = vld [vmem:[%s11648_s1 + $0x330] sm:$0xff]   ;;  %v8704_v23 = vld [vmem:[%s11648_s1 + $0x378] sm:$0xff]  }
  0x59   : > { %7765 = vmatpush3.bf16.msra.mxu0 %v8658_v34  ;;  %v8682_v34 = vld [vmem:[%s11648_s1 + $0x308] sm:$0xff]  }
  0x5a   : > { %7793 = vmatpush3.bf16.msra.mxu1 %v8659_v35  ;;  %7766 = vmatprep.subr.bf16.mxu0 %v8660_v38  ;;  %v397_v35 = vsel %vm377_vm1, %v388_v42, %v396_v56  ;;  %v435_v38 = vrot.slane %v433_v28, 2  ;;  %v9720_v56 = vor.u32 %v462_v13, %v461_v3  ;;  %v8693_v3 = vld [vmem:[%s11648_s1 + $0x3e0] sm:$0xff]   ;;  %v421_v13 = vshll.u32 %v9649_v4, 16 }
  0x5b   : > { %7794 = vmatprep.subr.bf16.mxu1 %v8661_v39  ;;  %v8683_v39 = vld [vmem:[%s11648_s1 + $0x388] sm:$0xff]  }
  0x5c   : > { %v436_v42 = vor.u32 %v435_v38, %v432_v32  ;;  %v423_v19 = vrot.slane %v421_v13, 2  ;;  %v9808_v32 = vor.u32 %v450_v58, %v449_v2  ;;  %v8722_v58 = vld [vmem:[%s11648_s1 + $0x490] sm:$0xff]  }
  0x5d   : > { %7767 = vmatpush3.bf16.msra.mxu0 %v8662_v41  ;;  %v454_v41 = vshrl.u32 %v7063_v21, 16 }
  0x5e   : > { %7795 = vmatpush3.bf16.msra.mxu1 %v8663_v43  ;;  %7768 = vmatprep.subr.bf16.mxu0 %v8664_v45  ;;  %v457_v43 = vshll.u32 %v7063_v21, 16  ;;  %v8685_v45 = vld [vmem:[%s11648_s1 + $0x3d0] sm:$0xff]   ;;  %v8696_v21 = vld [vmem:[%s11648_s1 + $0x368] sm:$0xff]  }
  0x5f   : > { %7796 = vmatprep.subr.bf16.mxu1 %v8665_v47  ;;  %v9710_v47 = vor.u32 %v438_v0, %v9619_v48  ;;  %v8687_v48 = vld [vmem:[%s11648_s1 + $0x390] sm:$0xff]   ;;  %v425_v0 = vrot.slane %v327_v53, 1  ;;  %v426_v53 = vrot.slane %v287_v31, 2  ;;  %v8697_v31 = vld [vmem:[%s11648_s1 + $0x3e8] sm:$0xff]  }
  0x61   : > { %7769 = vmatpush3.bf16.msra.mxu0 %v8666_v49  ;;  %v456_v49 = vrot.slane %v454_v41, 1  ;;  %v9803_v28 = vor.u32 %v426_v53, %v425_v0 }
  0x62   : > { %7797 = vmatpush3.bf16.msra.mxu1 %v8667_v52  ;;  %7770 = vmatprep.subr.bf16.mxu0 %v8668_v51  ;;  %v8686_v52 = vld [vmem:[%s11648_s1 + $0x310] sm:$0xff]   ;;  %v459_v51 = vrot.slane %v457_v43, 2  ;;  %v8712_v43 = vld [vmem:[%s11648_s1 + $0x448] sm:$0xff]  }
  0x63   : > { %7798 = vmatprep.subr.bf16.mxu1 %v8669_v57  ;;  %v8689_v57 = vld [vmem:[%s11648_s1 + $0x3d8] sm:$0xff]  }
  0x64   : > { %v460_v54 = vor.u32 %v459_v51, %v456_v49  ;;  %v8715_v49 = vld [vmem:[%s11648_s1 + $0x488] sm:$0xff]  }
  0x65   : > { %7771 = vmatpush3.bf16.msra.mxu0 %v8670_v61  ;;  %v440_v61 = vsel %vm416_vm2, %v436_v42, %v9710_v47  ;;  %v8714_v42 = vld [vmem:[%s11648_s1 + $0x408] sm:$0xff]  }
  0x66   : > { %7799 = vmatpush3.bf16.msra.mxu1 %v8671_v1  ;;  %7812 = vmatprep.subr.bf16.mxu0 %v8676_v11  ;;  %v464_v46 = vsel %vm416_vm2, %v460_v54, %v9720_v56  ;;  %v8692_v1 = vld [vmem:[%s11648_s1 + $0x360] sm:$0xff]   ;;  %v418_v11 = vshrl.u32 %v9649_v4, 16  ;;  %v8700_v4 = vld [vmem:[%s11648_s1 + $0x370] sm:$0xff]  }
  0x67   : > { %7840 = vmatprep.subr.bf16.mxu1 %v8677_v33  ;;  %v445_v33 = vshll.u32 %v9654_v10, 16  ;;  %v8703_v10 = vld [vmem:[%s11648_s1 + $0x3b0] sm:$0xff]  }
  0x68   : > { %5602 = vmatmul.mubr.bf16.vlgmr.msra.gmra.mrb[16].mxu0 %v380_v20  ;;  %v444_v20 = vrot.slane %v442_v37, 1 }
  0x69   : > { %5651 = vmatmul.mubr.bf16.vlgmr.msra.gmra.mrb[16].mxu1 %v386_v26  ;;  %7813 = vmatpush3.bf16.msra.mxu0 %v8678_v17  ;;  %v420_v17 = vrot.slane %v418_v11, 1  ;;  %v8706_v26 = vld [vmem:[%s11648_s1 + $0x338] sm:$0xff]  }
  0x6a   : > { %7841 = vmatpush3.bf16.msra.mxu1 %v8679_v22  ;;  %7814 = vmatprep.subr.bf16.mxu0 %v8680_v27  ;;  %v447_v22 = vrot.slane %v445_v33, 2 }
  0x6b   : > { %7842 = vmatprep.subr.bf16.mxu1 %v8681_v29  ;;  %5609 = vmatprep.mubr.bf16.mxu0 %v393_v30  ;;  %v424_v27 = vor.u32 %v423_v19, %v420_v17  ;;  %v8707_v29 = vld [vmem:[%s11648_s1 + $0x3b8] sm:$0xff]   ;;  %v9156_v17 = vld [vmem:[%s9325_s28 + $0x10] sm:$0xff] }
  0x6c   : > { %5658 = vmatprep.mubr.bf16.mxu1 %v397_v35  ;;  %v448_v30 = vor.u32 %v447_v22, %v444_v20  ;;  %v8709_v35 = vld [vmem:[%s11648_s1 + $0x4c0] sm:$0xff]   ;;  %v8726_v22 = vld [vmem:[%s11648_s1 + $0x418] sm:$0xff]  }
  0x6d   : > { %7815 = vmatpush3.bf16.msra.mxu0 %v8682_v34  ;;  %v8708_v34 = vld [vmem:[%s11648_s1 + $0x440] sm:$0xff]   ;;  %v428_v38 = vsel %vm416_vm2, %v424_v27, %v9803_v28  ;;  %v9158_v27 = vld [vmem:[%s9325_s28 + $0x18] sm:$0xff] }
  0x6e   : > { %7843 = vmatpush3.bf16.msra.mxu1 %v8683_v39  ;;  %7816 = vmatprep.subr.bf16.mxu0 %v8684_v40  ;;  %v8710_v39 = vld [vmem:[%s11648_s1 + $0x400] sm:$0xff]   ;;  %v452_v41 = vsel %vm416_vm2, %v448_v30, %v9808_v32 }
  0x6f   : > { %7844 = vmatprep.subr.bf16.mxu1 %v8685_v45  ;;  %v8711_v40 = vld [vmem:[%s11648_s1 + $0x480] sm:$0xff]   ;;  %v8713_v45 = vld [vmem:[%s11648_s1 + $0x4c8] sm:$0xff]  }
  0x70   : > { %5610 = vmatmul.mubr.bf16.gmra.mrb[20].mxu0 %v391_v50  ;;  %v194_v50 = vld [vmem:[%s9325_s28 + $0x40] sm:$0x33] }
  0x71   : > { %7817 = vmatpush3.bf16.msra.mxu0 %v8686_v52  ;;  %5659 = vmatmul.mubr.bf16.gmra.mrb[20].mxu1 %v395_v60  ;;  %v7065_v52 = vcombine.high %v194_v50, %v194_v50  ;;  %v7064_v51 = vcombine.low %v194_v50, %v194_v50  ;;  %v8719_v60 = vld [vmem:[%s11648_s1 + $0x4d0] sm:$0xff]   ;;  %v8728_v30 = vld [vmem:[%s11648_s1 + $0x460] sm:$0xff]   ;;  %v8740_v50 = vld [vmem:[%s11648_s1 + $0x478] sm:$0xff]  }
  0x72   : > { %7845 = vmatpush3.bf16.msra.mxu1 %v8687_v48  ;;  %7818 = vmatprep.subr.bf16.mxu0 %v8688_v44  ;;  %v8718_v48 = vld [vmem:[%s11648_s1 + $0x450] sm:$0xff]  }
  0x73   : > { %7846 = vmatprep.subr.bf16.mxu1 %v8689_v57  ;;  %5699 = vmatprep.mubr.bf16.mxu0 %v440_v61  ;;  %v475_v44 = vshrl.u32 %v7065_v52, 16  ;;  %v478_v54 = vshll.u32 %v7065_v52, 16  ;;  %v466_v57 = vshrl.u32 %v7064_v51, 16  ;;  %v469_v61 = vshll.u32 %v7064_v51, 16  ;;  %v8741_v52 = vld [vmem:[%s11648_s1 + $0x4f8] sm:$0xff]  }
  0x74   : > { %5748 = vmatprep.mubr.bf16.mxu1 %v464_v46  ;;  %v8742_v51 = vld [vmem:[%s11648_s1 + $0x438] sm:$0xff]  }
  0x75   : > { %7819 = vmatpush3.bf16.msra.mxu0 %v8690_v5  ;;  %v195_v5 = vld [vmem:[%s9325_s28 + $0x48] sm:$0x33]  ;;  %v480_v2 = vrot.slane %v478_v54, 2  ;;  %v8748_v54 = vld [vmem:[%s11648_s1 + $0x540] sm:$0xff]  }
  0x76   : > { %7847 = vmatpush3.bf16.msra.mxu1 %v8691_v59  ;;  %7820 = vmatprep.subr.bf16.mxu0 %v8692_v1  ;;  %v7067_v46 = vcombine.high %v195_v5, %v195_v5  ;;  %v8721_v59 = vld [vmem:[%s11648_s1 + $0x410] sm:$0xff]   ;;  %v7066_v0 = vcombine.low %v195_v5, %v195_v5  ;;  %v477_v1 = vrot.slane %v475_v44, 1  ;;  %v8750_v5 = vld [vmem:[%s11648_s1 + $0x500] sm:$0xff]  }
  0x77   : > { %7848 = vmatprep.subr.bf16.mxu1 %v8693_v3  ;;  %v468_v3 = vrot.slane %v466_v57, 1  ;;  %v8749_v57 = vld [vmem:[%s11648_s1 + $0x5c0] sm:$0xff]  }
  0x78   : > { %v493_v53 = vshrl.u32 %v7067_v46, 16  ;;  %v481_v11 = vor.u32 %v480_v2, %v477_v1  ;;  %v487_v13 = vshll.u32 %v7066_v0, 16  ;;  %v8753_v1 = vld [vmem:[%s11648_s1 + $0x5c8] sm:$0xff]  }
  0x79   : > { %7821 = vmatpush3.bf16.msra.mxu0 %v8694_v7  ;;  %v471_v7 = vrot.slane %v469_v61, 2 }
  0x7a   : > { %7849 = vmatpush3.bf16.msra.mxu1 %v8695_v9  ;;  %7822 = vmatprep.subr.bf16.mxu0 %v8696_v21  ;;  %v496_v9 = vshll.u32 %v7067_v46, 16  ;;  %v484_v21 = vshrl.u32 %v7066_v0, 16  ;;  %v495_v37 = vrot.slane %v493_v53, 1  ;;  %v8751_v46 = vld [vmem:[%s11648_s1 + $0x580] sm:$0xff]   ;;  %v8752_v0 = vld [vmem:[%s11648_s1 + $0x548] sm:$0xff]  }
  0x7b   : > { %7850 = vmatprep.subr.bf16.mxu1 %v8697_v31  ;;  %v472_v31 = vor.u32 %v471_v7, %v468_v3  ;;  %v8754_v3 = vld [vmem:[%s11648_s1 + $0x508] sm:$0xff]  }
  0x7c   : > { %v486_v33 = vrot.slane %v484_v21, 1  ;;  %v8755_v53 = vld [vmem:[%s11648_s1 + $0x588] sm:$0xff]  }
  0x7d   : > { %7823 = vmatpush3.bf16.msra.mxu0 %v8698_v55  ;;  %v8724_v55 = vld [vmem:[%s11648_s1 + $0x458] sm:$0xff]   ;;  %v473_v20 = vsel %vm416_vm2, %v9803_v28, %v472_v31  ;;  %v8758_v31 = vld [vmem:[%s11648_s1 + $0x550] sm:$0xff]  }
  0x7e   : > { %7851 = vmatpush3.bf16.msra.mxu1 %v8699_v15  ;;  %7824 = vmatprep.subr.bf16.mxu0 %v8700_v4  ;;  %v498_v15 = vrot.slane %v496_v9, 2  ;;  %v8725_v4 = vld [vmem:[%s11648_s1 + $0x4d8] sm:$0xff]   ;;  %v196_v9 = vld [vmem:[%s9325_s28 + $0x40] sm:$0xff] }
  0x7f   : > { %7852 = vmatprep.subr.bf16.mxu1 %v8701_v36  ;;  %v9860_v36 = vld [vmem:[%s9325_s28 + $0x20] sm:$0xff] }
  0x80   : > { %v9863_v19 = vcombine.high %v9156_v17, %v9860_v36 }
  0x81   : > { %7825 = vmatpush3.bf16.msra.mxu0 %v8702_v24  ;;  %v482_v24 = vsel %vm416_vm2, %v9710_v47, %v481_v11  ;;  %v9877_v47 = vld [vmem:[%s9325_s28 + $0x28] sm:$0xff] }
  0x82   : > { %7853 = vmatpush3.bf16.msra.mxu1 %v8703_v10  ;;  %7826 = vmatprep.subr.bf16.mxu0 %v8704_v23  ;;  %v489_v10 = vrot.slane %v487_v13, 2  ;;  %v499_v23 = vor.u32 %v498_v15, %v495_v37  ;;  %v9880_v28 = vcombine.high %v9158_v27, %v9877_v47  ;;  %v9940_v44 = vcombine.low %v9158_v27, %v9877_v47  ;;  %v8759_v13 = vld [vmem:[%s11648_s1 + $0x5d0] sm:$0xff]  }
  0x83   : > { %7854 = vmatprep.subr.bf16.mxu1 %v8705_v25  ;;  %v556_v61 = vshll.u32 %v9863_v19, 16  ;;  %v554_v2 = vshrl.u32 %v9863_v19, 16 }
  0x84   : > { %v490_v25 = vor.u32 %v489_v10, %v486_v33  ;;  %v578_v37 = vshrl.u32 %v9880_v28, 16  ;;  %v9161_v33 = vld [vmem:[%s9325_s28 + $0x38] sm:$0xff]  ;;  %v8762_v10 = vld [vmem:[%s11648_s1 + $0x590] sm:$0xff]  }
  0x85   : > { %7827 = vmatpush3.bf16.msra.mxu0 %v8706_v26  ;;  %v8727_v26 = vld [vmem:[%s11648_s1 + $0x498] sm:$0xff]   ;;  %v558_v7 = vrot.slane %v556_v61, 1  ;;  %v8778_v61 = vld [vmem:[%s11648_s1 + $0x530] sm:$0xff]  }
  0x86   : > { %7855 = vmatpush3.bf16.msra.mxu1 %v8707_v29  ;;  %7868 = vmatprep.subr.bf16.mxu0 %v8708_v34  ;;  %v500_v29 = vsel %vm416_vm2, %v9720_v56, %v499_v23  ;;  %v491_v34 = vsel %vm416_vm2, %v9808_v32, %v490_v25  ;;  %v8730_v56 = vld [vmem:[%s11648_s1 + $0x420] sm:$0xff]   ;;  %v8732_v32 = vld [vmem:[%s11648_s1 + $0x468] sm:$0xff]   ;;  %v8765_v25 = vld [vmem:[%s11648_s1 + $0x5d8] sm:$0xff]  }
  0x87   : > { %7896 = vmatprep.subr.bf16.mxu1 %v8709_v35  ;;  %v8729_v35 = vld [vmem:[%s11648_s1 + $0x4e0] sm:$0xff]  }
  0x88   : > { %5700 = vmatmul.mubr.bf16.vlgmr.msra.gmra.mrb[24].mxu0 %v428_v38  ;;  %v8731_v38 = vld [vmem:[%s11648_s1 + $0x4a0] sm:$0xff]  }
  0x89   : > { %5749 = vmatmul.mubr.bf16.vlgmr.msra.gmra.mrb[24].mxu1 %v452_v41  ;;  %7869 = vmatpush3.bf16.msra.mxu0 %v8710_v39  ;;  %v8733_v39 = vld [vmem:[%s11648_s1 + $0x4e8] sm:$0xff]  }
  0x8a   : > { %7897 = vmatpush3.bf16.msra.mxu1 %v8711_v40  ;;  %7870 = vmatprep.subr.bf16.mxu0 %v8712_v43  ;;  %v8734_v41 = vld [vmem:[%s11648_s1 + $0x428] sm:$0xff]   ;;  %v8736_v43 = vld [vmem:[%s11648_s1 + $0x470] sm:$0xff]  }
  0x8b   : > { %7898 = vmatprep.subr.bf16.mxu1 %v8713_v45  ;;  %5707 = vmatprep.mubr.bf16.mxu0 %v482_v24  ;;  %v8735_v40 = vld [vmem:[%s11648_s1 + $0x4a8] sm:$0xff]   ;;  %v8737_v45 = vld [vmem:[%s11648_s1 + $0x4f0] sm:$0xff]   ;;  %v559_v24 = vor.u32 %v558_v7, %v554_v2  ;;  %v8782_v7 = vld [vmem:[%s11648_s1 + $0x538] sm:$0xff]  }
  0x8c   : > { %5756 = vmatprep.mubr.bf16.mxu1 %v500_v29 }
  0x8d   : > { %7871 = vmatpush3.bf16.msra.mxu0 %v8714_v42  ;;  %v8738_v42 = vld [vmem:[%s11648_s1 + $0x430] sm:$0xff]  }
  0x8e   : > { %7899 = vmatpush3.bf16.msra.mxu1 %v8715_v49  ;;  %7872 = vmatprep.subr.bf16.mxu0 %v8718_v48  ;;  %v8739_v49 = vld [vmem:[%s11648_s1 + $0x4b0] sm:$0xff]   ;;  %v8743_v48 = vld [vmem:[%s11648_s1 + $0x4b8] sm:$0xff]  }
  0x8f   : > { %7900 = vmatprep.subr.bf16.mxu1 %v8719_v60  ;;  %v9937_v60 = vcombine.low %v9156_v17, %v9860_v36  ;;  %v8761_v17 = vld [vmem:[%s11648_s1 + $0x510] sm:$0xff]  }
  0x90   : > { %5708 = vmatmul.mubr.bf16.gmra.mrb[28].mxu0 %v473_v20 }
  0x91   : > { %7873 = vmatpush3.bf16.msra.mxu0 %v8721_v59  ;;  %5797 = vmatprep.mubr.bf16.mxu0 %v9863_v19  ;;  %v580_v59 = vshll.u32 %v9880_v28, 16 }
  0x92   : > { %7901 = vmatpush3.bf16.msra.mxu1 %v8722_v58  ;;  %7874 = vmatprep.subr.bf16.mxu0 %v8724_v55  ;;  %v9160_v58 = vld [vmem:[%s9325_s28 + $0x30] sm:$0xff]  ;;  %v197_v55 = vld [vmem:[%s9325_s28 + $0x48] sm:$0xff] }
  0x93   : > { %7902 = vmatprep.subr.bf16.mxu1 %v8725_v4  ;;  %5757 = vmatmul.mubr.bf16.gmra.mrb[28].mxu1 %v491_v34  ;;  %v9973_v21 = vcombine.high %v9160_v58, %v196_v9  ;;  %v9975_v11 = vcombine.low %v9160_v58, %v196_v9  ;;  %v582_v15 = vrot.slane %v580_v59, 1  ;;  %v9987_v4 = vcombine.high %v9161_v33, %v197_v55  ;;  %v8784_v58 = vld [vmem:[%s11648_s1 + $0x640] sm:$0xff]  }
  0x94   : > { %5846 = vmatprep.mubr.bf16.mxu1 %v9880_v28  ;;  %v9992_v19 = vcombine.low %v9161_v33, %v197_v55  ;;  %v8766_v28 = vld [vmem:[%s11648_s1 + $0x518] sm:$0xff]   ;;  %v8786_v55 = vld [vmem:[%s11648_s1 + $0x600] sm:$0xff]  }
  0x95   : > { %7875 = vmatpush3.bf16.msra.mxu0 %v8726_v22  ;;  %v561_v20 = vshll.u32 %v9973_v21, 16  ;;  %v8764_v22 = vld [vmem:[%s11648_s1 + $0x558] sm:$0xff]   ;;  %v585_v27 = vshll.u32 %v9987_v4, 16  ;;  %v597_v33 = vshrl.u32 %v9973_v21, 16 }
  0x96   : > { %7903 = vmatpush3.bf16.msra.mxu1 %v8727_v26  ;;  %7876 = vmatprep.subr.bf16.mxu0 %v8728_v30  ;;  %v583_v26 = vor.u32 %v582_v15, %v578_v37  ;;  %v8767_v30 = vld [vmem:[%s11648_s1 + $0x598] sm:$0xff]   ;;  %v8787_v37 = vld [vmem:[%s11648_s1 + $0x680] sm:$0xff]   ;;  %v8788_v15 = vld [vmem:[%s11648_s1 + $0x648] sm:$0xff]  }
  0x97   : > { %7904 = vmatprep.subr.bf16.mxu1 %v8729_v35  ;;  %v10005_v23 = vrot.slane %v561_v20, 1  ;;  %v10022_v34 = vrot.slane %v585_v27, 1  ;;  %v8768_v35 = vld [vmem:[%s11648_s1 + $0x560] sm:$0xff]  }
  0x99   : > { %7877 = vmatpush3.bf16.msra.mxu0 %v8730_v56  ;;  %v564_v29 = vsel %vm278_vm0, %v559_v24, %v10005_v23  ;;  %v8769_v56 = vld [vmem:[%s11648_s1 + $0x5e0] sm:$0xff]   ;;  %v589_v24 = vshrl.u32 %v9975_v11, 16 }
  0x9a   : > { %7905 = vmatpush3.bf16.msra.mxu1 %v8731_v38  ;;  %7878 = vmatprep.subr.bf16.mxu0 %v8732_v32  ;;  %v588_v38 = vsel %vm278_vm0, %v583_v26, %v10022_v34  ;;  %v8770_v32 = vld [vmem:[%s11648_s1 + $0x520] sm:$0xff]   ;;  %v605_v26 = vshrl.u32 %v9992_v19, 16 }
  0x9b   : > { %7906 = vmatprep.subr.bf16.mxu1 %v8733_v39  ;;  %v544_v39 = vshll.u32 %v9937_v60, 16 }
  0x9d   : > { %7879 = vmatpush3.bf16.msra.mxu0 %v8734_v41  ;;  %v8771_v41 = vld [vmem:[%s11648_s1 + $0x5a0] sm:$0xff]  }
  0x9e   : > { %7907 = vmatpush3.bf16.msra.mxu1 %v8735_v40  ;;  %7880 = vmatprep.subr.bf16.mxu0 %v8736_v43  ;;  %v568_v40 = vshll.u32 %v9940_v44, 16  ;;  %v8772_v43 = vld [vmem:[%s11648_s1 + $0x568] sm:$0xff]  }
  0x9f   : > { %7908 = vmatprep.subr.bf16.mxu1 %v8737_v45  ;;  %v542_v45 = vshrl.u32 %v9937_v60, 16 }
  0xa1   : > { %7881 = vmatpush3.bf16.msra.mxu0 %v8738_v42  ;;  %v8773_v42 = vld [vmem:[%s11648_s1 + $0x5e8] sm:$0xff]  }
  0xa2   : > { %7909 = vmatpush3.bf16.msra.mxu1 %v8739_v49  ;;  %7882 = vmatprep.subr.bf16.mxu0 %v8740_v50  ;;  %v566_v49 = vshrl.u32 %v9940_v44, 16  ;;  %v8774_v50 = vld [vmem:[%s11648_s1 + $0x528] sm:$0xff]  }
  0xa3   : > { %7910 = vmatprep.subr.bf16.mxu1 %v8741_v52  ;;  %v546_v52 = vrot.slane %v544_v39, 1  ;;  %v199_v39 = vld [vmem:[%s9325_s28 + $0x58] sm:$0x11] }
  0xa5   : > { %7883 = vmatpush3.bf16.msra.mxu0 %v8742_v51  ;;  %v8775_v51 = vld [vmem:[%s11648_s1 + $0x5a8] sm:$0xff]   ;;  %v547_v59 = vor.u32 %v546_v52, %v542_v45  ;;  %v8797_v45 = vld [vmem:[%s11648_s1 + $0x610] sm:$0xff]  }
  0xa6   : > { %7911 = vmatpush3.bf16.msra.mxu1 %v8743_v48  ;;  %7924 = vmatprep.subr.bf16.mxu0 %v8748_v54  ;;  %v570_v48 = vrot.slane %v568_v40, 1  ;;  %v549_v54 = vshll.u32 %v9975_v11, 16 }
  0xa7   : > { %7952 = vmatprep.subr.bf16.mxu1 %v8749_v57  ;;  %v573_v57 = vshll.u32 %v9992_v19, 16 }
  0xa8   : > { %5798 = vmatmul.mubr.bf16.vlgmr.msra.gmra.mrb[32].mxu0 %v9937_v60  ;;  %v8776_v60 = vld [vmem:[%s11648_s1 + $0x570] sm:$0xff]   ;;  %v571_v2 = vor.u32 %v570_v48, %v566_v49 }
  0xa9   : > { %5847 = vmatmul.mubr.bf16.vlgmr.msra.gmra.mrb[32].mxu1 %v9940_v44  ;;  %7925 = vmatpush3.bf16.msra.mxu0 %v8750_v5  ;;  %v8777_v44 = vld [vmem:[%s11648_s1 + $0x5f0] sm:$0xff]  }
  0xaa   : > { %7953 = vmatpush3.bf16.msra.mxu1 %v8751_v46  ;;  %7926 = vmatprep.subr.bf16.mxu0 %v8752_v0  ;;  %v8779_v5 = vld [vmem:[%s11648_s1 + $0x5b0] sm:$0xff]   ;;  %v8780_v46 = vld [vmem:[%s11648_s1 + $0x578] sm:$0xff]   ;;  %v551_v0 = vrot.slane %v549_v54, 1 }
  0xab   : > { %7954 = vmatprep.subr.bf16.mxu1 %v8753_v1  ;;  %5805 = vmatprep.mubr.bf16.mxu0 %v9973_v21  ;;  %v8781_v1 = vld [vmem:[%s11648_s1 + $0x5f8] sm:$0xff]  }
  0xac   : > { %5854 = vmatprep.mubr.bf16.mxu1 %v9987_v4  ;;  %v552_v9 = vsel %vm278_vm0, %v547_v59, %v551_v0 }
  0xad   : > { %7927 = vmatpush3.bf16.msra.mxu0 %v8754_v3  ;;  %v575_v3 = vrot.slane %v573_v57, 1 }
  0xae   : > { %7955 = vmatpush3.bf16.msra.mxu1 %v8755_v53  ;;  %7928 = vmatprep.subr.bf16.mxu0 %v8758_v31  ;;  %v8783_v53 = vld [vmem:[%s11648_s1 + $0x5b8] sm:$0xff]  }
  0xaf   : > { %7956 = vmatprep.subr.bf16.mxu1 %v8759_v13  ;;  %v576_v31 = vsel %vm278_vm0, %v571_v2, %v575_v3  ;;  %v8785_v13 = vld [vmem:[%s11648_s1 + $0x6c0] sm:$0xff]  }
  0xb0   : > { %5806 = vmatmul.mubr.bf16.gmra.mrb[36].mxu0 %v9975_v11 }
  0xb1   : > { %7929 = vmatpush3.bf16.msra.mxu0 %v8761_v17  ;;  %5855 = vmatmul.mubr.bf16.gmra.mrb[36].mxu1 %v9992_v19  ;;  %v8789_v17 = vld [vmem:[%s11648_s1 + $0x6c8] sm:$0xff]  }
  0xb2   : > { %7957 = vmatpush3.bf16.msra.mxu1 %v8762_v10  ;;  %7930 = vmatprep.subr.bf16.mxu0 %v8764_v22  ;;  %v8790_v10 = vld [vmem:[%s11648_s1 + $0x608] sm:$0xff]   ;;  %v613_v22 = vshrl.u32 %v9987_v4, 16 }
  0xb3   : > { %7958 = vmatprep.subr.bf16.mxu1 %v8765_v25  ;;  %5895 = vmatprep.mubr.bf16.mxu0 %v564_v29  ;;  %v8791_v25 = vld [vmem:[%s11648_s1 + $0x688] sm:$0xff]  }
  0xb4   : > { %5944 = vmatprep.mubr.bf16.mxu1 %v588_v38  ;;  %v591_v38 = vor.u32 %v589_v24, %v551_v0  ;;  %v615_v49 = vor.u32 %v613_v22, %v10022_v34  ;;  %v8801_v34 = vld [vmem:[%s11648_s1 + $0x6d8] sm:$0xff]  }
  0xb5   : > { %7931 = vmatpush3.bf16.msra.mxu0 %v8766_v28  ;;  %v198_v28 = vld [vmem:[%s9325_s28 + $0x50] sm:$0x11]  ;;  %v8802_v0 = vld [vmem:[%s11648_s1 + $0x618] sm:$0xff]  }
  0xb6   : > { %7959 = vmatpush3.bf16.msra.mxu1 %v8767_v30  ;;  %7932 = vmatprep.subr.bf16.mxu0 %v8768_v35  ;;  %v10115_v29 = vcombine.high %v198_v28, %v198_v28  ;;  %v10117_v30 = vcombine.low %v198_v28, %v198_v28  ;;  %v8794_v35 = vld [vmem:[%s11648_s1 + $0x650] sm:$0xff]  }
  0xb7   : > { %7960 = vmatprep.subr.bf16.mxu1 %v8769_v56  ;;  %v599_v56 = vor.u32 %v597_v33, %v10005_v23  ;;  %v8798_v23 = vld [vmem:[%s11648_s1 + $0x690] sm:$0xff]  }
  0xb8   : > { %v593_v40 = vshll.u32 %v10117_v30, 16  ;;  %v8812_v28 = vld [vmem:[%s11648_s1 + $0x670] sm:$0xff]  }
  0xb9   : > { %7933 = vmatpush3.bf16.msra.mxu0 %v8770_v32  ;;  %v8795_v32 = vld [vmem:[%s11648_s1 + $0x6d0] sm:$0xff]  }
  0xba   : > { %7961 = vmatpush3.bf16.msra.mxu1 %v8771_v41  ;;  %7934 = vmatprep.subr.bf16.mxu0 %v8772_v43  ;;  %v601_v41 = vshll.u32 %v10115_v29, 16  ;;  %v10131_v43 = vcombine.high %v199_v39, %v199_v39 }
  0xbb   : > { %7962 = vmatprep.subr.bf16.mxu1 %v8773_v42  ;;  %v10139_v42 = vcombine.low %v199_v39, %v199_v39  ;;  %v10213_v39 = vrot.slane %v613_v22, 1  ;;  %v8817_v22 = vld [vmem:[%s11648_s1 + $0x6f8] sm:$0xff]  }
  0xbc   : > { %v603_v52 = vrot.slane %v601_v41, 1  ;;  %v617_v48 = vshll.u32 %v10131_v43, 16  ;;  %v8816_v41 = vld [vmem:[%s11648_s1 + $0x678] sm:$0xff]  }
  0xbd   : > { %7935 = vmatpush3.bf16.msra.mxu0 %v8774_v50  ;;  %v607_v50 = vor.u32 %v605_v26, %v575_v3  ;;  %v8803_v3 = vld [vmem:[%s11648_s1 + $0x698] sm:$0xff]  }
  0xbe   : > { %7963 = vmatpush3.bf16.msra.mxu1 %v8775_v51  ;;  %7936 = vmatprep.subr.bf16.mxu0 %v8776_v60  ;;  %v595_v51 = vrot.slane %v593_v40, 1  ;;  %v609_v60 = vshll.u32 %v10139_v42, 16  ;;  %v10227_v40 = vrot.slane %v549_v54, 2  ;;  %v8819_v54 = vld [vmem:[%s11648_s1 + $0x6b8] sm:$0xff]  }
  0xbf   : > { %7964 = vmatprep.subr.bf16.mxu1 %v8777_v44  ;;  %v8800_v44 = vld [vmem:[%s11648_s1 + $0x658] sm:$0xff]  }
  0xc0   : > { %v611_v59 = vrot.slane %v609_v60, 1  ;;  %v8824_v60 = vld [vmem:[%s11648_s1 + $0x740] sm:$0xff]  }
  0xc1   : > { %7937 = vmatpush3.bf16.msra.mxu0 %v8778_v61  ;;  %v604_v61 = vsel %vm278_vm0, %v599_v56, %v603_v52  ;;  %v8813_v56 = vld [vmem:[%s11648_s1 + $0x6f0] sm:$0xff]   ;;  %v657_v52 = vrot.slane %v10131_v43, 1  ;;  %v8825_v43 = vld [vmem:[%s11648_s1 + $0x7c0] sm:$0xff]  }
  0xc2   : > { %7965 = vmatpush3.bf16.msra.mxu1 %v8779_v5  ;;  %7938 = vmatprep.subr.bf16.mxu0 %v8780_v46  ;;  %v596_v5 = vsel %vm278_vm0, %v591_v38, %v595_v51  ;;  %v619_v46 = vrot.slane %v617_v48, 1  ;;  %v612_v2 = vsel %vm278_vm0, %v607_v50, %v611_v59  ;;  %v10206_v38 = vrot.slane %v561_v20, 2  ;;  %v201_v50 = vld [vmem:[%s9325_s28 + $0x18] sm:$0xee] }
  0xc3   : > { %7966 = vmatprep.subr.bf16.mxu1 %v8781_v1  ;;  %v10220_v20 = vrot.slane %v585_v27, 2  ;;  %v8818_v27 = vld [vmem:[%s11648_s1 + $0x638] sm:$0xff]   ;;  %v10248_v48 = vcombine.low %v201_v50, %v9877_v47 }
  0xc4   : > { %v620_v1 = vsel %vm278_vm0, %v615_v49, %v619_v46  ;;  %v200_v49 = vld [vmem:[%s9325_s28 + $0x10] sm:$0xee] }
  0xc5   : > { %7939 = vmatpush3.bf16.msra.mxu0 %v8782_v7  ;;  %v8804_v7 = vld [vmem:[%s11648_s1 + $0x660] sm:$0xff]   ;;  %v7081_v51 = vcombine.high %v200_v49, %v9860_v36  ;;  %v645_v46 = vrot.slane %v10248_v48, 1 }
  0xc6   : > { %7967 = vmatpush3.bf16.msra.mxu1 %v8783_v53  ;;  %7980 = vmatprep.subr.bf16.mxu0 %v8784_v58  ;;  %v8805_v53 = vld [vmem:[%s11648_s1 + $0x6e0] sm:$0xff]  }
  0xc7   : > { %8008 = vmatprep.subr.bf16.mxu1 %v8785_v13  ;;  %v8806_v58 = vld [vmem:[%s11648_s1 + $0x620] sm:$0xff]   ;;  %v643_v13 = vrot.slane %v9973_v21, 1  ;;  %v690_v59 = vshrl.u32 %v7081_v51, 16 }
  0xc8   : > { %5896 = vmatmul.mubr.bf16.vlgmr.msra.gmra.mrb[40].mxu0 %v552_v9  ;;  %v10168_v9 = vrot.slane %v589_v24, 1  ;;  %v8810_v24 = vld [vmem:[%s11648_s1 + $0x628] sm:$0xff]  }
  0xc9   : > { %5945 = vmatmul.mubr.bf16.vlgmr.msra.gmra.mrb[40].mxu1 %v576_v31  ;;  %7981 = vmatpush3.bf16.msra.mxu0 %v8786_v55  ;;  %v8807_v31 = vld [vmem:[%s11648_s1 + $0x6a0] sm:$0xff]   ;;  %v10177_v55 = vrot.slane %v605_v26, 1  ;;  %v646_v26 = vrot.slane %v9992_v19, 1 }
  0xca   : > { %8009 = vmatpush3.bf16.msra.mxu1 %v8787_v37  ;;  %7982 = vmatprep.subr.bf16.mxu0 %v8788_v15  ;;  %v8808_v37 = vld [vmem:[%s11648_s1 + $0x668] sm:$0xff]  }
  0xcb   : > { %8010 = vmatprep.subr.bf16.mxu1 %v8789_v17  ;;  %5903 = vmatprep.mubr.bf16.mxu0 %v604_v61  ;;  %v8809_v15 = vld [vmem:[%s11648_s1 + $0x6e8] sm:$0xff]   ;;  %v649_v17 = vrot.slane %v9987_v4, 1  ;;  %v642_v61 = vrot.slane %v7081_v51, 1 }
  0xcc   : > { %5952 = vmatprep.mubr.bf16.mxu1 %v620_v1  ;;  %v647_v1 = vsel %vm377_vm1, %v645_v46, %v646_v26 }
  0xcd   : > { %7983 = vmatpush3.bf16.msra.mxu0 %v8790_v10  ;;  %v640_v10 = vrot.slane %v9975_v11, 1 }
  0xce   : > { %8011 = vmatpush3.bf16.msra.mxu1 %v8791_v25  ;;  %7984 = vmatprep.subr.bf16.mxu0 %v8794_v35  ;;  %v8811_v25 = vld [vmem:[%s11648_s1 + $0x6a8] sm:$0xff]   ;;  %v10199_v35 = vrot.slane %v597_v33, 1  ;;  %v8815_v33 = vld [vmem:[%s11648_s1 + $0x6b0] sm:$0xff]  }
  0xcf   : > { %8012 = vmatprep.subr.bf16.mxu1 %v8795_v32  ;;  %v8814_v32 = vld [vmem:[%s11648_s1 + $0x630] sm:$0xff]  }
  0xd0   : > { %5904 = vmatmul.mubr.bf16.gmra.mrb[44].mxu0 %v596_v5 }
  0xd1   : > { %7985 = vmatpush3.bf16.msra.mxu0 %v8797_v45  ;;  %5953 = vmatmul.mubr.bf16.gmra.mrb[44].mxu1 %v612_v2  ;;  %v653_v45 = vrot.slane %v10115_v29, 1  ;;  %v10244_v29 = vcombine.low %v200_v49, %v9860_v36  ;;  %v8827_v2 = vld [vmem:[%s11648_s1 + $0x780] sm:$0xff]  }
  0xd2   : > { %8013 = vmatpush3.bf16.msra.mxu1 %v8798_v23  ;;  %7986 = vmatprep.subr.bf16.mxu0 %v8800_v44  ;;  %v651_v23 = vrot.slane %v10117_v30, 1  ;;  %v10251_v30 = vcombine.high %v201_v50, %v9877_v47  ;;  %v655_v44 = vrot.slane %v10139_v42, 1  ;;  %v8826_v47 = vld [vmem:[%s11648_s1 + $0x700] sm:$0xff]  }
  0xd3   : > { %8014 = vmatprep.subr.bf16.mxu1 %v8801_v34  ;;  %v639_v5 = vrot.slane %v10244_v29, 1  ;;  %v644_v34 = vsel %vm377_vm1, %v642_v61, %v643_v13  ;;  %v8840_v61 = vld [vmem:[%s11648_s1 + $0x760] sm:$0xff]  }
  0xd4   : > { %v648_v36 = vrot.slane %v10251_v30, 1  ;;  %5993 = vmatprep.mubr.bf16.mxu0 %v644_v34 }
  0xd5   : > { %7987 = vmatpush3.bf16.msra.mxu0 %v8802_v0  ;;  %v641_v0 = vsel %vm377_vm1, %v639_v5, %v640_v10  ;;  %v8841_v5 = vld [vmem:[%s11648_s1 + $0x7e0] sm:$0xff]  }
  0xd6   : > { %8015 = vmatpush3.bf16.msra.mxu1 %v8803_v3  ;;  %7988 = vmatprep.subr.bf16.mxu0 %v8804_v7  ;;  %v650_v42 = vsel %vm377_vm1, %v648_v36, %v649_v17  ;;  %v8828_v3 = vld [vmem:[%s11648_s1 + $0x748] sm:$0xff]   ;;  %v692_v7 = vrot.slane %v690_v59, 1  ;;  %v8842_v59 = vld [vmem:[%s11648_s1 + $0x720] sm:$0xff]  }
  0xd7   : > { %8016 = vmatprep.subr.bf16.mxu1 %v8805_v53  ;;  %6042 = vmatprep.mubr.bf16.mxu1 %v650_v42  ;;  %v8829_v53 = vld [vmem:[%s11648_s1 + $0x7c8] sm:$0xff]  }
  0xd9   : > { %7989 = vmatpush3.bf16.msra.mxu0 %v8806_v58  ;;  %v654_v58 = vsel %vm377_vm1, %v643_v13, %v653_v45  ;;  %v8834_v45 = vld [vmem:[%s11648_s1 + $0x710] sm:$0xff]  }
  0xda   : > { %8017 = vmatpush3.bf16.msra.mxu1 %v8807_v31  ;;  %7990 = vmatprep.subr.bf16.mxu0 %v8808_v37  ;;  %v658_v31 = vsel %vm377_vm1, %v649_v17, %v657_v52  ;;  %v693_v37 = vshll.u32 %v7081_v51, 16  ;;  %v8832_v17 = vld [vmem:[%s11648_s1 + $0x750] sm:$0xff]   ;;  %v8838_v52 = vld [vmem:[%s11648_s1 + $0x718] sm:$0xff]  }
  0xdb   : > { %8018 = vmatprep.subr.bf16.mxu1 %v8809_v15  ;;  %v8830_v15 = vld [vmem:[%s11648_s1 + $0x708] sm:$0xff]  }
  0xdc   : > { %v695_v13 = vrot.slane %v693_v37, 2 }
  0xdd   : > { %7991 = vmatpush3.bf16.msra.mxu0 %v8810_v24  ;;  %v714_v24 = vshrl.u32 %v10251_v30, 16 }
  0xde   : > { %8019 = vmatpush3.bf16.msra.mxu1 %v8811_v25  ;;  %7992 = vmatprep.subr.bf16.mxu0 %v8812_v28  ;;  %v8831_v25 = vld [vmem:[%s11648_s1 + $0x788] sm:$0xff]  }
  0xdf   : > { %8020 = vmatprep.subr.bf16.mxu1 %v8813_v56  ;;  %v10303_v28 = vrot.slane %v714_v24, 1  ;;  %v8833_v56 = vld [vmem:[%s11648_s1 + $0x7d0] sm:$0xff]  }
  0xe1   : > { %7993 = vmatpush3.bf16.msra.mxu0 %v8814_v32  ;;  %v696_v32 = vor.u32 %v695_v13, %v692_v7  ;;  %v8844_v7 = vld [vmem:[%s11648_s1 + $0x768] sm:$0xff]  }
  0xe2   : > { %8021 = vmatpush3.bf16.msra.mxu1 %v8815_v33  ;;  %7994 = vmatprep.subr.bf16.mxu0 %v8816_v41  ;;  %v10310_v33 = vor.u32 %v10206_v38, %v10199_v35  ;;  %v717_v41 = vshll.u32 %v10251_v30, 16  ;;  %v8835_v35 = vld [vmem:[%s11648_s1 + $0x790] sm:$0xff]  }
  0xe3   : > { %8022 = vmatprep.subr.bf16.mxu1 %v8817_v22  ;;  %v652_v22 = vsel %vm377_vm1, %v640_v10, %v651_v23  ;;  %v8836_v10 = vld [vmem:[%s11648_s1 + $0x758] sm:$0xff]  }
  0xe4   : > { %v700_v50 = vsel %vm416_vm2, %v696_v32, %v10310_v33 }
  0xe5   : > { %7995 = vmatpush3.bf16.msra.mxu0 %v8818_v27  ;;  %v656_v27 = vsel %vm377_vm1, %v646_v26, %v655_v44  ;;  %v8837_v26 = vld [vmem:[%s11648_s1 + $0x7d8] sm:$0xff]  }
  0xe6   : > { %8023 = vmatpush3.bf16.msra.mxu1 %v8819_v54  ;;  %8036 = vmatprep.subr.bf16.mxu0 %v8824_v60  ;;  %v678_v54 = vshrl.u32 %v10244_v29, 16  ;;  %v8839_v60 = vld [vmem:[%s11648_s1 + $0x798] sm:$0xff]  }
  0xe7   : > { %8064 = vmatprep.subr.bf16.mxu1 %v8825_v43 }
  0xe8   : > { %5994 = vmatmul.mubr.bf16.vlgmr.msra.gmra.mrb[48].mxu0 %v641_v0  ;;  %v8843_v0 = vld [vmem:[%s11648_s1 + $0x7a0] sm:$0xff]  }
  0xe9   : > { %6043 = vmatmul.mubr.bf16.vlgmr.msra.gmra.mrb[48].mxu1 %v647_v1  ;;  %8037 = vmatpush3.bf16.msra.mxu0 %v8826_v47 }
  0xea   : > { %8065 = vmatpush3.bf16.msra.mxu1 %v8827_v2  ;;  %8038 = vmatprep.subr.bf16.mxu0 %v8828_v3  ;;  %v719_v2 = vrot.slane %v717_v41, 2  ;;  %v10356_v3 = vor.u32 %v10220_v20, %v10213_v39  ;;  %v8846_v39 = vld [vmem:[%s11648_s1 + $0x728] sm:$0xff]   ;;  %v702_v20 = vshrl.u32 %v10248_v48, 16  ;;  %v8851_v41 = vld [vmem:[%s11648_s1 + $0x7b0] sm:$0xff]  }
  0xeb   : > { %8066 = vmatprep.subr.bf16.mxu1 %v8829_v53  ;;  %6001 = vmatprep.mubr.bf16.mxu0 %v654_v58  ;;  %v710_v53 = vrot.slane %v573_v57, 2  ;;  %v8845_v58 = vld [vmem:[%s11648_s1 + $0x7e8] sm:$0xff]  }
  0xec   : > { %6050 = vmatprep.mubr.bf16.mxu1 %v658_v31  ;;  %v720_v37 = vor.u32 %v719_v2, %v10303_v28  ;;  %v8847_v57 = vld [vmem:[%s11648_s1 + $0x7a8] sm:$0xff]   ;;  %v705_v28 = vshll.u32 %v10248_v48, 16  ;;  %v704_v32 = vrot.slane %v702_v20, 1  ;;  %v8853_v48 = vld [vmem:[%s11648_s1 + $0x7f8] sm:$0xff]   ;;  %v8867_v2 = vld [vmem:[%s11648_s1 + $0x8d0] sm:$0xff]  }
  0xed   : > { %8039 = vmatpush3.bf16.msra.mxu0 %v8830_v15  ;;  %v681_v15 = vshll.u32 %v10244_v29, 16  ;;  %v8848_v29 = vld [vmem:[%s11648_s1 + $0x770] sm:$0xff]  }
  0xee   : > { %8067 = vmatpush3.bf16.msra.mxu1 %v8831_v25  ;;  %8040 = vmatprep.subr.bf16.mxu0 %v8832_v17  ;;  %v724_v24 = vsel %vm416_vm2, %v720_v37, %v10356_v3  ;;  %v680_v25 = vrot.slane %v678_v54, 1  ;;  %v8849_v17 = vld [vmem:[%s11648_s1 + $0x7f0] sm:$0xff]   ;;  %v8854_v54 = vld [vmem:[%s11648_s1 + $0x738] sm:$0xff]  }
  0xef   : > { %8068 = vmatprep.subr.bf16.mxu1 %v8833_v56  ;;  %v683_v13 = vrot.slane %v681_v15, 2  ;;  %v8850_v56 = vld [vmem:[%s11648_s1 + $0x730] sm:$0xff]  }
  0xf0   : > { %6002 = vmatmul.mubr.bf16.gmra.mrb[52].mxu0 %v652_v22  ;;  %v707_v22 = vrot.slane %v705_v28, 2 }
  0xf1   : > { %6051 = vmatmul.mubr.bf16.gmra.mrb[52].mxu1 %v656_v27  ;;  %8041 = vmatpush3.bf16.msra.mxu0 %v8834_v45  ;;  %v8852_v45 = vld [vmem:[%s11648_s1 + $0x778] sm:$0xff]   ;;  %v10400_v27 = vor.u32 %v10227_v40, %v10168_v9  ;;  %v8856_v9 = vld [vmem:[%s11648_s1 + $0x840] sm:$0xff]  }
  0xf2   : > { %8069 = vmatpush3.bf16.msra.mxu1 %v8835_v35  ;;  %8042 = vmatprep.subr.bf16.mxu0 %v8836_v10  ;;  %v684_v35 = vor.u32 %v683_v13, %v680_v25  ;;  %v10406_v10 = vor.u32 %v710_v53, %v10177_v55  ;;  %v8857_v40 = vld [vmem:[%s11648_s1 + $0x8c0] sm:$0xff]  }
  0xf3   : > { %8070 = vmatprep.subr.bf16.mxu1 %v8837_v26  ;;  %6091 = vmatprep.mubr.bf16.mxu0 %v700_v50  ;;  %v8859_v50 = vld [vmem:[%s11648_s1 + $0x880] sm:$0xff]  }
  0xf4   : > { %6140 = vmatprep.mubr.bf16.mxu1 %v724_v24  ;;  %v688_v55 = vsel %vm416_vm2, %v684_v35, %v10400_v27 }
  0xf5   : > { %8043 = vmatpush3.bf16.msra.mxu0 %v8838_v52  ;;  %v8860_v52 = vld [vmem:[%s11648_s1 + $0x848] sm:$0xff]  }
  0xf6   : > { %8071 = vmatpush3.bf16.msra.mxu1 %v8839_v60  ;;  %8044 = vmatprep.subr.bf16.mxu0 %v8840_v61  ;;  %v8863_v61 = vld [vmem:[%s11648_s1 + $0x888] sm:$0xff]  }
  0xf7   : > { %8072 = vmatprep.subr.bf16.mxu1 %v8841_v5 }
  0xf9   : > { %8045 = vmatpush3.bf16.msra.mxu0 %v8842_v59 }
  0xfa   : > { %8073 = vmatpush3.bf16.msra.mxu1 %v8843_v0  ;;  %8046 = vmatprep.subr.bf16.mxu0 %v8844_v7 }
  0xfb   : > { %v7660_v38 = vpop.f32.mrb[0].mxu0  ;;  %8074 = vmatprep.subr.bf16.mxu1 %v8845_v58 }
  0xfc   : > { %v7688_v23 = vpop.f32.mrb[0].mxu1  ;;  %v7661_v49 = vpop.f32.mrb[1].mxu0 }
  0xfd   : > { %v7662_v51 = vadd.f32 %v7661_v49, %v7660_v38  ;;  %v7689_v30 = vpop.f32.mrb[1].mxu1  ;;  %v7663_v44 = vpop.f32.mrb[2].mxu0  ;;  %8047 = vmatpush3.bf16.msra.mxu0 %v8846_v39  ;;  %v708_v38 = vor.u32 %v707_v22, %v704_v32  ;;  %v8858_v49 = vld [vmem:[%s11648_s1 + $0x800] sm:$0xff]   ;;  %v203_v39 = vld [vmem:[%s9325_s28 + $0x58] sm:$0x33]  ;;  %v8870_v22 = vld [vmem:[%s11648_s1 + $0x890] sm:$0xff]  }
  0xfe   : > { %v7690_v43 = vadd.f32 %v7689_v30, %v7688_v23  ;;  %v7691_v36 = vpop.f32.mrb[2].mxu1  ;;  %v7664_v47 = vpop.f32.mrb[3].mxu0  ;;  %8075 = vmatpush3.bf16.msra.mxu1 %v8847_v57  ;;  %8048 = vmatprep.subr.bf16.mxu0 %v8848_v29  ;;  %v8855_v23 = vld [vmem:[%s11648_s1 + $0x7b8] sm:$0xff]   ;;  %v8861_v30 = vld [vmem:[%s11648_s1 + $0x8c8] sm:$0xff]   ;;  %v7087_v20 = vcombine.high %v203_v39, %v203_v39  ;;  %v8869_v57 = vld [vmem:[%s11648_s1 + $0x810] sm:$0xff]   ;;  %v7086_v25 = vcombine.low %v203_v39, %v203_v39 }
  0xff   : > { %v7665_v34 = vadd.f32 %v7664_v47, %v7663_v44  ;;  %v7692_v42 = vpop.f32.mrb[3].mxu1  ;;  %8076 = vmatprep.subr.bf16.mxu1 %v8849_v17  ;;  %v712_v26 = vsel %vm416_vm2, %v708_v38, %v10406_v10  ;;  %v8881_v39 = vld [vmem:[%s11648_s1 + $0x8e8] sm:$0xff]  }
 0x100   : > { %v10346_v46 = vadd.f32 %v7690_v43, %v7662_v51  ;;  %v7693_v1 = vadd.f32 %v7692_v42, %v7691_v36  ;;  %v8862_v43 = vld [vmem:[%s11648_s1 + $0x808] sm:$0xff]   ;;  %v202_v36 = vld [vmem:[%s9325_s28 + $0x50] sm:$0x33]  ;;  %v753_v32 = vshrl.u32 %v7087_v20, 16  ;;  %v747_v38 = vshll.u32 %v7086_v25, 16 }
 0x101   : > { %8049 = vmatpush3.bf16.msra.mxu0 %v8850_v56  ;;  %v7085_v59 = vcombine.high %v202_v36, %v202_v36  ;;  %v8866_v42 = vld [vmem:[%s11648_s1 + $0x850] sm:$0xff]  }
 0x102   : > { %v10366_v31 = vadd.f32 %v7693_v1, %v7665_v34  ;;  %8077 = vmatpush3.bf16.msra.mxu1 %v8851_v41  ;;  %8050 = vmatprep.subr.bf16.mxu0 %v8852_v45  ;;  %v7084_v34 = vcombine.low %v202_v36, %v202_v36  ;;  %v756_v41 = vshll.u32 %v7087_v20, 16  ;;  %v744_v45 = vshrl.u32 %v7086_v25, 16  ;;  %v8883_v25 = vld [vmem:[%s11648_s1 + $0x8a8] sm:$0xff]  }
 0x103   : > { %8078 = vmatprep.subr.bf16.mxu1 %v8853_v48  ;;  %v7666_v51 = vpop.f32.mrb[4].mxu0  ;;  %v735_v53 = vshrl.u32 %v7085_v59, 16  ;;  %v738_v58 = vshll.u32 %v7085_v59, 16 }
 0x104   : > { %v7694_v60 = vpop.f32.mrb[4].mxu1  ;;  %v7667_v44 = vpop.f32.mrb[5].mxu0  ;;  %v726_v37 = vshrl.u32 %v7084_v34, 16  ;;  %v729_v15 = vshll.u32 %v7084_v34, 16 }
 0x105   : > { %8051 = vmatpush3.bf16.msra.mxu0 %v8854_v54  ;;  %v7668_v5 = vadd.f32 %v7667_v44, %v7666_v51  ;;  %v7695_v47 = vpop.f32.mrb[5].mxu1  ;;  %v7669_v1 = vpop.f32.mrb[6].mxu0  ;;  %v737_v13 = vrot.slane %v735_v53, 1  ;;  %v740_v17 = vrot.slane %v738_v58, 2  ;;  %v749_v51 = vrot.slane %v747_v38, 2  ;;  %v8874_v44 = vld [vmem:[%s11648_s1 + $0x818] sm:$0xff]  }
 0x106   : > { %8079 = vmatpush3.bf16.msra.mxu1 %v8855_v23  ;;  %8092 = vmatprep.subr.bf16.mxu0 %v8856_v9  ;;  %v7696_v0 = vadd.f32 %v7695_v47, %v7694_v60  ;;  %v7697_v7 = vpop.f32.mrb[6].mxu1  ;;  %v7670_v29 = vpop.f32.mrb[7].mxu0  ;;  %v728_v28 = vrot.slane %v726_v37, 1  ;;  %v731_v56 = vrot.slane %v729_v15, 2  ;;  %v755_v9 = vrot.slane %v753_v32, 1  ;;  %v8876_v47 = vld [vmem:[%s11648_s1 + $0x860] sm:$0xff]  }
 0x107   : > { %8120 = vmatprep.subr.bf16.mxu1 %v8857_v40  ;;  %v7671_v48 = vadd.f32 %v7670_v29, %v7669_v1  ;;  %v741_v54 = vor.u32 %v740_v17, %v737_v13  ;;  %v7698_v23 = vpop.f32.mrb[7].mxu1  ;;  %v758_v40 = vrot.slane %v756_v41, 2  ;;  %v8880_v58 = vld [vmem:[%s11648_s1 + $0x868] sm:$0xff]   ;;  %v8884_v13 = vld [vmem:[%s11648_s1 + $0x870] sm:$0xff]  }
 0x108   : > { %6092 = vmatmul.mubr.bf16.vlgmr.msra.gmra.mrb[56].mxu0 %v688_v55  ;;  %v10450_v24 = vadd.f32 %v7696_v0, %v7668_v5  ;;  %v732_v35 = vor.u32 %v731_v56, %v728_v28  ;;  %v746_v55 = vrot.slane %v744_v45, 1  ;;  %v8885_v56 = vld [vmem:[%s11648_s1 + $0x8f0] sm:$0xff]  }
 0x109   : > { %6141 = vmatmul.mubr.bf16.vlgmr.msra.gmra.mrb[56].mxu1 %v712_v26  ;;  %8093 = vmatpush3.bf16.msra.mxu0 %v8858_v49  ;;  %v7699_v26 = vadd.f32 %v7698_v23, %v7697_v7  ;;  %v8872_v49 = vld [vmem:[%s11648_s1 + $0x858] sm:$0xff]   ;;  %v759_v60 = vor.u32 %v758_v40, %v755_v9  ;;  %v8886_v41 = vld [vmem:[%s11648_s1 + $0x830] sm:$0xff]  }
 0x10a   : > { %8121 = vmatpush3.bf16.msra.mxu1 %v8859_v50  ;;  %8094 = vmatprep.subr.bf16.mxu0 %v8860_v52  ;;  %v742_v50 = vsel %vm416_vm2, %v10310_v33, %v741_v54  ;;  %v733_v52 = vsel %vm416_vm2, %v10400_v27, %v732_v35  ;;  %v750_v33 = vor.u32 %v749_v51, %v746_v55  ;;  %v8875_v27 = vld [vmem:[%s11648_s1 + $0x898] sm:$0xff]   ;;  %v8887_v45 = vld [vmem:[%s11648_s1 + $0x8b0] sm:$0xff]  }
 0x10b   : > { %8122 = vmatprep.subr.bf16.mxu1 %v8861_v30  ;;  %v8873_v30 = vld [vmem:[%s11648_s1 + $0x8d8] sm:$0xff]   ;;  %6099 = vmatprep.mubr.bf16.mxu0 %v742_v50  ;;  %v760_v5 = vsel %vm416_vm2, %v10356_v3, %v759_v60  ;;  %v8878_v3 = vld [vmem:[%s11648_s1 + $0x820] sm:$0xff]  }
 0x10c   : > { %6148 = vmatprep.mubr.bf16.mxu1 %v760_v5  ;;  %v751_v34 = vsel %vm416_vm2, %v10406_v10, %v750_v33  ;;  %v8888_v35 = vld [vmem:[%s11648_s1 + $0x878] sm:$0xff]   ;;  %v8892_v60 = vld [vmem:[%s11648_s1 + $0x940] sm:$0xff]   ;;  %v204_v5 = vld [vmem:[%s9325_s28 + $0x50] sm:$0xff] }
 0x10d   : > { %8095 = vmatpush3.bf16.msra.mxu0 %v8862_v43  ;;  %v10465_v43 = vadd.f32 %v7699_v26, %v7671_v48  ;;  %v8889_v23 = vld [vmem:[%s11648_s1 + $0x8f8] sm:$0xff]   ;;  %v8895_v33 = vld [vmem:[%s11648_s1 + $0x980] sm:$0xff]  }
 0x10e   : > { %8123 = vmatpush3.bf16.msra.mxu1 %v8863_v61  ;;  %8096 = vmatprep.subr.bf16.mxu0 %v8866_v42  ;;  %v8877_v42 = vld [vmem:[%s11648_s1 + $0x8e0] sm:$0xff]   ;;  %v8890_v55 = vld [vmem:[%s11648_s1 + $0x838] sm:$0xff]  }
 0x10f   : > { %8124 = vmatprep.subr.bf16.mxu1 %v8867_v2 }
 0x110   : > { %6100 = vmatmul.mubr.bf16.gmra.mrb[60].mxu0 %v733_v52 }
 0x111   : > { %8097 = vmatpush3.bf16.msra.mxu0 %v8869_v57  ;;  %6189 = vmatprep.mubr.bf16.mxu0 %v9434_v12  ;;  %v8879_v12 = vld [vmem:[%s11648_s1 + $0x8a0] sm:$0xff]  }
 0x112   : > { %8125 = vmatpush3.bf16.msra.mxu1 %v8870_v22  ;;  %8098 = vmatprep.subr.bf16.mxu0 %v8872_v49 }
 0x113   : > { %8126 = vmatprep.subr.bf16.mxu1 %v8873_v30  ;;  %6149 = vmatmul.mubr.bf16.gmra.mrb[60].mxu1 %v751_v34 }
 0x114   : > { %6238 = vmatprep.mubr.bf16.mxu1 %v9439_v16  ;;  %v8882_v16 = vld [vmem:[%s11648_s1 + $0x828] sm:$0xff]  }
 0x115   : > { %8099 = vmatpush3.bf16.msra.mxu0 %v8874_v44  ;;  %v8893_v44 = vld [vmem:[%s11648_s1 + $0x9c0] sm:$0xff]  }
 0x116   : > { %8127 = vmatpush3.bf16.msra.mxu1 %v8875_v27  ;;  %8100 = vmatprep.subr.bf16.mxu0 %v8876_v47  ;;  %v8896_v27 = vld [vmem:[%s11648_s1 + $0x948] sm:$0xff]   ;;  %v9162_v47 = vld [vmem:[%s9325_s28 + $0x40] sm:$0xff] }
 0x117   : > { %8128 = vmatprep.subr.bf16.mxu1 %v8877_v42  ;;  %v10569_v34 = vcombine.low %v9162_v47, %v204_v5  ;;  %v8902_v42 = vld [vmem:[%s11648_s1 + $0x950] sm:$0xff]  }
 0x119   : > { %8101 = vmatpush3.bf16.msra.mxu0 %v8878_v3 }
 0x11a   : > { %8129 = vmatpush3.bf16.msra.mxu1 %v8879_v12  ;;  %8102 = vmatprep.subr.bf16.mxu0 %v8880_v58  ;;  %v8905_v12 = vld [vmem:[%s11648_s1 + $0x910] sm:$0xff]  }
 0x11b   : > { %v7716_v61 = vpop.f32.mrb[8].mxu0  ;;  %8130 = vmatprep.subr.bf16.mxu1 %v8881_v39  ;;  %v8906_v58 = vld [vmem:[%s11648_s1 + $0x990] sm:$0xff]   ;;  %v8908_v39 = vld [vmem:[%s11648_s1 + $0x958] sm:$0xff]  }
 0x11c   : > { %v7744_v36 = vpop.f32.mrb[8].mxu1  ;;  %v7717_v59 = vpop.f32.mrb[9].mxu0 }
 0x11d   : > { %v7718_v0 = vadd.f32 %v7717_v59, %v7716_v61  ;;  %v7745_v1 = vpop.f32.mrb[9].mxu1  ;;  %v7719_v7 = vpop.f32.mrb[10].mxu0  ;;  %8103 = vmatpush3.bf16.msra.mxu0 %v8882_v16  ;;  %v10567_v59 = vcombine.high %v9162_v47, %v204_v5  ;;  %v8923_v47 = vld [vmem:[%s11648_s1 + $0x9b0] sm:$0xff]  }
 0x11e   : > { %v7746_v2 = vadd.f32 %v7745_v1, %v7744_v36  ;;  %v7747_v53 = vpop.f32.mrb[10].mxu1  ;;  %v7720_v37 = vpop.f32.mrb[11].mxu0  ;;  %8131 = vmatpush3.bf16.msra.mxu1 %v8883_v25  ;;  %8104 = vmatprep.subr.bf16.mxu0 %v8884_v13  ;;  %v8897_v36 = vld [vmem:[%s11648_s1 + $0x9c8] sm:$0xff]   ;;  %v205_v1 = vld [vmem:[%s9325_s28 + $0x58] sm:$0xff] }
 0x11f   : > { %v5506_v10 = vadd.f32 %v7718_v0, %v10346_v46  ;;  %v7721_v20 = vadd.f32 %v7720_v37, %v7719_v7  ;;  %v7748_v57 = vpop.f32.mrb[11].mxu1  ;;  %8132 = vmatprep.subr.bf16.mxu1 %v8885_v56  ;;  %v8903_v0 = vld [vmem:[%s11648_s1 + $0x9d0] sm:$0xff]   ;;  %v799_v3 = vshll.u32 %v10567_v59, 16  ;;  %v8910_v25 = vld [vmem:[%s11648_s1 + $0x918] sm:$0xff]  }
 0x120   : > { %v7749_v46 = vadd.f32 %v7748_v57, %v7747_v53  ;;  %v794_v53 = vshll.u32 %v10569_v34, 16  ;;  %v8909_v57 = vld [vmem:[%s11648_s1 + $0x9d8] sm:$0xff]  }
 0x121   : > { %v10495_v15 = vadd.f32 %v7746_v2, %v5506_v10  ;;  %v5509_v29 = vadd.f32 %v7721_v20, %v10366_v31  ;;  %8105 = vmatpush3.bf16.msra.mxu0 %v8886_v41  ;;  %v9163_v2 = vld [vmem:[%s9325_s28 + $0x48] sm:$0xff]  ;;  %v10595_v37 = vrot.slane %v799_v3, 1  ;;  %v8911_v13 = vld [vmem:[%s11648_s1 + $0x998] sm:$0xff]  }
 0x122   : > { %8133 = vmatpush3.bf16.msra.mxu1 %v8887_v45  ;;  %8106 = vmatprep.subr.bf16.mxu0 %v8888_v35  ;;  %v10582_v7 = vcombine.high %v9163_v2, %v205_v1  ;;  %v10587_v10 = vcombine.low %v9163_v2, %v205_v1  ;;  %v8924_v1 = vld [vmem:[%s11648_s1 + $0x978] sm:$0xff]  }
 0x123   : > { %v7722_v17 = vpop.f32.mrb[12].mxu0  ;;  %v10510_v28 = vadd.f32 %v7749_v46, %v5509_v29  ;;  %8134 = vmatprep.subr.bf16.mxu1 %v8889_v23  ;;  %v802_v16 = vsel %vm278_vm0, %v9531_v62, %v10595_v37  ;;  %v10610_v46 = vrot.slane %v794_v53, 1  ;;  %v8912_v62 = vld [vmem:[%s11648_s1 + $0x960] sm:$0xff]   ;;  %v8916_v23 = vld [vmem:[%s11648_s1 + $0x968] sm:$0xff]  }
 0x124   : > { %v7723_v32 = vpop.f32.mrb[13].mxu0  ;;  %v7750_v48 = vpop.f32.mrb[12].mxu1  ;;  %v809_v20 = vshll.u32 %v10582_v7, 16 }
 0x125   : > { %v7724_v31 = vadd.f32 %v7723_v32, %v7722_v17  ;;  %v7725_v22 = vpop.f32.mrb[14].mxu0  ;;  %v7751_v40 = vpop.f32.mrb[13].mxu1  ;;  %8107 = vmatpush3.bf16.msra.mxu0 %v8890_v55  ;;  %v8913_v32 = vld [vmem:[%s11648_s1 + $0x9e0] sm:$0xff]   ;;  %v8917_v55 = vld [vmem:[%s11648_s1 + $0x9e8] sm:$0xff]  }
 0x126   : > { %v7726_v38 = vpop.f32.mrb[15].mxu0  ;;  %v7752_v26 = vadd.f32 %v7751_v40, %v7750_v48  ;;  %v7753_v49 = vpop.f32.mrb[14].mxu1  ;;  %8148 = vmatprep.subr.bf16.mxu0 %v8892_v60 }
 0x127   : > { %v5514_v54 = vadd.f32 %v7724_v31, %v10450_v24  ;;  %v7727_v9 = vadd.f32 %v7726_v38, %v7725_v22  ;;  %v8891_v24 = vld [vmem:[%s11648_s1 + $0x8b8] sm:$0xff]   ;;  %v7754_v52 = vpop.f32.mrb[15].mxu1  ;;  %v8914_v22 = vld [vmem:[%s11648_s1 + $0x920] sm:$0xff]  }
 0x128   : > { %v7755_v30 = vadd.f32 %v7754_v52, %v7753_v49  ;;  %8135 = vmatpush3.bf16.msra.mxu1 %v8891_v24  ;;  %6190 = vmatmul.mubr.bf16.vlgmr.msra.gmra.mrb[64].mxu0 %v9437_v14  ;;  %v8898_v14 = vld [vmem:[%s11648_s1 + $0x908] sm:$0xff]  }
 0x129   : > { %v5517_v50 = vadd.f32 %v7727_v9, %v10465_v43  ;;  %v10535_v51 = vadd.f32 %v7752_v26, %v5514_v54  ;;  %v8894_v43 = vld [vmem:[%s11648_s1 + $0x900] sm:$0xff]   ;;  %8176 = vmatprep.subr.bf16.mxu1 %v8893_v44  ;;  %6197 = vmatprep.mubr.bf16.mxu0 %v10567_v59  ;;  %v8919_v52 = vld [vmem:[%s11648_s1 + $0x9a8] sm:$0xff]   ;;  %v8920_v44 = vld [vmem:[%s11648_s1 + $0x970] sm:$0xff]  }
 0x12a   : > { %8149 = vmatpush3.bf16.msra.mxu0 %v8894_v43  ;;  %v8915_v54 = vld [vmem:[%s11648_s1 + $0x9a0] sm:$0xff]  }
 0x12b   : > { %v10543_v61 = vadd.f32 %v7755_v30, %v5517_v50  ;;  %6239 = vmatmul.mubr.bf16.vlgmr.msra.gmra.mrb[64].mxu1 %v9444_v18  ;;  %8150 = vmatprep.subr.bf16.mxu0 %v8896_v27  ;;  %v8899_v18 = vld [vmem:[%s11648_s1 + $0x988] sm:$0xff]  }
 0x12c   : > { %8177 = vmatpush3.bf16.msra.mxu1 %v8895_v33  ;;  %6246 = vmatprep.mubr.bf16.mxu1 %v10582_v7 }
 0x12d   : > { %8178 = vmatprep.subr.bf16.mxu1 %v8897_v36  ;;  %v8921_v36 = vld [vmem:[%s11648_s1 + $0x9f0] sm:$0xff]  }
 0x12e   : > { %8151 = vmatpush3.bf16.msra.mxu0 %v8898_v14 }
 0x12f   : > { %8152 = vmatprep.subr.bf16.mxu0 %v8902_v42 }
 0x130   : > { %8179 = vmatpush3.bf16.msra.mxu1 %v8899_v18  ;;  %6198 = vmatmul.mubr.bf16.gmra.mrb[68].mxu0 %v10569_v34 }
 0x131   : > { %8180 = vmatprep.subr.bf16.mxu1 %v8903_v0  ;;  %6287 = vmatprep.mubr.bf16.mxu0 %v802_v16 }
 0x132   : > { %8153 = vmatpush3.bf16.msra.mxu0 %v8905_v12 }
 0x133   : > { %6247 = vmatmul.mubr.bf16.gmra.mrb[68].mxu1 %v10587_v10  ;;  %8154 = vmatprep.subr.bf16.mxu0 %v8908_v39  ;;  %v811_v39 = vrot.slane %v809_v20, 1 }
 0x134   : > { %8181 = vmatpush3.bf16.msra.mxu1 %v8906_v58 }
 0x135   : > { %8182 = vmatprep.subr.bf16.mxu1 %v8909_v57  ;;  %v8926_v57 = vld [vmem:[%s11648_s1 + $0x938] sm:$0xff]  }
 0x136   : > { %8155 = vmatpush3.bf16.msra.mxu0 %v8910_v25 }
 0x137   : > { %8156 = vmatprep.subr.bf16.mxu0 %v8912_v62  ;;  %v797_v62 = vsel %vm278_vm0, %v9535_v63, %v10610_v46  ;;  %v8930_v63 = vld [vmem:[%s11648_s1 + $0xa00] sm:$0xff]  }
 0x138   : > { %8183 = vmatpush3.bf16.msra.mxu1 %v8911_v13  ;;  %v812_v13 = vsel %vm278_vm0, %v9549_v6, %v811_v39 }
 0x139   : > { %8184 = vmatprep.subr.bf16.mxu1 %v8913_v32  ;;  %6336 = vmatprep.mubr.bf16.mxu1 %v812_v13  ;;  %v821_v32 = vshrl.u32 %v10567_v59, 16  ;;  %v8945_v13 = vld [vmem:[%s11648_s1 + $0xad8] sm:$0xff]  }
 0x13a   : > { %8157 = vmatpush3.bf16.msra.mxu0 %v8914_v22  ;;  %v813_v22 = vshrl.u32 %v10569_v34, 16 }
 0x13b   : > { %v7772_v29 = vpop.f32.mrb[16].mxu0  ;;  %8158 = vmatprep.subr.bf16.mxu0 %v8916_v23  ;;  %v829_v23 = vshrl.u32 %v10587_v10, 16 }
 0x13c   : > { %v7800_v17 = vpop.f32.mrb[16].mxu1  ;;  %v7773_v56 = vpop.f32.mrb[17].mxu0  ;;  %8185 = vmatpush3.bf16.msra.mxu1 %v8915_v54  ;;  %v837_v54 = vshrl.u32 %v10582_v7, 16 }
 0x13d   : > { %v7774_v41 = vadd.f32 %v7773_v56, %v7772_v29  ;;  %v7801_v31 = vpop.f32.mrb[17].mxu1  ;;  %v7775_v48 = vpop.f32.mrb[18].mxu0  ;;  %8186 = vmatprep.subr.bf16.mxu1 %v8917_v55  ;;  %v8927_v29 = vld [vmem:[%s11648_s1 + $0x9b8] sm:$0xff]   ;;  %v8928_v56 = vld [vmem:[%s11648_s1 + $0xa40] sm:$0xff]   ;;  %v867_v55 = vrot.slane %v10567_v59, 1 }
 0x13e   : > { %v7802_v45 = vadd.f32 %v7801_v31, %v7800_v17  ;;  %v7803_v38 = vpop.f32.mrb[18].mxu1  ;;  %v7776_v9 = vpop.f32.mrb[19].mxu0  ;;  %v804_v17 = vshll.u32 %v10587_v10, 16  ;;  %v8929_v31 = vld [vmem:[%s11648_s1 + $0xac0] sm:$0xff]  }
 0x13f   : > { %v5604_v35 = vadd.f32 %v7774_v41, %v10495_v15  ;;  %v7777_v26 = vadd.f32 %v7776_v9, %v7775_v48  ;;  %v7804_v49 = vpop.f32.mrb[19].mxu1  ;;  %v8918_v15 = vld [vmem:[%s11648_s1 + $0x928] sm:$0xff]   ;;  %v8931_v48 = vld [vmem:[%s11648_s1 + $0xa80] sm:$0xff]  }
 0x140   : > { %v7805_v24 = vadd.f32 %v7804_v49, %v7803_v38  ;;  %8159 = vmatpush3.bf16.msra.mxu0 %v8918_v15  ;;  %8187 = vmatpush3.bf16.msra.mxu1 %v8919_v52  ;;  %v806_v6 = vrot.slane %v804_v17, 1  ;;  %v10709_v38 = vrot.slane %v813_v22, 1  ;;  %v8934_v9 = vld [vmem:[%s11648_s1 + $0xa08] sm:$0xff]   ;;  %v206_v49 = vld [vmem:[%s9325_s28 + $0x60] sm:$0x11]  ;;  %v10723_v15 = vrot.slane %v829_v23, 1 }
 0x141   : > { %v10635_v40 = vadd.f32 %v7802_v45, %v5604_v35  ;;  %v5607_v30 = vadd.f32 %v7777_v26, %v10510_v28  ;;  %8160 = vmatprep.subr.bf16.mxu0 %v8920_v44  ;;  %v8922_v28 = vld [vmem:[%s11648_s1 + $0x930] sm:$0xff]   ;;  %8188 = vmatprep.subr.bf16.mxu1 %v8921_v36  ;;  %v8932_v35 = vld [vmem:[%s11648_s1 + $0xa48] sm:$0xff]   ;;  %v815_v44 = vor.u32 %v813_v22, %v10610_v46  ;;  %v864_v36 = vrot.slane %v10569_v34, 1 }
 0x142   : > { %v807_v45 = vsel %vm278_vm0, %v9556_v8, %v806_v6  ;;  %v8933_v8 = vld [vmem:[%s11648_s1 + $0xac8] sm:$0xff]   ;;  %v8938_v52 = vld [vmem:[%s11648_s1 + $0xa50] sm:$0xff]  }
 0x143   : > { %v7778_v50 = vpop.f32.mrb[20].mxu0  ;;  %v10650_v27 = vadd.f32 %v7805_v24, %v5607_v30  ;;  %v8935_v26 = vld [vmem:[%s11648_s1 + $0xa88] sm:$0xff]   ;;  %v10725_v24 = vcombine.high %v206_v49, %v206_v49  ;;  %v873_v30 = vrot.slane %v10582_v7, 1  ;;  %v8941_v46 = vld [vmem:[%s11648_s1 + $0xa10] sm:$0xff]  }
 0x144   : > { %v7779_v60 = vpop.f32.mrb[21].mxu0  ;;  %v7806_v14 = vpop.f32.mrb[20].mxu1  ;;  %8161 = vmatpush3.bf16.msra.mxu0 %v8922_v28  ;;  %8189 = vmatpush3.bf16.msra.mxu1 %v8923_v47  ;;  %v831_v47 = vor.u32 %v829_v23, %v806_v6  ;;  %v8947_v6 = vld [vmem:[%s11648_s1 + $0xa98] sm:$0xff]  }
 0x145   : > { %v7780_v43 = vadd.f32 %v7779_v60, %v7778_v50  ;;  %v7781_v33 = vpop.f32.mrb[22].mxu0  ;;  %v7807_v0 = vpop.f32.mrb[21].mxu1  ;;  %8162 = vmatprep.subr.bf16.mxu0 %v8924_v1  ;;  %v10727_v50 = vcombine.low %v206_v49, %v206_v49  ;;  %v823_v60 = vor.u32 %v821_v32, %v10595_v37  ;;  %v839_v37 = vor.u32 %v837_v54, %v811_v39 }
 0x146   : > { %v7782_v5 = vpop.f32.mrb[23].mxu0  ;;  %v7808_v2 = vadd.f32 %v7807_v0, %v7806_v14  ;;  %v7809_v12 = vpop.f32.mrb[22].mxu1  ;;  %v825_v14 = vshll.u32 %v10725_v24, 16 }
 0x147   : > { %v5612_v18 = vadd.f32 %v7780_v43, %v10535_v51  ;;  %v7783_v42 = vadd.f32 %v7782_v5, %v7781_v33  ;;  %v8925_v51 = vld [vmem:[%s11648_s1 + $0x9f8] sm:$0xff]   ;;  %v7810_v25 = vpop.f32.mrb[23].mxu1  ;;  %v8939_v43 = vld [vmem:[%s11648_s1 + $0xad0] sm:$0xff]   ;;  %v207_v33 = vld [vmem:[%s9325_s28 + $0x68] sm:$0x11]  ;;  %v817_v28 = vshll.u32 %v10727_v50, 16 }
 0x148   : > { %8190 = vmatprep.subr.bf16.mxu1 %v8925_v51  ;;  %8163 = vmatpush3.bf16.msra.mxu0 %v8926_v57  ;;  %v10746_v5 = vcombine.low %v207_v33, %v207_v33  ;;  %v827_v0 = vrot.slane %v825_v14, 1 }
 0x149   : > { %v5615_v58 = vadd.f32 %v7783_v42, %v10543_v61  ;;  %v10674_v16 = vadd.f32 %v7808_v2, %v5612_v18  ;;  %v7811_v61 = vadd.f32 %v7810_v25, %v7809_v12  ;;  %8191 = vmatpush3.bf16.msra.mxu1 %v8927_v29  ;;  %8204 = vmatprep.subr.bf16.mxu0 %v8928_v56  ;;  %v870_v42 = vrot.slane %v10587_v10, 1  ;;  %v8942_v12 = vld [vmem:[%s11648_s1 + $0xa90] sm:$0xff]  }
 0x14a   : > { %8232 = vmatprep.subr.bf16.mxu1 %v8929_v31  ;;  %v10744_v18 = vcombine.high %v207_v33, %v207_v33  ;;  %v819_v1 = vrot.slane %v817_v28, 1  ;;  %v833_v51 = vshll.u32 %v10746_v5, 16  ;;  %v828_v39 = vsel %vm278_vm0, %v823_v60, %v827_v0  ;;  %v8952_v60 = vld [vmem:[%s11648_s1 + $0xa68] sm:$0xff]  }
 0x14b   : > { %v10689_v41 = vadd.f32 %v7811_v61, %v5615_v58  ;;  %6288 = vmatmul.mubr.bf16.vlgmr.msra.gmra.mrb[72].mxu0 %v797_v62  ;;  %v8944_v58 = vld [vmem:[%s11648_s1 + $0xa58] sm:$0xff]   ;;  %v8954_v28 = vld [vmem:[%s11648_s1 + $0xa28] sm:$0xff]   ;;  %v877_v0 = vrot.slane %v10725_v24, 1 }
 0x14c   : > { %6337 = vmatmul.mubr.bf16.vlgmr.msra.gmra.mrb[72].mxu1 %v807_v45  ;;  %8205 = vmatpush3.bf16.msra.mxu0 %v8930_v63  ;;  %v841_v2 = vshll.u32 %v10744_v18, 16  ;;  %v820_v57 = vsel %vm278_vm0, %v815_v44, %v819_v1  ;;  %v835_v29 = vrot.slane %v833_v51, 1  ;;  %v8946_v61 = vld [vmem:[%s11648_s1 + $0xa18] sm:$0xff]   ;;  %v8948_v63 = vld [vmem:[%s11648_s1 + $0xa60] sm:$0xff]   ;;  %v8957_v51 = vld [vmem:[%s11648_s1 + $0xaf0] sm:$0xff]  }
 0x14d   : > { %8233 = vmatpush3.bf16.msra.mxu1 %v8931_v48  ;;  %8206 = vmatprep.subr.bf16.mxu0 %v8932_v35  ;;  %v8949_v45 = vld [vmem:[%s11648_s1 + $0xae0] sm:$0xff]  }
 0x14e   : > { %8234 = vmatprep.subr.bf16.mxu1 %v8933_v8  ;;  %v843_v25 = vrot.slane %v841_v2, 1  ;;  %6295 = vmatprep.mubr.bf16.mxu0 %v828_v39  ;;  %v836_v56 = vsel %vm278_vm0, %v831_v47, %v835_v29  ;;  %v8950_v35 = vld [vmem:[%s11648_s1 + $0xa20] sm:$0xff]   ;;  %v8956_v2 = vld [vmem:[%s11648_s1 + $0xa70] sm:$0xff]  }
 0x150   : > { %8207 = vmatpush3.bf16.msra.mxu0 %v8934_v9  ;;  %v844_v62 = vsel %vm278_vm0, %v839_v37, %v843_v25  ;;  %v8951_v9 = vld [vmem:[%s11648_s1 + $0xaa0] sm:$0xff]   ;;  %v8959_v25 = vld [vmem:[%s11648_s1 + $0xab0] sm:$0xff]  }
 0x151   : > { %8235 = vmatpush3.bf16.msra.mxu1 %v8935_v26  ;;  %8208 = vmatprep.subr.bf16.mxu0 %v8938_v52 }
 0x152   : > { %8236 = vmatprep.subr.bf16.mxu1 %v8939_v43  ;;  %6344 = vmatprep.mubr.bf16.mxu1 %v844_v62  ;;  %v8953_v43 = vld [vmem:[%s11648_s1 + $0xae8] sm:$0xff]  }
 0x153   : > { %6296 = vmatmul.mubr.bf16.gmra.mrb[76].mxu0 %v820_v57 }
 0x154   : > { %8209 = vmatpush3.bf16.msra.mxu0 %v8941_v46  ;;  %6345 = vmatmul.mubr.bf16.gmra.mrb[76].mxu1 %v836_v56  ;;  %v8955_v46 = vld [vmem:[%s11648_s1 + $0xaa8] sm:$0xff]   ;;  %v8961_v56 = vld [vmem:[%s11648_s1 + $0xaf8] sm:$0xff]  }
 0x155   : > { %8237 = vmatpush3.bf16.msra.mxu1 %v8942_v12  ;;  %8210 = vmatprep.subr.bf16.mxu0 %v8944_v58  ;;  %v875_v12 = vrot.slane %v10727_v50, 1  ;;  %v881_v58 = vrot.slane %v10744_v18, 1  ;;  %v8977_v18 = vld [vmem:[%s11648_s1 + $0xbd0] sm:$0xff]  }
 0x156   : > { %8238 = vmatprep.subr.bf16.mxu1 %v8945_v13 }
 0x158   : > { %8211 = vmatpush3.bf16.msra.mxu0 %v8946_v61  ;;  %v8960_v61 = vld [vmem:[%s11648_s1 + $0xa78] sm:$0xff]  }
 0x159   : > { %8239 = vmatpush3.bf16.msra.mxu1 %v8947_v6  ;;  %8212 = vmatprep.subr.bf16.mxu0 %v8948_v63  ;;  %v8962_v63 = vld [vmem:[%s11648_s1 + $0xa38] sm:$0xff]  }
 0x15a   : > { %8240 = vmatprep.subr.bf16.mxu1 %v8949_v45  ;;  %v8963_v45 = vld [vmem:[%s11648_s1 + $0xab8] sm:$0xff]  }
 0x15b   : > { %v7828_v31 = vpop.f32.mrb[24].mxu0 }
 0x15c   : > { %v7856_v22 = vpop.f32.mrb[24].mxu1  ;;  %v7829_v48 = vpop.f32.mrb[25].mxu0  ;;  %8213 = vmatpush3.bf16.msra.mxu0 %v8950_v35 }
 0x15d   : > { %v7830_v8 = vadd.f32 %v7829_v48, %v7828_v31  ;;  %v7857_v23 = vpop.f32.mrb[25].mxu1  ;;  %v7831_v49 = vpop.f32.mrb[26].mxu0  ;;  %8241 = vmatpush3.bf16.msra.mxu1 %v8951_v9  ;;  %8214 = vmatprep.subr.bf16.mxu0 %v8952_v60  ;;  %v8968_v60 = vld [vmem:[%s11648_s1 + $0xb40] sm:$0xff]  }
 0x15e   : > { %v7858_v26 = vadd.f32 %v7857_v23, %v7856_v22  ;;  %v7859_v44 = vpop.f32.mrb[26].mxu1  ;;  %v7832_v33 = vpop.f32.mrb[27].mxu0  ;;  %8242 = vmatprep.subr.bf16.mxu1 %v8953_v43  ;;  %v9165_v43 = vld [vmem:[%s9325_s28 + $0x38] sm:$0xff] }
 0x15f   : > { %v5702_v52 = vadd.f32 %v7830_v8, %v10635_v40  ;;  %v7833_v37 = vadd.f32 %v7832_v33, %v7831_v49  ;;  %v7860_v40 = vpop.f32.mrb[27].mxu1  ;;  %v208_v8 = vld [vmem:[%s9325_s28 + $0x20] sm:$0xee] }
 0x160   : > { %v7861_v47 = vadd.f32 %v7860_v40, %v7859_v44  ;;  %8215 = vmatpush3.bf16.msra.mxu0 %v8954_v28  ;;  %v8969_v40 = vld [vmem:[%s11648_s1 + $0xbc0] sm:$0xff]  }
 0x161   : > { %v10794_v14 = vadd.f32 %v7858_v26, %v5702_v52  ;;  %v5705_v1 = vadd.f32 %v7833_v37, %v10650_v27  ;;  %8243 = vmatpush3.bf16.msra.mxu1 %v8955_v46  ;;  %8216 = vmatprep.subr.bf16.mxu0 %v8956_v2  ;;  %v8958_v27 = vld [vmem:[%s11648_s1 + $0xa30] sm:$0xff]   ;;  %v209_v52 = vld [vmem:[%s9325_s28 + $0x28] sm:$0xee] }
 0x162   : > { %8244 = vmatprep.subr.bf16.mxu1 %v8957_v51  ;;  %v9164_v26 = vld [vmem:[%s9325_s28 + $0x30] sm:$0xff]  ;;  %v10843_v33 = vcombine.low %v209_v52, %v9165_v43  ;;  %v10845_v28 = vcombine.high %v209_v52, %v9165_v43 }
 0x163   : > { %v10812_v39 = vadd.f32 %v7861_v47, %v5705_v1  ;;  %v7834_v57 = vpop.f32.mrb[28].mxu0  ;;  %v7097_v49 = vcombine.high %v208_v8, %v9164_v26 }
 0x164   : > { %v7835_v29 = vpop.f32.mrb[29].mxu0  ;;  %8217 = vmatpush3.bf16.msra.mxu0 %v8958_v27  ;;  %v869_v51 = vrot.slane %v10843_v33, 1  ;;  %v8970_v27 = vld [vmem:[%s11648_s1 + $0xb00] sm:$0xff]   ;;  %v941_v59 = vshll.u32 %v10845_v28, 16 }
 0x165   : > { %v7836_v13 = vadd.f32 %v7835_v29, %v7834_v57  ;;  %v7837_v62 = vpop.f32.mrb[30].mxu0  ;;  %8245 = vmatpush3.bf16.msra.mxu1 %v8959_v25  ;;  %8218 = vmatprep.subr.bf16.mxu0 %v8960_v61  ;;  %v866_v47 = vrot.slane %v7097_v49, 1  ;;  %v8971_v57 = vld [vmem:[%s11648_s1 + $0xb80] sm:$0xff]  }
 0x166   : > { %v7862_v6 = vpop.f32.mrb[28].mxu1  ;;  %v7838_v22 = vpop.f32.mrb[31].mxu0  ;;  %8246 = vmatprep.subr.bf16.mxu1 %v8961_v56  ;;  %v8972_v56 = vld [vmem:[%s11648_s1 + $0xb48] sm:$0xff]  }
 0x167   : > { %v5710_v31 = vadd.f32 %v7836_v13, %v10674_v16  ;;  %v7839_v48 = vadd.f32 %v7838_v22, %v7837_v62  ;;  %v7863_v35 = vpop.f32.mrb[29].mxu1  ;;  %v10835_v16 = vcombine.low %v208_v8, %v9164_v26  ;;  %v868_v25 = vsel %vm377_vm1, %v866_v47, %v867_v55  ;;  %v8978_v8 = vld [vmem:[%s11648_s1 + $0xb10] sm:$0xff]  }
 0x168   : > { %8219 = vmatpush3.bf16.msra.mxu0 %v8962_v63  ;;  %v7864_v23 = vadd.f32 %v7863_v35, %v7862_v6  ;;  %v7865_v9 = vpop.f32.mrb[30].mxu1  ;;  %6385 = vmatprep.mubr.bf16.mxu0 %v868_v25  ;;  %v871_v62 = vsel %vm377_vm1, %v869_v51, %v870_v42  ;;  %v879_v6 = vrot.slane %v10746_v5, 1  ;;  %v878_v63 = vsel %vm377_vm1, %v867_v55, %v877_v0  ;;  %v8975_v55 = vld [vmem:[%s11648_s1 + $0xb88] sm:$0xff]   ;;  %v8976_v0 = vld [vmem:[%s11648_s1 + $0xb50] sm:$0xff]   ;;  %v8986_v51 = vld [vmem:[%s11648_s1 + $0xb20] sm:$0xff]  }
 0x169   : > { %v5713_v44 = vadd.f32 %v7839_v48, %v10689_v41  ;;  %v7866_v37 = vpop.f32.mrb[31].mxu1  ;;  %8247 = vmatpush3.bf16.msra.mxu1 %v8963_v45  ;;  %v863_v2 = vrot.slane %v10835_v16, 1  ;;  %8260 = vmatprep.subr.bf16.mxu0 %v8968_v60  ;;  %v872_v41 = vrot.slane %v10845_v28, 1  ;;  %v914_v22 = vshrl.u32 %v7097_v49, 16  ;;  %v8974_v45 = vld [vmem:[%s11648_s1 + $0xb08] sm:$0xff]   ;;  %v8987_v25 = vld [vmem:[%s11648_s1 + $0xba0] sm:$0xff]  }
 0x16a   : > { %v10850_v46 = vadd.f32 %v7864_v23, %v5710_v31  ;;  %v7867_v1 = vadd.f32 %v7866_v37, %v7865_v9  ;;  %8288 = vmatprep.subr.bf16.mxu1 %v8969_v40  ;;  %v8973_v31 = vld [vmem:[%s11648_s1 + $0xbc8] sm:$0xff]   ;;  %v882_v5 = vsel %vm377_vm1, %v873_v30, %v881_v58  ;;  %v917_v48 = vshll.u32 %v7097_v49, 16  ;;  %v8984_v37 = vld [vmem:[%s11648_s1 + $0xb60] sm:$0xff]  }
 0x16b   : > { %v865_v13 = vsel %vm377_vm1, %v863_v2, %v864_v36  ;;  %v874_v61 = vsel %vm377_vm1, %v872_v41, %v873_v30  ;;  %v916_v24 = vrot.slane %v914_v22, 1  ;;  %v921_v30 = vrot.slane %v821_v32, 1  ;;  %v8979_v32 = vld [vmem:[%s11648_s1 + $0xb90] sm:$0xff]   ;;  %v8990_v22 = vld [vmem:[%s11648_s1 + $0xb28] sm:$0xff]  }
 0x16c   : > { %v10864_v29 = vadd.f32 %v7867_v1, %v5713_v44  ;;  %6434 = vmatprep.mubr.bf16.mxu1 %v874_v61  ;;  %6386 = vmatmul.mubr.bf16.vlgmr.msra.gmra.mrb[80].mxu0 %v865_v13  ;;  %v919_v35 = vrot.slane %v917_v48, 2  ;;  %v876_v58 = vsel %vm377_vm1, %v864_v36, %v875_v12  ;;  %v922_v9 = vrot.slane %v799_v3, 2  ;;  %v8980_v12 = vld [vmem:[%s11648_s1 + $0xb58] sm:$0xff]   ;;  %v8985_v1 = vld [vmem:[%s11648_s1 + $0xbe0] sm:$0xff]   ;;  %v8991_v48 = vld [vmem:[%s11648_s1 + $0xba8] sm:$0xff]  }
 0x16d   : > { %6435 = vmatmul.mubr.bf16.vlgmr.msra.gmra.mrb[80].mxu1 %v871_v62  ;;  %8261 = vmatpush3.bf16.msra.mxu0 %v8970_v27  ;;  %v880_v50 = vsel %vm377_vm1, %v870_v42, %v879_v6  ;;  %v938_v36 = vshrl.u32 %v10845_v28, 16  ;;  %v8981_v3 = vld [vmem:[%s11648_s1 + $0xbd8] sm:$0xff]   ;;  %v8988_v62 = vld [vmem:[%s11648_s1 + $0xb68] sm:$0xff]  }
 0x16e   : > { %8289 = vmatpush3.bf16.msra.mxu1 %v8971_v57  ;;  %8262 = vmatprep.subr.bf16.mxu0 %v8972_v56  ;;  %v920_v23 = vor.u32 %v919_v35, %v916_v24  ;;  %v10926_v26 = vor.u32 %v922_v9, %v921_v30  ;;  %v8982_v42 = vld [vmem:[%s11648_s1 + $0xb18] sm:$0xff]   ;;  %v8992_v35 = vld [vmem:[%s11648_s1 + $0xb70] sm:$0xff]  }
 0x16f   : > { %8290 = vmatprep.subr.bf16.mxu1 %v8973_v31  ;;  %6393 = vmatprep.mubr.bf16.mxu0 %v878_v63  ;;  %v8983_v44 = vld [vmem:[%s11648_s1 + $0xb98] sm:$0xff]  }
 0x170   : > { %6442 = vmatprep.mubr.bf16.mxu1 %v882_v5  ;;  %v924_v60 = vsel %vm416_vm2, %v920_v23, %v10926_v26 }
 0x171   : > { %8263 = vmatpush3.bf16.msra.mxu0 %v8974_v45 }
 0x172   : > { %8291 = vmatpush3.bf16.msra.mxu1 %v8975_v55  ;;  %8264 = vmatprep.subr.bf16.mxu0 %v8976_v0 }
 0x173   : > { %8292 = vmatprep.subr.bf16.mxu1 %v8977_v18 }
 0x174   : > { %6394 = vmatmul.mubr.bf16.gmra.mrb[84].mxu0 %v876_v58 }
 0x175   : > { %8265 = vmatpush3.bf16.msra.mxu0 %v8978_v8  ;;  %6443 = vmatmul.mubr.bf16.gmra.mrb[84].mxu1 %v880_v50  ;;  %v8994_v8 = vld [vmem:[%s11648_s1 + $0xb30] sm:$0xff]  }
 0x176   : > { %8293 = vmatpush3.bf16.msra.mxu1 %v8979_v32  ;;  %8266 = vmatprep.subr.bf16.mxu0 %v8980_v12  ;;  %v8995_v32 = vld [vmem:[%s11648_s1 + $0xbb0] sm:$0xff]  }
 0x177   : > { %8294 = vmatprep.subr.bf16.mxu1 %v8981_v3  ;;  %6483 = vmatprep.mubr.bf16.mxu0 %v924_v60  ;;  %v943_v60 = vrot.slane %v941_v59, 2  ;;  %v902_v59 = vshrl.u32 %v10835_v16, 16 }
 0x179   : > { %8267 = vmatpush3.bf16.msra.mxu0 %v8982_v42  ;;  %v8997_v42 = vld [vmem:[%s11648_s1 + $0xbf8] sm:$0xff]   ;;  %v904_v7 = vrot.slane %v902_v59, 1 }
 0x17a   : > { %8295 = vmatpush3.bf16.msra.mxu1 %v8983_v44  ;;  %8268 = vmatprep.subr.bf16.mxu0 %v8984_v37  ;;  %v8998_v44 = vld [vmem:[%s11648_s1 + $0xb38] sm:$0xff]   ;;  %v946_v37 = vrot.slane %v809_v20, 2  ;;  %v929_v20 = vshll.u32 %v10843_v33, 16 }
 0x17b   : > { %v7884_v49 = vpop.f32.mrb[32].mxu0  ;;  %8296 = vmatprep.subr.bf16.mxu1 %v8985_v1  ;;  %v926_v1 = vshrl.u32 %v10843_v33, 16 }
 0x17c   : > { %v7912_v52 = vpop.f32.mrb[32].mxu1  ;;  %v7885_v43 = vpop.f32.mrb[33].mxu0  ;;  %v931_v33 = vrot.slane %v929_v20, 2 }
 0x17d   : > { %v7886_v40 = vadd.f32 %v7885_v43, %v7884_v49  ;;  %v7913_v47 = vpop.f32.mrb[33].mxu1  ;;  %v7887_v41 = vpop.f32.mrb[34].mxu0  ;;  %8269 = vmatpush3.bf16.msra.mxu0 %v8986_v51  ;;  %v940_v49 = vrot.slane %v938_v36, 1  ;;  %v8999_v36 = vld [vmem:[%s11648_s1 + $0xbb8] sm:$0xff]   ;;  %v934_v51 = vrot.slane %v804_v17, 2  ;;  %v9002_v17 = vld [vmem:[%s11648_s1 + $0xc00] sm:$0xff]  }
 0x17e   : > { %v7914_v2 = vadd.f32 %v7913_v47, %v7912_v52  ;;  %v7915_v57 = vpop.f32.mrb[34].mxu1  ;;  %v7888_v13 = vpop.f32.mrb[35].mxu0  ;;  %8297 = vmatpush3.bf16.msra.mxu1 %v8987_v25  ;;  %8270 = vmatprep.subr.bf16.mxu0 %v8988_v62  ;;  %v905_v47 = vshll.u32 %v10835_v16, 16  ;;  %v9001_v16 = vld [vmem:[%s11648_s1 + $0xcc0] sm:$0xff]  }
 0x17f   : > { %v5800_v27 = vadd.f32 %v7886_v40, %v10794_v14  ;;  %v7889_v56 = vadd.f32 %v7888_v13, %v7887_v41  ;;  %v7916_v6 = vpop.f32.mrb[35].mxu1  ;;  %v8989_v14 = vld [vmem:[%s11648_s1 + $0xbe8] sm:$0xff]   ;;  %v944_v43 = vor.u32 %v943_v60, %v940_v49  ;;  %v11030_v10 = vor.u32 %v934_v51, %v10723_v15  ;;  %v9016_v49 = vld [vmem:[%s11648_s1 + $0xc58] sm:$0xff]  }
 0x180   : > { %v7917_v31 = vadd.f32 %v7916_v6, %v7915_v57  ;;  %8298 = vmatprep.subr.bf16.mxu1 %v8989_v14  ;;  %v928_v57 = vrot.slane %v926_v1, 1  ;;  %v9005_v6 = vld [vmem:[%s11648_s1 + $0xcc8] sm:$0xff]   ;;  %v9019_v51 = vld [vmem:[%s11648_s1 + $0xc98] sm:$0xff]  }
 0x181   : > { %v10953_v61 = vadd.f32 %v7914_v2, %v5800_v27  ;;  %v5803_v45 = vadd.f32 %v7889_v56, %v10812_v39  ;;  %v8993_v39 = vld [vmem:[%s11648_s1 + $0xbf0] sm:$0xff]   ;;  %8271 = vmatpush3.bf16.msra.mxu0 %v8990_v22  ;;  %v9000_v2 = vld [vmem:[%s11648_s1 + $0xc40] sm:$0xff]   ;;  %v9004_v56 = vld [vmem:[%s11648_s1 + $0xc48] sm:$0xff]  }
 0x182   : > { %8299 = vmatpush3.bf16.msra.mxu1 %v8991_v48  ;;  %8272 = vmatprep.subr.bf16.mxu0 %v8992_v35  ;;  %v932_v62 = vor.u32 %v931_v33, %v928_v57  ;;  %v210_v22 = vld [vmem:[%s9325_s28 + $0x60] sm:$0x33]  ;;  %v9010_v48 = vld [vmem:[%s11648_s1 + $0xc50] sm:$0xff]  }
 0x183   : > { %v7890_v63 = vpop.f32.mrb[36].mxu0  ;;  %v10968_v0 = vadd.f32 %v7917_v31, %v5803_v45  ;;  %8300 = vmatprep.subr.bf16.mxu1 %v8993_v39  ;;  %v9006_v31 = vld [vmem:[%s11648_s1 + $0xc08] sm:$0xff]   ;;  %v7101_v45 = vcombine.high %v210_v22, %v210_v22 }
 0x184   : > { %v7891_v5 = vpop.f32.mrb[37].mxu0  ;;  %v7918_v18 = vpop.f32.mrb[36].mxu1  ;;  %v936_v14 = vsel %vm416_vm2, %v932_v62, %v11030_v10 }
 0x185   : > { %v7892_v55 = vadd.f32 %v7891_v5, %v7890_v63  ;;  %v7893_v24 = vpop.f32.mrb[38].mxu0  ;;  %v7919_v9 = vpop.f32.mrb[37].mxu1  ;;  %8273 = vmatpush3.bf16.msra.mxu0 %v8994_v8  ;;  %v9007_v63 = vld [vmem:[%s11648_s1 + $0xc88] sm:$0xff]   ;;  %v7100_v5 = vcombine.low %v210_v22, %v210_v22  ;;  %v959_v35 = vshrl.u32 %v7101_v45, 16  ;;  %v9013_v8 = vld [vmem:[%s11648_s1 + $0xc10] sm:$0xff]  }
 0x186   : > { %v7894_v58 = vpop.f32.mrb[39].mxu0  ;;  %v7920_v50 = vadd.f32 %v7919_v9, %v7918_v18  ;;  %v7921_v12 = vpop.f32.mrb[38].mxu1  ;;  %8301 = vmatpush3.bf16.msra.mxu1 %v8995_v32  ;;  %v962_v18 = vshll.u32 %v7101_v45, 16  ;;  %v9026_v22 = vld [vmem:[%s11648_s1 + $0xc28] sm:$0xff]  }
 0x187   : > { %v5808_v30 = vadd.f32 %v7892_v55, %v10850_v46  ;;  %v7895_v23 = vadd.f32 %v7894_v58, %v7893_v24  ;;  %v8996_v46 = vld [vmem:[%s11648_s1 + $0xb78] sm:$0xff]   ;;  %v7922_v28 = vpop.f32.mrb[39].mxu1  ;;  %8302 = vmatprep.subr.bf16.mxu1 %v8997_v42  ;;  %v9011_v55 = vld [vmem:[%s11648_s1 + $0xcd0] sm:$0xff]   ;;  %v211_v24 = vld [vmem:[%s9325_s28 + $0x68] sm:$0x33]  ;;  %v950_v39 = vshrl.u32 %v7100_v5, 16 }
 0x188   : > { %8274 = vmatprep.subr.bf16.mxu0 %v8996_v46  ;;  %v7923_v40 = vadd.f32 %v7922_v28, %v7921_v12  ;;  %v7103_v58 = vcombine.high %v211_v24, %v211_v24  ;;  %v961_v32 = vrot.slane %v959_v35, 1  ;;  %v9029_v35 = vld [vmem:[%s11648_s1 + $0xcf0] sm:$0xff]  }
 0x189   : > { %v5811_v3 = vadd.f32 %v7895_v23, %v10864_v29  ;;  %v10992_v52 = vadd.f32 %v7920_v50, %v5808_v30  ;;  %v945_v29 = vrot.slane %v837_v54, 1  ;;  %v910_v54 = vrot.slane %v794_v53, 2  ;;  %8275 = vmatpush3.bf16.msra.mxu0 %v8998_v44 }
 0x18a   : > { %v907_v53 = vrot.slane %v905_v47, 2  ;;  %8303 = vmatpush3.bf16.msra.mxu1 %v8999_v36  ;;  %8316 = vmatprep.subr.bf16.mxu0 %v9000_v2  ;;  %v953_v30 = vshll.u32 %v7100_v5, 16  ;;  %v7102_v23 = vcombine.low %v211_v24, %v211_v24  ;;  %v964_v50 = vrot.slane %v962_v18, 2  ;;  %v9017_v47 = vld [vmem:[%s11648_s1 + $0xcd8] sm:$0xff]  }
 0x18b   : > { %v11014_v41 = vor.u32 %v946_v37, %v945_v29  ;;  %v11022_v34 = vadd.f32 %v7923_v40, %v5811_v3  ;;  %v11025_v27 = vor.u32 %v910_v54, %v10709_v38  ;;  %8344 = vmatprep.subr.bf16.mxu1 %v9001_v16  ;;  %v9003_v38 = vld [vmem:[%s11648_s1 + $0xc80] sm:$0xff]   ;;  %v952_v12 = vrot.slane %v950_v39, 1  ;;  %v9014_v3 = vld [vmem:[%s11648_s1 + $0xc90] sm:$0xff]   ;;  %v9018_v54 = vld [vmem:[%s11648_s1 + $0xc18] sm:$0xff]  }
 0x18c   : > { %v908_v13 = vor.u32 %v907_v53, %v904_v7  ;;  %v955_v46 = vrot.slane %v953_v30, 2  ;;  %v977_v42 = vshrl.u32 %v7103_v58, 16  ;;  %v980_v60 = vshll.u32 %v7103_v58, 16  ;;  %v9020_v53 = vld [vmem:[%s11648_s1 + $0xc60] sm:$0xff]   ;;  %v9031_v58 = vld [vmem:[%s11648_s1 + $0xcb0] sm:$0xff]  }
 0x18d   : > { %v948_v25 = vsel %vm416_vm2, %v944_v43, %v11014_v41  ;;  %v968_v44 = vshrl.u32 %v7102_v23, 16  ;;  %v971_v29 = vshll.u32 %v7102_v23, 16  ;;  %v965_v36 = vor.u32 %v964_v50, %v961_v32 }
 0x18e   : > { %6532 = vmatprep.mubr.bf16.mxu1 %v948_v25  ;;  %v912_v15 = vsel %vm416_vm2, %v908_v13, %v11025_v27  ;;  %v956_v43 = vor.u32 %v955_v46, %v952_v12  ;;  %v979_v37 = vrot.slane %v977_v42, 1  ;;  %v982_v28 = vrot.slane %v980_v60, 2  ;;  %v9021_v25 = vld [vmem:[%s11648_s1 + $0xce0] sm:$0xff]   ;;  %v9033_v12 = vld [vmem:[%s11648_s1 + $0xcf8] sm:$0xff]  }
 0x18f   : > { %6484 = vmatmul.mubr.bf16.vlgmr.msra.gmra.mrb[88].mxu0 %v912_v15  ;;  %6533 = vmatmul.mubr.bf16.vlgmr.msra.gmra.mrb[88].mxu1 %v936_v14  ;;  %v970_v59 = vrot.slane %v968_v44, 1  ;;  %v973_v40 = vrot.slane %v971_v29, 2  ;;  %v966_v1 = vsel %vm416_vm2, %v10926_v26, %v965_v36  ;;  %v9022_v13 = vld [vmem:[%s11648_s1 + $0xc20] sm:$0xff]   ;;  %v9024_v15 = vld [vmem:[%s11648_s1 + $0xc68] sm:$0xff]   ;;  %v9035_v60 = vld [vmem:[%s11648_s1 + $0xcb8] sm:$0xff]  }
 0x190   : > { %8317 = vmatpush3.bf16.msra.mxu0 %v9002_v17  ;;  %8345 = vmatpush3.bf16.msra.mxu1 %v9003_v38  ;;  %v957_v2 = vsel %vm416_vm2, %v11025_v27, %v956_v43  ;;  %v983_v7 = vor.u32 %v982_v28, %v979_v37  ;;  %v9036_v36 = vld [vmem:[%s11648_s1 + $0xd40] sm:$0xff]  }
 0x191   : > { %8318 = vmatprep.subr.bf16.mxu0 %v9004_v56  ;;  %8346 = vmatprep.subr.bf16.mxu1 %v9005_v6  ;;  %v974_v20 = vor.u32 %v973_v40, %v970_v59  ;;  %v9038_v37 = vld [vmem:[%s11648_s1 + $0xd00] sm:$0xff]   ;;  %v9040_v59 = vld [vmem:[%s11648_s1 + $0xd48] sm:$0xff]  }
 0x192   : > { %6491 = vmatprep.mubr.bf16.mxu0 %v966_v1  ;;  %v984_v26 = vsel %vm416_vm2, %v11014_v41, %v983_v7  ;;  %v9023_v41 = vld [vmem:[%s11648_s1 + $0xca0] sm:$0xff]   ;;  %v9041_v40 = vld [vmem:[%s11648_s1 + $0xdc8] sm:$0xff]   ;;  %v9046_v7 = vld [vmem:[%s11648_s1 + $0xd50] sm:$0xff]  }
 0x193   : > { %v975_v27 = vsel %vm416_vm2, %v11030_v10, %v974_v20  ;;  %6540 = vmatprep.mubr.bf16.mxu1 %v984_v26  ;;  %v9039_v28 = vld [vmem:[%s11648_s1 + $0xd80] sm:$0xff]   ;;  %v9047_v20 = vld [vmem:[%s11648_s1 + $0xdd0] sm:$0xff]  }
 0x194   : > { %8319 = vmatpush3.bf16.msra.mxu0 %v9006_v31  ;;  %8347 = vmatpush3.bf16.msra.mxu1 %v9007_v63  ;;  %v9025_v31 = vld [vmem:[%s11648_s1 + $0xce8] sm:$0xff]  }
 0x195   : > { %8320 = vmatprep.subr.bf16.mxu0 %v9010_v48  ;;  %8348 = vmatprep.subr.bf16.mxu1 %v9011_v55  ;;  %v9028_v48 = vld [vmem:[%s11648_s1 + $0xc70] sm:$0xff]  }
 0x197   : > { %6492 = vmatmul.mubr.bf16.gmra.mrb[92].mxu0 %v957_v2  ;;  %6541 = vmatmul.mubr.bf16.gmra.mrb[92].mxu1 %v975_v27  ;;  %v9050_v27 = vld [vmem:[%s11648_s1 + $0xd90] sm:$0xff]  }
 0x198   : > { %8321 = vmatpush3.bf16.msra.mxu0 %v9013_v8  ;;  %8349 = vmatpush3.bf16.msra.mxu1 %v9014_v3 }
 0x199   : > { %8322 = vmatprep.subr.bf16.mxu0 %v9016_v49  ;;  %8350 = vmatprep.subr.bf16.mxu1 %v9017_v47  ;;  %v9042_v47 = vld [vmem:[%s11648_s1 + $0xd08] sm:$0xff]  }
 0x19a   : > { %6581 = vmatprep.mubr.bf16.mxu0 %v9973_v21  ;;  %6630 = vmatprep.mubr.bf16.mxu1 %v9987_v4  ;;  %v9027_v21 = vld [vmem:[%s11648_s1 + $0xca8] sm:$0xff]  }
 0x19b   : > { %v7940_v9 = vpop.f32.mrb[40].mxu0 }
 0x19c   : > { %v7968_v16 = vpop.f32.mrb[40].mxu1  ;;  %v7941_v57 = vpop.f32.mrb[41].mxu0  ;;  %8323 = vmatpush3.bf16.msra.mxu0 %v9018_v54  ;;  %8351 = vmatpush3.bf16.msra.mxu1 %v9019_v51  ;;  %v9166_v54 = vld [vmem:[%s9325_s28 + $0x50] sm:$0xff]  ;;  %v11189_v51 = vld [vmem:[%s9325_s28 + $0x68] sm:$0xff] }
 0x19d   : > { %v7942_v33 = vadd.f32 %v7941_v57, %v7940_v9  ;;  %v7969_v17 = vpop.f32.mrb[41].mxu1  ;;  %8324 = vmatprep.subr.bf16.mxu0 %v9020_v53  ;;  %v7943_v62 = vpop.f32.mrb[42].mxu0  ;;  %8352 = vmatprep.subr.bf16.mxu1 %v9021_v25  ;;  %v9032_v9 = vld [vmem:[%s11648_s1 + $0xc78] sm:$0xff]   ;;  %v9049_v57 = vld [vmem:[%s11648_s1 + $0xd10] sm:$0xff]  }
 0x19e   : > { %v7970_v38 = vadd.f32 %v7969_v17, %v7968_v16  ;;  %v7971_v56 = vpop.f32.mrb[42].mxu1  ;;  %v7944_v6 = vpop.f32.mrb[43].mxu0  ;;  %v9167_v16 = vld [vmem:[%s9325_s28 + $0x58] sm:$0xff] }
 0x19f   : > { %v5898_v10 = vadd.f32 %v7942_v33, %v10953_v61  ;;  %v7945_v63 = vadd.f32 %v7944_v6, %v7943_v62  ;;  %v7972_v61 = vpop.f32.mrb[43].mxu1  ;;  %v7107_v53 = vcombine.high %v9167_v16, %v11189_v51  ;;  %v7106_v26 = vcombine.low %v9167_v16, %v11189_v51  ;;  %v9052_v25 = vld [vmem:[%s11648_s1 + $0xd58] sm:$0xff]   ;;  %v9057_v6 = vld [vmem:[%s11648_s1 + $0xde0] sm:$0xff]  }
 0x1a0   : > { %8325 = vmatpush3.bf16.msra.mxu0 %v9022_v13  ;;  %8353 = vmatpush3.bf16.msra.mxu1 %v9023_v41  ;;  %v7973_v45 = vadd.f32 %v7972_v61, %v7971_v56  ;;  %v9053_v33 = vld [vmem:[%s11648_s1 + $0xdd8] sm:$0xff]   ;;  %v9058_v61 = vld [vmem:[%s11648_s1 + $0xd20] sm:$0xff]  }
 0x1a1   : > { %v11106_v14 = vadd.f32 %v7970_v38, %v5898_v10  ;;  %8326 = vmatprep.subr.bf16.mxu0 %v9024_v15  ;;  %8354 = vmatprep.subr.bf16.mxu1 %v9025_v31  ;;  %v5901_v4 = vadd.f32 %v7945_v63, %v10968_v0  ;;  %v9030_v0 = vld [vmem:[%s11648_s1 + $0xc30] sm:$0xff]   ;;  %v9054_v13 = vld [vmem:[%s11648_s1 + $0xd18] sm:$0xff]   ;;  %v9056_v10 = vld [vmem:[%s11648_s1 + $0xd60] sm:$0xff]  }
 0x1a2   : > { %v9055_v62 = vld [vmem:[%s11648_s1 + $0xd98] sm:$0xff]  }
 0x1a3   : > { %v7946_v5 = vpop.f32.mrb[44].mxu0  ;;  %v11121_v24 = vadd.f32 %v7973_v45, %v5901_v4  ;;  %v215_v16 = vld [vmem:[%s9325_s28 + $0x38] sm:$0xff] }
 0x1a4   : > { %v7947_v55 = vpop.f32.mrb[45].mxu0  ;;  %8327 = vmatpush3.bf16.msra.mxu0 %v9026_v22  ;;  %8355 = vmatpush3.bf16.msra.mxu1 %v9027_v21  ;;  %v7974_v30 = vpop.f32.mrb[44].mxu1  ;;  %v9059_v21 = vld [vmem:[%s11648_s1 + $0xda0] sm:$0xff]  }
 0x1a5   : > { %v7948_v18 = vadd.f32 %v7947_v55, %v7946_v5  ;;  %v7949_v39 = vpop.f32.mrb[46].mxu0  ;;  %8328 = vmatprep.subr.bf16.mxu0 %v9028_v48  ;;  %8356 = vmatprep.subr.bf16.mxu1 %v9029_v35  ;;  %v7975_v50 = vpop.f32.mrb[45].mxu1  ;;  %v9060_v48 = vld [vmem:[%s11648_s1 + $0xd68] sm:$0xff]  }
 0x1a6   : > { %v7950_v23 = vpop.f32.mrb[47].mxu0  ;;  %v7976_v46 = vadd.f32 %v7975_v50, %v7974_v30  ;;  %v7977_v3 = vpop.f32.mrb[46].mxu1  ;;  %v9064_v50 = vld [vmem:[%s11648_s1 + $0xd70] sm:$0xff]  }
 0x1a7   : > { %v5906_v8 = vadd.f32 %v7948_v18, %v10992_v52  ;;  %v7951_v32 = vadd.f32 %v7950_v23, %v7949_v39  ;;  %v9034_v52 = vld [vmem:[%s11648_s1 + $0xc38] sm:$0xff]   ;;  %v7978_v42 = vpop.f32.mrb[47].mxu1 }
 0x1a8   : > { %8329 = vmatpush3.bf16.msra.mxu0 %v9030_v0  ;;  %8357 = vmatpush3.bf16.msra.mxu1 %v9031_v58  ;;  %v7979_v29 = vadd.f32 %v7978_v42, %v7977_v3  ;;  %v9062_v0 = vld [vmem:[%s11648_s1 + $0xd28] sm:$0xff]  }
 0x1a9   : > { %8330 = vmatprep.subr.bf16.mxu0 %v9032_v9  ;;  %v5909_v49 = vadd.f32 %v7951_v32, %v11022_v34  ;;  %8358 = vmatprep.subr.bf16.mxu1 %v9033_v12  ;;  %v11146_v44 = vadd.f32 %v7976_v46, %v5906_v8  ;;  %v9037_v34 = vld [vmem:[%s11648_s1 + $0xdc0] sm:$0xff]   ;;  %v9063_v8 = vld [vmem:[%s11648_s1 + $0xda8] sm:$0xff]  }
 0x1ab   : > { %v11151_v43 = vadd.f32 %v7979_v29, %v5909_v49 }
 0x1ac   : > { %8331 = vmatpush3.bf16.msra.mxu0 %v9034_v52  ;;  %8359 = vmatpush3.bf16.msra.mxu1 %v9035_v60  ;;  %v9066_v52 = vld [vmem:[%s11648_s1 + $0xd30] sm:$0xff]  }
 0x1ad   : > { %8372 = vmatprep.subr.bf16.mxu0 %v9036_v36  ;;  %8400 = vmatprep.subr.bf16.mxu1 %v9037_v34  ;;  %v9067_v60 = vld [vmem:[%s11648_s1 + $0xdb0] sm:$0xff]  }
 0x1af   : > { %6582 = vmatmul.mubr.bf16.vlgmr.msra.gmra.mrb[96].mxu0 %v9975_v11  ;;  %6631 = vmatmul.mubr.bf16.vlgmr.msra.gmra.mrb[96].mxu1 %v9992_v19  ;;  %v9043_v11 = vld [vmem:[%s11648_s1 + $0xd88] sm:$0xff]   ;;  %v11177_v19 = vld [vmem:[%s9325_s28 + $0x60] sm:$0xff] }
 0x1b0   : > { %8373 = vmatpush3.bf16.msra.mxu0 %v9038_v37  ;;  %8401 = vmatpush3.bf16.msra.mxu1 %v9039_v28  ;;  %v7105_v1 = vcombine.high %v9166_v54, %v11177_v19  ;;  %v7104_v2 = vcombine.low %v9166_v54, %v11177_v19  ;;  %v9069_v28 = vld [vmem:[%s11648_s1 + $0xdf8] sm:$0xff]   ;;  %v11272_v54 = vld [vmem:[%s9325_s28 + $0x40] sm:$0xff] }
 0x1b1   : > { %8374 = vmatprep.subr.bf16.mxu0 %v9040_v59  ;;  %8402 = vmatprep.subr.bf16.mxu1 %v9041_v40 }
 0x1b2   : > { %6589 = vmatprep.mubr.bf16.mxu0 %v7105_v1  ;;  %6638 = vmatprep.mubr.bf16.mxu1 %v7107_v53  ;;  %v11281_v53 = vld [vmem:[%s9325_s28 + $0x48] sm:$0xff] }
 0x1b4   : > { %8375 = vmatpush3.bf16.msra.mxu0 %v9042_v47  ;;  %8403 = vmatpush3.bf16.msra.mxu1 %v9043_v11  ;;  %v9070_v47 = vld [vmem:[%s11648_s1 + $0xd38] sm:$0xff]   ;;  %v214_v11 = vld [vmem:[%s9325_s28 + $0x30] sm:$0xff] }
 0x1b5   : > { %8376 = vmatprep.subr.bf16.mxu0 %v9046_v7  ;;  %8404 = vmatprep.subr.bf16.mxu1 %v9047_v20  ;;  %v7108_v7 = vcombine.low %v214_v11, %v11272_v54  ;;  %v7109_v20 = vcombine.high %v214_v11, %v11272_v54 }
 0x1b7   : > { %6590 = vmatmul.mubr.bf16.gmra.mrb[100].mxu0 %v7104_v2  ;;  %6639 = vmatmul.mubr.bf16.gmra.mrb[100].mxu1 %v7106_v26  ;;  %v218_v2 = vld [vmem:[%s9325_s28 + $0x50] sm:$0xff] }
 0x1b8   : > { %8377 = vmatpush3.bf16.msra.mxu0 %v9049_v57  ;;  %8405 = vmatpush3.bf16.msra.mxu1 %v9050_v27  ;;  %v11284_v57 = vcombine.low %v218_v2, %v11177_v19  ;;  %v11287_v26 = vcombine.high %v218_v2, %v11177_v19  ;;  %v219_v27 = vld [vmem:[%s9325_s28 + $0x58] sm:$0xff]  ;;  %v9081_v19 = vld [vmem:[%s11648_s1 + $0xec0] sm:$0xff]  }
 0x1b9   : > { %8378 = vmatprep.subr.bf16.mxu0 %v9052_v25  ;;  %8406 = vmatprep.subr.bf16.mxu1 %v9053_v33  ;;  %v7110_v25 = vcombine.low %v215_v16, %v11281_v53  ;;  %v7111_v33 = vcombine.high %v215_v16, %v11281_v53 }
 0x1bb   : > { %v7996_v17 = vpop.f32.mrb[48].mxu0 }
 0x1bc   : > { %v8024_v38 = vpop.f32.mrb[48].mxu1  ;;  %v7997_v41 = vpop.f32.mrb[49].mxu0  ;;  %8379 = vmatpush3.bf16.msra.mxu0 %v9054_v13  ;;  %8407 = vmatpush3.bf16.msra.mxu1 %v9055_v62  ;;  %v1064_v13 = vshll.u32 %v7109_v20, 16  ;;  %v11296_v62 = vcombine.high %v219_v27, %v11189_v51 }
 0x1bd   : > { %v7998_v56 = vadd.f32 %v7997_v41, %v7996_v17  ;;  %v8025_v15 = vpop.f32.mrb[49].mxu1  ;;  %v7999_v63 = vpop.f32.mrb[50].mxu0  ;;  %8380 = vmatprep.subr.bf16.mxu0 %v9056_v10  ;;  %8408 = vmatprep.subr.bf16.mxu1 %v9057_v6  ;;  %v1062_v17 = vshrl.u32 %v7109_v20, 16  ;;  %v9080_v41 = vld [vmem:[%s11648_s1 + $0xe40] sm:$0xff]   ;;  %v1069_v10 = vshll.u32 %v11287_v26, 16  ;;  %v1050_v6 = vshrl.u32 %v7108_v7, 16 }
 0x1be   : > { %v8026_v31 = vadd.f32 %v8025_v15, %v8024_v38  ;;  %v8027_v45 = vpop.f32.mrb[50].mxu1  ;;  %v8000_v4 = vpop.f32.mrb[51].mxu0  ;;  %v11293_v38 = vcombine.low %v219_v27, %v11189_v51  ;;  %v1088_v15 = vshll.u32 %v7111_v33, 16  ;;  %v1057_v51 = vshll.u32 %v11284_v57, 16  ;;  %v223_v20 = vld [vmem:[%s9325_s28 + $0x78] sm:$0x11] }
 0x1bf   : > { %v5996_v22 = vadd.f32 %v7998_v56, %v11106_v14  ;;  %v8001_v55 = vadd.f32 %v8000_v4, %v7999_v63  ;;  %v8028_v35 = vpop.f32.mrb[51].mxu1  ;;  %v9061_v14 = vld [vmem:[%s11648_s1 + $0xde8] sm:$0xff]   ;;  %v1086_v56 = vshrl.u32 %v7111_v33, 16  ;;  %v1093_v63 = vshll.u32 %v11296_v62, 16  ;;  %v9093_v27 = vld [vmem:[%s11648_s1 + $0xe10] sm:$0xff]  }
 0x1c0   : > { %8381 = vmatpush3.bf16.msra.mxu0 %v9058_v61  ;;  %8409 = vmatpush3.bf16.msra.mxu1 %v9059_v21  ;;  %v8029_v18 = vadd.f32 %v8028_v35, %v8027_v45  ;;  %v1052_v61 = vshll.u32 %v7108_v7, 16  ;;  %v1090_v45 = vrot.slane %v1088_v15, 1  ;;  %v1074_v21 = vshrl.u32 %v7110_v25, 16 }
 0x1c1   : > { %v11225_v5 = vadd.f32 %v8026_v31, %v5996_v22  ;;  %8382 = vmatprep.subr.bf16.mxu0 %v9060_v48  ;;  %v5999_v30 = vadd.f32 %v8001_v55, %v11121_v24  ;;  %8410 = vmatprep.subr.bf16.mxu1 %v9061_v14  ;;  %v9065_v24 = vld [vmem:[%s11648_s1 + $0xdf0] sm:$0xff]   ;;  %v1066_v31 = vrot.slane %v1064_v13, 1  ;;  %v1071_v22 = vrot.slane %v1069_v10, 1 }
 0x1c2   : > { %v1076_v4 = vshll.u32 %v7110_v25, 16  ;;  %v1095_v55 = vrot.slane %v1093_v63, 1  ;;  %v1054_v35 = vrot.slane %v1052_v61, 1  ;;  %v1059_v14 = vrot.slane %v1057_v51, 1 }
 0x1c3   : > { %v8002_v39 = vpop.f32.mrb[52].mxu0  ;;  %v11240_v32 = vadd.f32 %v8029_v18, %v5999_v30  ;;  %v1067_v48 = vor.u32 %v1066_v31, %v1062_v17  ;;  %v9082_v18 = vld [vmem:[%s11648_s1 + $0xe00] sm:$0xff]   ;;  %v1081_v30 = vshll.u32 %v11293_v38, 16  ;;  %v11359_v16 = vcombine.high %v223_v20, %v223_v20 }
 0x1c4   : > { %v8003_v58 = vpop.f32.mrb[53].mxu0  ;;  %8383 = vmatpush3.bf16.msra.mxu0 %v9062_v0  ;;  %v8030_v12 = vpop.f32.mrb[52].mxu1  ;;  %8411 = vmatpush3.bf16.msra.mxu1 %v9063_v8  ;;  %v1078_v0 = vrot.slane %v1076_v4, 1  ;;  %v9084_v8 = vld [vmem:[%s11648_s1 + $0xe48] sm:$0xff]   ;;  %v11364_v25 = vcombine.low %v223_v20, %v223_v20  ;;  %v1113_v33 = vshrl.u32 %v11293_v38, 16 }
 0x1c5   : > { %v8004_v23 = vadd.f32 %v8003_v58, %v8002_v39  ;;  %v8005_v9 = vpop.f32.mrb[54].mxu0  ;;  %8384 = vmatprep.subr.bf16.mxu0 %v9064_v50  ;;  %v8031_v42 = vpop.f32.mrb[53].mxu1  ;;  %8412 = vmatprep.subr.bf16.mxu1 %v9065_v24  ;;  %v1091_v39 = vor.u32 %v1090_v45, %v1086_v56  ;;  %v9083_v58 = vld [vmem:[%s11648_s1 + $0xe80] sm:$0xff]   ;;  %v1083_v24 = vrot.slane %v1081_v30, 1  ;;  %v9096_v56 = vld [vmem:[%s11648_s1 + $0xe58] sm:$0xff]   ;;  %v1125_v15 = vshll.u32 %v11359_v16, 16 }
 0x1c6   : > { %v8006_v3 = vpop.f32.mrb[55].mxu0  ;;  %v8032_v29 = vadd.f32 %v8031_v42, %v8030_v12  ;;  %v8033_v36 = vpop.f32.mrb[54].mxu1  ;;  %v1079_v12 = vor.u32 %v1078_v0, %v1074_v21  ;;  %v1117_v31 = vshll.u32 %v11364_v25, 16  ;;  %v11377_v61 = vrot.slane %v1113_v33, 1 }
 0x1c7   : > { %v6004_v46 = vadd.f32 %v8004_v23, %v11146_v44  ;;  %v8007_v49 = vadd.f32 %v8006_v3, %v8005_v9  ;;  %v9068_v44 = vld [vmem:[%s11648_s1 + $0xd78] sm:$0xff]   ;;  %v8034_v37 = vpop.f32.mrb[55].mxu1  ;;  %v1072_v23 = vsel %vm278_vm0, %v1067_v48, %v1071_v22  ;;  %v1055_v9 = vor.u32 %v1054_v35, %v1050_v6 }
 0x1c8   : > { %8385 = vmatpush3.bf16.msra.mxu0 %v9066_v52  ;;  %8413 = vmatpush3.bf16.msra.mxu1 %v9067_v60  ;;  %v8035_v40 = vadd.f32 %v8034_v37, %v8033_v36  ;;  %v1096_v50 = vsel %vm278_vm0, %v1091_v39, %v1095_v55  ;;  %v9086_v52 = vld [vmem:[%s11648_s1 + $0xe08] sm:$0xff]   ;;  %v1084_v42 = vsel %vm278_vm0, %v1079_v12, %v1083_v24  ;;  %v1097_v36 = vshrl.u32 %v11284_v57, 16  ;;  %v9090_v37 = vld [vmem:[%s11648_s1 + $0xe50] sm:$0xff]   ;;  %v9099_v39 = vld [vmem:[%s11648_s1 + $0xe98] sm:$0xff]  }
 0x1c9   : > { %v6007_v34 = vadd.f32 %v8007_v49, %v11151_v43  ;;  %v11262_v59 = vadd.f32 %v8032_v29, %v6004_v46  ;;  %8386 = vmatprep.subr.bf16.mxu0 %v9068_v44  ;;  %8414 = vmatprep.subr.bf16.mxu1 %v9069_v28  ;;  %v9071_v43 = vld [vmem:[%s11648_s1 + $0xdb8] sm:$0xff]   ;;  %v9085_v46 = vld [vmem:[%s11648_s1 + $0xec8] sm:$0xff]   ;;  %v1060_v3 = vsel %vm278_vm0, %v1055_v9, %v1059_v14  ;;  %v1105_v49 = vshrl.u32 %v11287_v26, 16  ;;  %v222_v29 = vld [vmem:[%s9325_s28 + $0x70] sm:$0x11] }
 0x1ca   : > { %6679 = vmatprep.mubr.bf16.mxu0 %v1072_v23  ;;  %6728 = vmatprep.mubr.bf16.mxu1 %v1096_v50  ;;  %v9087_v60 = vld [vmem:[%s11648_s1 + $0xe88] sm:$0xff]   ;;  %v11341_v44 = vcombine.high %v222_v29, %v222_v29  ;;  %v1121_v28 = vshrl.u32 %v11296_v62, 16  ;;  %v1099_v2 = vor.u32 %v1097_v36, %v1059_v14  ;;  %v1115_v6 = vor.u32 %v1113_v33, %v1083_v24  ;;  %v9101_v23 = vld [vmem:[%s11648_s1 + $0xee0] sm:$0xff]   ;;  %v9108_v33 = vld [vmem:[%s11648_s1 + $0xe70] sm:$0xff]  }
 0x1cb   : > { %v11274_v1 = vadd.f32 %v8035_v40, %v6007_v34  ;;  %v11343_v34 = vcombine.low %v222_v29, %v222_v29  ;;  %v11349_v40 = vrot.slane %v1097_v36, 1  ;;  %v1127_v4 = vrot.slane %v1125_v15, 1  ;;  %v9102_v12 = vld [vmem:[%s11648_s1 + $0xe20] sm:$0xff]  }
 0x1cc   : > { %8387 = vmatpush3.bf16.msra.mxu0 %v9070_v47  ;;  %8415 = vmatpush3.bf16.msra.mxu1 %v9071_v43  ;;  %v9091_v47 = vld [vmem:[%s11648_s1 + $0xed0] sm:$0xff]   ;;  %v1107_v43 = vor.u32 %v1105_v49, %v1071_v22  ;;  %v1109_v11 = vshll.u32 %v11341_v44, 16  ;;  %v9097_v22 = vld [vmem:[%s11648_s1 + $0xed8] sm:$0xff]   ;;  %v1119_v48 = vrot.slane %v1117_v31, 1 }
 0x1cd   : > { %8428 = vmatprep.subr.bf16.mxu0 %v9080_v41  ;;  %8456 = vmatprep.subr.bf16.mxu1 %v9081_v19  ;;  %v1101_v7 = vshll.u32 %v11343_v34, 16  ;;  %v1123_v41 = vor.u32 %v1121_v28, %v1095_v55  ;;  %v9094_v19 = vld [vmem:[%s11648_s1 + $0xe90] sm:$0xff]   ;;  %v9098_v55 = vld [vmem:[%s11648_s1 + $0xe18] sm:$0xff]  }
 0x1ce   : > { %v1111_v17 = vrot.slane %v1109_v11, 1  ;;  %v9111_v31 = vld [vmem:[%s11648_s1 + $0xeb0] sm:$0xff]  }
 0x1cf   : > { %6680 = vmatmul.mubr.bf16.vlgmr.msra.gmra.mrb[104].mxu0 %v1060_v3  ;;  %6729 = vmatmul.mubr.bf16.vlgmr.msra.gmra.mrb[104].mxu1 %v1084_v42  ;;  %v1103_v13 = vrot.slane %v1101_v7, 1  ;;  %v1128_v14 = vsel %vm278_vm0, %v1123_v41, %v1127_v4  ;;  %v9103_v3 = vld [vmem:[%s11648_s1 + $0xea0] sm:$0xff]   ;;  %v9107_v7 = vld [vmem:[%s11648_s1 + $0xea8] sm:$0xff]  }
 0x1d0   : > { %8429 = vmatpush3.bf16.msra.mxu0 %v9082_v18  ;;  %8457 = vmatpush3.bf16.msra.mxu1 %v9083_v58  ;;  %v1112_v45 = vsel %vm278_vm0, %v1107_v43, %v1111_v17  ;;  %v1120_v18 = vsel %vm278_vm0, %v1115_v6, %v1119_v48  ;;  %v9100_v58 = vld [vmem:[%s11648_s1 + $0xe60] sm:$0xff]  }
 0x1d1   : > { %8430 = vmatprep.subr.bf16.mxu0 %v9084_v8  ;;  %8458 = vmatprep.subr.bf16.mxu1 %v9085_v46  ;;  %v1104_v21 = vsel %vm278_vm0, %v1099_v2, %v1103_v13 }
 0x1d2   : > { %6687 = vmatprep.mubr.bf16.mxu0 %v1112_v45  ;;  %6736 = vmatprep.mubr.bf16.mxu1 %v1128_v14  ;;  %v9114_v14 = vld [vmem:[%s11648_s1 + $0xe38] sm:$0xff]  }
 0x1d4   : > { %8431 = vmatpush3.bf16.msra.mxu0 %v9086_v52  ;;  %8459 = vmatpush3.bf16.msra.mxu1 %v9087_v60  ;;  %v9104_v60 = vld [vmem:[%s11648_s1 + $0xe68] sm:$0xff]  }
 0x1d5   : > { %8432 = vmatprep.subr.bf16.mxu0 %v9090_v37  ;;  %8460 = vmatprep.subr.bf16.mxu1 %v9091_v47  ;;  %v9105_v37 = vld [vmem:[%s11648_s1 + $0xee8] sm:$0xff]  }
 0x1d7   : > { %6688 = vmatmul.mubr.bf16.gmra.mrb[108].mxu0 %v1104_v21  ;;  %6737 = vmatmul.mubr.bf16.gmra.mrb[108].mxu1 %v1120_v18  ;;  %v9112_v21 = vld [vmem:[%s11648_s1 + $0xe78] sm:$0xff]  }
 0x1d8   : > { %8433 = vmatpush3.bf16.msra.mxu0 %v9093_v27  ;;  %8461 = vmatpush3.bf16.msra.mxu1 %v9094_v19  ;;  %v9109_v19 = vld [vmem:[%s11648_s1 + $0xef0] sm:$0xff]  }
 0x1d9   : > { %8434 = vmatprep.subr.bf16.mxu0 %v9096_v56  ;;  %8462 = vmatprep.subr.bf16.mxu1 %v9097_v22 }
 0x1db   : > { %v8052_v35 = vpop.f32.mrb[56].mxu0 }
 0x1dc   : > { %v8080_v0 = vpop.f32.mrb[56].mxu1  ;;  %v8053_v8 = vpop.f32.mrb[57].mxu0  ;;  %8435 = vmatpush3.bf16.msra.mxu0 %v9098_v55  ;;  %8463 = vmatpush3.bf16.msra.mxu1 %v9099_v39  ;;  %v1157_v39 = vrot.slane %v11296_v62, 1 }
 0x1dd   : > { %v8054_v9 = vadd.f32 %v8053_v8, %v8052_v35  ;;  %v8081_v50 = vpop.f32.mrb[57].mxu1  ;;  %v8055_v46 = vpop.f32.mrb[58].mxu0  ;;  %8436 = vmatprep.subr.bf16.mxu0 %v9100_v58  ;;  %8464 = vmatprep.subr.bf16.mxu1 %v9101_v23  ;;  %v1151_v35 = vrot.slane %v11287_v26, 1  ;;  %v224_v58 = vld [vmem:[%s9325_s28 + $0x30] sm:$0xee]  ;;  %v9151_v26 = vld [vmem:[%s11648_s1 + $0xfb8] sm:$0xff]  }
 0x1de   : > { %v8082_v24 = vadd.f32 %v8081_v50, %v8080_v0  ;;  %v8083_v42 = vpop.f32.mrb[58].mxu1  ;;  %v8056_v29 = vpop.f32.mrb[59].mxu0  ;;  %v9115_v0 = vld [vmem:[%s11648_s1 + $0xeb8] sm:$0xff]  }
 0x1df   : > { %v6094_v52 = vadd.f32 %v8054_v9, %v11225_v5  ;;  %v8057_v47 = vadd.f32 %v8056_v29, %v8055_v46  ;;  %v8084_v43 = vpop.f32.mrb[59].mxu1  ;;  %v9106_v5 = vld [vmem:[%s11648_s1 + $0xe28] sm:$0xff]   ;;  %v225_v8 = vld [vmem:[%s9325_s28 + $0x38] sm:$0xee]  ;;  %v11458_v9 = vcombine.high %v224_v58, %v11272_v54 }
 0x1e0   : > { %v8085_v11 = vadd.f32 %v8084_v43, %v8083_v42  ;;  %8437 = vmatpush3.bf16.msra.mxu0 %v9102_v12  ;;  %8465 = vmatpush3.bf16.msra.mxu1 %v9103_v3  ;;  %v11461_v50 = vcombine.low %v225_v8, %v11281_v53  ;;  %v1148_v12 = vrot.slane %v11284_v57, 1  ;;  %v11468_v46 = vcombine.high %v225_v8, %v11281_v53  ;;  %v9123_v43 = vld [vmem:[%s11648_s1 + $0xf80] sm:$0xff]   ;;  %v9134_v8 = vld [vmem:[%s11648_s1 + $0xf18] sm:$0xff]  }
 0x1e1   : > { %v11408_v36 = vadd.f32 %v8082_v24, %v6094_v52  ;;  %v6097_v20 = vadd.f32 %v8057_v47, %v11240_v32  ;;  %8438 = vmatprep.subr.bf16.mxu0 %v9104_v60  ;;  %8466 = vmatprep.subr.bf16.mxu1 %v9105_v37  ;;  %v9110_v32 = vld [vmem:[%s11648_s1 + $0xe30] sm:$0xff]   ;;  %v9120_v24 = vld [vmem:[%s11648_s1 + $0xf40] sm:$0xff]   ;;  %v1154_v52 = vrot.slane %v11293_v38, 1  ;;  %v1150_v42 = vrot.slane %v11458_v9, 1 }
 0x1e2   : > { %v1153_v29 = vrot.slane %v11461_v50, 1  ;;  %v9122_v37 = vld [vmem:[%s11648_s1 + $0xf00] sm:$0xff]   ;;  %v1156_v53 = vrot.slane %v11468_v46, 1  ;;  %v1210_v62 = vshrl.u32 %v11461_v50, 16 }
 0x1e3   : > { %v8058_v2 = vpop.f32.mrb[60].mxu0  ;;  %v11423_v41 = vadd.f32 %v8085_v11, %v6097_v20  ;;  %v9124_v20 = vld [vmem:[%s11648_s1 + $0xf48] sm:$0xff]  }
 0x1e4   : > { %v8059_v27 = vpop.f32.mrb[61].mxu0  ;;  %8439 = vmatpush3.bf16.msra.mxu0 %v9106_v5  ;;  %8467 = vmatpush3.bf16.msra.mxu1 %v9107_v7  ;;  %v1152_v5 = vsel %vm377_vm1, %v1150_v42, %v1151_v35  ;;  %v1158_v7 = vsel %vm377_vm1, %v1156_v53, %v1157_v39  ;;  %v9138_v53 = vld [vmem:[%s11648_s1 + $0xf20] sm:$0xff]  }
 0x1e5   : > { %v8060_v17 = vadd.f32 %v8059_v27, %v8058_v2  ;;  %v8061_v13 = vpop.f32.mrb[62].mxu0  ;;  %8440 = vmatprep.subr.bf16.mxu0 %v9108_v33  ;;  %8468 = vmatprep.subr.bf16.mxu1 %v9109_v19  ;;  %v1155_v2 = vsel %vm377_vm1, %v1153_v29, %v1154_v52  ;;  %v1161_v27 = vrot.slane %v11341_v44, 1  ;;  %v9125_v33 = vld [vmem:[%s11648_s1 + $0xfc8] sm:$0xff]  }
 0x1e6   : > { %v8086_v56 = vpop.f32.mrb[60].mxu1  ;;  %v8062_v6 = vpop.f32.mrb[63].mxu0  ;;  %6777 = vmatprep.mubr.bf16.mxu0 %v1152_v5  ;;  %6826 = vmatprep.mubr.bf16.mxu1 %v1158_v7  ;;  %v9127_v44 = vld [vmem:[%s11648_s1 + $0xf88] sm:$0xff]  }
 0x1e7   : > { %v6102_v15 = vadd.f32 %v8060_v17, %v11262_v59  ;;  %v8063_v22 = vadd.f32 %v8062_v6, %v8061_v13  ;;  %v8087_v45 = vpop.f32.mrb[61].mxu1  ;;  %v9113_v59 = vld [vmem:[%s11648_s1 + $0xef8] sm:$0xff]   ;;  %v1159_v17 = vrot.slane %v11343_v34, 1  ;;  %v9126_v13 = vld [vmem:[%s11648_s1 + $0xf08] sm:$0xff]   ;;  %v1162_v19 = vsel %vm377_vm1, %v1151_v35, %v1161_v27  ;;  %v9128_v34 = vld [vmem:[%s11648_s1 + $0xf50] sm:$0xff]  }
 0x1e8   : > { %v8088_v4 = vadd.f32 %v8087_v45, %v8086_v56  ;;  %v8089_v48 = vpop.f32.mrb[62].mxu1  ;;  %8441 = vmatpush3.bf16.msra.mxu0 %v9110_v32  ;;  %8469 = vmatpush3.bf16.msra.mxu1 %v9111_v31  ;;  %v1165_v56 = vrot.slane %v11359_v16, 1  ;;  %v1163_v32 = vrot.slane %v11364_v25, 1  ;;  %v9129_v16 = vld [vmem:[%s11648_s1 + $0xfd0] sm:$0xff]  }
 0x1e9   : > { %v6105_v55 = vadd.f32 %v8063_v22, %v11274_v1  ;;  %v8090_v23 = vpop.f32.mrb[63].mxu1  ;;  %8442 = vmatprep.subr.bf16.mxu0 %v9112_v21  ;;  %8470 = vmatprep.subr.bf16.mxu1 %v9113_v59  ;;  %v11455_v1 = vcombine.low %v224_v58, %v11272_v54  ;;  %v9121_v54 = vld [vmem:[%s11648_s1 + $0xfc0] sm:$0xff]   ;;  %v1160_v22 = vsel %vm377_vm1, %v1148_v12, %v1159_v17  ;;  %v9130_v25 = vld [vmem:[%s11648_s1 + $0xf10] sm:$0xff]  }
 0x1ea   : > { %v11446_v18 = vadd.f32 %v8088_v4, %v6102_v15  ;;  %v8091_v3 = vadd.f32 %v8090_v23, %v8089_v48  ;;  %v1166_v15 = vsel %vm377_vm1, %v1157_v39, %v1165_v56  ;;  %v9131_v21 = vld [vmem:[%s11648_s1 + $0xf90] sm:$0xff]   ;;  %v1164_v4 = vsel %vm377_vm1, %v1154_v52, %v1163_v32  ;;  %v9133_v39 = vld [vmem:[%s11648_s1 + $0xfd8] sm:$0xff]  }
 0x1eb   : > { %v1147_v60 = vrot.slane %v11455_v1, 1 }
 0x1ec   : > { %8443 = vmatpush3.bf16.msra.mxu0 %v9114_v14  ;;  %8471 = vmatpush3.bf16.msra.mxu1 %v9115_v0  ;;  %v11481_v47 = vadd.f32 %v8091_v3, %v6105_v55  ;;  %v9132_v55 = vld [vmem:[%s11648_s1 + $0xf58] sm:$0xff]  }
 0x1ed   : > { %v1149_v11 = vsel %vm377_vm1, %v1147_v60, %v1148_v12  ;;  %8484 = vmatprep.subr.bf16.mxu0 %v9120_v24  ;;  %8512 = vmatprep.subr.bf16.mxu1 %v9121_v54  ;;  %v9135_v12 = vld [vmem:[%s11648_s1 + $0xf98] sm:$0xff]   ;;  %v9137_v60 = vld [vmem:[%s11648_s1 + $0xfe0] sm:$0xff]  }
 0x1ef   : > { %6778 = vmatmul.mubr.bf16.vlgmr.msra.gmra.mrb[112].mxu0 %v1149_v11  ;;  %6827 = vmatmul.mubr.bf16.vlgmr.msra.gmra.mrb[112].mxu1 %v1155_v2  ;;  %v9139_v11 = vld [vmem:[%s11648_s1 + $0xfa0] sm:$0xff]  }
 0x1f0   : > { %8485 = vmatpush3.bf16.msra.mxu0 %v9122_v37  ;;  %8513 = vmatpush3.bf16.msra.mxu1 %v9123_v43 }
 0x1f1   : > { %8486 = vmatprep.subr.bf16.mxu0 %v9124_v20  ;;  %8514 = vmatprep.subr.bf16.mxu1 %v9125_v33  ;;  %v9141_v33 = vld [vmem:[%s11648_s1 + $0xfe8] sm:$0xff]  }
 0x1f2   : > { %6785 = vmatprep.mubr.bf16.mxu0 %v1162_v19  ;;  %6834 = vmatprep.mubr.bf16.mxu1 %v1166_v15  ;;  %v9142_v19 = vld [vmem:[%s11648_s1 + $0xf28] sm:$0xff]   ;;  %v9144_v15 = vld [vmem:[%s11648_s1 + $0xf70] sm:$0xff]  }
 0x1f4   : > { %8487 = vmatpush3.bf16.msra.mxu0 %v9126_v13  ;;  %8515 = vmatpush3.bf16.msra.mxu1 %v9127_v44 }
 0x1f5   : > { %8488 = vmatprep.subr.bf16.mxu0 %v9128_v34  ;;  %8516 = vmatprep.subr.bf16.mxu1 %v9129_v16  ;;  %v1198_v34 = vshrl.u32 %v11458_v9, 16  ;;  %v1201_v16 = vshll.u32 %v11458_v9, 16  ;;  %v1205_v9 = vrot.slane %v1105_v49, 1  ;;  %v9150_v49 = vld [vmem:[%s11648_s1 + $0xf38] sm:$0xff]  }
 0x1f7   : > { %6786 = vmatmul.mubr.bf16.gmra.mrb[116].mxu0 %v1160_v22  ;;  %6835 = vmatmul.mubr.bf16.gmra.mrb[116].mxu1 %v1164_v4  ;;  %v1200_v22 = vrot.slane %v1198_v34, 1 }
 0x1f8   : > { %8489 = vmatpush3.bf16.msra.mxu0 %v9130_v25  ;;  %8517 = vmatpush3.bf16.msra.mxu1 %v9131_v21  ;;  %v1203_v25 = vrot.slane %v1201_v16, 2  ;;  %v9148_v21 = vld [vmem:[%s11648_s1 + $0xf78] sm:$0xff]  }
 0x1f9   : > { %8490 = vmatprep.subr.bf16.mxu0 %v9132_v55  ;;  %8518 = vmatprep.subr.bf16.mxu1 %v9133_v39  ;;  %v1222_v55 = vshrl.u32 %v11468_v46, 16  ;;  %v1229_v39 = vrot.slane %v1121_v28, 1  ;;  %v1194_v28 = vrot.slane %v1057_v51, 2 }
 0x1fa   : > { %v1204_v4 = vor.u32 %v1203_v25, %v1200_v22 }
 0x1fb   : > { %v8108_v6 = vpop.f32.mrb[64].mxu0 }
 0x1fc   : > { %v8109_v45 = vpop.f32.mrb[65].mxu0  ;;  %8491 = vmatpush3.bf16.msra.mxu0 %v9134_v8  ;;  %8519 = vmatpush3.bf16.msra.mxu1 %v9135_v12  ;;  %v1186_v8 = vshrl.u32 %v11455_v1, 16 }
 0x1fd   : > { %v8110_v48 = vadd.f32 %v8109_v45, %v8108_v6  ;;  %v8111_v14 = vpop.f32.mrb[66].mxu0  ;;  %8520 = vmatprep.subr.bf16.mxu1 %v9137_v60  ;;  %v9147_v45 = vld [vmem:[%s11648_s1 + $0xfb0] sm:$0xff]  }
 0x1fe   : > { %v8136_v31 = vpop.f32.mrb[64].mxu1  ;;  %v8112_v23 = vpop.f32.mrb[67].mxu0 }
 0x1ff   : > { %v8137_v59 = vpop.f32.mrb[65].mxu1  ;;  %v6192_v0 = vadd.f32 %v8110_v48, %v11408_v36  ;;  %v8113_v3 = vadd.f32 %v8112_v23, %v8111_v14  ;;  %v9136_v36 = vld [vmem:[%s11648_s1 + $0xf60] sm:$0xff]   ;;  %v1206_v48 = vrot.slane %v1069_v10, 2  ;;  %v1225_v14 = vshll.u32 %v11468_v46, 16 }
 0x200   : > { %v8138_v35 = vadd.f32 %v8137_v59, %v8136_v31  ;;  %v8139_v58 = vpop.f32.mrb[66].mxu1  ;;  %8492 = vmatprep.subr.bf16.mxu0 %v9136_v36  ;;  %8521 = vmatpush3.bf16.msra.mxu1 %v9139_v11  ;;  %v9145_v31 = vld [vmem:[%s11648_s1 + $0xff0] sm:$0xff]   ;;  %v9149_v59 = vld [vmem:[%s11648_s1 + $0xff8] sm:$0xff]   ;;  %v1224_v10 = vrot.slane %v1222_v55, 1 }
 0x201   : > { %v8140_v52 = vpop.f32.mrb[67].mxu1  ;;  %v6195_v29 = vadd.f32 %v8113_v3, %v11423_v41  ;;  %v9140_v41 = vld [vmem:[%s11648_s1 + $0xf68] sm:$0xff]   ;;  %8493 = vmatpush3.bf16.msra.mxu0 %v9138_v53  ;;  %8522 = vmatprep.subr.bf16.mxu1 %v9141_v33  ;;  %v1227_v23 = vrot.slane %v1225_v14, 2  ;;  %v1189_v3 = vshll.u32 %v11455_v1, 16  ;;  %v1195_v1 = vor.u32 %v1194_v28, %v11349_v40 }
 0x202   : > { %v11535_v24 = vadd.f32 %v8138_v35, %v6192_v0  ;;  %v8141_v54 = vadd.f32 %v8140_v52, %v8139_v58  ;;  %8494 = vmatprep.subr.bf16.mxu0 %v9140_v41  ;;  %v11596_v35 = vor.u32 %v1206_v48, %v1205_v9  ;;  %v1230_v0 = vrot.slane %v1093_v63, 2  ;;  %v226_v52 = vld [vmem:[%s9325_s28 + $0x70] sm:$0x33]  ;;  %v227_v63 = vld [vmem:[%s9325_s28 + $0x78] sm:$0x33]  ;;  %s7643_s28 = sshll.u32 %s11655_s9, 5 }
 0x203   : > { %v8114_v42 = vpop.f32.mrb[68].mxu0  ;;  %v1212_v53 = vrot.slane %v1210_v62, 1  ;;  %v7124_v33 = vcombine.low %v226_v52, %v226_v52  ;;  %v7126_v34 = vcombine.low %v227_v63, %v227_v63  ;;  %s180_s29 = scalar_lea.vmem %s11649_s2, %s7643_s28 }
 0x204   : > { %v8115_v37 = vpop.f32.mrb[69].mxu0  ;;  %v11550_v2 = vadd.f32 %v8141_v54, %v6195_v29  ;;  %v1208_v46 = vsel %vm416_vm2, %v1204_v4, %v11596_v35  ;;  %v1231_v36 = vor.u32 %v1230_v0, %v1229_v39  ;;  %v1188_v54 = vrot.slane %v1186_v8, 1 }
 0x205   : > { %v8116_v43 = vadd.f32 %v8115_v37, %v8114_v42  ;;  %v8117_v5 = vpop.f32.mrb[70].mxu0  ;;  %8495 = vmatpush3.bf16.msra.mxu0 %v9142_v19  ;;  %6875 = vmatprep.mubr.bf16.mxu0 %v1208_v46  ;;  %v1228_v42 = vor.u32 %v1227_v23, %v1224_v10  ;;  %v1191_v29 = vrot.slane %v1189_v3, 2  ;;  %v1213_v37 = vshll.u32 %v11461_v50, 16 }
 0x206   : > { %v8142_v7 = vpop.f32.mrb[68].mxu1  ;;  %v8118_v27 = vpop.f32.mrb[71].mxu0  ;;  %8496 = vmatprep.subr.bf16.mxu0 %v9144_v15  ;;  %v1234_v19 = vshrl.u32 %v7124_v33, 16  ;;  %v1255_v9 = vshll.u32 %v7126_v34, 16 }
 0x207   : > { %v6200_v20 = vadd.f32 %v8116_v43, %v11446_v18  ;;  %v8119_v17 = vadd.f32 %v8118_v27, %v8117_v5  ;;  %v8143_v13 = vpop.f32.mrb[69].mxu1  ;;  %v9143_v18 = vld [vmem:[%s11648_s1 + $0xfa8] sm:$0xff]   ;;  %v1218_v43 = vrot.slane %v1081_v30, 2  ;;  %v7125_v5 = vcombine.high %v226_v52, %v226_v52 }
 0x208   : > { %v8144_v56 = vadd.f32 %v8143_v13, %v8142_v7  ;;  %v8145_v44 = vpop.f32.mrb[70].mxu1  ;;  %8523 = vmatpush3.bf16.msra.mxu1 %v9143_v18  ;;  %v1232_v57 = vsel %vm416_vm2, %v1228_v42, %v1231_v36  ;;  %v1192_v51 = vor.u32 %v1191_v29, %v1188_v54  ;;  %v1215_v11 = vrot.slane %v1213_v37, 2 }
 0x209   : > { %v6203_v32 = vadd.f32 %v8119_v17, %v11481_v47  ;;  %v9146_v47 = vld [vmem:[%s11648_s1 + $0xf30] sm:$0xff]   ;;  %8524 = vmatprep.subr.bf16.mxu1 %v9145_v31  ;;  %v8146_v58 = vpop.f32.mrb[71].mxu1  ;;  %v7127_v7 = vcombine.high %v227_v63, %v227_v63  ;;  %6924 = vmatprep.mubr.bf16.mxu1 %v1232_v57  ;;  %v1219_v41 = vor.u32 %v1218_v43, %v11377_v61  ;;  %v1246_v27 = vshll.u32 %v7125_v5, 16 }
 0x20a   : > { %v11570_v6 = vadd.f32 %v8144_v56, %v6200_v20  ;;  %8497 = vmatpush3.bf16.msra.mxu0 %v9146_v47  ;;  %v8147_v12 = vadd.f32 %v8146_v58, %v8145_v44  ;;  %v1243_v20 = vshrl.u32 %v7125_v5, 16  ;;  %v1196_v50 = vsel %vm416_vm2, %v1192_v51, %v1195_v1 }
 0x20b   : > { %8498 = vmatprep.subr.bf16.mxu0 %v9148_v21  ;;  %v1216_v17 = vor.u32 %v1215_v11, %v1212_v53  ;;  %v1261_v40 = vshrl.u32 %v7127_v7, 16  ;;  %v1264_v13 = vshll.u32 %v7127_v7, 16  ;;  %v1248_v30 = vrot.slane %v1246_v27, 2 }
 0x20c   : > { %8525 = vmatpush3.bf16.msra.mxu1 %v9147_v45  ;;  %v11615_v60 = vadd.f32 %v8147_v12, %v6203_v32  ;;  %v1245_v38 = vrot.slane %v1243_v20, 1  ;;  %v1237_v56 = vshll.u32 %v7124_v33, 16  ;;  %v1236_v16 = vrot.slane %v1234_v19, 1 }
 0x20d   : > { %8526 = vmatprep.subr.bf16.mxu1 %v9149_v59  ;;  %v1220_v44 = vsel %vm416_vm2, %v1216_v17, %v1219_v41  ;;  %v1263_v18 = vrot.slane %v1261_v40, 1  ;;  %v1266_v32 = vrot.slane %v1264_v13, 2  ;;  %v1252_v45 = vshrl.u32 %v7126_v34, 16 }
 0x20e   : > { %8499 = vmatpush3.bf16.msra.mxu0 %v9150_v49  ;;  %v1249_v61 = vor.u32 %v1248_v30, %v1245_v38  ;;  %v1239_v31 = vrot.slane %v1237_v56, 2  ;;  %v1257_v0 = vrot.slane %v1255_v9, 2 }
 0x20f   : > { %v1267_v25 = vor.u32 %v1266_v32, %v1263_v18  ;;  %v1254_v39 = vrot.slane %v1252_v45, 1 }
 0x210   : > { %8527 = vmatpush3.bf16.msra.mxu1 %v9151_v26  ;;  %v1250_v59 = vsel %vm416_vm2, %v11596_v35, %v1249_v61  ;;  %v1240_v55 = vor.u32 %v1239_v31, %v1236_v16 }
 0x211   : > { %6876 = vmatmul.mubr.bf16.vlgmr.msra.gmra.mrb[120].mxu0 %v1196_v50  ;;  %v1268_v10 = vsel %vm416_vm2, %v1231_v36, %v1267_v25  ;;  %v1258_v3 = vor.u32 %v1257_v0, %v1254_v39 }
 0x212   : > { %6883 = vmatprep.mubr.bf16.mxu0 %v1250_v59  ;;  %v1241_v46 = vsel %vm416_vm2, %v1195_v1, %v1240_v55 }
 0x213   : > { %6925 = vmatmul.mubr.bf16.vlgmr.msra.gmra.mrb[120].mxu1 %v1220_v44  ;;  %v1259_v54 = vsel %vm416_vm2, %v1219_v41, %v1258_v3 }
 0x214   : > { %6932 = vmatprep.mubr.bf16.mxu1 %v1268_v10 }
 0x219   : > { %6884 = vmatmul.mubr.bf16.gmra.mrb[124].mxu0 %v1241_v46 }
 0x21b   : > { %6933 = vmatmul.mubr.bf16.gmra.mrb[124].mxu1 %v1259_v54 }
 0x21e   : > { %v8164_v15 = vpop.f32.mrb[72].mxu0 }
 0x21f   : > { %v8192_v22 = vpop.f32.mrb[72].mxu1  ;;  %v8165_v47 = vpop.f32.mrb[73].mxu0 }
 0x220   : > { %v8166_v21 = vadd.f32 %v8165_v47, %v8164_v15  ;;  %v8193_v4 = vpop.f32.mrb[73].mxu1  ;;  %v8167_v48 = vpop.f32.mrb[74].mxu0 }
 0x221   : > { %v8194_v49 = vadd.f32 %v8193_v4, %v8192_v22  ;;  %v8195_v14 = vpop.f32.mrb[74].mxu1  ;;  %v8168_v26 = vpop.f32.mrb[75].mxu0 }
 0x222   : > { %v6290_v58 = vadd.f32 %v8166_v21, %v11535_v24  ;;  %v8196_v8 = vpop.f32.mrb[75].mxu1  ;;  %v8169_v23 = vadd.f32 %v8168_v26, %v8167_v48 }
 0x223   : > { %v8197_v12 = vadd.f32 %v8196_v8, %v8195_v14 }
 0x224   : > { %v6339_v52 = vadd.f32 %v8194_v49, %v6290_v58  ;;  %v6293_v35 = vadd.f32 %v8169_v23, %v11550_v2 }
 0x226   : > { %v6342_v28 = vadd.f32 %v8197_v12, %v6293_v35  ;;  %v8170_v36 = vpop.f32.mrb[76].mxu0 }
 0x227   : > { %v8171_v62 = vpop.f32.mrb[77].mxu0  ;;  %v8198_v24 = vpop.f32.mrb[76].mxu1 }
 0x228   : > { %v8172_v63 = vadd.f32 %v8171_v62, %v8170_v36  ;;  %v8173_v42 = vpop.f32.mrb[78].mxu0  ;;  %v8199_v37 = vpop.f32.mrb[77].mxu1 }
 0x229   : > { %v8174_v29 = vpop.f32.mrb[79].mxu0  ;;  %v8200_v43 = vadd.f32 %v8199_v37, %v8198_v24  ;;  %v8201_v5 = vpop.f32.mrb[78].mxu1 }
 0x22a   : > { %v6298_v1 = vadd.f32 %v8172_v63, %v11570_v6  ;;  %v8175_v53 = vadd.f32 %v8174_v29, %v8173_v42  ;;  %v8202_v57 = vpop.f32.mrb[79].mxu1 }
 0x22b   : > { %v8203_v11 = vadd.f32 %v8202_v57, %v8201_v5 }
 0x22c   : > { %v6301_v51 = vadd.f32 %v8175_v53, %v11615_v60  ;;  %v6347_v2 = vadd.f32 %v8200_v43, %v6298_v1 }
 0x22e   : > { %v6350_v7 = vadd.f32 %v8203_v11, %v6301_v51 }
 0x23f   : > { %v8220_v41 = vpop.f32.mrb[80].mxu0 }
 0x240   : > { %v8248_v20 = vpop.f32.mrb[80].mxu1  ;;  %v8221_v27 = vpop.f32.mrb[81].mxu0 }
 0x241   : > { %v8222_v33 = vadd.f32 %v8221_v27, %v8220_v41  ;;  %v8249_v50 = vpop.f32.mrb[81].mxu1  ;;  %v8223_v17 = vpop.f32.mrb[82].mxu0 }
 0x242   : > { %v8250_v40 = vadd.f32 %v8249_v50, %v8248_v20  ;;  %v8251_v13 = vpop.f32.mrb[82].mxu1  ;;  %v8224_v38 = vpop.f32.mrb[83].mxu0 }
 0x243   : > { %v6388_v30 = vadd.f32 %v8222_v33, %v6339_v52  ;;  %v8225_v6 = vadd.f32 %v8224_v38, %v8223_v17  ;;  %v8252_v19 = vpop.f32.mrb[83].mxu1 }
 0x244   : > { %v8253_v56 = vadd.f32 %v8252_v19, %v8251_v13 }
 0x245   : > { %v6437_v44 = vadd.f32 %v8250_v40, %v6388_v30  ;;  %v6391_v18 = vadd.f32 %v8225_v6, %v6342_v28 }
 0x247   : > { %v6440_v32 = vadd.f32 %v8253_v56, %v6391_v18  ;;  %v8226_v60 = vpop.f32.mrb[84].mxu0 }
 0x248   : > { %v8227_v34 = vpop.f32.mrb[85].mxu0  ;;  %v8254_v15 = vpop.f32.mrb[84].mxu1 }
 0x249   : > { %v8228_v61 = vadd.f32 %v8227_v34, %v8226_v60  ;;  %v8229_v16 = vpop.f32.mrb[86].mxu0  ;;  %v8255_v31 = vpop.f32.mrb[85].mxu1 }
 0x24a   : > { %v8230_v22 = vpop.f32.mrb[87].mxu0  ;;  %v8256_v47 = vadd.f32 %v8255_v31, %v8254_v15  ;;  %v8257_v25 = vpop.f32.mrb[86].mxu1 }
 0x24b   : > { %v6396_v45 = vadd.f32 %v8228_v61, %v6347_v2  ;;  %v8231_v9 = vadd.f32 %v8230_v22, %v8229_v16  ;;  %v8258_v21 = vpop.f32.mrb[87].mxu1 }
 0x24c   : > { %v8259_v4 = vadd.f32 %v8258_v21, %v8257_v25 }
 0x24d   : > { %v6399_v48 = vadd.f32 %v8231_v9, %v6350_v7  ;;  %v6445_v59 = vadd.f32 %v8256_v47, %v6396_v45 }
 0x24f   : > { %v6448_v55 = vadd.f32 %v8259_v4, %v6399_v48 }
 0x262   : > { %v8276_v49 = vpop.f32.mrb[88].mxu0  ;;  %v8304_v14 = vpop.f32.mrb[88].mxu1 }
 0x263   : > { %v8277_v26 = vpop.f32.mrb[89].mxu0  ;;  %v8305_v39 = vpop.f32.mrb[89].mxu1 }
 0x264   : > { %v8278_v10 = vadd.f32 %v8277_v26, %v8276_v49  ;;  %v8279_v0 = vpop.f32.mrb[90].mxu0  ;;  %v8306_v58 = vadd.f32 %v8305_v39, %v8304_v14  ;;  %v8307_v8 = vpop.f32.mrb[90].mxu1 }
 0x265   : > { %v8280_v46 = vpop.f32.mrb[91].mxu0  ;;  %v8308_v3 = vpop.f32.mrb[91].mxu1 }
 0x266   : > { %v6486_v23 = vadd.f32 %v8278_v10, %v6437_v44  ;;  %v8281_v12 = vadd.f32 %v8280_v46, %v8279_v0  ;;  %v8309_v52 = vadd.f32 %v8308_v3, %v8307_v8 }
 0x268   : > { %v6535_v35 = vadd.f32 %v8306_v58, %v6486_v23  ;;  %v6489_v54 = vadd.f32 %v8281_v12, %v6440_v32 }
 0x26a   : > { %v6538_v28 = vadd.f32 %v8309_v52, %v6489_v54  ;;  %v8282_v36 = vpop.f32.mrb[92].mxu0  ;;  %v8310_v24 = vpop.f32.mrb[92].mxu1 }
 0x26b   : > { %v8283_v62 = vpop.f32.mrb[93].mxu0  ;;  %v8311_v53 = vpop.f32.mrb[93].mxu1 }
 0x26c   : > { %v8284_v63 = vadd.f32 %v8283_v62, %v8282_v36  ;;  %v8285_v42 = vpop.f32.mrb[94].mxu0  ;;  %v8312_v43 = vadd.f32 %v8311_v53, %v8310_v24  ;;  %v8313_v5 = vpop.f32.mrb[94].mxu1 }
 0x26d   : > { %v8286_v29 = vpop.f32.mrb[95].mxu0  ;;  %v8314_v51 = vpop.f32.mrb[95].mxu1 }
 0x26e   : > { %v6494_v37 = vadd.f32 %v8284_v63, %v6445_v59  ;;  %v8287_v1 = vadd.f32 %v8286_v29, %v8285_v42  ;;  %v8315_v11 = vadd.f32 %v8314_v51, %v8313_v5 }
 0x270   : > { %v6497_v57 = vadd.f32 %v8287_v1, %v6448_v55  ;;  %v6543_v2 = vadd.f32 %v8312_v43, %v6494_v37 }
 0x272   : > { %v6546_v7 = vadd.f32 %v8315_v11, %v6497_v57 }
 0x282   : > { %v8332_v41 = vpop.f32.mrb[96].mxu0  ;;  %v8360_v20 = vpop.f32.mrb[96].mxu1 }
 0x283   : > { %v8333_v27 = vpop.f32.mrb[97].mxu0  ;;  %v8361_v33 = vpop.f32.mrb[97].mxu1 }
 0x284   : > { %v8334_v50 = vadd.f32 %v8333_v27, %v8332_v41  ;;  %v8362_v17 = vadd.f32 %v8361_v33, %v8360_v20  ;;  %v8335_v40 = vpop.f32.mrb[98].mxu0  ;;  %v8363_v13 = vpop.f32.mrb[98].mxu1 }
 0x285   : > { %v8336_v38 = vpop.f32.mrb[99].mxu0  ;;  %v8364_v30 = vpop.f32.mrb[99].mxu1 }
 0x286   : > { %v6584_v6 = vadd.f32 %v8334_v50, %v6535_v35  ;;  %v8337_v19 = vadd.f32 %v8336_v38, %v8335_v40  ;;  %v8365_v56 = vadd.f32 %v8364_v30, %v8363_v13 }
 0x288   : > { %v6633_v44 = vadd.f32 %v8362_v17, %v6584_v6  ;;  %v6587_v18 = vadd.f32 %v8337_v19, %v6538_v28 }
 0x28a   : > { %v6636_v32 = vadd.f32 %v8365_v56, %v6587_v18  ;;  %v8338_v60 = vpop.f32.mrb[100].mxu0  ;;  %v8366_v16 = vpop.f32.mrb[100].mxu1 }
 0x28b   : > { %v8339_v34 = vpop.f32.mrb[101].mxu0  ;;  %v8367_v25 = vpop.f32.mrb[101].mxu1 }
 0x28c   : > { %v8340_v15 = vadd.f32 %v8339_v34, %v8338_v60  ;;  %v8341_v61 = vpop.f32.mrb[102].mxu0  ;;  %v8368_v45 = vadd.f32 %v8367_v25, %v8366_v16  ;;  %v8369_v9 = vpop.f32.mrb[102].mxu1 }
 0x28d   : > { %v8342_v31 = vpop.f32.mrb[103].mxu0  ;;  %v8370_v4 = vpop.f32.mrb[103].mxu1 }
 0x28e   : > { %v6592_v22 = vadd.f32 %v8340_v15, %v6543_v2  ;;  %v8343_v47 = vadd.f32 %v8342_v31, %v8341_v61  ;;  %v8371_v59 = vadd.f32 %v8370_v4, %v8369_v9 }
 0x290   : > { %v6595_v21 = vadd.f32 %v8343_v47, %v6546_v7  ;;  %v6641_v48 = vadd.f32 %v8368_v45, %v6592_v22 }
 0x292   : > { %v6644_v55 = vadd.f32 %v8371_v59, %v6595_v21 }
 0x2a2   : > { %v8388_v49 = vpop.f32.mrb[104].mxu0  ;;  %v8416_v14 = vpop.f32.mrb[104].mxu1 }
 0x2a3   : > { %v8389_v26 = vpop.f32.mrb[105].mxu0  ;;  %v8417_v39 = vpop.f32.mrb[105].mxu1 }
 0x2a4   : > { %v8390_v10 = vadd.f32 %v8389_v26, %v8388_v49  ;;  %v8391_v0 = vpop.f32.mrb[106].mxu0  ;;  %v8418_v58 = vadd.f32 %v8417_v39, %v8416_v14  ;;  %v8419_v8 = vpop.f32.mrb[106].mxu1 }
 0x2a5   : > { %v8392_v46 = vpop.f32.mrb[107].mxu0  ;;  %v8420_v3 = vpop.f32.mrb[107].mxu1 }
 0x2a6   : > { %v6682_v23 = vadd.f32 %v8390_v10, %v6633_v44  ;;  %v8393_v12 = vadd.f32 %v8392_v46, %v8391_v0  ;;  %v8421_v52 = vadd.f32 %v8420_v3, %v8419_v8 }
 0x2a8   : > { %v6731_v35 = vadd.f32 %v8418_v58, %v6682_v23  ;;  %v6685_v54 = vadd.f32 %v8393_v12, %v6636_v32 }
 0x2aa   : > { %v6734_v28 = vadd.f32 %v8421_v52, %v6685_v54  ;;  %v8394_v36 = vpop.f32.mrb[108].mxu0  ;;  %v8422_v24 = vpop.f32.mrb[108].mxu1 }
 0x2ab   : > { %v8395_v62 = vpop.f32.mrb[109].mxu0  ;;  %v8423_v53 = vpop.f32.mrb[109].mxu1 }
 0x2ac   : > { %v8396_v63 = vadd.f32 %v8395_v62, %v8394_v36  ;;  %v8397_v42 = vpop.f32.mrb[110].mxu0  ;;  %v8424_v43 = vadd.f32 %v8423_v53, %v8422_v24  ;;  %v8425_v5 = vpop.f32.mrb[110].mxu1 }
 0x2ad   : > { %v8398_v29 = vpop.f32.mrb[111].mxu0  ;;  %v8426_v51 = vpop.f32.mrb[111].mxu1 }
 0x2ae   : > { %v6690_v37 = vadd.f32 %v8396_v63, %v6641_v48  ;;  %v8399_v1 = vadd.f32 %v8398_v29, %v8397_v42  ;;  %v8427_v11 = vadd.f32 %v8426_v51, %v8425_v5 }
 0x2b0   : > { %v6693_v57 = vadd.f32 %v8399_v1, %v6644_v55  ;;  %v6739_v2 = vadd.f32 %v8424_v43, %v6690_v37 }
 0x2b2   : > { %v6742_v7 = vadd.f32 %v8427_v11, %v6693_v57 }
 0x2c2   : > { %v8444_v41 = vpop.f32.mrb[112].mxu0  ;;  %v8472_v20 = vpop.f32.mrb[112].mxu1 }
 0x2c3   : > { %v8445_v27 = vpop.f32.mrb[113].mxu0  ;;  %v8473_v50 = vpop.f32.mrb[113].mxu1 }
 0x2c4   : > { %v8446_v33 = vadd.f32 %v8445_v27, %v8444_v41  ;;  %v8447_v17 = vpop.f32.mrb[114].mxu0  ;;  %v8474_v40 = vadd.f32 %v8473_v50, %v8472_v20  ;;  %v8475_v13 = vpop.f32.mrb[114].mxu1 }
 0x2c5   : > { %v8448_v38 = vpop.f32.mrb[115].mxu0  ;;  %v8476_v19 = vpop.f32.mrb[115].mxu1 }
 0x2c6   : > { %v6780_v30 = vadd.f32 %v8446_v33, %v6731_v35  ;;  %v8449_v6 = vadd.f32 %v8448_v38, %v8447_v17  ;;  %v8477_v56 = vadd.f32 %v8476_v19, %v8475_v13 }
 0x2c8   : > { %v6829_v44 = vadd.f32 %v8474_v40, %v6780_v30  ;;  %v6783_v18 = vadd.f32 %v8449_v6, %v6734_v28 }
 0x2ca   : > { %v6832_v32 = vadd.f32 %v8477_v56, %v6783_v18  ;;  %v8450_v60 = vpop.f32.mrb[116].mxu0  ;;  %v8478_v15 = vpop.f32.mrb[116].mxu1 }
 0x2cb   : > { %v8451_v34 = vpop.f32.mrb[117].mxu0  ;;  %v8479_v31 = vpop.f32.mrb[117].mxu1 }
 0x2cc   : > { %v8452_v61 = vadd.f32 %v8451_v34, %v8450_v60  ;;  %v8453_v16 = vpop.f32.mrb[118].mxu0  ;;  %v8480_v47 = vadd.f32 %v8479_v31, %v8478_v15  ;;  %v8481_v25 = vpop.f32.mrb[118].mxu1 }
 0x2cd   : > { %v8454_v22 = vpop.f32.mrb[119].mxu0  ;;  %v8482_v21 = vpop.f32.mrb[119].mxu1 }
 0x2ce   : > { %v6788_v45 = vadd.f32 %v8452_v61, %v6739_v2  ;;  %v8455_v9 = vadd.f32 %v8454_v22, %v8453_v16  ;;  %v8483_v4 = vadd.f32 %v8482_v21, %v8481_v25 }
 0x2d0   : > { %v6791_v48 = vadd.f32 %v8455_v9, %v6742_v7  ;;  %v6837_v59 = vadd.f32 %v8480_v47, %v6788_v45 }
 0x2d2   : > { %v6840_v55 = vadd.f32 %v8483_v4, %v6791_v48 }
 0x2e4   : > { %v8500_v49 = vpop.f32.mrb[120].mxu0 }
 0x2e5   : > { %v8501_v14 = vpop.f32.mrb[121].mxu0 }
 0x2e6   : > { %v8528_v26 = vpop.f32.mrb[120].mxu1  ;;  %v8502_v10 = vadd.f32 %v8501_v14, %v8500_v49  ;;  %v8503_v39 = vpop.f32.mrb[122].mxu0 }
 0x2e7   : > { %v8529_v0 = vpop.f32.mrb[121].mxu1  ;;  %v8504_v58 = vpop.f32.mrb[123].mxu0 }
 0x2e8   : > { %v6878_v8 = vadd.f32 %v8502_v10, %v6829_v44  ;;  %v8530_v46 = vadd.f32 %v8529_v0, %v8528_v26  ;;  %v8531_v23 = vpop.f32.mrb[122].mxu1  ;;  %v8505_v12 = vadd.f32 %v8504_v58, %v8503_v39 }
 0x2e9   : > { %v8532_v3 = vpop.f32.mrb[123].mxu1 }
 0x2ea   : > { %v6927_v52 = vadd.f32 %v8530_v46, %v6878_v8  ;;  %v6881_v35 = vadd.f32 %v8505_v12, %v6832_v32  ;;  %v8533_v54 = vadd.f32 %v8532_v3, %v8531_v23 }
 0x2ec   : > { %6941 = vst [vmem:[%s180_s29] sm:$0xff] %v6927_v52  ;;  %v6930_v28 = vadd.f32 %v8533_v54, %v6881_v35  ;;  %v8506_v36 = vpop.f32.mrb[124].mxu0 }
 0x2ed   : > { %v8507_v62 = vpop.f32.mrb[125].mxu0 }
 0x2ee   : > { %6942 = vst [vmem:[%s180_s29 + $0x8] sm:$0xff] %v6930_v28  ;;  %v8534_v63 = vpop.f32.mrb[124].mxu1  ;;  %v8508_v42 = vadd.f32 %v8507_v62, %v8506_v36  ;;  %v8509_v24 = vpop.f32.mrb[126].mxu0 }
 0x2ef   : > { %v8535_v29 = vpop.f32.mrb[125].mxu1  ;;  %v8510_v37 = vpop.f32.mrb[127].mxu0 }
 0x2f0   : > { %v6886_v1 = vadd.f32 %v8508_v42, %v6837_v59  ;;  %v8536_v53 = vadd.f32 %v8535_v29, %v8534_v63  ;;  %v8537_v43 = vpop.f32.mrb[126].mxu1  ;;  %v8511_v5 = vadd.f32 %v8510_v37, %v8509_v24 }
 0x2f1   : > { %v8538_v57 = vpop.f32.mrb[127].mxu1 }
 0x2f2   : > { %v6935_v51 = vadd.f32 %v8536_v53, %v6886_v1  ;;  %v6889_v2 = vadd.f32 %v8511_v5, %v6840_v55  ;;  %v8539_v11 = vadd.f32 %v8538_v57, %v8537_v43 }
 0x2f4   : > { %6943 = vst [vmem:[%s180_s29 + $0x10] sm:$0xff] %v6935_v51  ;;  %v6938_v7 = vadd.f32 %v8539_v11, %v6889_v2 }
 0x2f6   : > { %6944 = vst [vmem:[%s180_s29 + $0x18] sm:$0xff] %v6938_v7 }
 0x2f7 PF: > { %s12_s11 = sadd.s32 1, %s9190_s11   ;;  %s11650_s9 = smov %s9186_s10 }
 0x2f8   : > { %p9_p5 = scmp.ge.s32.totalorder %s12_s11, 4   ;;  %s11651_s10 = smov %s11653_s12 }
 0x2fa   :  { %11 = sbr.rel (!%p9_p5) target bundleno = 2 (0x2), region = 61 }

</bundles_post_ra>
